<compile_context>
chip_gen: v6e
topology: v6e:2x2x1
jax: 0.10.0
libtpu: 0.0.40
codegen_flags: <defaults>
</compile_context>

<pallas_src>
from functools import partial

import numpy as np
import jax
import jax.numpy as jnp
from jax.experimental import pallas as pl
from jax.experimental.pallas import tpu as pltpu


# ----------------------------------------------------------------------------
# Kernel 1/2: fused conv(3x3, pad=1) + BatchNorm(batch stats) + ReLU + MaxPool(2)
# Input  : (B*(H+2), (W+2)*Cin)  bf16, row-major padded NHWC
# Weight : (3, (W+2)*Cin, W*Cout) bf16 banded (one slab per kernel row dy)
# Output : (B*H/2, W/2*Cout)      bf16, row-major (b, h, (w, c))
# ----------------------------------------------------------------------------
def _conv_bn_relu_pool_kernel(xp_ref, w_ref, gamma_ref, beta_ref, o_ref,
                              *, B, H, W, Cin, Cout, eps):
    WCi = (W + 2) * Cin
    WCo = W * Cout
    xp = xp_ref[...].reshape(B, H + 2, WCi)             # leading-dim split only

    # Conv as 3 banded MXU matmuls (one per kernel row); N = W*Cout lanes (dense).
    y = jnp.zeros((B * H, WCo), jnp.float32)
    for dy in range(3):
        rows = xp[:, dy:dy + H, :].reshape(B * H, WCi)  # (B*H, (W+2)*Cin) bf16
        y = y + jnp.dot(rows, w_ref[dy], preferred_element_type=jnp.float32)

    # Training-mode BatchNorm, one-pass statistics (per channel, over B*H*W positions).
    n = float(B * H * W)
    s = jnp.sum(y, axis=0, keepdims=True)               # (1, W*Cout)
    ss = jnp.sum(y * y, axis=0, keepdims=True)          # (1, W*Cout)
    csum = jnp.zeros((1, Cout), jnp.float32)
    csq = jnp.zeros((1, Cout), jnp.float32)
    for w in range(W):                                  # fold the W lane-groups -> per-channel
        csum = csum + s[:, w * Cout:(w + 1) * Cout]
        csq = csq + ss[:, w * Cout:(w + 1) * Cout]
    mean = csum / n
    var = jnp.maximum(csq / n - mean * mean, 0.0)       # biased variance, clamped
    scale = gamma_ref[...] * jax.lax.rsqrt(var + eps)   # (1, Cout)
    shift = beta_ref[...] - mean * scale
    scale_f = jnp.tile(scale, (1, W))                   # (1, W*Cout)
    shift_f = jnp.tile(shift, (1, W))
    f = jnp.maximum(y * scale_f + shift_f, 0.0)         # BN + ReLU, (B*H, W*Cout)

    # 2x2 max pool.
    Hh, Wh = H // 2, W // 2
    hp = jnp.max(f.reshape(B * Hh, 2, WCo), axis=1)     # height pool, lane dim unchanged
    pooled = jnp.concatenate(
        [jnp.maximum(hp[:, (2 * wo) * Cout:(2 * wo + 1) * Cout],
                     hp[:, (2 * wo + 1) * Cout:(2 * wo + 2) * Cout])
         for wo in range(Wh)], axis=1)                  # width pool, (B*Hh, Wh*Cout)
    o_ref[...] = pooled.astype(o_ref.dtype)


def conv_bn_relu_pool(x_nhwc, w_band, gamma, beta, *, eps=1e-5):
    B, H, W, Cin = x_nhwc.shape
    Cout = gamma.shape[0]
    Hh, Wh = H // 2, W // 2
    # Pad spatially and fold to a lane-dense 2D slab in the wrapper (cheap XLA ops).
    xp = jnp.pad(x_nhwc, ((0, 0), (1, 1), (1, 1), (0, 0))).astype(jnp.bfloat16)
    xp = xp.reshape(B * (H + 2), (W + 2) * Cin)
    kern = partial(_conv_bn_relu_pool_kernel,
                   B=B, H=H, W=W, Cin=Cin, Cout=Cout, eps=eps)
    return pl.pallas_call(
        kern,
        grid=(1,),
        in_specs=[
            pl.BlockSpec((B * (H + 2), (W + 2) * Cin), lambda i: (0, 0)),
            pl.BlockSpec((3, (W + 2) * Cin, W * Cout), lambda i: (0, 0, 0)),
            pl.BlockSpec((1, Cout), lambda i: (0, 0)),
            pl.BlockSpec((1, Cout), lambda i: (0, 0)),
        ],
        out_specs=pl.BlockSpec((B * Hh, Wh * Cout), lambda i: (0, 0)),
        out_shape=jax.ShapeDtypeStruct((B * Hh, Wh * Cout), jnp.bfloat16),
        compiler_params=pltpu.CompilerParams(
            dimension_semantics=("arbitrary",),
            vmem_limit_bytes=32 * 1024 * 1024),
    )(xp, w_band, gamma[None, :].astype(jnp.float32), beta[None, :].astype(jnp.float32))


# ----------------------------------------------------------------------------
# Kernel 3: whole-batch Linear  (B, Fin) @ (Fin, 128) + bias  (Fout padded to 128).
# ----------------------------------------------------------------------------
def _linear_kernel(x_ref, w_ref, b_ref, o_ref):
    o_ref[...] = (jnp.dot(x_ref[...], w_ref[...], preferred_element_type=jnp.float32)
                  + b_ref[...])


def linear(x, wT, b):
    B, Fin = x.shape
    Fout = wT.shape[1]
    return pl.pallas_call(
        _linear_kernel,
        grid=(1,),
        in_specs=[
            pl.BlockSpec((B, Fin), lambda i: (0, 0)),
            pl.BlockSpec((Fin, Fout), lambda i: (0, 0)),
            pl.BlockSpec((1, Fout), lambda i: (0, 0)),
        ],
        out_specs=pl.BlockSpec((B, Fout), lambda i: (0, 0)),
        out_shape=jax.ShapeDtypeStruct((B, Fout), jnp.float32),
        compiler_params=pltpu.CompilerParams(dimension_semantics=("arbitrary",)),
    )(x, wT, b[None, :])


# ----------------------------------------------------------------------------
# Parameter init (shapes from the PyTorch __init__), pre-laid out for the kernels.
# ----------------------------------------------------------------------------
def _banded_conv_weight(w_oihw, W_out):
    """Torch OIHW (Cout, Cin, 3, 3) -> banded (3, (W_out+2)*Cin, W_out*Cout)."""
    Cout, Cin, KH, KW = w_oihw.shape
    T = np.zeros((KH, (W_out + 2) * Cin, W_out * Cout), np.float32)
    for dy in range(KH):
        for dx in range(KW):
            blk = w_oihw[:, :, dy, dx].T                 # (Cin, Cout)
            for w in range(W_out):
                T[dy, (w + dx) * Cin:(w + dx + 1) * Cin,
                  w * Cout:(w + 1) * Cout] = blk
    return T


def init_params(key):
    ks = jax.random.split(key, 6)

    def kaiming(k, shape, fan_in):
        return np.asarray(jax.random.normal(k, shape, jnp.float32)) * (2.0 / fan_in) ** 0.5

    p = {}
    w1 = kaiming(ks[0], (32, 3, 3, 3), 3 * 9)
    p['w1'] = jnp.asarray(_banded_conv_weight(w1, 32), jnp.bfloat16)      # (3, 102, 1024)
    p['bn1_w'] = jnp.ones((32,), jnp.float32)
    p['bn1_b'] = jnp.zeros((32,), jnp.float32)

    w2 = kaiming(ks[2], (64, 32, 3, 3), 32 * 9)
    p['w2'] = jnp.asarray(_banded_conv_weight(w2, 16), jnp.bfloat16)      # (3, 576, 1024)
    p['bn2_w'] = jnp.ones((64,), jnp.float32)
    p['bn2_b'] = jnp.zeros((64,), jnp.float32)

    # Conv biases are omitted: exactly cancelled by training-mode BatchNorm.

    wfc = kaiming(ks[4], (10, 64 * 8 * 8), 64 * 8 * 8)                    # torch (out, c*h*w)
    # Fold the NCHW flatten order into the weight rows -> (h, w, c) / NHWC order,
    # and zero-pad the output dim 10 -> 128 for a dense lane store.
    wT = np.transpose(wfc.reshape(10, 64, 8, 8), (2, 3, 1, 0)).reshape(64 * 8 * 8, 10)
    wT_pad = np.zeros((64 * 8 * 8, 128), np.float32)
    wT_pad[:, :10] = wT
    p['fc_wT'] = jnp.asarray(wT_pad, jnp.bfloat16)
    bfc = 0.01 * np.asarray(jax.random.normal(ks[5], (10,), jnp.float32))
    b_pad = np.zeros((128,), np.float32)
    b_pad[:10] = bfc
    p['fc_b'] = jnp.asarray(b_pad, jnp.float32)
    return p


# ----------------------------------------------------------------------------
# Full forward pass (input in PyTorch NCHW layout).
# ----------------------------------------------------------------------------
def simple_cnn_forward(x_nchw, p):
    B = x_nchw.shape[0]
    x = jnp.transpose(x_nchw, (0, 2, 3, 1)).astype(jnp.bfloat16)          # NCHW -> NHWC

    a1 = conv_bn_relu_pool(x, p['w1'], p['bn1_w'], p['bn1_b'])            # (B*16, 512)
    a1 = a1.reshape(B, 16, 16, 32)
    a2 = conv_bn_relu_pool(a1, p['w2'], p['bn2_w'], p['bn2_b'])           # (B*8, 512)

    feat = a2.reshape(B, 64 * 8 * 8)           # row-major (h, w, c) -> matches fc_wT rows
    logits = linear(feat, p['fc_wT'], p['fc_b'])                          # (B, 128) f32
    return logits[:, :10]


if __name__ == "__main__":
    key = jax.random.PRNGKey(0)
    kx, kp = jax.random.split(key)
    B = 2
    # Spatial size must be 32x32 so the flattened features match fc's 64*8*8.
    x = jax.random.normal(kx, (B, 3, 32, 32), jnp.float32)   # NCHW, like PyTorch
    params = init_params(kp)
    out = simple_cnn_forward(x, params)
    out = jax.block_until_ready(out)
    assert out.shape == (B, 10) and out.dtype == jnp.float32
    assert bool(jnp.all(jnp.isfinite(out)))
    print("KERNEL_OK")
</pallas_src>

<mosaic_0001>
module attributes {stable_mosaic.version = 11 : i64} {
  func.func @_conv_bn_relu_pool_kernel(%arg0: i32, %arg1: memref<68x102xbf16, #tpu.memory_space<vmem>>, %arg2: memref<3x102x1024xbf16, #tpu.memory_space<vmem>>, %arg3: memref<1x32xf32, #tpu.memory_space<vmem>>, %arg4: memref<1x32xf32, #tpu.memory_space<vmem>>, %arg5: memref<32x512xbf16, #tpu.memory_space<vmem>>) attributes {dimension_semantics = [#tpu.dimension_semantics<arbitrary>], iteration_bounds = array<i64: 1>, scalar_prefetch = 0 : i64, scratch_operands = 0 : i64, tpu.core_type = #tpu.core_type<tc>, window_params = [{pipeline_mode = #tpu.pipeline_mode<synchronous>, transform_indices = @transform_0, window_bounds = array<i64: 68, 102>}, {pipeline_mode = #tpu.pipeline_mode<synchronous>, transform_indices = @transform_1, window_bounds = array<i64: 3, 102, 1024>}, {pipeline_mode = #tpu.pipeline_mode<synchronous>, transform_indices = @transform_2, window_bounds = array<i64: 1, 32>}, {pipeline_mode = #tpu.pipeline_mode<synchronous>, transform_indices = @transform_3, window_bounds = array<i64: 1, 32>}, {pipeline_mode = #tpu.pipeline_mode<synchronous>, transform_indices = @transform_4, window_bounds = array<i64: 32, 512>}]} {
    %c0 = arith.constant 0 : index
    %c0_0 = arith.constant 0 : index
    %0 = vector.load %arg1[%c0, %c0_0] : memref<68x102xbf16, #tpu.memory_space<vmem>>, vector<68x102xbf16>
    %1 = vector.shape_cast %0 : vector<68x102xbf16> to vector<2x34x102xbf16>
    %cst = arith.constant 0.000000e+00 : f32
    %2 = vector.broadcast %cst : f32 to vector<64x1024xf32>
    %3 = vector.extract_strided_slice %1 {offsets = [0, 0, 0], sizes = [2, 32, 102], strides = [1, 1, 1]} : vector<2x34x102xbf16> to vector<2x32x102xbf16>
    %4 = vector.shape_cast %3 : vector<2x32x102xbf16> to vector<64x102xbf16>
    %c0_1 = arith.constant 0 : index
    %c0_2 = arith.constant 0 : index
    %c0_3 = arith.constant 0 : index
    %5 = vector.load %arg2[%c0_1, %c0_2, %c0_3] : memref<3x102x1024xbf16, #tpu.memory_space<vmem>>, vector<1x102x1024xbf16>
    %6 = vector.shape_cast %5 : vector<1x102x1024xbf16> to vector<102x1024xbf16>
    %cst_4 = arith.constant dense<0.000000e+00> : vector<64x1024xf32>
    %7 = tpu.matmul %4, %6, %cst_4 {dimension_numbers = #tpu.dot_dimension_numbers<[1], [0], [0], [1], [0, 0, 1, 1], [], []>} : vector<64x102xbf16>, vector<102x1024xbf16>, vector<64x1024xf32> -> vector<64x1024xf32>
    %8 = arith.addf %2, %7 : vector<64x1024xf32>
    %9 = vector.extract_strided_slice %1 {offsets = [0, 1, 0], sizes = [2, 32, 102], strides = [1, 1, 1]} : vector<2x34x102xbf16> to vector<2x32x102xbf16>
    %10 = vector.shape_cast %9 : vector<2x32x102xbf16> to vector<64x102xbf16>
    %c1 = arith.constant 1 : index
    %c0_5 = arith.constant 0 : index
    %c0_6 = arith.constant 0 : index
    %11 = vector.load %arg2[%c1, %c0_5, %c0_6] : memref<3x102x1024xbf16, #tpu.memory_space<vmem>>, vector<1x102x1024xbf16>
    %12 = vector.shape_cast %11 : vector<1x102x1024xbf16> to vector<102x1024xbf16>
    %cst_7 = arith.constant dense<0.000000e+00> : vector<64x1024xf32>
    %13 = tpu.matmul %10, %12, %cst_7 {dimension_numbers = #tpu.dot_dimension_numbers<[1], [0], [0], [1], [0, 0, 1, 1], [], []>} : vector<64x102xbf16>, vector<102x1024xbf16>, vector<64x1024xf32> -> vector<64x1024xf32>
    %14 = arith.addf %8, %13 : vector<64x1024xf32>
    %15 = vector.extract_strided_slice %1 {offsets = [0, 2, 0], sizes = [2, 32, 102], strides = [1, 1, 1]} : vector<2x34x102xbf16> to vector<2x32x102xbf16>
    %16 = vector.shape_cast %15 : vector<2x32x102xbf16> to vector<64x102xbf16>
    %c2 = arith.constant 2 : index
    %c0_8 = arith.constant 0 : index
    %c0_9 = arith.constant 0 : index
    %17 = vector.load %arg2[%c2, %c0_8, %c0_9] : memref<3x102x1024xbf16, #tpu.memory_space<vmem>>, vector<1x102x1024xbf16>
    %18 = vector.shape_cast %17 : vector<1x102x1024xbf16> to vector<102x1024xbf16>
    %cst_10 = arith.constant dense<0.000000e+00> : vector<64x1024xf32>
    %19 = tpu.matmul %16, %18, %cst_10 {dimension_numbers = #tpu.dot_dimension_numbers<[1], [0], [0], [1], [0, 0, 1, 1], [], []>} : vector<64x102xbf16>, vector<102x1024xbf16>, vector<64x1024xf32> -> vector<64x1024xf32>
    %20 = arith.addf %14, %19 : vector<64x1024xf32>
    %cst_11 = arith.constant dense<0.000000e+00> : vector<1024xf32>
    %21 = vector.multi_reduction <add>, %20, %cst_11 [0] : vector<64x1024xf32> to vector<1024xf32>
    %22 = vector.shape_cast %21 : vector<1024xf32> to vector<1x1024xf32>
    %23 = arith.mulf %20, %20 : vector<64x1024xf32>
    %cst_12 = arith.constant dense<0.000000e+00> : vector<1024xf32>
    %24 = vector.multi_reduction <add>, %23, %cst_12 [0] : vector<64x1024xf32> to vector<1024xf32>
    %25 = vector.shape_cast %24 : vector<1024xf32> to vector<1x1024xf32>
    %cst_13 = arith.constant 0.000000e+00 : f32
    %26 = vector.broadcast %cst_13 : f32 to vector<1x32xf32>
    %cst_14 = arith.constant 0.000000e+00 : f32
    %27 = vector.broadcast %cst_14 : f32 to vector<1x32xf32>
    %28 = vector.extract_strided_slice %22 {offsets = [0, 0], sizes = [1, 32], strides = [1, 1]} : vector<1x1024xf32> to vector<1x32xf32>
    %29 = arith.addf %26, %28 : vector<1x32xf32>
    %30 = vector.extract_strided_slice %25 {offsets = [0, 0], sizes = [1, 32], strides = [1, 1]} : vector<1x1024xf32> to vector<1x32xf32>
    %31 = arith.addf %27, %30 : vector<1x32xf32>
    %32 = vector.extract_strided_slice %22 {offsets = [0, 32], sizes = [1, 32], strides = [1, 1]} : vector<1x1024xf32> to vector<1x32xf32>
    %33 = arith.addf %29, %32 : vector<1x32xf32>
    %34 = vector.extract_strided_slice %25 {offsets = [0, 32], sizes = [1, 32], strides = [1, 1]} : vector<1x1024xf32> to vector<1x32xf32>
    %35 = arith.addf %31, %34 : vector<1x32xf32>
    %36 = vector.extract_strided_slice %22 {offsets = [0, 64], sizes = [1, 32], strides = [1, 1]} : vector<1x1024xf32> to vector<1x32xf32>
    %37 = arith.addf %33, %36 : vector<1x32xf32>
    %38 = vector.extract_strided_slice %25 {offsets = [0, 64], sizes = [1, 32], strides = [1, 1]} : vector<1x1024xf32> to vector<1x32xf32>
    %39 = arith.addf %35, %38 : vector<1x32xf32>
    %40 = vector.extract_strided_slice %22 {offsets = [0, 96], sizes = [1, 32], strides = [1, 1]} : vector<1x1024xf32> to vector<1x32xf32>
    %41 = arith.addf %37, %40 : vector<1x32xf32>
    %42 = vector.extract_strided_slice %25 {offsets = [0, 96], sizes = [1, 32], strides = [1, 1]} : vector<1x1024xf32> to vector<1x32xf32>
    %43 = arith.addf %39, %42 : vector<1x32xf32>
    %44 = vector.extract_strided_slice %22 {offsets = [0, 128], sizes = [1, 32], strides = [1, 1]} : vector<1x1024xf32> to vector<1x32xf32>
    %45 = arith.addf %41, %44 : vector<1x32xf32>
    %46 = vector.extract_strided_slice %25 {offsets = [0, 128], sizes = [1, 32], strides = [1, 1]} : vector<1x1024xf32> to vector<1x32xf32>
    %47 = arith.addf %43, %46 : vector<1x32xf32>
    %48 = vector.extract_strided_slice %22 {offsets = [0, 160], sizes = [1, 32], strides = [1, 1]} : vector<1x1024xf32> to vector<1x32xf32>
    %49 = arith.addf %45, %48 : vector<1x32xf32>
    %50 = vector.extract_strided_slice %25 {offsets = [0, 160], sizes = [1, 32], strides = [1, 1]} : vector<1x1024xf32> to vector<1x32xf32>
    %51 = arith.addf %47, %50 : vector<1x32xf32>
    %52 = vector.extract_strided_slice %22 {offsets = [0, 192], sizes = [1, 32], strides = [1, 1]} : vector<1x1024xf32> to vector<1x32xf32>
    %53 = arith.addf %49, %52 : vector<1x32xf32>
    %54 = vector.extract_strided_slice %25 {offsets = [0, 192], sizes = [1, 32], strides = [1, 1]} : vector<1x1024xf32> to vector<1x32xf32>
    %55 = arith.addf %51, %54 : vector<1x32xf32>
    %56 = vector.extract_strided_slice %22 {offsets = [0, 224], sizes = [1, 32], strides = [1, 1]} : vector<1x1024xf32> to vector<1x32xf32>
    %57 = arith.addf %53, %56 : vector<1x32xf32>
    %58 = vector.extract_strided_slice %25 {offsets = [0, 224], sizes = [1, 32], strides = [1, 1]} : vector<1x1024xf32> to vector<1x32xf32>
    %59 = arith.addf %55, %58 : vector<1x32xf32>
    %60 = vector.extract_strided_slice %22 {offsets = [0, 256], sizes = [1, 32], strides = [1, 1]} : vector<1x1024xf32> to vector<1x32xf32>
    %61 = arith.addf %57, %60 : vector<1x32xf32>
    %62 = vector.extract_strided_slice %25 {offsets = [0, 256], sizes = [1, 32], strides = [1, 1]} : vector<1x1024xf32> to vector<1x32xf32>
    %63 = arith.addf %59, %62 : vector<1x32xf32>
    %64 = vector.extract_strided_slice %22 {offsets = [0, 288], sizes = [1, 32], strides = [1, 1]} : vector<1x1024xf32> to vector<1x32xf32>
    %65 = arith.addf %61, %64 : vector<1x32xf32>
    %66 = vector.extract_strided_slice %25 {offsets = [0, 288], sizes = [1, 32], strides = [1, 1]} : vector<1x1024xf32> to vector<1x32xf32>
    %67 = arith.addf %63, %66 : vector<1x32xf32>
    %68 = vector.extract_strided_slice %22 {offsets = [0, 320], sizes = [1, 32], strides = [1, 1]} : vector<1x1024xf32> to vector<1x32xf32>
    %69 = arith.addf %65, %68 : vector<1x32xf32>
    %70 = vector.extract_strided_slice %25 {offsets = [0, 320], sizes = [1, 32], strides = [1, 1]} : vector<1x1024xf32> to vector<1x32xf32>
    %71 = arith.addf %67, %70 : vector<1x32xf32>
    %72 = vector.extract_strided_slice %22 {offsets = [0, 352], sizes = [1, 32], strides = [1, 1]} : vector<1x1024xf32> to vector<1x32xf32>
    %73 = arith.addf %69, %72 : vector<1x32xf32>
    %74 = vector.extract_strided_slice %25 {offsets = [0, 352], sizes = [1, 32], strides = [1, 1]} : vector<1x1024xf32> to vector<1x32xf32>
    %75 = arith.addf %71, %74 : vector<1x32xf32>
    %76 = vector.extract_strided_slice %22 {offsets = [0, 384], sizes = [1, 32], strides = [1, 1]} : vector<1x1024xf32> to vector<1x32xf32>
    %77 = arith.addf %73, %76 : vector<1x32xf32>
    %78 = vector.extract_strided_slice %25 {offsets = [0, 384], sizes = [1, 32], strides = [1, 1]} : vector<1x1024xf32> to vector<1x32xf32>
    %79 = arith.addf %75, %78 : vector<1x32xf32>
    %80 = vector.extract_strided_slice %22 {offsets = [0, 416], sizes = [1, 32], strides = [1, 1]} : vector<1x1024xf32> to vector<1x32xf32>
    %81 = arith.addf %77, %80 : vector<1x32xf32>
    %82 = vector.extract_strided_slice %25 {offsets = [0, 416], sizes = [1, 32], strides = [1, 1]} : vector<1x1024xf32> to vector<1x32xf32>
    %83 = arith.addf %79, %82 : vector<1x32xf32>
    %84 = vector.extract_strided_slice %22 {offsets = [0, 448], sizes = [1, 32], strides = [1, 1]} : vector<1x1024xf32> to vector<1x32xf32>
    %85 = arith.addf %81, %84 : vector<1x32xf32>
    %86 = vector.extract_strided_slice %25 {offsets = [0, 448], sizes = [1, 32], strides = [1, 1]} : vector<1x1024xf32> to vector<1x32xf32>
    %87 = arith.addf %83, %86 : vector<1x32xf32>
    %88 = vector.extract_strided_slice %22 {offsets = [0, 480], sizes = [1, 32], strides = [1, 1]} : vector<1x1024xf32> to vector<1x32xf32>
    %89 = arith.addf %85, %88 : vector<1x32xf32>
    %90 = vector.extract_strided_slice %25 {offsets = [0, 480], sizes = [1, 32], strides = [1, 1]} : vector<1x1024xf32> to vector<1x32xf32>
    %91 = arith.addf %87, %90 : vector<1x32xf32>
    %92 = vector.extract_strided_slice %22 {offsets = [0, 512], sizes = [1, 32], strides = [1, 1]} : vector<1x1024xf32> to vector<1x32xf32>
    %93 = arith.addf %89, %92 : vector<1x32xf32>
    %94 = vector.extract_strided_slice %25 {offsets = [0, 512], sizes = [1, 32], strides = [1, 1]} : vector<1x1024xf32> to vector<1x32xf32>
    %95 = arith.addf %91, %94 : vector<1x32xf32>
    %96 = vector.extract_strided_slice %22 {offsets = [0, 544], sizes = [1, 32], strides = [1, 1]} : vector<1x1024xf32> to vector<1x32xf32>
    %97 = arith.addf %93, %96 : vector<1x32xf32>
    %98 = vector.extract_strided_slice %25 {offsets = [0, 544], sizes = [1, 32], strides = [1, 1]} : vector<1x1024xf32> to vector<1x32xf32>
    %99 = arith.addf %95, %98 : vector<1x32xf32>
    %100 = vector.extract_strided_slice %22 {offsets = [0, 576], sizes = [1, 32], strides = [1, 1]} : vector<1x1024xf32> to vector<1x32xf32>
    %101 = arith.addf %97, %100 : vector<1x32xf32>
    %102 = vector.extract_strided_slice %25 {offsets = [0, 576], sizes = [1, 32], strides = [1, 1]} : vector<1x1024xf32> to vector<1x32xf32>
    %103 = arith.addf %99, %102 : vector<1x32xf32>
    %104 = vector.extract_strided_slice %22 {offsets = [0, 608], sizes = [1, 32], strides = [1, 1]} : vector<1x1024xf32> to vector<1x32xf32>
    %105 = arith.addf %101, %104 : vector<1x32xf32>
    %106 = vector.extract_strided_slice %25 {offsets = [0, 608], sizes = [1, 32], strides = [1, 1]} : vector<1x1024xf32> to vector<1x32xf32>
    %107 = arith.addf %103, %106 : vector<1x32xf32>
    %108 = vector.extract_strided_slice %22 {offsets = [0, 640], sizes = [1, 32], strides = [1, 1]} : vector<1x1024xf32> to vector<1x32xf32>
    %109 = arith.addf %105, %108 : vector<1x32xf32>
    %110 = vector.extract_strided_slice %25 {offsets = [0, 640], sizes = [1, 32], strides = [1, 1]} : vector<1x1024xf32> to vector<1x32xf32>
    %111 = arith.addf %107, %110 : vector<1x32xf32>
    %112 = vector.extract_strided_slice %22 {offsets = [0, 672], sizes = [1, 32], strides = [1, 1]} : vector<1x1024xf32> to vector<1x32xf32>
    %113 = arith.addf %109, %112 : vector<1x32xf32>
    %114 = vector.extract_strided_slice %25 {offsets = [0, 672], sizes = [1, 32], strides = [1, 1]} : vector<1x1024xf32> to vector<1x32xf32>
    %115 = arith.addf %111, %114 : vector<1x32xf32>
    %116 = vector.extract_strided_slice %22 {offsets = [0, 704], sizes = [1, 32], strides = [1, 1]} : vector<1x1024xf32> to vector<1x32xf32>
    %117 = arith.addf %113, %116 : vector<1x32xf32>
    %118 = vector.extract_strided_slice %25 {offsets = [0, 704], sizes = [1, 32], strides = [1, 1]} : vector<1x1024xf32> to vector<1x32xf32>
    %119 = arith.addf %115, %118 : vector<1x32xf32>
    %120 = vector.extract_strided_slice %22 {offsets = [0, 736], sizes = [1, 32], strides = [1, 1]} : vector<1x1024xf32> to vector<1x32xf32>
    %121 = arith.addf %117, %120 : vector<1x32xf32>
    %122 = vector.extract_strided_slice %25 {offsets = [0, 736], sizes = [1, 32], strides = [1, 1]} : vector<1x1024xf32> to vector<1x32xf32>
    %123 = arith.addf %119, %122 : vector<1x32xf32>
    %124 = vector.extract_strided_slice %22 {offsets = [0, 768], sizes = [1, 32], strides = [1, 1]} : vector<1x1024xf32> to vector<1x32xf32>
    %125 = arith.addf %121, %124 : vector<1x32xf32>
    %126 = vector.extract_strided_slice %25 {offsets = [0, 768], sizes = [1, 32], strides = [1, 1]} : vector<1x1024xf32> to vector<1x32xf32>
    %127 = arith.addf %123, %126 : vector<1x32xf32>
    %128 = vector.extract_strided_slice %22 {offsets = [0, 800], sizes = [1, 32], strides = [1, 1]} : vector<1x1024xf32> to vector<1x32xf32>
    %129 = arith.addf %125, %128 : vector<1x32xf32>
    %130 = vector.extract_strided_slice %25 {offsets = [0, 800], sizes = [1, 32], strides = [1, 1]} : vector<1x1024xf32> to vector<1x32xf32>
    %131 = arith.addf %127, %130 : vector<1x32xf32>
    %132 = vector.extract_strided_slice %22 {offsets = [0, 832], sizes = [1, 32], strides = [1, 1]} : vector<1x1024xf32> to vector<1x32xf32>
    %133 = arith.addf %129, %132 : vector<1x32xf32>
    %134 = vector.extract_strided_slice %25 {offsets = [0, 832], sizes = [1, 32], strides = [1, 1]} : vector<1x1024xf32> to vector<1x32xf32>
    %135 = arith.addf %131, %134 : vector<1x32xf32>
    %136 = vector.extract_strided_slice %22 {offsets = [0, 864], sizes = [1, 32], strides = [1, 1]} : vector<1x1024xf32> to vector<1x32xf32>
    %137 = arith.addf %133, %136 : vector<1x32xf32>
    %138 = vector.extract_strided_slice %25 {offsets = [0, 864], sizes = [1, 32], strides = [1, 1]} : vector<1x1024xf32> to vector<1x32xf32>
    %139 = arith.addf %135, %138 : vector<1x32xf32>
    %140 = vector.extract_strided_slice %22 {offsets = [0, 896], sizes = [1, 32], strides = [1, 1]} : vector<1x1024xf32> to vector<1x32xf32>
    %141 = arith.addf %137, %140 : vector<1x32xf32>
    %142 = vector.extract_strided_slice %25 {offsets = [0, 896], sizes = [1, 32], strides = [1, 1]} : vector<1x1024xf32> to vector<1x32xf32>
    %143 = arith.addf %139, %142 : vector<1x32xf32>
    %144 = vector.extract_strided_slice %22 {offsets = [0, 928], sizes = [1, 32], strides = [1, 1]} : vector<1x1024xf32> to vector<1x32xf32>
    %145 = arith.addf %141, %144 : vector<1x32xf32>
    %146 = vector.extract_strided_slice %25 {offsets = [0, 928], sizes = [1, 32], strides = [1, 1]} : vector<1x1024xf32> to vector<1x32xf32>
    %147 = arith.addf %143, %146 : vector<1x32xf32>
    %148 = vector.extract_strided_slice %22 {offsets = [0, 960], sizes = [1, 32], strides = [1, 1]} : vector<1x1024xf32> to vector<1x32xf32>
    %149 = arith.addf %145, %148 : vector<1x32xf32>
    %150 = vector.extract_strided_slice %25 {offsets = [0, 960], sizes = [1, 32], strides = [1, 1]} : vector<1x1024xf32> to vector<1x32xf32>
    %151 = arith.addf %147, %150 : vector<1x32xf32>
    %152 = vector.extract_strided_slice %22 {offsets = [0, 992], sizes = [1, 32], strides = [1, 1]} : vector<1x1024xf32> to vector<1x32xf32>
    %153 = arith.addf %149, %152 : vector<1x32xf32>
    %154 = vector.extract_strided_slice %25 {offsets = [0, 992], sizes = [1, 32], strides = [1, 1]} : vector<1x1024xf32> to vector<1x32xf32>
    %155 = arith.addf %151, %154 : vector<1x32xf32>
    %cst_15 = arith.constant 2.048000e+03 : f32
    %156 = vector.broadcast %cst_15 : f32 to vector<1x32xf32>
    %157 = arith.divf %153, %156 : vector<1x32xf32>
    %cst_16 = arith.constant 2.048000e+03 : f32
    %158 = vector.broadcast %cst_16 : f32 to vector<1x32xf32>
    %159 = arith.divf %155, %158 : vector<1x32xf32>
    %160 = arith.mulf %157, %157 : vector<1x32xf32>
    %161 = arith.subf %159, %160 : vector<1x32xf32>
    %cst_17 = arith.constant 0.000000e+00 : f32
    %162 = vector.broadcast %cst_17 : f32 to vector<1x32xf32>
    %163 = arith.maximumf %161, %162 : vector<1x32xf32>
    %c0_18 = arith.constant 0 : index
    %c0_19 = arith.constant 0 : index
    %164 = vector.load %arg3[%c0_18, %c0_19] : memref<1x32xf32, #tpu.memory_space<vmem>>, vector<1x32xf32>
    %cst_20 = arith.constant 9.99999974E-6 : f32
    %165 = vector.broadcast %cst_20 : f32 to vector<1x32xf32>
    %166 = arith.addf %163, %165 : vector<1x32xf32>
    %167 = math.rsqrt %166 : vector<1x32xf32>
    %168 = arith.mulf %164, %167 : vector<1x32xf32>
    %c0_21 = arith.constant 0 : index
    %c0_22 = arith.constant 0 : index
    %169 = vector.load %arg4[%c0_21, %c0_22] : memref<1x32xf32, #tpu.memory_space<vmem>>, vector<1x32xf32>
    %170 = arith.mulf %157, %168 : vector<1x32xf32>
    %171 = arith.subf %169, %170 : vector<1x32xf32>
    %172 = tpu.concatenate %168, %168, %168, %168, %168, %168, %168, %168, %168, %168, %168, %168, %168, %168, %168, %168, %168, %168, %168, %168, %168, %168, %168, %168, %168, %168, %168, %168, %168, %168, %168, %168 in 1 : vector<1x32xf32>, vector<1x32xf32>, vector<1x32xf32>, vector<1x32xf32>, vector<1x32xf32>, vector<1x32xf32>, vector<1x32xf32>, vector<1x32xf32>, vector<1x32xf32>, vector<1x32xf32>, vector<1x32xf32>, vector<1x32xf32>, vector<1x32xf32>, vector<1x32xf32>, vector<1x32xf32>, vector<1x32xf32>, vector<1x32xf32>, vector<1x32xf32>, vector<1x32xf32>, vector<1x32xf32>, vector<1x32xf32>, vector<1x32xf32>, vector<1x32xf32>, vector<1x32xf32>, vector<1x32xf32>, vector<1x32xf32>, vector<1x32xf32>, vector<1x32xf32>, vector<1x32xf32>, vector<1x32xf32>, vector<1x32xf32>, vector<1x32xf32> -> vector<1x1024xf32>
    %173 = tpu.concatenate %171, %171, %171, %171, %171, %171, %171, %171, %171, %171, %171, %171, %171, %171, %171, %171, %171, %171, %171, %171, %171, %171, %171, %171, %171, %171, %171, %171, %171, %171, %171, %171 in 1 : vector<1x32xf32>, vector<1x32xf32>, vector<1x32xf32>, vector<1x32xf32>, vector<1x32xf32>, vector<1x32xf32>, vector<1x32xf32>, vector<1x32xf32>, vector<1x32xf32>, vector<1x32xf32>, vector<1x32xf32>, vector<1x32xf32>, vector<1x32xf32>, vector<1x32xf32>, vector<1x32xf32>, vector<1x32xf32>, vector<1x32xf32>, vector<1x32xf32>, vector<1x32xf32>, vector<1x32xf32>, vector<1x32xf32>, vector<1x32xf32>, vector<1x32xf32>, vector<1x32xf32>, vector<1x32xf32>, vector<1x32xf32>, vector<1x32xf32>, vector<1x32xf32>, vector<1x32xf32>, vector<1x32xf32>, vector<1x32xf32>, vector<1x32xf32> -> vector<1x1024xf32>
    %174 = vector.broadcast %172 : vector<1x1024xf32> to vector<64x1024xf32>
    %175 = arith.mulf %20, %174 : vector<64x1024xf32>
    %176 = vector.broadcast %173 : vector<1x1024xf32> to vector<64x1024xf32>
    %177 = arith.addf %175, %176 : vector<64x1024xf32>
    %cst_23 = arith.constant 0.000000e+00 : f32
    %178 = vector.broadcast %cst_23 : f32 to vector<64x1024xf32>
    %179 = arith.maximumf %177, %178 : vector<64x1024xf32>
    %180 = vector.shape_cast %179 : vector<64x1024xf32> to vector<32x2x1024xf32>
    %cst_24 = arith.constant dense<0xFF800000> : vector<32x1024xf32>
    %181 = vector.multi_reduction <maximumf>, %180, %cst_24 [1] : vector<32x2x1024xf32> to vector<32x1024xf32>
    %182 = vector.extract_strided_slice %181 {offsets = [0, 0], sizes = [32, 32], strides = [1, 1]} : vector<32x1024xf32> to vector<32x32xf32>
    %183 = vector.extract_strided_slice %181 {offsets = [0, 32], sizes = [32, 32], strides = [1, 1]} : vector<32x1024xf32> to vector<32x32xf32>
    %184 = arith.maximumf %182, %183 : vector<32x32xf32>
    %185 = vector.extract_strided_slice %181 {offsets = [0, 64], sizes = [32, 32], strides = [1, 1]} : vector<32x1024xf32> to vector<32x32xf32>
    %186 = vector.extract_strided_slice %181 {offsets = [0, 96], sizes = [32, 32], strides = [1, 1]} : vector<32x1024xf32> to vector<32x32xf32>
    %187 = arith.maximumf %185, %186 : vector<32x32xf32>
    %188 = vector.extract_strided_slice %181 {offsets = [0, 128], sizes = [32, 32], strides = [1, 1]} : vector<32x1024xf32> to vector<32x32xf32>
    %189 = vector.extract_strided_slice %181 {offsets = [0, 160], sizes = [32, 32], strides = [1, 1]} : vector<32x1024xf32> to vector<32x32xf32>
    %190 = arith.maximumf %188, %189 : vector<32x32xf32>
    %191 = vector.extract_strided_slice %181 {offsets = [0, 192], sizes = [32, 32], strides = [1, 1]} : vector<32x1024xf32> to vector<32x32xf32>
    %192 = vector.extract_strided_slice %181 {offsets = [0, 224], sizes = [32, 32], strides = [1, 1]} : vector<32x1024xf32> to vector<32x32xf32>
    %193 = arith.maximumf %191, %192 : vector<32x32xf32>
    %194 = vector.extract_strided_slice %181 {offsets = [0, 256], sizes = [32, 32], strides = [1, 1]} : vector<32x1024xf32> to vector<32x32xf32>
    %195 = vector.extract_strided_slice %181 {offsets = [0, 288], sizes = [32, 32], strides = [1, 1]} : vector<32x1024xf32> to vector<32x32xf32>
    %196 = arith.maximumf %194, %195 : vector<32x32xf32>
    %197 = vector.extract_strided_slice %181 {offsets = [0, 320], sizes = [32, 32], strides = [1, 1]} : vector<32x1024xf32> to vector<32x32xf32>
    %198 = vector.extract_strided_slice %181 {offsets = [0, 352], sizes = [32, 32], strides = [1, 1]} : vector<32x1024xf32> to vector<32x32xf32>
    %199 = arith.maximumf %197, %198 : vector<32x32xf32>
    %200 = vector.extract_strided_slice %181 {offsets = [0, 384], sizes = [32, 32], strides = [1, 1]} : vector<32x1024xf32> to vector<32x32xf32>
    %201 = vector.extract_strided_slice %181 {offsets = [0, 416], sizes = [32, 32], strides = [1, 1]} : vector<32x1024xf32> to vector<32x32xf32>
    %202 = arith.maximumf %200, %201 : vector<32x32xf32>
    %203 = vector.extract_strided_slice %181 {offsets = [0, 448], sizes = [32, 32], strides = [1, 1]} : vector<32x1024xf32> to vector<32x32xf32>
    %204 = vector.extract_strided_slice %181 {offsets = [0, 480], sizes = [32, 32], strides = [1, 1]} : vector<32x1024xf32> to vector<32x32xf32>
    %205 = arith.maximumf %203, %204 : vector<32x32xf32>
    %206 = vector.extract_strided_slice %181 {offsets = [0, 512], sizes = [32, 32], strides = [1, 1]} : vector<32x1024xf32> to vector<32x32xf32>
    %207 = vector.extract_strided_slice %181 {offsets = [0, 544], sizes = [32, 32], strides = [1, 1]} : vector<32x1024xf32> to vector<32x32xf32>
    %208 = arith.maximumf %206, %207 : vector<32x32xf32>
    %209 = vector.extract_strided_slice %181 {offsets = [0, 576], sizes = [32, 32], strides = [1, 1]} : vector<32x1024xf32> to vector<32x32xf32>
    %210 = vector.extract_strided_slice %181 {offsets = [0, 608], sizes = [32, 32], strides = [1, 1]} : vector<32x1024xf32> to vector<32x32xf32>
    %211 = arith.maximumf %209, %210 : vector<32x32xf32>
    %212 = vector.extract_strided_slice %181 {offsets = [0, 640], sizes = [32, 32], strides = [1, 1]} : vector<32x1024xf32> to vector<32x32xf32>
    %213 = vector.extract_strided_slice %181 {offsets = [0, 672], sizes = [32, 32], strides = [1, 1]} : vector<32x1024xf32> to vector<32x32xf32>
    %214 = arith.maximumf %212, %213 : vector<32x32xf32>
    %215 = vector.extract_strided_slice %181 {offsets = [0, 704], sizes = [32, 32], strides = [1, 1]} : vector<32x1024xf32> to vector<32x32xf32>
    %216 = vector.extract_strided_slice %181 {offsets = [0, 736], sizes = [32, 32], strides = [1, 1]} : vector<32x1024xf32> to vector<32x32xf32>
    %217 = arith.maximumf %215, %216 : vector<32x32xf32>
    %218 = vector.extract_strided_slice %181 {offsets = [0, 768], sizes = [32, 32], strides = [1, 1]} : vector<32x1024xf32> to vector<32x32xf32>
    %219 = vector.extract_strided_slice %181 {offsets = [0, 800], sizes = [32, 32], strides = [1, 1]} : vector<32x1024xf32> to vector<32x32xf32>
    %220 = arith.maximumf %218, %219 : vector<32x32xf32>
    %221 = vector.extract_strided_slice %181 {offsets = [0, 832], sizes = [32, 32], strides = [1, 1]} : vector<32x1024xf32> to vector<32x32xf32>
    %222 = vector.extract_strided_slice %181 {offsets = [0, 864], sizes = [32, 32], strides = [1, 1]} : vector<32x1024xf32> to vector<32x32xf32>
    %223 = arith.maximumf %221, %222 : vector<32x32xf32>
    %224 = vector.extract_strided_slice %181 {offsets = [0, 896], sizes = [32, 32], strides = [1, 1]} : vector<32x1024xf32> to vector<32x32xf32>
    %225 = vector.extract_strided_slice %181 {offsets = [0, 928], sizes = [32, 32], strides = [1, 1]} : vector<32x1024xf32> to vector<32x32xf32>
    %226 = arith.maximumf %224, %225 : vector<32x32xf32>
    %227 = vector.extract_strided_slice %181 {offsets = [0, 960], sizes = [32, 32], strides = [1, 1]} : vector<32x1024xf32> to vector<32x32xf32>
    %228 = vector.extract_strided_slice %181 {offsets = [0, 992], sizes = [32, 32], strides = [1, 1]} : vector<32x1024xf32> to vector<32x32xf32>
    %229 = arith.maximumf %227, %228 : vector<32x32xf32>
    %230 = tpu.concatenate %184, %187, %190, %193, %196, %199, %202, %205, %208, %211, %214, %217, %220, %223, %226, %229 in 1 : vector<32x32xf32>, vector<32x32xf32>, vector<32x32xf32>, vector<32x32xf32>, vector<32x32xf32>, vector<32x32xf32>, vector<32x32xf32>, vector<32x32xf32>, vector<32x32xf32>, vector<32x32xf32>, vector<32x32xf32>, vector<32x32xf32>, vector<32x32xf32>, vector<32x32xf32>, vector<32x32xf32>, vector<32x32xf32> -> vector<32x512xf32>
    %231 = arith.truncf %230 : vector<32x512xf32> to vector<32x512xbf16>
    %c0_25 = arith.constant 0 : index
    %c0_26 = arith.constant 0 : index
    %232 = vector.load %arg5[%c0_25, %c0_26] : memref<32x512xbf16, #tpu.memory_space<vmem>>, vector<32x512xbf16>
    tpu.vector_store %arg5[%c0_25, %c0_26], %231 {strides = array<i32>} : memref<32x512xbf16, #tpu.memory_space<vmem>>, vector<32x512xbf16>,
    return
  }
  func.func @transform_0(%arg0: i32) -> (i32, i32) {
    %c0_i32 = arith.constant 0 : i32
    %c0_i32_0 = arith.constant 0 : i32
    %c0_i32_1 = arith.constant 0 : i32
    return %c0_i32, %c0_i32_0 : i32, i32
  }
  func.func @transform_1(%arg0: i32) -> (i32, i32, i32) {
    %c0_i32 = arith.constant 0 : i32
    %c0_i32_0 = arith.constant 0 : i32
    %c0_i32_1 = arith.constant 0 : i32
    %c0_i32_2 = arith.constant 0 : i32
    return %c0_i32, %c0_i32_0, %c0_i32_1 : i32, i32, i32
  }
  func.func @transform_2(%arg0: i32) -> (i32, i32) {
    %c0_i32 = arith.constant 0 : i32
    %c0_i32_0 = arith.constant 0 : i32
    %c0_i32_1 = arith.constant 0 : i32
    return %c0_i32, %c0_i32_0 : i32, i32
  }
  func.func @transform_3(%arg0: i32) -> (i32, i32) {
    %c0_i32 = arith.constant 0 : i32
    %c0_i32_0 = arith.constant 0 : i32
    %c0_i32_1 = arith.constant 0 : i32
    return %c0_i32, %c0_i32_0 : i32, i32
  }
  func.func @transform_4(%arg0: i32) -> (i32, i32) {
    %c0_i32 = arith.constant 0 : i32
    %c0_i32_0 = arith.constant 0 : i32
    %c0_i32_1 = arith.constant 0 : i32
    return %c0_i32, %c0_i32_0 : i32, i32
  }
}

</mosaic_0001>

<bundles_post_ra>
// kernel: tpu_custom_call.1
= control target key start
LH: loop header
LB: loop body
LE: loop exit
PB: predicated region body
PF: predicated region fallthrough
CT: control target
= control target key end

     0   :  { %9 = vsyncpa [#allocation3], 0  ;;  %s17691_s0 = inlined_call_operand.hbm [shape: bf16[68,102], index: 0, kind: input, shape index: {}]   ;;  %s17692_s1 = inlined_call_operand.hbm [shape: bf16[3,102,1024], index: 1, kind: input, shape index: {}]   ;;  %s17693_s2 = inlined_call_operand.vmem [shape: f32[1,32], index: 2, kind: input, shape index: {}]   ;;  %s17694_s3 = inlined_call_operand.vmem [shape: f32[1,32], index: 3, kind: input, shape index: {}]   ;;  %s17695_s4 = inlined_call_operand.hbm [shape: bf16[32,512], index: 4, kind: output, shape index: {}]  }
   0x1   :  { %10 = vsyncpa [#allocation6], 0 }
   0x2   :  { %11 = vsyncpa [#allocation4], 0  ;;  %s11146_s15 = smov [#allocation2]  }
   0x3   :  { %s17_s16 = sshll.u32 %s11146_s15, 4  ;;  %s18_s16 = int_to_ptr.vmem [resolvable:$true] %s17_s16 }
   0x4   :  { %s11088_s17 = scalar_lea.vmem %s18_s16, 576  ;;  %p11093_p1 = scmp.lt.s32.totalorder %s18_s16, %s18_s16 }
   0x5   :  { %p11089_p0 = scmp.ne.s32.totalorder %s18_s16, %s11088_s17  ;;  %p11094_p2 = scmp.lt.s32.totalorder %s11088_s17, %s11088_s17 }
   0x7   :  { %p11095_p3 = por %p11094_p2, %p11093_p1 }
   0x9   :  { %p11096_p4 = pnand %p11095_p3, %p11089_p0 }
   0xb   :  { %11099 = shalt.err (!%p11096_p4)
}
   0xc   :  { %s11147_s18 = smov 64   ;;  %s11148_s19 = smov 4  }
   0xd   :  { %23 = dma.hbm_to_vmem [thread:$0]  %s17691_s0, 576, %s18_s16, [#allocation3], %s11147_s18, %s11147_s18, %s11148_s19  }
   0xe   :  { %s11149_s22 = smov [#allocation5]  }
   0xf   :  { %s29_s23 = sshll.u32 %s11149_s22, 4  ;;  %s30_s23 = int_to_ptr.vmem [resolvable:$true] %s29_s23 }
  0x10   :  { %s11108_s24 = scalar_lea.vmem %s30_s23, 19968  ;;  %p11113_p6 = scmp.lt.s32.totalorder %s30_s23, %s30_s23 }
  0x11   :  { %p11109_p5 = scmp.ne.s32.totalorder %s30_s23, %s11108_s24  ;;  %p11114_p7 = scmp.lt.s32.totalorder %s11108_s24, %s11108_s24 }
  0x13   :  { %p11115_p8 = por %p11114_p7, %p11113_p6 }
  0x15   :  { %p11116_p9 = pnand %p11115_p8, %p11109_p5 }
  0x17   :  { %11119 = shalt.err (!%p11116_p9)
}
  0x18   :  { %s11150_s25 = smov 512   ;;  %s11151_s26 = smov 32  }
  0x19   :  { %35 = dma.hbm_to_vmem [thread:$0]  %s17692_s1, 19968, %s30_s23, [#allocation6], %s11150_s25, %s11150_s25, %s11151_s26  }
  0x1a   :  { %11140 = dma.done.wait [#allocation3], 576  }
  0x1b   :  { %11141 = vsyncadd [#allocation3], 4294966720 }
  0x1c   :  { %11142 = dma.done.wait [#allocation6], 19968  }
  0x1d   :  { %11143 = vsyncadd [#allocation6], 4294947328  ;;  %v76_v0 = vlaneseq  ;;  %v17699_v1 = vmov 0   ;;  %v11153_v2 = vmov 1966171168   ;;  %vm1126_vm11 = vcmask 1042432  }
  0x1e   :  { %1183 = vmatprep.mubr.bf16.mxu0 %v17699_v1  ;;  %1256 = vmatprep.mubr.bf16.mxu1 %v17699_v1  ;;  %v74_v3 = vunpack.c.l.s4 %v11153_v2  ;;  %vm331_vm0 = vsmask.f32 256  ;;  %vm332_vm1 = vsmask.f32 1284  ;;  %vm334_vm2 = vsmask.f32 2312 }
  0x1f   :  { %vm333_vm3 = vmor %vm331_vm0, %vm332_vm1  ;;  %vm336_vm4 = vsmask.f32 3340  ;;  %vm338_vm5 = vsmask.f32 4368  ;;  %vm340_vm7 = vsmask.f32 5396 }
  0x20   :  { %vm335_vm6 = vmor %vm333_vm3, %vm334_vm2  ;;  %v75_v4 = vunpack.c.0.s8 %v74_v3  ;;  %v11195_v5 = vshrl.u32 %v76_v0, 7  ;;  %v653_v7 = vld [vmem:[#allocation5 + $0x320] sm:$0x77]  ;;  %v654_v8 = vld [vmem:[#allocation5 + $0x328] sm:$0x77]  ;;  %vm1113_vm0 = vcmask 834560  }
  0x21   :  { %vm337_vm8 = vmor %vm335_vm6, %vm336_vm4  ;;  %v645_v9 = vld [vmem:[#allocation5 + $0x2e0] sm:$0xff]  ;;  %v10014_v10 = vcombine.high %v653_v7, %v653_v7  ;;  %v10016_v11 = vcombine.high %v654_v8, %v654_v8  ;;  %v10013_v12 = vcombine.low %v653_v7, %v653_v7  ;;  %v10015_v13 = vcombine.low %v654_v8, %v654_v8  ;;  %v646_v15 = vld [vmem:[#allocation5 + $0x2e8] sm:$0xff]  ;;  %s11154_s0 = smov 96  }
  0x22   :  { %18256 = vst [vmem:[#allocation11_spill] sm:$0xff] %v11195_v5  ;;  %vm339_vm9 = vmor %vm337_vm8, %vm338_vm5  ;;  %v649_v14 = vld [vmem:[#allocation5 + $0x300] sm:$0xff]  ;;  %v650_v16 = vld [vmem:[#allocation5 + $0x308] sm:$0xff]  ;;  %v11208_v22 = vsub.s32 %v75_v4, %v11195_v5  ;;  %vm342_vm12 = vsmask.f32 6424  ;;  %vm3651_vm1 = vcmask 261120  }
  0x23   :  { %vm11197_vm10 = vmor %vm339_vm9, %vm340_vm7  ;;  %v10006_v17 = vcombine.high %v645_v9, %v649_v14  ;;  %v10008_v18 = vcombine.high %v646_v15, %v650_v16  ;;  %v11201_v19 = vld [vmem:[#allocation5 + $0x2a0] sm:$0xff]  ;;  %v11205_v21 = vld [vmem:[#allocation5 + $0x2a8] sm:$0xff]  ;;  %10021 = vmatprep.subr.msk.bf16.mxu0 %vm1126_vm11, %v10014_v10  ;;  %10026 = vmatprep.subr.msk.bf16.mxu1 %vm1126_vm11, %v10016_v11  ;;  %v1128_v23 = vsel %vm1126_vm11, %v10013_v12, 0  ;;  %v1134_v24 = vsel %vm1126_vm11, %v10015_v13, 0 }
  0x24   :  { %v11203_v20 = vld [vmem:[#allocation5 + $0x2c0] sm:$0xff]  ;;  %v10005_v25 = vcombine.low %v645_v9, %v649_v14  ;;  %v10007_v26 = vcombine.low %v646_v15, %v650_v16  ;;  %v642_v27 = vld [vmem:[#allocation5 + $0x2c8] sm:$0xff]  ;;  %1154 = vmatpush1.bf16.msra.mxu0 %v1128_v23  ;;  %1227 = vmatpush1.bf16.msra.mxu1 %v1134_v24  ;;  %vm344_vm13 = vsmask.f32 7452  ;;  %v11284_v3 = vld [vmem:[#allocation5 + $0x330] sm:$0x77] }
  0x25   :  { %v11214_v28 = vld [vmem:[#allocation5 + $0x260] sm:$0xff]  ;;  %v9998_v30 = vcombine.high %v11201_v19, %v11203_v20  ;;  %v10000_v31 = vcombine.high %v11205_v21, %v642_v27  ;;  %v9997_v32 = vcombine.low %v11201_v19, %v11203_v20  ;;  %v11223_v33 = vld [vmem:[#allocation5 + $0x268] sm:$0xff]  ;;  %1155 = vmatprep.subr.bf16.mxu0 %v10006_v17  ;;  %1228 = vmatprep.subr.bf16.mxu1 %v10008_v18  ;;  %v9924_v61 = vld.sshfl [vmem:[#allocation2] sm:$0x33 pattern:$0x75316420] }
  0x26   :  { %v11216_v29 = vld [vmem:[#allocation5 + $0x280] sm:$0xff]  ;;  %v11225_v34 = vld [vmem:[#allocation5 + $0x288] sm:$0xff]  ;;  %v9999_v36 = vcombine.low %v11205_v21, %v642_v27  ;;  %v72_v7 = vcombine.high %v9924_v61, %v9924_v61  ;;  %v11289_v8 = vrot.slane %v9924_v61, %v11208_v22  ;;  %vm11297_vm14 = vmor %vm11197_vm10, %vm342_vm12  ;;  %v10018_v14 = vcombine.high %v11284_v3, %v11284_v3 }
  0x27   :  { %v11227_v35 = vld [vmem:[#allocation5 + $0x220] sm:$0xff]  ;;  %v9990_v37 = vcombine.high %v11214_v28, %v11216_v29  ;;  %v9992_v38 = vcombine.high %v11223_v33, %v11225_v34  ;;  %v11236_v40 = vld [vmem:[#allocation5 + $0x228] sm:$0xff]  ;;  %v9989_v42 = vcombine.low %v11214_v28, %v11216_v29  ;;  %v9991_v43 = vcombine.low %v11223_v33, %v11225_v34  ;;  %v11301_v12 = vld [vmem:[#allocation5 + $0x338] sm:$0x77] }
  0x28   :  { %v11234_v39 = vld [vmem:[#allocation5 + $0x240] sm:$0xff]  ;;  %v11238_v41 = vld [vmem:[#allocation5 + $0x248] sm:$0xff]  ;;  %1156 = vmatpush1.bf16.msra.mxu0 %v10005_v25  ;;  %1229 = vmatpush1.bf16.msra.mxu1 %v10007_v26  ;;  %v10017_v15 = vcombine.low %v11284_v3, %v11284_v3  ;;  %v10020_v16 = vcombine.high %v11301_v12, %v11301_v12  ;;  %v11314_v6 = vrot.slane %v72_v7, %v11208_v22  ;;  %v347_v19 = vshrl.u32 %v11289_v8, 16  ;;  %vm11331_vm15 = vmor %vm11297_vm14, %vm344_vm13 }
  0x29   :  { %v9982_v44 = vcombine.high %v11227_v35, %v11234_v39  ;;  %v9984_v45 = vcombine.high %v11236_v40, %v11238_v41  ;;  %v11248_v46 = vld [vmem:[#allocation5 + $0x1e0] sm:$0xff]  ;;  %v11252_v48 = vld [vmem:[#allocation5 + $0x1e8] sm:$0xff]  ;;  %v9981_v49 = vcombine.low %v11227_v35, %v11234_v39  ;;  %v9983_v50 = vcombine.low %v11236_v40, %v11238_v41  ;;  %1157 = vmatprep.subr.bf16.mxu0 %v9998_v30  ;;  %v11369_v7 = vld [vmem:[#allocation5 + $0x2f0] sm:$0xff] }
  0x2a   :  { %v11250_v47 = vld [vmem:[#allocation5 + $0x200] sm:$0xff]  ;;  %v11260_v52 = vld [vmem:[#allocation5 + $0x208] sm:$0xff]  ;;  %1230 = vmatprep.subr.bf16.mxu1 %v10000_v31  ;;  %v11318_v17 = vcombine.high %v11289_v8, %v11289_v8  ;;  %v11340_v26 = vcombine.high %v11314_v6, %v11314_v6  ;;  %v352_v28 = vshll.u32 %v11314_v6, 16  ;;  %v355_v29 = vshrl.u32 %v11314_v6, 16 }
  0x2b   :  { %v9974_v51 = vcombine.high %v11248_v46, %v11250_v47  ;;  %v9973_v53 = vcombine.low %v11248_v46, %v11250_v47  ;;  %v11264_v54 = vld [vmem:[#allocation5 + $0x1a0] sm:$0xff]  ;;  %v9976_v56 = vcombine.high %v11252_v48, %v11260_v52  ;;  %v9975_v57 = vcombine.low %v11252_v48, %v11260_v52  ;;  %v11274_v59 = vld [vmem:[#allocation5 + $0x1a8] sm:$0xff] }
  0x2c   :  { %v11266_v55 = vld [vmem:[#allocation5 + $0x1c0] sm:$0xff]  ;;  %v11276_v60 = vld [vmem:[#allocation5 + $0x1c8] sm:$0xff]  ;;  %1158 = vmatpush1.bf16.msra.mxu0 %v9997_v32  ;;  %1231 = vmatpush1.bf16.msra.mxu1 %v9999_v36  ;;  %v360_v30 = vshll.u32 %v11318_v17, 16  ;;  %v363_v31 = vshrl.u32 %v11318_v17, 16  ;;  %v354_v34 = vsel %vm11331_vm15, %v347_v19, %v352_v28  ;;  %v368_v36 = vshll.u32 %v11340_v26, 16 }
  0x2d   :  { %v9966_v58 = vcombine.high %v11264_v54, %v11266_v55  ;;  %v9968_v62 = vcombine.high %v11274_v59, %v11276_v60  ;;  %v9965_v63 = vcombine.low %v11264_v54, %v11266_v55  ;;  %v9967_v0 = vcombine.low %v11274_v59, %v11276_v60  ;;  %v9925_v2 = vld.sshfl [vmem:[#allocation2 + $0x4] sm:$0x33 pattern:$0x75316420]  ;;  %1159 = vmatprep.subr.bf16.mxu0 %v9990_v37 }
  0x2e   :  { %v11286_v4 = vld.sshfl [vmem:[#allocation2 + $0x8] sm:$0x33 pattern:$0x75316420]  ;;  %v96_v9 = vcombine.high %v9925_v2, %v9925_v2  ;;  %v11292_v10 = vrot.slane %v9925_v2, %v11208_v22  ;;  %1232 = vmatprep.subr.bf16.mxu1 %v9992_v38  ;;  %v371_v37 = vshrl.u32 %v11340_v26, 16  ;;  %vm3653_vm2 = vcmask 523264  }
  0x2f   :  { %v11305_v13 = vrot.slane %v11286_v4, %v11208_v22  ;;  %v11405_v41 = vld.sshfl [vmem:[#allocation2 + $0x10] sm:$0x33 pattern:$0x75316420]  ;;  %v327_v5 = vld [vmem:[#allocation5 + $0x180] sm:$0x77] }
  0x30   :  { %v11321_v18 = vrot.slane %v96_v9, %v11208_v22  ;;  %v11326_v20 = vcombine.high %v11292_v10, %v11292_v10  ;;  %v376_v23 = vshll.u32 %v11292_v10, 16  ;;  %v379_v24 = vshrl.u32 %v11292_v10, 16  ;;  %1160 = vmatpush1.bf16.msra.mxu0 %v9989_v42  ;;  %1233 = vmatpush1.bf16.msra.mxu1 %v9991_v43  ;;  %v11371_v9 = vld [vmem:[#allocation5 + $0x310] sm:$0xff] }
  0x31   :  { %v408_v25 = vshll.u32 %v11305_v13, 16  ;;  %1161 = vmatprep.subr.bf16.mxu0 %v9982_v44  ;;  %1234 = vmatprep.subr.bf16.mxu1 %v9984_v45  ;;  %v362_v42 = vsel %vm11331_vm15, %v355_v29, %v360_v30  ;;  %v370_v44 = vsel %vm11331_vm15, %v363_v31, %v368_v36  ;;  %v11391_v31 = vsel %vm1126_vm11, %v10017_v15, 0 }
  0x32   :  { %v11344_v27 = vcombine.high %v11321_v18, %v11321_v18  ;;  %v384_v32 = vshll.u32 %v11321_v18, 16  ;;  %v387_v33 = vshrl.u32 %v11321_v18, 16  ;;  %v392_v38 = vshll.u32 %v11326_v20, 16 }
  0x33   :  { %v395_v61 = vshrl.u32 %v11326_v20, 16  ;;  %v378_v45 = vsel %vm11331_vm15, %v371_v37, %v376_v23  ;;  %v657_v28 = vcombine.low %v354_v34, %v362_v42  ;;  %v9927_v34 = vld.sshfl [vmem:[#allocation2 + $0xc] sm:$0x33 pattern:$0x75316420]  ;;  %v10019_v15 = vcombine.low %v11301_v12, %v11301_v12  ;;  %v652_v12 = vld [vmem:[#allocation5 + $0x318] sm:$0xff] }
  0x34   :  { %v386_v43 = vsel %vm11331_vm15, %v379_v24, %v384_v32  ;;  %v400_v2 = vshll.u32 %v11344_v27, 16  ;;  %v394_v11 = vsel %vm11331_vm15, %v387_v33, %v392_v38  ;;  %v403_v19 = vshrl.u32 %v11344_v27, 16  ;;  %1162 = vmatpush1.bf16.msra.mxu0 %v9981_v49  ;;  %1235 = vmatpush1.bf16.msra.mxu1 %v9983_v50 }
  0x35   :  { %v658_v29 = vcombine.low %v370_v44, %v378_v45  ;;  %v659_v30 = vcombine.low %v386_v43, %v394_v11  ;;  %v10009_v32 = vcombine.low %v11369_v7, %v11371_v9  ;;  %v10010_v33 = vcombine.high %v11369_v7, %v11371_v9  ;;  %1163 = vmatprep.subr.bf16.mxu0 %v9974_v51 }
  0x36   :  { %v402_v24 = vsel %vm11331_vm15, %v395_v61, %v400_v2  ;;  %v410_v23 = vsel %vm11331_vm15, %v403_v19, %v408_v25  ;;  %1236 = vmatprep.subr.bf16.mxu1 %v9976_v56  ;;  %v667_v39 = vrot.slane %v657_v28, %v11208_v22  ;;  %v411_v49 = vshrl.u32 %v11305_v13, 16 }
  0x37   :  { %v660_v35 = vcombine.low %v402_v24, %v410_v23  ;;  %v674_v40 = vrot.slane %v658_v29, %v11208_v22  ;;  %v681_v50 = vrot.slane %v659_v30, %v11208_v22  ;;  %v120_v51 = vcombine.high %v11286_v4, %v11286_v4 }
  0x38   :  { %v11415_v56 = vcombine.high %v11305_v13, %v11305_v13  ;;  %v144_v37 = vcombine.high %v9927_v34, %v9927_v34  ;;  %v11419_v38 = vrot.slane %v9927_v34, %v11208_v22  ;;  %1164 = vmatpush1.bf16.msra.mxu0 %v9973_v53  ;;  %1237 = vmatpush1.bf16.msra.mxu1 %v9975_v57  ;;  %v1146_v4 = vsel %vm1126_vm11, %v10019_v15, 0  ;;  %v643_v15 = vld [vmem:[#allocation5 + $0x2d0] sm:$0xff] }
  0x39   :  { %v688_v25 = vrot.slane %v660_v35, %v11208_v22  ;;  %v689_v36 = vcombine.low %v667_v39, %v674_v40  ;;  %v11429_v42 = vrot.slane %v120_v51, %v11208_v22  ;;  %v11433_v43 = vrot.slane %v11405_v41, %v11208_v22  ;;  %1165 = vmatprep.subr.bf16.mxu0 %v9966_v58  ;;  %v639_v39 = vld [vmem:[#allocation5 + $0x2b0] sm:$0xff]  ;;  %v640_v51 = vld [vmem:[#allocation5 + $0x2b8] sm:$0xff] }
  0x3a   :  { %v424_v61 = vshll.u32 %v11415_v56, 16  ;;  %1238 = vmatprep.subr.bf16.mxu1 %v9968_v62  ;;  %v11444_v48 = vrot.slane %v144_v37, %v11208_v22  ;;  %v427_v52 = vshrl.u32 %v11415_v56, 16  ;;  %v11453_v57 = vcombine.high %v11419_v38, %v11419_v38 }
  0x3b   :  { %18263 = vst [vmem:[#allocation12_spill] sm:$0xff] %v11433_v43  ;;  %v690_v46 = vcombine.low %v681_v50, %v688_v25  ;;  %v697_v47 = vrot.slane %v689_v36, %v11208_v22  ;;  %v11449_v53 = vcombine.high %v11429_v42, %v11429_v42  ;;  %v416_v58 = vshll.u32 %v11429_v42, 16  ;;  %v644_v25 = vld [vmem:[#allocation5 + $0x2d8] sm:$0xff] }
  0x3c   :  { %v419_v62 = vshrl.u32 %v11429_v42, 16  ;;  %v11460_v44 = vcombine.high %v11444_v48, %v11444_v48  ;;  %v440_v45 = vshll.u32 %v11419_v38, 16  ;;  %v443_v11 = vshrl.u32 %v11419_v38, 16  ;;  %1166 = vmatpush1.bf16.msra.mxu0 %v9965_v63  ;;  %1239 = vmatpush1.bf16.msra.mxu1 %v9967_v0 }
  0x3d   :  { %v704_v2 = vrot.slane %v690_v46, %v11208_v22  ;;  %v418_v19 = vsel %vm11331_vm15, %v411_v49, %v416_v58  ;;  %v432_v28 = vshll.u32 %v11449_v53, 16  ;;  %v435_v29 = vshrl.u32 %v11449_v53, 16  ;;  %10031 = vmatprep.subr.msk.bf16.mxu0 %vm1126_vm11, %v10018_v14  ;;  %10036 = vmatprep.subr.msk.bf16.mxu1 %vm1126_vm11, %v10020_v16  ;;  %v648_v14 = vld [vmem:[#allocation5 + $0x2f8] sm:$0xff]  ;;  %v635_v58 = vld [vmem:[#allocation5 + $0x290] sm:$0xff] }
  0x3e   :  { %18264 = vst [vmem:[#allocation13_spill] sm:$0xff] %v11460_v44  ;;  %v426_v24 = vsel %vm11331_vm15, %v419_v62, %v424_v61  ;;  %v448_v54 = vshll.u32 %v11444_v48, 16  ;;  %v451_v55 = vshrl.u32 %v11444_v48, 16  ;;  %v456_v59 = vshll.u32 %v11453_v57, 16 }
  0x3f   :  { %v11476_v30 = vcombine.low %v697_v47, %v704_v2  ;;  %v434_v60 = vsel %vm11331_vm15, %v427_v52, %v432_v28  ;;  %v442_v63 = vsel %vm11331_vm15, %v435_v29, %v440_v45  ;;  %v459_v0 = vshrl.u32 %v11453_v57, 16  ;;  %v631_v52 = vld [vmem:[#allocation5 + $0x270] sm:$0xff] }
  0x40   :  { %v464_v3 = vshll.u32 %v11460_v44, 16  ;;  %v450_v16 = vsel %vm11331_vm15, %v443_v11, %v448_v54  ;;  %v458_v23 = vsel %vm11331_vm15, %v451_v55, %v456_v59  ;;  %v467_v34 = vshrl.u32 %v11460_v44, 16  ;;  %v9929_v11 = vld.sshfl [vmem:[#allocation2 + $0x14] sm:$0x33 pattern:$0x75316420] }
  0x41   :  { %10022 = vmatmul.mubr.msk.bf16.vlgmr.msra.gmra.mxu0 %vm1113_vm0, %v11476_v30  ;;  %10027 = vmatmul.mubr.msk.bf16.vlgmr.msra.gmra.mxu1 %vm1113_vm0, %v11476_v30  ;;  %v472_v35 = vshll.u32 %v11433_v43, 16  ;;  %v706_v49 = vcombine.low %v418_v19, %v426_v24  ;;  %v707_v50 = vcombine.low %v434_v60, %v442_v63  ;;  %v708_v37 = vcombine.low %v450_v16, %v458_v23  ;;  %v9930_v29 = vld.sshfl [vmem:[#allocation2 + $0x18] sm:$0x33 pattern:$0x75316420] }
  0x42   :  { %1300 = vmatpush1.bf16.msra.mxu0 %v11391_v31  ;;  %1373 = vmatpush1.bf16.msra.mxu1 %v1146_v4  ;;  %v466_v40 = vsel %vm11331_vm15, %v459_v0, %v464_v3  ;;  %v10011_v31 = vcombine.low %v648_v14, %v652_v12  ;;  %v10012_v47 = vcombine.high %v648_v14, %v652_v12  ;;  %vm3655_vm3 = vcmask 785408  }
  0x43   :  { %1301 = vmatprep.subr.bf16.mxu0 %v10010_v33  ;;  %1193 = vmatprep.mubr.bf16.mxu0 %v17699_v1  ;;  %v474_v36 = vsel %vm11331_vm15, %v467_v34, %v472_v35  ;;  %v716_v61 = vrot.slane %v706_v49, %v11208_v22  ;;  %v723_v46 = vrot.slane %v707_v50, %v11208_v22  ;;  %vm5858_vm4 = vcmask 1041408  }
  0x44   :  { %1266 = vmatprep.mubr.bf16.mxu1 %v17699_v1  ;;  %v709_v4 = vcombine.low %v466_v40, %v474_v36  ;;  %v730_v62 = vrot.slane %v708_v37, %v11208_v22  ;;  %v10001_v33 = vcombine.low %v639_v39, %v643_v15  ;;  %v10002_v2 = vcombine.high %v639_v39, %v643_v15 }
  0x45   :  { %v10003_v45 = vcombine.low %v640_v51, %v644_v25  ;;  %v738_v24 = vcombine.low %v716_v61, %v723_v46  ;;  %1374 = vmatprep.subr.bf16.mxu1 %v10012_v47  ;;  %v10004_v28 = vcombine.high %v640_v51, %v644_v25  ;;  %v9993_v54 = vcombine.low %v631_v52, %v635_v58 }
  0x46   :  { %1302 = vmatpush1.bf16.msra.mxu0 %v10009_v32  ;;  %v737_v19 = vrot.slane %v709_v4, %v11208_v22  ;;  %1375 = vmatpush1.bf16.msra.mxu1 %v10011_v31  ;;  %v9994_v55 = vcombine.high %v631_v52, %v635_v58  ;;  %v168_v59 = vcombine.high %v11405_v41, %v11405_v41  ;;  %v632_v52 = vld [vmem:[#allocation5 + $0x278] sm:$0xff]  ;;  %vm8964_vm5 = vcmask 1041409  }
  0x47   :  { %1303 = vmatprep.subr.bf16.mxu0 %v10002_v2  ;;  %v746_v63 = vrot.slane %v738_v24, %v11208_v22  ;;  %1376 = vmatprep.subr.bf16.mxu1 %v10004_v28  ;;  %v11527_v7 = vcombine.high %v11433_v43, %v11433_v43  ;;  %v192_v9 = vcombine.high %v9929_v11, %v9929_v11  ;;  %vm8967_vm6 = vcmask 1042434  }
  0x48   :  { %v739_v60 = vcombine.low %v730_v62, %v737_v19  ;;  %v11530_v32 = vrot.slane %v168_v59, %v11208_v22  ;;  %v11533_v0 = vrot.slane %v9929_v11, %v11208_v22  ;;  %v216_v3 = vcombine.high %v9930_v29, %v9930_v29  ;;  %v623_v11 = vld [vmem:[#allocation5 + $0x230] sm:$0xff] }
  0x49   :  { %v11536_v14 = vrot.slane %v9930_v29, %v11208_v22  ;;  %v11540_v12 = vrot.slane %v192_v9, %v11208_v22  ;;  %v481_v16 = vshll.u32 %v11527_v7, 16  ;;  %v484_v23 = vshrl.u32 %v11527_v7, 16  ;;  %v627_v19 = vld [vmem:[#allocation5 + $0x250] sm:$0xff] }
  0x4a   :  { %v753_v41 = vrot.slane %v739_v60, %v11208_v22  ;;  %1304 = vmatpush1.bf16.msra.mxu0 %v10001_v33  ;;  %1377 = vmatpush1.bf16.msra.mxu1 %v10003_v45  ;;  %v11546_v34 = vcombine.high %v11530_v32, %v11530_v32  ;;  %v11550_v35 = vcombine.high %v11533_v0, %v11533_v0  ;;  %v476_v40 = vshrl.u32 %v11530_v32, 16  ;;  %v636_v45 = vld [vmem:[#allocation5 + $0x298] sm:$0xff] }
  0x4b   :  { %1305 = vmatprep.subr.bf16.mxu0 %v9994_v55  ;;  %v11553_v39 = vrot.slane %v216_v3, %v11208_v22  ;;  %v11560_v50 = vcombine.high %v11540_v12, %v11540_v12  ;;  %v497_v15 = vshll.u32 %v11533_v0, 16  ;;  %v500_v51 = vshrl.u32 %v11533_v0, 16  ;;  %v624_v3 = vld [vmem:[#allocation5 + $0x238] sm:$0xff] }
  0x4c   :  { %v11556_v49 = vcombine.low %v746_v63, %v753_v41  ;;  %v483_v25 = vsel %vm11331_vm15, %v476_v40, %v481_v16  ;;  %v489_v36 = vshll.u32 %v11546_v34, 16  ;;  %v492_v37 = vshrl.u32 %v11546_v34, 16  ;;  %v628_v41 = vld [vmem:[#allocation5 + $0x258] sm:$0xff] }
  0x4d   :  { %v505_v31 = vshll.u32 %v11540_v12, 16  ;;  %v508_v4 = vshrl.u32 %v11540_v12, 16  ;;  %v513_v61 = vshll.u32 %v11550_v35, 16  ;;  %v516_v46 = vshrl.u32 %v11550_v35, 16 }
  0x4e   :  { %10023 = vmatmul.mubr.msk.bf16.gmra.mxu0 %vm1113_vm0, %v11556_v49  ;;  %10028 = vmatmul.mubr.msk.bf16.gmra.mxu1 %vm1113_vm0, %v11556_v49  ;;  %v521_v47 = vshll.u32 %v11560_v50, 16  ;;  %v491_v58 = vsel %vm11331_vm15, %v484_v23, %v489_v36  ;;  %v499_v62 = vsel %vm11331_vm15, %v492_v37, %v497_v15  ;;  %v524_v2 = vshrl.u32 %v11560_v50, 16  ;;  %v615_v15 = vld [vmem:[#allocation5 + $0x1f0] sm:$0xff] }
  0x4f   :  { %1203 = vmatprep.mubr.bf16.mxu0 %v17699_v1  ;;  %1276 = vmatprep.mubr.bf16.mxu1 %v17699_v1  ;;  %v507_v33 = vsel %vm11331_vm15, %v500_v51, %v505_v31  ;;  %v515_v24 = vsel %vm11331_vm15, %v508_v4, %v513_v61  ;;  %v529_v29 = vshll.u32 %v11536_v14, 16  ;;  %v532_v55 = vshrl.u32 %v11536_v14, 16  ;;  %v619_v51 = vld [vmem:[#allocation5 + $0x210] sm:$0xff] }
  0x50   :  { %1306 = vmatpush1.bf16.msra.mxu0 %v9993_v54  ;;  %v523_v28 = vsel %vm11331_vm15, %v516_v46, %v521_v47  ;;  %v537_v59 = vshll.u32 %v11553_v39, 16  ;;  %v755_v60 = vcombine.low %v483_v25, %v491_v58  ;;  %v756_v63 = vcombine.low %v499_v62, %v507_v33  ;;  %v9931_v4 = vld.sshfl [vmem:[#allocation2 + $0x1c] sm:$0x33 pattern:$0x75316420] }
  0x51   :  { %v757_v9 = vcombine.low %v515_v24, %v523_v28  ;;  %v531_v54 = vsel %vm11331_vm15, %v524_v2, %v529_v29  ;;  %v9995_v16 = vcombine.low %v632_v52, %v636_v45  ;;  %v9996_v23 = vcombine.high %v632_v52, %v636_v45  ;;  %v9932_v62 = vld.sshfl [vmem:[#allocation2 + $0x20] sm:$0x11 pattern:$0x75316420] }
  0x52   :  { %v9985_v40 = vcombine.low %v623_v11, %v627_v19  ;;  %v539_v36 = vsel %vm11331_vm15, %v532_v55, %v537_v59  ;;  %v765_v37 = vrot.slane %v755_v60, %v11208_v22  ;;  %v772_v31 = vrot.slane %v756_v63, %v11208_v22 }
  0x53   :  { %v779_v25 = vrot.slane %v757_v9, %v11208_v22  ;;  %v758_v61 = vcombine.low %v531_v54, %v539_v36  ;;  %1378 = vmatprep.subr.bf16.mxu1 %v9996_v23  ;;  %v9986_v46 = vcombine.high %v623_v11, %v627_v19  ;;  %v9987_v47 = vcombine.low %v624_v3, %v628_v41 }
  0x54   :  { %v9988_v58 = vcombine.high %v624_v3, %v628_v41  ;;  %v787_v52 = vcombine.low %v765_v37, %v772_v31  ;;  %1379 = vmatpush1.bf16.msra.mxu1 %v9995_v16  ;;  %v9977_v33 = vcombine.low %v615_v15, %v619_v51  ;;  %v9978_v2 = vcombine.high %v615_v15, %v619_v51 }
  0x55   :  { %v11602_v45 = vcombine.high %v11536_v14, %v11536_v14  ;;  %v786_v24 = vrot.slane %v758_v61, %v11208_v22  ;;  %1307 = vmatprep.subr.bf16.mxu0 %v9986_v46  ;;  %v11607_v28 = vcombine.high %v11553_v39, %v11553_v39  ;;  %v240_v11 = vcombine.high %v9931_v4, %v9931_v4 }
  0x56   :  { %1380 = vmatprep.subr.bf16.mxu1 %v9988_v58  ;;  %v540_v19 = vshrl.u32 %v11553_v39, 16  ;;  %v795_v29 = vrot.slane %v787_v52, %v11208_v22  ;;  %1308 = vmatpush1.bf16.msra.mxu0 %v9985_v40  ;;  %v11612_v55 = vrot.slane %v9931_v4, %v11208_v22  ;;  %v264_v59 = vcombine.high %v9932_v62, %v9932_v62 }
  0x57   :  { %v11615_v60 = vrot.slane %v9932_v62, %v11208_v22  ;;  %v788_v63 = vcombine.low %v779_v25, %v786_v24  ;;  %1309 = vmatprep.subr.bf16.mxu0 %v9978_v2  ;;  %v11618_v9 = vrot.slane %v240_v11, %v11208_v22  ;;  %v545_v3 = vshll.u32 %v11602_v45, 16 }
  0x58   :  { %v548_v41 = vshrl.u32 %v11602_v45, 16  ;;  %1381 = vmatpush1.bf16.msra.mxu1 %v9987_v47  ;;  %v11624_v54 = vcombine.high %v11612_v55, %v11612_v55  ;;  %v11627_v16 = vrot.slane %v264_v59, %v11208_v22  ;;  %v553_v23 = vshll.u32 %v11607_v28, 16 }
  0x59   :  { %v556_v40 = vshrl.u32 %v11607_v28, 16  ;;  %v802_v15 = vrot.slane %v788_v63, %v11208_v22  ;;  %v11634_v51 = vcombine.high %v11618_v9, %v11618_v9  ;;  %v547_v36 = vsel %vm11331_vm15, %v540_v19, %v545_v3  ;;  %v616_v19 = vld [vmem:[#allocation5 + $0x1f8] sm:$0xff] }
  0x5a   :  { %18265 = vst [vmem:[#allocation14_spill] sm:$0xff] %v11627_v16  ;;  %v561_v37 = vshll.u32 %v11612_v55, 16  ;;  %v555_v31 = vsel %vm11331_vm15, %v548_v41, %v553_v23  ;;  %v564_v25 = vshrl.u32 %v11612_v55, 16  ;;  %v569_v4 = vshll.u32 %v11618_v9, 16  ;;  %1310 = vmatpush1.bf16.msra.mxu0 %v9977_v33  ;;  %v620_v33 = vld [vmem:[#allocation5 + $0x218] sm:$0xff]  ;;  %v607_v41 = vld [vmem:[#allocation5 + $0x1b0] sm:$0xff] }
  0x5b   :  { %v572_v61 = vshrl.u32 %v11618_v9, 16  ;;  %v11644_v46 = vcombine.low %v795_v29, %v802_v15  ;;  %v577_v58 = vshll.u32 %v11624_v54, 16  ;;  %v580_v62 = vshrl.u32 %v11624_v54, 16  ;;  %v611_v23 = vld [vmem:[#allocation5 + $0x1d0] sm:$0xff] }
  0x5c   :  { %v563_v47 = vsel %vm11331_vm15, %v556_v40, %v561_v37  ;;  %v571_v52 = vsel %vm11331_vm15, %v564_v25, %v569_v4  ;;  %v585_v2 = vshll.u32 %v11634_v51, 16  ;;  %v588_v24 = vshrl.u32 %v11634_v51, 16  ;;  %v608_v25 = vld [vmem:[#allocation5 + $0x1b8] sm:$0xff] }
  0x5d   :  { %v593_v11 = vshll.u32 %v11615_v60, 16  ;;  %10024 = vmatmul.mubr.msk.bf16.gmra.mxu0 %vm1113_vm0, %v11644_v46  ;;  %10029 = vmatmul.mubr.msk.bf16.gmra.mxu1 %vm1113_vm0, %v11644_v46  ;;  %v579_v29 = vsel %vm11331_vm15, %v572_v61, %v577_v58  ;;  %v596_v59 = vshrl.u32 %v11615_v60, 16  ;;  %v601_v63 = vshll.u32 %v11627_v16, 16  ;;  %v612_v4 = vld [vmem:[#allocation5 + $0x1d8] sm:$0xff] }
  0x5e   :  { %v804_v3 = vcombine.low %v547_v36, %v555_v31  ;;  %1213 = vmatprep.mubr.bf16.mxu0 %v17699_v1  ;;  %1286 = vmatprep.mubr.bf16.mxu1 %v17699_v1  ;;  %v587_v40 = vsel %vm11331_vm15, %v580_v62, %v585_v2  ;;  %v805_v37 = vcombine.low %v563_v47, %v571_v52  ;;  %v328_v47 = vld [vmem:[#allocation5 + $0x188] sm:$0x77]  ;;  %vm8970_vm7 = vcmask 1043459  }
  0x5f   :  { %v595_v15 = vsel %vm11331_vm15, %v588_v24, %v593_v11  ;;  %v603_v61 = vsel %vm11331_vm15, %v596_v59, %v601_v63  ;;  %v806_v58 = vcombine.low %v579_v29, %v587_v40  ;;  %v9979_v31 = vcombine.low %v616_v19, %v620_v33  ;;  %v324_v40 = vld [vmem:[#allocation5 + $0x168] sm:$0xff] }
  0x60   :  { %v814_v36 = vrot.slane %v804_v3, %v11208_v22  ;;  %v807_v16 = vcombine.low %v595_v15, %v603_v61  ;;  %v821_v1 = vrot.slane %v805_v37, %v11208_v22  ;;  %v9980_v44 = vcombine.high %v616_v19, %v620_v33 }
  0x61   :  { %v9969_v43 = vcombine.low %v607_v41, %v611_v23  ;;  %v828_v62 = vrot.slane %v806_v58, %v11208_v22  ;;  %v9970_v2 = vcombine.high %v607_v41, %v611_v23  ;;  %v9972_v24 = vcombine.high %v608_v25, %v612_v4  ;;  %v323_v41 = vld [vmem:[#allocation5 + $0x160] sm:$0xff]  ;;  %v320_v23 = vld [vmem:[#allocation5 + $0x148] sm:$0xff] }
  0x62   :  { %v835_v52 = vrot.slane %v807_v16, %v11208_v22  ;;  %v836_v11 = vcombine.low %v814_v36, %v821_v1  ;;  %1382 = vmatprep.subr.bf16.mxu1 %v9980_v44  ;;  %v10094_v21 = vcombine.high %v327_v5, %v327_v5  ;;  %v9971_v29 = vcombine.low %v608_v25, %v612_v4  ;;  %v319_v16 = vld [vmem:[#allocation5 + $0x140] sm:$0xff]  ;;  %v312_v36 = vld [vmem:[#allocation5 + $0x108] sm:$0xff] }
  0x63   :  { %1383 = vmatpush1.bf16.msra.mxu1 %v9979_v31  ;;  %1311 = vmatprep.subr.bf16.mxu0 %v9970_v2  ;;  %v10096_v19 = vcombine.high %v328_v47, %v328_v47  ;;  %v18266_v1 = vmov 0   ;;  %v10095_v44 = vcombine.low %v328_v47, %v328_v47  ;;  %v10086_v37 = vcombine.high %v319_v16, %v323_v41  ;;  %v311_v4 = vld [vmem:[#allocation5 + $0x100] sm:$0xff]  ;;  %v316_v31 = vld [vmem:[#allocation5 + $0x128] sm:$0xff] }
  0x64   :  { %v837_v59 = vcombine.low %v828_v62, %v835_v52  ;;  %v844_v63 = vrot.slane %v836_v11, %v11208_v22  ;;  %1384 = vmatprep.subr.bf16.mxu1 %v9972_v24  ;;  %1312 = vmatpush1.bf16.msra.mxu0 %v9969_v43  ;;  %v10093_v43 = vcombine.low %v327_v5, %v327_v5  ;;  %v315_v58 = vld [vmem:[#allocation5 + $0x120] sm:$0xff]  ;;  %v304_v11 = vld [vmem:[#allocation5 + $0xc8] sm:$0xff]  ;;  %vm8973_vm8 = vcmask 1044484  }
  0x65   :  { %10101 = vmatprep.subr.msk.bf16.mxu0 %vm1126_vm11, %v10094_v21  ;;  %v1918_v25 = vsel %vm1126_vm11, %v10095_v44, 0  ;;  %v10088_v61 = vcombine.high %v320_v23, %v324_v40  ;;  %v10085_v5 = vcombine.low %v319_v16, %v323_v41  ;;  %v10087_v62 = vcombine.low %v320_v23, %v324_v40  ;;  %v303_v2 = vld [vmem:[#allocation5 + $0xc0] sm:$0xff]  ;;  %v308_v21 = vld [vmem:[#allocation5 + $0xe8] sm:$0xff] }
  0x66   :  { %v851_v33 = vrot.slane %v837_v59, %v11208_v22  ;;  %v1912_v15 = vsel %vm1126_vm11, %v10093_v43, 0  ;;  %v307_v24 = vld [vmem:[#allocation5 + $0xe0] sm:$0xff]  ;;  %v10078_v47 = vcombine.high %v311_v4, %v315_v58  ;;  %v10080_v52 = vcombine.high %v312_v36, %v316_v31  ;;  %v11701_v44 = vld [vmem:[#allocation5 + $0x88] sm:$0xff] }
  0x67   :  { %1385 = vmatpush1.bf16.msra.mxu1 %v9971_v29  ;;  %v10077_v29 = vcombine.low %v311_v4, %v315_v58  ;;  %v10079_v59 = vcombine.low %v312_v36, %v316_v31  ;;  %v10070_v43 = vcombine.high %v303_v2, %v307_v24  ;;  %v11703_v16 = vld [vmem:[#allocation5 + $0xa8] sm:$0xff]  ;;  %v1542_v41 = vcombine.low %v11546_v34, %v11533_v0 }
  0x68   :  { %v11678_v3 = vcombine.low %v844_v63, %v851_v33  ;;  %10106 = vmatprep.subr.msk.bf16.mxu1 %vm1126_vm11, %v10096_v19  ;;  %v10069_v63 = vcombine.low %v303_v2, %v307_v24  ;;  %v11697_v19 = vld [vmem:[#allocation5 + $0xa0] sm:$0xff]  ;;  %v1541_v33 = vcombine.low %v11530_v32, %v11527_v7  ;;  %v1543_v23 = vcombine.low %v11540_v12, %v11550_v35 }
  0x69   :  { %v10071_v40 = vcombine.low %v304_v11, %v308_v21  ;;  %v1558_v4 = vrot.slane %v1542_v41, %v11208_v22  ;;  %v10063_v35 = vcombine.low %v11701_v44, %v11703_v16  ;;  %v10064_v58 = vcombine.high %v11701_v44, %v11703_v16 }
  0x6a   :  { %10025 = vmatmul.mubr.msk.bf16.gmra.mxu0 %vm1113_vm0, %v11678_v3  ;;  %10030 = vmatmul.mubr.msk.bf16.gmra.mxu1 %vm1113_vm0, %v11678_v3  ;;  %v1551_v7 = vrot.slane %v1541_v33, %v11208_v22  ;;  %v1443_v36 = vcombine.low %v11289_v8, %v11314_v6  ;;  %v1445_v2 = vcombine.low %v11292_v10, %v11321_v18  ;;  %vm8976_vm9 = vcmask 1045509  }
  0x6b   :  { %1329 = vmatprep.mubr.bf16.mxu0 %v18266_v1  ;;  %1402 = vmatprep.mubr.bf16.mxu1 %v18266_v1  ;;  %vm8979_vm10 = vcmask 1046534  }
  0x6c   :  { %v1573_v31 = vcombine.low %v1551_v7, %v1558_v4 }
  0x72   :  { %10032 = vmatmul.mubr.msk.bf16.vlgmr.msra.gmra.mxu0 %vm1113_vm0, %v11476_v30  ;;  %10037 = vmatmul.mubr.msk.bf16.vlgmr.msra.gmra.mxu1 %vm1113_vm0, %v11476_v30  ;;  %v11695_v30 = vld [vmem:[#allocation5 + $0x80] sm:$0xff] }
  0x73   :  { %1938 = vmatpush1.bf16.msra.mxu0 %v1912_v15  ;;  %2011 = vmatpush1.bf16.msra.mxu1 %v1918_v25  ;;  %v1544_v15 = vcombine.low %v11560_v50, %v11536_v14  ;;  %v10061_v25 = vcombine.low %v11695_v30, %v11697_v19  ;;  %v10062_v34 = vcombine.high %v11695_v30, %v11697_v19 }
  0x74   :  { %1939 = vmatprep.subr.bf16.mxu0 %v10086_v37  ;;  %1339 = vmatprep.mubr.bf16.mxu0 %v18266_v1  ;;  %v10072_v37 = vcombine.high %v304_v11, %v308_v21  ;;  %v1591_v11 = vcombine.low %v11607_v28, %v11612_v55  ;;  %v288_v21 = vld [vmem:[#allocation5 + $0x48] sm:$0xff]  ;;  %v1592_v30 = vcombine.low %v11618_v9, %v11624_v54 }
  0x75   :  { %1412 = vmatprep.mubr.bf16.mxu1 %v18266_v1  ;;  %2012 = vmatprep.subr.bf16.mxu1 %v10088_v61  ;;  %v1565_v61 = vrot.slane %v1543_v23, %v11208_v22  ;;  %v1572_v50 = vrot.slane %v1544_v15, %v11208_v22  ;;  %v1593_v19 = vcombine.low %v11634_v51, %v11615_v60  ;;  %v283_v23 = vld [vmem:[#allocation5 + $0x20] sm:$0xff]  ;;  %v280_v15 = vld [vmem:[#allocation5 + $0x8] sm:$0xff] }
  0x76   :  { %v1607_v28 = vrot.slane %v1591_v11, %v11208_v22  ;;  %v1614_v16 = vrot.slane %v1592_v30, %v11208_v22  ;;  %v284_v51 = vld [vmem:[#allocation5 + $0x28] sm:$0xff] }
  0x77   :  { %1940 = vmatpush1.bf16.msra.mxu0 %v10085_v5  ;;  %2013 = vmatpush1.bf16.msra.mxu1 %v10087_v62  ;;  %v291_v5 = vld [vmem:[#allocation5 + $0x60] sm:$0xff]  ;;  %v10041_v62 = vcombine.high %v11289_v8, %v11314_v6  ;;  %v1574_v24 = vcombine.low %v1565_v61, %v1572_v50  ;;  %v10042_v8 = vcombine.high %v11292_v10, %v11321_v18 }
  0x78   :  { %1941 = vmatprep.subr.bf16.mxu0 %v10078_v47  ;;  %2014 = vmatprep.subr.bf16.mxu1 %v10080_v52  ;;  %v1581_v47 = vrot.slane %v1573_v31, %v11208_v22  ;;  %v1590_v52 = vcombine.low %v11553_v39, %v11602_v45  ;;  %v1621_v41 = vrot.slane %v1593_v19, %v11208_v22 }
  0x79   :  { %v1474_v4 = vrot.slane %v10042_v8, %v11208_v22  ;;  %v10048_v31 = vcombine.high %v280_v15, %v284_v51 }
  0x7a   :  { %10033 = vmatmul.mubr.msk.bf16.gmra.mxu0 %vm1113_vm0, %v11556_v49  ;;  %10038 = vmatmul.mubr.msk.bf16.gmra.mxu1 %vm1113_vm0, %v11556_v49  ;;  %v287_v49 = vld [vmem:[#allocation5 + $0x40] sm:$0xff]  ;;  %v1600_v45 = vrot.slane %v1590_v52, %v11208_v22  ;;  %v1623_v61 = vcombine.low %v1614_v16, %v1621_v41  ;;  %v321_v41 = vld [vmem:[#allocation5 + $0x150] sm:$0xff] }
  0x7b   :  { %1942 = vmatpush1.bf16.msra.mxu0 %v10077_v29  ;;  %2015 = vmatpush1.bf16.msra.mxu1 %v10079_v59  ;;  %v292_v29 = vld [vmem:[#allocation5 + $0x68] sm:$0xff]  ;;  %v1588_v59 = vrot.slane %v1574_v24, %v11208_v22  ;;  %v10054_v33 = vcombine.high %v287_v49, %v291_v5  ;;  %v1494_v24 = vcombine.low %v11419_v38, %v11444_v48 }
  0x7c   :  { %1943 = vmatprep.subr.bf16.mxu0 %v10070_v43  ;;  %1349 = vmatprep.mubr.bf16.mxu0 %v18266_v1  ;;  %v279_v43 = vld [vmem:[#allocation5] sm:$0xff]  ;;  %v10056_v54 = vcombine.high %v288_v21, %v292_v29  ;;  %v1622_v7 = vcombine.low %v1600_v45, %v1607_v28  ;;  %v10055_v50 = vcombine.low %v288_v21, %v292_v29 }
  0x7d   :  { %1422 = vmatprep.mubr.bf16.mxu1 %v18266_v1  ;;  %2016 = vmatprep.subr.bf16.mxu1 %v10072_v37  ;;  %v11749_v44 = vcombine.low %v1581_v47, %v1588_v59  ;;  %v1467_v37 = vrot.slane %v1445_v2, %v11208_v22  ;;  %v329_v2 = vld [vmem:[#allocation5 + $0x190] sm:$0x77]  ;;  %v10044_v47 = vcombine.high %v11419_v38, %v11444_v48 }
  0x7e   :  { %v10045_v11 = vcombine.low %v279_v43, %v283_v23  ;;  %v10047_v21 = vcombine.low %v280_v15, %v284_v51  ;;  %v10098_v29 = vcombine.high %v329_v2, %v329_v2  ;;  %v1516_v45 = vrot.slane %v1494_v24, %v11208_v22  ;;  %v322_v51 = vld [vmem:[#allocation5 + $0x158] sm:$0xff] }
  0x7f   :  { %1944 = vmatpush1.bf16.msra.mxu0 %v10069_v63  ;;  %2017 = vmatpush1.bf16.msra.mxu1 %v10071_v40  ;;  %v1453_v63 = vrot.slane %v1443_v36, %v11208_v22  ;;  %v1460_v40 = vrot.slane %v10041_v62, %v11208_v22  ;;  %v10046_v36 = vcombine.high %v279_v43, %v283_v23  ;;  %v306_v24 = vld [vmem:[#allocation5 + $0xd8] sm:$0xff] }
  0x80   :  { %1945 = vmatprep.subr.bf16.mxu0 %v10062_v34  ;;  %2018 = vmatprep.subr.bf16.mxu1 %v10064_v58  ;;  %v10053_v34 = vcombine.low %v287_v49, %v291_v5  ;;  %v1630_v58 = vrot.slane %v1622_v7, %v11208_v22  ;;  %v1637_v62 = vrot.slane %v1623_v61, %v11208_v22  ;;  %v330_v5 = vld [vmem:[#allocation5 + $0x198] sm:$0x77] }
  0x81   :  { %v1476_v49 = vcombine.low %v1467_v37, %v1474_v4  ;;  %v10100_v59 = vcombine.high %v330_v5, %v330_v5  ;;  %v1523_v28 = vrot.slane %v10044_v47, %v11208_v22  ;;  %v10097_v43 = vcombine.low %v329_v2, %v329_v2  ;;  %v313_v4 = vld [vmem:[#allocation5 + $0x110] sm:$0xff]  ;;  %v310_v47 = vld [vmem:[#allocation5 + $0xf8] sm:$0xff] }
  0x82   :  { %10034 = vmatmul.mubr.msk.bf16.gmra.mxu0 %vm1113_vm0, %v11644_v46  ;;  %10039 = vmatmul.mubr.msk.bf16.gmra.mxu1 %vm1113_vm0, %v11644_v46  ;;  %v1475_v46 = vcombine.low %v1453_v63, %v1460_v40  ;;  %v11773_v52 = vcombine.low %v1630_v58, %v1637_v62  ;;  %v10099_v16 = vcombine.low %v330_v5, %v330_v5  ;;  %v326_v63 = vld [vmem:[#allocation5 + $0x178] sm:$0xff] }
  0x83   :  { %1946 = vmatpush1.bf16.msra.mxu0 %v10061_v25  ;;  %2019 = vmatpush1.bf16.msra.mxu1 %v10063_v35  ;;  %v1492_v25 = vcombine.low %v11305_v13, %v11429_v42  ;;  %v10043_v35 = vcombine.high %v11305_v13, %v11429_v42  ;;  %v1525_v15 = vcombine.low %v1516_v45, %v1523_v28  ;;  %v1924_v40 = vsel %vm1126_vm11, %v10097_v43, 0  ;;  %v318_v58 = vld [vmem:[#allocation5 + $0x138] sm:$0xff] }
  0x84   :  { %1359 = vmatprep.mubr.bf16.mxu0 %v18266_v1  ;;  %1432 = vmatprep.mubr.bf16.mxu1 %v18266_v1  ;;  %v1483_v8 = vrot.slane %v1475_v46, %v11208_v22  ;;  %v1930_v37 = vsel %vm1126_vm11, %v10099_v16, 0  ;;  %v10092_v61 = vcombine.high %v322_v51, %v326_v63  ;;  %v10091_v46 = vcombine.low %v322_v51, %v326_v63 }
  0x85   :  { %1947 = vmatprep.subr.bf16.mxu0 %v10054_v33  ;;  %2020 = vmatprep.subr.bf16.mxu1 %v10056_v54  ;;  %v1502_v30 = vrot.slane %v1492_v25, %v11208_v22  ;;  %v1509_v19 = vrot.slane %v10043_v35, %v11208_v22  ;;  %v1490_v33 = vrot.slane %v1476_v49, %v11208_v22  ;;  %v305_v35 = vld [vmem:[#allocation5 + $0xd0] sm:$0xff] }
  0x86   :  { %v309_v49 = vld [vmem:[#allocation5 + $0xf0] sm:$0xff]  ;;  %v10075_v28 = vcombine.low %v306_v24, %v310_v47 }
  0x87   :  { %1948 = vmatpush1.bf16.msra.mxu0 %v10053_v34  ;;  %2021 = vmatpush1.bf16.msra.mxu1 %v10055_v50  ;;  %v11789_v54 = vcombine.low %v1483_v8, %v1490_v33  ;;  %v1524_v23 = vcombine.low %v1502_v30, %v1509_v19  ;;  %v317_v34 = vld [vmem:[#allocation5 + $0x130] sm:$0xff]  ;;  %v314_v50 = vld [vmem:[#allocation5 + $0x118] sm:$0xff]  ;;  %v10073_v45 = vcombine.low %v305_v35, %v309_v49 }
  0x88   :  { %1949 = vmatprep.subr.bf16.mxu0 %v10046_v36  ;;  %2022 = vmatprep.subr.bf16.mxu1 %v10048_v31  ;;  %v1539_v31 = vrot.slane %v1525_v15, %v11208_v22  ;;  %v10082_v2 = vcombine.high %v313_v4, %v317_v34  ;;  %v10084_v25 = vcombine.high %v314_v50, %v318_v58  ;;  %v297_v8 = vld [vmem:[#allocation5 + $0x90] sm:$0xff]  ;;  %v298_v19 = vld [vmem:[#allocation5 + $0x98] sm:$0xff] }
  0x89   :  { %v1532_v36 = vrot.slane %v1524_v23, %v11208_v22  ;;  %v301_v30 = vld [vmem:[#allocation5 + $0xb0] sm:$0xff]  ;;  %v302_v33 = vld [vmem:[#allocation5 + $0xb8] sm:$0xff] }
  0x8a   :  { %10035 = vmatmul.mubr.msk.bf16.gmra.mxu0 %vm1113_vm0, %v11678_v3  ;;  %10040 = vmatmul.mubr.msk.bf16.gmra.mxu1 %vm1113_vm0, %v11678_v3  ;;  %v325_v3 = vld [vmem:[#allocation5 + $0x170] sm:$0xff]  ;;  %v10066_v43 = vcombine.high %v297_v8, %v301_v30  ;;  %v10068_v16 = vcombine.high %v298_v19, %v302_v33  ;;  %v290_v23 = vld [vmem:[#allocation5 + $0x58] sm:$0xff]  ;;  %v10065_v51 = vcombine.low %v297_v8, %v301_v30  ;;  %v2273_v8 = vld [vmem:[#allocation5 + $0x4a8] sm:$0xff] }
  0x8b   :  { %1950 = vmatpush1.bf16.msra.mxu0 %v10045_v11  ;;  %2023 = vmatpush1.bf16.msra.mxu1 %v10047_v21  ;;  %v10090_v7 = vcombine.high %v321_v41, %v325_v3  ;;  %v10089_v62 = vcombine.low %v321_v41, %v325_v3  ;;  %v11801_v5 = vcombine.low %v1532_v36, %v1539_v31  ;;  %v289_v41 = vld [vmem:[#allocation5 + $0x50] sm:$0xff]  ;;  %v294_v15 = vld [vmem:[#allocation5 + $0x78] sm:$0xff] }
  0x8c   :  { %1967 = vmatprep.mubr.bf16.mxu0 %v18266_v1  ;;  %2040 = vmatprep.mubr.bf16.mxu1 %v18266_v1  ;;  %v10081_v11 = vcombine.low %v313_v4, %v317_v34  ;;  %v10083_v21 = vcombine.low %v314_v50, %v318_v58  ;;  %v293_v3 = vld [vmem:[#allocation5 + $0x70] sm:$0xff]  ;;  %v10067_v63 = vcombine.low %v298_v19, %v302_v33  ;;  %v286_v34 = vld [vmem:[#allocation5 + $0x38] sm:$0xff]  ;;  %v2260_v33 = vld [vmem:[#allocation5 + $0x440] sm:$0xff] }
  0x8d   :  { %10111 = vmatprep.subr.msk.bf16.mxu0 %vm1126_vm11, %v10098_v29  ;;  %10116 = vmatprep.subr.msk.bf16.mxu1 %vm1126_vm11, %v10100_v59  ;;  %v10074_v29 = vcombine.high %v305_v35, %v309_v49  ;;  %v10076_v59 = vcombine.high %v306_v24, %v310_v47  ;;  %v285_v4 = vld [vmem:[#allocation5 + $0x30] sm:$0xff]  ;;  %v10057_v50 = vcombine.low %v289_v41, %v293_v3 }
  0x8e   :  { %v10059_v58 = vcombine.low %v290_v23, %v294_v15 }
  0x92   :  { %10102 = vmatmul.mubr.msk.bf16.vlgmr.msra.gmra.mxu0 %vm1113_vm0, %v11789_v54  ;;  %10107 = vmatmul.mubr.msk.bf16.vlgmr.msra.gmra.mxu1 %vm1113_vm0, %v11789_v54 }
  0x93   :  { %2084 = vmatpush1.bf16.msra.mxu0 %v1924_v40  ;;  %2157 = vmatpush1.bf16.msra.mxu1 %v1930_v37  ;;  %v281_v40 = vld [vmem:[#allocation5 + $0x10] sm:$0xff]  ;;  %v10060_v37 = vcombine.high %v290_v23, %v294_v15 }
  0x94   :  { %2085 = vmatprep.subr.bf16.mxu0 %v10090_v7  ;;  %1977 = vmatprep.mubr.bf16.mxu0 %v18266_v1  ;;  %v10058_v7 = vcombine.high %v289_v41, %v293_v3  ;;  %v10050_v36 = vcombine.high %v281_v40, %v285_v4 }
  0x95   :  { %2050 = vmatprep.mubr.bf16.mxu1 %v18266_v1  ;;  %2158 = vmatprep.subr.bf16.mxu1 %v10092_v61  ;;  %v282_v61 = vld [vmem:[#allocation5 + $0x18] sm:$0xff] }
  0x96   :  { %v10052_v31 = vcombine.high %v282_v61, %v286_v34 }
  0x97   :  { %2086 = vmatpush1.bf16.msra.mxu0 %v10089_v62  ;;  %2159 = vmatpush1.bf16.msra.mxu1 %v10091_v46  ;;  %v2276_v62 = vld [vmem:[#allocation5 + $0x4c0] sm:$0x77]  ;;  %v2277_v46 = vld [vmem:[#allocation5 + $0x4c8] sm:$0x77] }
  0x98   :  { %2087 = vmatprep.subr.bf16.mxu0 %v10082_v2  ;;  %2160 = vmatprep.subr.bf16.mxu1 %v10084_v25  ;;  %v10049_v2 = vcombine.low %v281_v40, %v285_v4  ;;  %v10051_v25 = vcombine.low %v282_v61, %v286_v34  ;;  %v10174_v35 = vcombine.high %v2276_v62, %v2276_v62  ;;  %v2253_v40 = vld [vmem:[#allocation5 + $0x408] sm:$0xff]  ;;  %v2244_v61 = vld [vmem:[#allocation5 + $0x3c0] sm:$0xff] }
  0x99   :  { %v10176_v49 = vcombine.high %v2277_v46, %v2277_v46  ;;  %v10173_v24 = vcombine.low %v2276_v62, %v2276_v62  ;;  %v10175_v47 = vcombine.low %v2277_v46, %v2277_v46 }
  0x9a   :  { %10103 = vmatmul.mubr.msk.bf16.gmra.mxu0 %vm1113_vm0, %v11801_v5  ;;  %10108 = vmatmul.mubr.msk.bf16.gmra.mxu1 %vm1113_vm0, %v11801_v5 }
  0x9b   :  { %2088 = vmatpush1.bf16.msra.mxu0 %v10081_v11  ;;  %2161 = vmatpush1.bf16.msra.mxu1 %v10083_v21  ;;  %v2268_v11 = vld [vmem:[#allocation5 + $0x480] sm:$0xff]  ;;  %v2755_v19 = vsel %vm1126_vm11, %v10175_v47, 0  ;;  %v2241_v47 = vld [vmem:[#allocation5 + $0x3a8] sm:$0xff] }
  0x9c   :  { %2089 = vmatprep.subr.bf16.mxu0 %v10074_v29  ;;  %1987 = vmatprep.mubr.bf16.mxu0 %v18266_v1  ;;  %v2272_v21 = vld [vmem:[#allocation5 + $0x4a0] sm:$0xff]  ;;  %v2269_v29 = vld [vmem:[#allocation5 + $0x488] sm:$0xff] }
  0x9d   :  { %2060 = vmatprep.mubr.bf16.mxu1 %v18266_v1  ;;  %2162 = vmatprep.subr.bf16.mxu1 %v10076_v59  ;;  %v2749_v59 = vsel %vm1126_vm11, %v10173_v24, 0  ;;  %v10166_v30 = vcombine.high %v2268_v11, %v2272_v21  ;;  %v10165_v41 = vcombine.low %v2268_v11, %v2272_v21  ;;  %v10167_v3 = vcombine.low %v2269_v29, %v2273_v8  ;;  %v2237_v24 = vld [vmem:[#allocation5 + $0x388] sm:$0xff] }
  0x9e   :  { %v2282_v11 = vcombine.low %v11321_v18, %v11326_v20  ;;  %v2283_v21 = vcombine.low %v11344_v27, %v11305_v13  ;;  %v10135_v27 = vcombine.low %v2237_v24, %v2241_v47 }
  0x9f   :  { %2090 = vmatpush1.bf16.msra.mxu0 %v10073_v45  ;;  %2163 = vmatpush1.bf16.msra.mxu1 %v10075_v28  ;;  %v10168_v45 = vcombine.high %v2269_v29, %v2273_v8  ;;  %v2264_v28 = vld [vmem:[#allocation5 + $0x460] sm:$0xff] }
  0xa0   :  { %2091 = vmatprep.subr.bf16.mxu0 %v10066_v43  ;;  %2164 = vmatprep.subr.bf16.mxu1 %v10068_v16  ;;  %v2261_v43 = vld [vmem:[#allocation5 + $0x448] sm:$0xff]  ;;  %v10158_v23 = vcombine.high %v2260_v33, %v2264_v28  ;;  %v2304_v13 = vrot.slane %v2282_v11, %v11208_v22  ;;  %v2311_v18 = vrot.slane %v2283_v21, %v11208_v22  ;;  %v2262_v11 = vld [vmem:[#allocation5 + $0x450] sm:$0xff] }
  0xa1   :  { %v2265_v16 = vld [vmem:[#allocation5 + $0x468] sm:$0xff]  ;;  %v2266_v21 = vld [vmem:[#allocation5 + $0x470] sm:$0xff] }
  0xa2   :  { %10104 = vmatmul.mubr.msk.bf16.gmra.mxu0 %vm1113_vm0, %v11749_v44  ;;  %10109 = vmatmul.mubr.msk.bf16.gmra.mxu1 %vm1113_vm0, %v11749_v44  ;;  %v10160_v15 = vcombine.high %v2261_v43, %v2265_v16 }
  0xa3   :  { %2092 = vmatpush1.bf16.msra.mxu0 %v10065_v51  ;;  %2165 = vmatpush1.bf16.msra.mxu1 %v10067_v63  ;;  %v2252_v51 = vld [vmem:[#allocation5 + $0x400] sm:$0xff] }
  0xa4   :  { %1997 = vmatprep.mubr.bf16.mxu0 %v18266_v1  ;;  %2070 = vmatprep.mubr.bf16.mxu1 %v18266_v1  ;;  %v2256_v63 = vld [vmem:[#allocation5 + $0x420] sm:$0xff] }
  0xa5   :  { %2093 = vmatprep.subr.bf16.mxu0 %v10058_v7  ;;  %2166 = vmatprep.subr.bf16.mxu1 %v10060_v37  ;;  %v2257_v7 = vld [vmem:[#allocation5 + $0x428] sm:$0xff]  ;;  %v10157_v37 = vcombine.low %v2260_v33, %v2264_v28  ;;  %v10150_v4 = vcombine.high %v2252_v51, %v2256_v63 }
  0xa6   :  { %v10152_v34 = vcombine.high %v2253_v40, %v2257_v7  ;;  %v10151_v62 = vcombine.low %v2253_v40, %v2257_v7 }
  0xa7   :  { %2094 = vmatpush1.bf16.msra.mxu0 %v10057_v50  ;;  %2167 = vmatpush1.bf16.msra.mxu1 %v10059_v58  ;;  %v2248_v50 = vld [vmem:[#allocation5 + $0x3e0] sm:$0xff]  ;;  %v2245_v58 = vld [vmem:[#allocation5 + $0x3c8] sm:$0xff] }
  0xa8   :  { %2095 = vmatprep.subr.bf16.mxu0 %v10050_v36  ;;  %2168 = vmatprep.subr.bf16.mxu1 %v10052_v31  ;;  %v2249_v36 = vld [vmem:[#allocation5 + $0x3e8] sm:$0xff]  ;;  %v10149_v31 = vcombine.low %v2252_v51, %v2256_v63  ;;  %v10142_v46 = vcombine.high %v2244_v61, %v2248_v50  ;;  %v10141_v29 = vcombine.low %v2244_v61, %v2248_v50  ;;  %v18268_v63 = vld [vmem:[#allocation13_spill] sm:$0xff] }
  0xa9   :  { %v10143_v8 = vcombine.low %v2245_v58, %v2249_v36  ;;  %v18267_v51 = vld [vmem:[#allocation12_spill] sm:$0xff]  ;;  %v2270_v50 = vld [vmem:[#allocation5 + $0x490] sm:$0xff] }
  0xaa   :  { %10105 = vmatmul.mubr.msk.bf16.gmra.mxu0 %vm1113_vm0, %v11773_v52  ;;  %10110 = vmatmul.mubr.msk.bf16.gmra.mxu1 %vm1113_vm0, %v11773_v52  ;;  %v2332_v40 = vcombine.low %v18268_v63, %v18267_v51 }
  0xab   :  { %2096 = vmatpush1.bf16.msra.mxu0 %v10049_v2  ;;  %2169 = vmatpush1.bf16.msra.mxu1 %v10051_v25  ;;  %v10144_v2 = vcombine.high %v2245_v58, %v2249_v36  ;;  %v2236_v25 = vld [vmem:[#allocation5 + $0x380] sm:$0xff]  ;;  %v10121_v58 = vcombine.high %v18267_v51, %v11530_v32  ;;  %v2271_v36 = vld [vmem:[#allocation5 + $0x498] sm:$0xff] }
  0xac   :  { %2113 = vmatprep.mubr.bf16.mxu0 %v18266_v1  ;;  %2186 = vmatprep.mubr.bf16.mxu1 %v18266_v1 }
  0xad   :  { %10181 = vmatprep.subr.msk.bf16.mxu0 %vm1126_vm11, %v10174_v35  ;;  %10186 = vmatprep.subr.msk.bf16.mxu1 %vm1126_vm11, %v10176_v49  ;;  %v2280_v35 = vcombine.low %v11314_v6, %v11318_v17  ;;  %v2281_v49 = vcombine.low %v11340_v26, %v11292_v10  ;;  %v10136_v17 = vcombine.high %v2237_v24, %v2241_v47  ;;  %v2229_v10 = vld [vmem:[#allocation5 + $0x348] sm:$0xff] }
  0xae   :  { %v2233_v26 = vld [vmem:[#allocation5 + $0x368] sm:$0xff] }
  0xaf   :  { %v2297_v33 = vrot.slane %v2281_v49, %v11208_v22  ;;  %v10128_v28 = vcombine.high %v2229_v10, %v2233_v26 }
  0xb2   :  { %10112 = vmatmul.mubr.msk.bf16.vlgmr.msra.gmra.mxu0 %vm1113_vm0, %v11789_v54  ;;  %10117 = vmatmul.mubr.msk.bf16.vlgmr.msra.gmra.mxu1 %vm1113_vm0, %v11789_v54  ;;  %v10159_v54 = vcombine.low %v2261_v43, %v2265_v16  ;;  %v2278_v16 = vld [vmem:[#allocation5 + $0x4d0] sm:$0x77] }
  0xb3   :  { %2775 = vmatpush1.bf16.msra.mxu0 %v2749_v59  ;;  %2848 = vmatpush1.bf16.msra.mxu1 %v2755_v19  ;;  %v2228_v59 = vld [vmem:[#allocation5 + $0x340] sm:$0xff]  ;;  %v2290_v19 = vrot.slane %v2280_v35, %v11208_v22  ;;  %v10177_v61 = vcombine.low %v2278_v16, %v2278_v16 }
  0xb4   :  { %2776 = vmatprep.subr.bf16.mxu0 %v10166_v30  ;;  %2123 = vmatprep.mubr.bf16.mxu0 %v18266_v1  ;;  %v2232_v30 = vld [vmem:[#allocation5 + $0x360] sm:$0xff] }
  0xb5   :  { %2196 = vmatprep.mubr.bf16.mxu1 %v18266_v1  ;;  %2849 = vmatprep.subr.bf16.mxu1 %v10168_v45  ;;  %v10126_v45 = vcombine.high %v2228_v59, %v2232_v30  ;;  %v2312_v43 = vcombine.low %v2290_v19, %v2297_v33  ;;  %v10125_v7 = vcombine.low %v2228_v59, %v2232_v30  ;;  %v2761_v49 = vsel %vm1126_vm11, %v10177_v61, 0 }
  0xb6   :  { %v2388_v59 = vrot.slane %v10121_v58, %v11208_v22  ;;  %v10162_v19 = vcombine.high %v2262_v11, %v2266_v21  ;;  %v2242_v58 = vld [vmem:[#allocation5 + $0x3b0] sm:$0xff] }
  0xb7   :  { %2777 = vmatpush1.bf16.msra.mxu0 %v10165_v41  ;;  %2850 = vmatpush1.bf16.msra.mxu1 %v10167_v3  ;;  %v2330_v41 = vcombine.low %v11449_v53, %v11419_v38  ;;  %v2313_v3 = vcombine.low %v2304_v13, %v2311_v18 }
  0xb8   :  { %2778 = vmatprep.subr.bf16.mxu0 %v10158_v23  ;;  %2851 = vmatprep.subr.bf16.mxu1 %v10160_v15  ;;  %v2279_v23 = vld [vmem:[#allocation5 + $0x4d8] sm:$0x77]  ;;  %v2331_v15 = vcombine.low %v11444_v48, %v11453_v57 }
  0xb9   :  { %v2346_v53 = vrot.slane %v2330_v41, %v11208_v22  ;;  %v2327_v48 = vrot.slane %v2313_v3, %v11208_v22  ;;  %v10124_v41 = vcombine.high %v11612_v55, %v11618_v9  ;;  %v18269_v3 = vld [vmem:[#allocation14_spill] sm:$0xff] }
  0xba   :  { %10113 = vmatmul.mubr.msk.bf16.gmra.mxu0 %vm1113_vm0, %v11801_v5  ;;  %10118 = vmatmul.mubr.msk.bf16.gmra.mxu1 %vm1113_vm0, %v11801_v5  ;;  %v2240_v5 = vld [vmem:[#allocation5 + $0x3a0] sm:$0xff]  ;;  %v2353_v57 = vrot.slane %v2331_v15, %v11208_v22  ;;  %v10161_v15 = vcombine.low %v2262_v11, %v2266_v21 }
  0xbb   :  { %2779 = vmatpush1.bf16.msra.mxu0 %v10157_v37  ;;  %2852 = vmatpush1.bf16.msra.mxu1 %v10159_v54  ;;  %v10134_v6 = vcombine.high %v2236_v25, %v2240_v5  ;;  %v10133_v20 = vcombine.low %v2236_v25, %v2240_v5  ;;  %v10127_v37 = vcombine.low %v2229_v10, %v2233_v26 }
  0xbc   :  { %2780 = vmatprep.subr.bf16.mxu0 %v10150_v4  ;;  %2133 = vmatprep.mubr.bf16.mxu0 %v18266_v1  ;;  %v10178_v54 = vcombine.high %v2278_v16, %v2278_v16  ;;  %v2360_v4 = vrot.slane %v2332_v40, %v11208_v22  ;;  %v2259_v16 = vld [vmem:[#allocation5 + $0x438] sm:$0xff] }
  0xbd   :  { %2206 = vmatprep.mubr.bf16.mxu1 %v18266_v1  ;;  %2853 = vmatprep.subr.bf16.mxu1 %v10152_v34  ;;  %v10179_v34 = vcombine.low %v2279_v23, %v2279_v23 }
  0xbe   :  { %v2362_v32 = vcombine.low %v2353_v57, %v2360_v4  ;;  %v2238_v4 = vld [vmem:[#allocation5 + $0x390] sm:$0xff] }
  0xbf   :  { %2781 = vmatpush1.bf16.msra.mxu0 %v10149_v31  ;;  %2854 = vmatpush1.bf16.msra.mxu1 %v10151_v62  ;;  %v2275_v31 = vld [vmem:[#allocation5 + $0x4b8] sm:$0xff]  ;;  %v2379_v62 = vcombine.low %v11533_v0, %v11540_v12  ;;  %v2767_v5 = vsel %vm1126_vm11, %v10179_v34, 0  ;;  %v10137_v11 = vcombine.low %v2238_v4, %v2242_v58 }
  0xc0   :  { %2782 = vmatprep.subr.bf16.mxu0 %v10142_v46  ;;  %2855 = vmatprep.subr.bf16.mxu1 %v10144_v2  ;;  %v10122_v46 = vcombine.high %v11533_v0, %v11540_v12  ;;  %v2381_v2 = vcombine.low %v11536_v14, %v11553_v39  ;;  %v10172_v47 = vcombine.high %v2271_v36, %v2275_v31 }
  0xc1   :  { %v2395_v0 = vrot.slane %v2379_v62, %v11208_v22  ;;  %v2376_v30 = vrot.slane %v2362_v32, %v11208_v22  ;;  %v10171_v26 = vcombine.low %v2271_v36, %v2275_v31  ;;  %v2243_v36 = vld [vmem:[#allocation5 + $0x3b8] sm:$0xff]  ;;  %v2234_v32 = vld [vmem:[#allocation5 + $0x370] sm:$0xff] }
  0xc2   :  { %10114 = vmatmul.mubr.msk.bf16.gmra.mxu0 %vm1113_vm0, %v11749_v44  ;;  %10119 = vmatmul.mubr.msk.bf16.gmra.mxu1 %vm1113_vm0, %v11749_v44  ;;  %v2329_v44 = vcombine.low %v11429_v42, %v11415_v56  ;;  %v2320_v56 = vrot.slane %v2312_v43, %v11208_v22  ;;  %v10180_v42 = vcombine.high %v2279_v23, %v2279_v23  ;;  %v2255_v43 = vld [vmem:[#allocation5 + $0x418] sm:$0xff] }
  0xc3   :  { %2783 = vmatpush1.bf16.msra.mxu0 %v10141_v29  ;;  %2856 = vmatpush1.bf16.msra.mxu1 %v10143_v8  ;;  %v2263_v29 = vld [vmem:[#allocation5 + $0x458] sm:$0xff]  ;;  %v2402_v12 = vrot.slane %v10122_v46, %v11208_v22  ;;  %v2410_v13 = vcombine.low %v2388_v59, %v2395_v0  ;;  %v2430_v23 = vcombine.low %v11615_v60, %v18269_v3  ;;  %v2230_v46 = vld [vmem:[#allocation5 + $0x350] sm:$0xff] }
  0xc4   :  { %2143 = vmatprep.mubr.bf16.mxu0 %v18266_v1  ;;  %2216 = vmatprep.mubr.bf16.mxu1 %v18266_v1  ;;  %v2339_v38 = vrot.slane %v2329_v44, %v11208_v22  ;;  %v11885_v25 = vcombine.low %v2320_v56, %v2327_v48  ;;  %v2267_v8 = vld [vmem:[#allocation5 + $0x478] sm:$0xff]  ;;  %v2428_v44 = vcombine.low %v11612_v55, %v11618_v9 }
  0xc5   :  { %2784 = vmatprep.subr.bf16.mxu0 %v10134_v6  ;;  %2857 = vmatprep.subr.bf16.mxu1 %v10136_v17  ;;  %v2409_v6 = vrot.slane %v2381_v2, %v11208_v22  ;;  %v10164_v33 = vcombine.high %v2263_v29, %v2267_v8  ;;  %v10163_v51 = vcombine.low %v2263_v29, %v2267_v8  ;;  %v2251_v56 = vld [vmem:[#allocation5 + $0x3f8] sm:$0xff] }
  0xc6   :  { %v2361_v35 = vcombine.low %v2339_v38, %v2346_v53  ;;  %v2418_v63 = vrot.slane %v2410_v13, %v11208_v22  ;;  %v2444_v60 = vrot.slane %v2428_v44, %v11208_v22  ;;  %v2451_v9 = vrot.slane %v10124_v41, %v11208_v22 }
  0xc7   :  { %2785 = vmatpush1.bf16.msra.mxu0 %v10133_v20  ;;  %2858 = vmatpush1.bf16.msra.mxu1 %v10135_v27  ;;  %v2411_v18 = vcombine.low %v2402_v12, %v2409_v6  ;;  %v2254_v20 = vld [vmem:[#allocation5 + $0x410] sm:$0xff]  ;;  %v10155_v53 = vcombine.low %v2255_v43, %v2259_v16  ;;  %v10138_v2 = vcombine.high %v2238_v4, %v2242_v58 }
  0xc8   :  { %2786 = vmatprep.subr.bf16.mxu0 %v10126_v45  ;;  %2859 = vmatprep.subr.bf16.mxu1 %v10128_v28  ;;  %v2369_v17 = vrot.slane %v2361_v35, %v11208_v22  ;;  %v2258_v27 = vld [vmem:[#allocation5 + $0x430] sm:$0xff]  ;;  %v10123_v45 = vcombine.high %v11536_v14, %v11553_v39  ;;  %v10130_v29 = vcombine.high %v2230_v46, %v2234_v32 }
  0xc9   :  { %v10154_v14 = vcombine.high %v2254_v20, %v2258_v27  ;;  %v2246_v39 = vld [vmem:[#allocation5 + $0x3d0] sm:$0xff]  ;;  %v2425_v40 = vrot.slane %v2411_v18, %v11208_v22  ;;  %v10153_v38 = vcombine.low %v2254_v20, %v2258_v27  ;;  %v10129_v0 = vcombine.low %v2230_v46, %v2234_v32 }
  0xca   :  { %10115 = vmatmul.mubr.msk.bf16.gmra.mxu0 %vm1113_vm0, %v11773_v52  ;;  %10120 = vmatmul.mubr.msk.bf16.gmra.mxu1 %vm1113_vm0, %v11773_v52  ;;  %v2274_v52 = vld [vmem:[#allocation5 + $0x4b0] sm:$0xff]  ;;  %v11903_v28 = vcombine.low %v2369_v17, %v2376_v30  ;;  %v2437_v55 = vrot.slane %v10123_v45, %v11208_v22 }
  0xcb   :  { %2787 = vmatpush1.bf16.msra.mxu0 %v10125_v7  ;;  %2860 = vmatpush1.bf16.msra.mxu1 %v10127_v37  ;;  %v10170_v24 = vcombine.high %v2270_v50, %v2274_v52  ;;  %v10169_v10 = vcombine.low %v2270_v50, %v2274_v52  ;;  %v10156_v7 = vcombine.high %v2255_v43, %v2259_v16  ;;  %v2250_v37 = vld [vmem:[#allocation5 + $0x3f0] sm:$0xff]  ;;  %v2239_v52 = vld [vmem:[#allocation5 + $0x398] sm:$0xff] }
  0xcc   :  { %2804 = vmatprep.mubr.bf16.mxu0 %v18266_v1  ;;  %2877 = vmatprep.mubr.bf16.mxu1 %v18266_v1  ;;  %v10146_v48 = vcombine.high %v2246_v39, %v2250_v37  ;;  %v2426_v61 = vcombine.low %v2418_v63, %v2425_v40  ;;  %v2459_v34 = vcombine.low %v2437_v55, %v2444_v60 }
  0xcd   :  { %10191 = vmatprep.subr.msk.bf16.mxu0 %vm1126_vm11, %v10178_v54  ;;  %10196 = vmatprep.subr.msk.bf16.mxu1 %vm1126_vm11, %v10180_v42  ;;  %v2247_v54 = vld [vmem:[#allocation5 + $0x3d8] sm:$0xff]  ;;  %v2458_v42 = vrot.slane %v2430_v23, %v11208_v22  ;;  %v10145_v31 = vcombine.low %v2246_v39, %v2250_v37  ;;  %v10140_v35 = vcombine.high %v2239_v52, %v2243_v36  ;;  %vm8982_vm11 = vcmask 1047559  }
  0xce   :  { %v10148_v57 = vcombine.high %v2247_v54, %v2251_v56  ;;  %v10147_v62 = vcombine.low %v2247_v54, %v2251_v56  ;;  %v10139_v21 = vcombine.low %v2239_v52, %v2243_v36 }
  0xcf   :  { %v2460_v50 = vcombine.low %v2451_v9, %v2458_v42 }
  0xd2   :  { %10182 = vmatmul.mubr.msk.bf16.vlgmr.msra.gmra.mxu0 %vm1113_vm0, %v11885_v25  ;;  %10187 = vmatmul.mubr.msk.bf16.vlgmr.msra.gmra.mxu1 %vm1113_vm0, %v11885_v25 }
  0xd3   :  { %2921 = vmatpush1.bf16.msra.mxu0 %v2761_v49  ;;  %2994 = vmatpush1.bf16.msra.mxu1 %v2767_v5  ;;  %v2231_v49 = vld [vmem:[#allocation5 + $0x358] sm:$0xff] }
  0xd4   :  { %2814 = vmatprep.mubr.bf16.mxu0 %v18266_v1  ;;  %2887 = vmatprep.mubr.bf16.mxu1 %v18266_v1  ;;  %v2235_v5 = vld [vmem:[#allocation5 + $0x378] sm:$0xff] }
  0xd5   :  { %2922 = vmatprep.subr.bf16.mxu0 %v10170_v24  ;;  %2995 = vmatprep.subr.bf16.mxu1 %v10172_v47  ;;  %v2467_v24 = vrot.slane %v2459_v34, %v11208_v22  ;;  %v2474_v47 = vrot.slane %v2460_v50, %v11208_v22  ;;  %v10132_v8 = vcombine.high %v2231_v49, %v2235_v5 }
  0xd6   :  { %v10131_v12 = vcombine.low %v2231_v49, %v2235_v5 }
  0xd7   :  { %2923 = vmatpush1.bf16.msra.mxu0 %v10169_v10  ;;  %2996 = vmatpush1.bf16.msra.mxu1 %v10171_v26  ;;  %v2475_v59 = vcombine.low %v2467_v24, %v2474_v47 }
  0xd8   :  { %2924 = vmatprep.subr.bf16.mxu0 %v10162_v19  ;;  %2997 = vmatprep.subr.bf16.mxu1 %v10164_v33 }
  0xda   :  { %10183 = vmatmul.mubr.msk.bf16.gmra.mxu0 %vm1113_vm0, %v11903_v28  ;;  %10188 = vmatmul.mubr.msk.bf16.gmra.mxu1 %vm1113_vm0, %v11903_v28 }
  0xdb   :  { %2925 = vmatpush1.bf16.msra.mxu0 %v10161_v15  ;;  %2998 = vmatpush1.bf16.msra.mxu1 %v10163_v51 }
  0xdc   :  { %2824 = vmatprep.mubr.bf16.mxu0 %v18266_v1  ;;  %2897 = vmatprep.mubr.bf16.mxu1 %v18266_v1 }
  0xdd   :  { %2926 = vmatprep.subr.bf16.mxu0 %v10154_v14  ;;  %2999 = vmatprep.subr.bf16.mxu1 %v10156_v7 }
  0xdf   :  { %2927 = vmatpush1.bf16.msra.mxu0 %v10153_v38  ;;  %3000 = vmatpush1.bf16.msra.mxu1 %v10155_v53 }
  0xe0   :  { %2928 = vmatprep.subr.bf16.mxu0 %v10146_v48  ;;  %3001 = vmatprep.subr.bf16.mxu1 %v10148_v57 }
  0xe2   :  { %10184 = vmatmul.mubr.msk.bf16.gmra.mxu0 %vm1113_vm0, %v2426_v61  ;;  %10189 = vmatmul.mubr.msk.bf16.gmra.mxu1 %vm1113_vm0, %v2426_v61 }
  0xe3   :  { %2929 = vmatpush1.bf16.msra.mxu0 %v10145_v31  ;;  %3002 = vmatpush1.bf16.msra.mxu1 %v10147_v62 }
  0xe4   :  { %2834 = vmatprep.mubr.bf16.mxu0 %v18266_v1  ;;  %2907 = vmatprep.mubr.bf16.mxu1 %v18266_v1 }
  0xe5   :  { %2930 = vmatprep.subr.bf16.mxu0 %v10138_v2  ;;  %3003 = vmatprep.subr.bf16.mxu1 %v10140_v35 }
  0xe7   :  { %2931 = vmatpush1.bf16.msra.mxu0 %v10137_v11  ;;  %3004 = vmatpush1.bf16.msra.mxu1 %v10139_v21 }
  0xe8   :  { %2932 = vmatprep.subr.bf16.mxu0 %v10130_v29  ;;  %3005 = vmatprep.subr.bf16.mxu1 %v10132_v8 }
  0xea   :  { %10185 = vmatmul.mubr.msk.bf16.gmra.mxu0 %vm1113_vm0, %v2475_v59  ;;  %10190 = vmatmul.mubr.msk.bf16.gmra.mxu1 %vm1113_vm0, %v2475_v59 }
  0xeb   :  { %2933 = vmatpush1.bf16.msra.mxu0 %v10129_v0  ;;  %3006 = vmatpush1.bf16.msra.mxu1 %v10131_v12 }
  0xec   :  { %2950 = vmatprep.mubr.bf16.mxu0 %v18266_v1  ;;  %3023 = vmatprep.mubr.bf16.mxu1 %v18266_v1 }
  0xf2   :  { %10192 = vmatmul.mubr.msk.bf16.vlgmr.msra.gmra.mxu0 %vm1113_vm0, %v11885_v25  ;;  %10197 = vmatmul.mubr.msk.bf16.vlgmr.msra.gmra.mxu1 %vm1113_vm0, %v11885_v25 }
  0xf3   :  { %2960 = vmatprep.mubr.bf16.mxu0 %v18266_v1  ;;  %3033 = vmatprep.mubr.bf16.mxu1 %v18266_v1 }
  0xfa   :  { %10193 = vmatmul.mubr.msk.bf16.gmra.mxu0 %vm1113_vm0, %v11903_v28  ;;  %10198 = vmatmul.mubr.msk.bf16.gmra.mxu1 %vm1113_vm0, %v11903_v28 }
  0xfb   :  { %2970 = vmatprep.mubr.bf16.mxu0 %v18266_v1  ;;  %3043 = vmatprep.mubr.bf16.mxu1 %v18266_v1 }
 0x101   :  { %v11945_v22 = vpop.f32.mrf.mxu0  ;;  %v11947_v6 = vpop.f32.mrf.mxu1 }
 0x102   :  { %18270 = vst [vmem:[#allocation12_spill] sm:$0xff] %v11947_v6  ;;  %10194 = vmatmul.mubr.msk.bf16.gmra.mxu0 %vm1113_vm0, %v2426_v61  ;;  %10199 = vmatmul.mubr.msk.bf16.gmra.mxu1 %vm1113_vm0, %v2426_v61 }
 0x103   :  { %v11951_v25 = vpop.f32.mrf.mxu0  ;;  %v11953_v17 = vpop.f32.mrf.mxu1  ;;  %2980 = vmatprep.mubr.bf16.mxu0 %v18266_v1  ;;  %3053 = vmatprep.mubr.bf16.mxu1 %v18266_v1 }
 0x104   :  { %18271 = vst [vmem:[#allocation13_spill] sm:$0xff] %v11951_v25  ;;  %18272 = vst [vmem:[#allocation14_spill] sm:$0xff] %v11953_v17 }
 0x105   :  { %v11957_v30 = vpop.f32.mrf.mxu0  ;;  %v11959_v10 = vpop.f32.mrf.mxu1 }
 0x107   :  { %v11961_v26 = vpop.f32.mrf.mxu0  ;;  %v11963_v19 = vpop.f32.mrf.mxu1 }
 0x108   :  { %18273 = vst [vmem:[#allocation15_spill] sm:$0xff] %v11961_v26  ;;  %18274 = vst [vmem:[#allocation16_spill] sm:$0xff] %v11963_v19 }
 0x10a   :  { %10195 = vmatmul.mubr.msk.bf16.gmra.mxu0 %vm1113_vm0, %v2475_v59  ;;  %10200 = vmatmul.mubr.msk.bf16.gmra.mxu1 %vm1113_vm0, %v2475_v59 }
 0x10e   :  { %v11967_v33 = vpop.f32.mrf.mxu0  ;;  %v11969_v13 = vpop.f32.mrf.mxu1 }
 0x10f   :  { %18275 = vst [vmem:[#allocation17_spill] sm:$0xff] %v11969_v13 }
 0x110   :  { %v11971_v18 = vpop.f32.mrf.mxu0  ;;  %v11973_v20 = vpop.f32.mrf.mxu1 }
 0x111   :  { %18276 = vst [vmem:[#allocation18_spill] sm:$0xff] %v11971_v18  ;;  %18277 = vst [vmem:[#allocation19_spill] sm:$0xff] %v11973_v20 }
 0x112   :  { %v11975_v1 = vpop.f32.mrf.mxu0  ;;  %v11977_v27 = vpop.f32.mrf.mxu1 }
 0x113   :  { %18278 = vst [vmem:[#allocation20_spill] sm:$0xff] %v11977_v27 }
 0x114   :  { %v11979_v45 = vpop.f32.mrf.mxu0  ;;  %v11981_v28 = vpop.f32.mrf.mxu1 }
 0x115   :  { %18279 = vst [vmem:[#allocation21_spill] sm:$0xff] %v11979_v45  ;;  %18280 = vst [vmem:[#allocation22_spill] sm:$0xff] %v11981_v28 }
 0x11d   :  { %v11983_v43 = vpop.f32.mrf.mxu0  ;;  %v11985_v16 = vpop.f32.mrf.mxu1 }
 0x11e   :  { %18281 = vst [vmem:[#allocation23_spill] sm:$0xff] %v11985_v16 }
 0x11f   :  { %v11987_v44 = vpop.f32.mrf.mxu0  ;;  %v11989_v41 = vpop.f32.mrf.mxu1 }
 0x120   :  { %18282 = vst [vmem:[#allocation24_spill] sm:$0xff] %v11987_v44  ;;  %18283 = vst [vmem:[#allocation25_spill] sm:$0xff] %v11989_v41 }
 0x121   :  { %v11991_v3 = vpop.f32.mrf.mxu0  ;;  %v11993_v23 = vpop.f32.mrf.mxu1 }
 0x122   :  { %18284 = vst [vmem:[#allocation26_spill] sm:$0xff] %v11991_v3  ;;  %18285 = vst [vmem:[#allocation27_spill] sm:$0xff] %v11993_v23 }
 0x123   :  { %v11995_v15 = vpop.f32.mrf.mxu0  ;;  %v11997_v51 = vpop.f32.mrf.mxu1 }
 0x12a   :  { %v11999_v14 = vpop.f32.mrf.mxu0  ;;  %v12001_v39 = vpop.f32.mrf.mxu1 }
 0x12c   :  { %v12003_v63 = vpop.f32.mrf.mxu0  ;;  %v12005_v40 = vpop.f32.mrf.mxu1 }
 0x12e   :  { %v12007_v7 = vpop.f32.mrf.mxu0  ;;  %v12009_v37 = vpop.f32.mrf.mxu1 }
 0x12f   :  { %18286 = vst [vmem:[#allocation28_spill] sm:$0xff] %v12007_v7  ;;  %18287 = vst [vmem:[#allocation29_spill] sm:$0xff] %v12009_v37 }
 0x130   :  { %v12011_v54 = vpop.f32.mrf.mxu0  ;;  %v12013_v56 = vpop.f32.mrf.mxu1 }
 0x132   :  { %v12015_v55 = vpop.f32.mrf.mxu0  ;;  %v12017_v60 = vpop.f32.mrf.mxu1 }
 0x134   :  { %v12019_v9 = vpop.f32.mrf.mxu0  ;;  %v12021_v42 = vpop.f32.mrf.mxu1 }
 0x136   :  { %v12023_v38 = vpop.f32.mrf.mxu0  ;;  %v12025_v53 = vpop.f32.mrf.mxu1 }
 0x138   :  { %v12027_v48 = vpop.f32.mrf.mxu0  ;;  %v12029_v57 = vpop.f32.mrf.mxu1 }
 0x13a   :  { %v12031_v4 = vpop.f32.mrf.mxu0  ;;  %v12033_v61 = vpop.f32.mrf.mxu1 }
 0x13c   :  { %v12035_v34 = vpop.f32.mrf.mxu0  ;;  %v12037_v50 = vpop.f32.mrf.mxu1 }
 0x13e   :  { %v12039_v58 = vpop.f32.mrf.mxu0  ;;  %v12041_v52 = vpop.f32.mrf.mxu1 }
 0x140   :  { %v12043_v36 = vpop.f32.mrf.mxu0  ;;  %v12045_v31 = vpop.f32.mrf.mxu1 }
 0x142   :  { %v12047_v62 = vpop.f32.mrf.mxu0  ;;  %v12049_v46 = vpop.f32.mrf.mxu1 }
 0x144   :  { %v12051_v2 = vpop.f32.mrf.mxu0  ;;  %v12053_v35 = vpop.f32.mrf.mxu1 }
 0x146   :  { %v12055_v32 = vpop.f32.mrf.mxu0  ;;  %v12057_v49 = vpop.f32.mrf.mxu1 }
 0x148   :  { %v12059_v5 = vpop.f32.mrf.mxu0  ;;  %v12061_v24 = vpop.f32.mrf.mxu1 }
 0x14a   :  { %v12063_v47 = vpop.f32.mrf.mxu0  ;;  %v12065_v11 = vpop.f32.mrf.mxu1 }
 0x14c   :  { %v12067_v21 = vpop.f32.mrf.mxu0  ;;  %v12069_v29 = vpop.f32.mrf.mxu1 }
 0x14e   :  { %v12071_v8 = vpop.f32.mrf.mxu0  ;;  %v12073_v59 = vpop.f32.mrf.mxu1 }
 0x150   :  { %v12075_v0 = vpop.f32.mrf.mxu0  ;;  %v12077_v12 = vpop.f32.mrf.mxu1 }
 0x152   :  { %v12079_v41 = vpop.f32.mrf.mxu0  ;;  %v12081_v44 = vpop.f32.mrf.mxu1 }
 0x153   :  { %18288 = vst [vmem:[#allocation30_spill] sm:$0xff] %v12081_v44 }
 0x154   :  { %v12083_v28 = vpop.f32.mrf.mxu0  ;;  %v12085_v45 = vpop.f32.mrf.mxu1 }
 0x155   :  { %18289 = vst [vmem:[#allocation31_spill] sm:$0xff] %v12083_v28  ;;  %18290 = vst [vmem:[#allocation32_spill] sm:$0xff] %v12085_v45 }
 0x156   :  { %v12087_v20 = vpop.f32.mrf.mxu0  ;;  %v12089_v18 = vpop.f32.mrf.mxu1 }
 0x158   :  { %v12091_v19 = vpop.f32.mrf.mxu0  ;;  %v12093_v17 = vpop.f32.mrf.mxu1 }
 0x159   :  { %18291 = vst [vmem:[#allocation33_spill] sm:$0xff] %v12091_v19  ;;  %18292 = vst [vmem:[#allocation34_spill] sm:$0xff] %v12093_v17 }
 0x15a   :  { %v12095_v25 = vpop.f32.mrf.mxu0  ;;  %v12097_v26 = vpop.f32.mrf.mxu1 }
 0x15b   :  { %18293 = vst [vmem:[#allocation35_spill] sm:$0xff] %v12097_v26 }
 0x15c   :  { %v12099_v37 = vpop.f32.mrf.mxu0  ;;  %v12101_v23 = vpop.f32.mrf.mxu1 }
 0x15d   :  { %18294 = vst [vmem:[#allocation36_spill] sm:$0xff] %v12099_v37  ;;  %18295 = vst [vmem:[#allocation37_spill] sm:$0xff] %v12101_v23 }
 0x15e   :  { %v12103_v7 = vpop.f32.mrf.mxu0  ;;  %v12105_v28 = vpop.f32.mrf.mxu1 }
 0x15f   :  { %18296 = vst [vmem:[#allocation38_spill] sm:$0xff] %v12105_v28 }
 0x160   :  { %v12107_v45 = vpop.f32.mrf.mxu0  ;;  %v12109_v16 = vpop.f32.mrf.mxu1 }
 0x161   :  { %18297 = vst [vmem:[#allocation39_spill] sm:$0xff] %v12107_v45  ;;  %18298 = vst [vmem:[#allocation40_spill] sm:$0xff] %v12109_v16 }
 0x162   :  { %v12111_v27 = vpop.f32.mrf.mxu0  ;;  %v12113_v19 = vpop.f32.mrf.mxu1 }
 0x163   :  { %18299 = vst [vmem:[#allocation41_spill] sm:$0xff] %v12113_v19 }
 0x164   :  { %v12115_v17 = vpop.f32.mrf.mxu0  ;;  %v12117_v3 = vpop.f32.mrf.mxu1 }
 0x165   :  { %18300 = vst [vmem:[#allocation42_spill] sm:$0xff] %v12115_v17  ;;  %18301 = vst [vmem:[#allocation43_spill] sm:$0xff] %v12117_v3 }
 0x166   :  { %v12119_v26 = vpop.f32.mrf.mxu0  ;;  %v12121_v37 = vpop.f32.mrf.mxu1 }
 0x167   :  { %18302 = vst [vmem:[#allocation44_spill] sm:$0xff] %v12119_v26  ;;  %18303 = vst [vmem:[#allocation45_spill] sm:$0xff] %v12121_v37 }
 0x168   :  { %v1995_v23 = vpop.f32.mrf.mxu0  ;;  %v2068_v13 = vpop.f32.mrf.mxu1 }
 0x169   :  { %v12124_v28 = vadd.f32 %v1995_v23, %v11995_v15  ;;  %v12127_v45 = vadd.f32 %v2068_v13, %v11997_v51 }
 0x16a   :  { %v1999_v16 = vpop.f32.mrf.mxu0  ;;  %v2072_v44 = vpop.f32.mrf.mxu1 }
 0x16b   :  { %18304 = vst [vmem:[#allocation46_spill] sm:$0xff] %v12127_v45  ;;  %v12130_v19 = vadd.f32 %v1999_v16, %v11999_v14  ;;  %v12133_v17 = vadd.f32 %v2072_v44, %v12001_v39 }
 0x16c   :  { %v2001_v3 = vpop.f32.mrf.mxu0  ;;  %v2074_v26 = vpop.f32.mrf.mxu1 }
 0x16d   :  { %v12136_v37 = vadd.f32 %v2001_v3, %v12003_v63  ;;  %v12139_v6 = vadd.f32 %v2074_v26, %v12005_v40 }
 0x16e   :  { %v12141_v23 = vpop.f32.mrf.mxu0  ;;  %v12143_v13 = vpop.f32.mrf.mxu1 }
 0x16f   :  { %18305 = vst [vmem:[#allocation47_spill] sm:$0xff] %v12139_v6 }
 0x170   :  { %v2005_v15 = vpop.f32.mrf.mxu0  ;;  %v2078_v51 = vpop.f32.mrf.mxu1 }
 0x171   :  { %v12146_v16 = vadd.f32 %v2005_v15, %v12011_v54  ;;  %v12149_v44 = vadd.f32 %v2078_v51, %v12013_v56 }
 0x172   :  { %v2115_v14 = vpop.f32.mrf.mxu0  ;;  %v2188_v39 = vpop.f32.mrf.mxu1 }
 0x173   :  { %v12152_v3 = vadd.f32 %v2115_v14, %v12015_v55  ;;  %v12155_v26 = vadd.f32 %v2188_v39, %v12017_v60 }
 0x174   :  { %v2117_v63 = vpop.f32.mrf.mxu0  ;;  %v2190_v40 = vpop.f32.mrf.mxu1 }
 0x175   :  { %v12158_v6 = vadd.f32 %v2117_v63, %v12019_v9  ;;  %v12161_v45 = vadd.f32 %v2190_v40, %v12021_v42 }
 0x176   :  { %v2119_v54 = vpop.f32.mrf.mxu0  ;;  %v2192_v15 = vpop.f32.mrf.mxu1 }
 0x177   :  { %18306 = vst [vmem:[#allocation48_spill] sm:$0xff] %v12158_v6  ;;  %18307 = vst [vmem:[#allocation49_spill] sm:$0xff] %v12161_v45  ;;  %v12164_v56 = vadd.f32 %v2119_v54, %v12023_v38  ;;  %v12167_v51 = vadd.f32 %v2192_v15, %v12025_v53  ;;  %v1980_v45 = vadd.f32 %v12095_v25, %v11967_v33  ;;  %v18336_v6 = vld [vmem:[#allocation44_spill] sm:$0xff] }
 0x178   :  { %v2121_v55 = vpop.f32.mrf.mxu0  ;;  %v2194_v14 = vpop.f32.mrf.mxu1  ;;  %v1990_v25 = vadd.f32 %v12111_v27, %v11983_v43 }
 0x179   :  { %v12170_v60 = vadd.f32 %v2121_v55, %v12027_v48  ;;  %v12173_v39 = vadd.f32 %v2194_v14, %v12029_v57 }
 0x17a   :  { %v2125_v9 = vpop.f32.mrf.mxu0  ;;  %v2198_v63 = vpop.f32.mrf.mxu1 }
 0x17b   :  { %18308 = vst [vmem:[#allocation50_spill] sm:$0xff] %v12170_v60  ;;  %18309 = vst [vmem:[#allocation51_spill] sm:$0xff] %v12173_v39  ;;  %v12176_v42 = vadd.f32 %v2125_v9, %v12031_v4  ;;  %v12179_v40 = vadd.f32 %v2198_v63, %v12033_v61  ;;  %v18340_v60 = vld [vmem:[#allocation38_spill] sm:$0xff] }
 0x17c   :  { %v2127_v38 = vpop.f32.mrf.mxu0  ;;  %v2200_v54 = vpop.f32.mrf.mxu1 }
 0x17d   :  { %v12182_v53 = vadd.f32 %v2127_v38, %v12035_v34  ;;  %v12185_v15 = vadd.f32 %v2200_v54, %v12037_v50 }
 0x17e   :  { %v2129_v48 = vpop.f32.mrf.mxu0  ;;  %v2202_v55 = vpop.f32.mrf.mxu1 }
 0x17f   :  { %18310 = vst [vmem:[#allocation52_spill] sm:$0xff] %v12182_v53  ;;  %18311 = vst [vmem:[#allocation53_spill] sm:$0xff] %v12185_v15  ;;  %v12188_v57 = vadd.f32 %v2129_v48, %v12039_v58  ;;  %v12191_v14 = vadd.f32 %v2202_v55, %v12041_v52  ;;  %v1970_v15 = vadd.f32 %v12079_v41, %v11945_v22  ;;  %v18335_v53 = vld [vmem:[#allocation26_spill] sm:$0xff] }
 0x180   :  { %v2131_v4 = vpop.f32.mrf.mxu0  ;;  %v2204_v9 = vpop.f32.mrf.mxu1  ;;  %v2047_v22 = vadd.f32 %v12089_v18, %v11959_v10 }
 0x181   :  { %18312 = vst [vmem:[#allocation54_spill] sm:$0xff] %v12191_v14  ;;  %v12194_v61 = vadd.f32 %v2131_v4, %v12043_v36  ;;  %v12197_v63 = vadd.f32 %v2204_v9, %v12045_v31  ;;  %v18367_v14 = vld [vmem:[#allocation34_spill] sm:$0xff] }
 0x182   :  { %v2135_v34 = vpop.f32.mrf.mxu0  ;;  %v2208_v38 = vpop.f32.mrf.mxu1 }
 0x183   :  { %18313 = vst [vmem:[#allocation55_spill] sm:$0xff] %v12194_v61  ;;  %18314 = vst [vmem:[#allocation56_spill] sm:$0xff] %v12197_v63  ;;  %v12200_v50 = vadd.f32 %v2135_v34, %v12047_v62  ;;  %v12203_v54 = vadd.f32 %v2208_v38, %v12049_v46 }
 0x184   :  { %v2137_v58 = vpop.f32.mrf.mxu0  ;;  %v2210_v48 = vpop.f32.mrf.mxu1 }
 0x185   :  { %18315 = vst [vmem:[#allocation57_spill] sm:$0xff] %v12203_v54  ;;  %v12206_v52 = vadd.f32 %v2137_v58, %v12051_v2  ;;  %v12209_v55 = vadd.f32 %v2210_v48, %v12053_v35 }
 0x186   :  { %v2139_v36 = vpop.f32.mrf.mxu0  ;;  %v2212_v4 = vpop.f32.mrf.mxu1 }
 0x187   :  { %18316 = vst [vmem:[#allocation58_spill] sm:$0xff] %v12206_v52  ;;  %18317 = vst [vmem:[#allocation59_spill] sm:$0xff] %v12209_v55  ;;  %v12212_v31 = vadd.f32 %v2139_v36, %v12055_v32  ;;  %v12215_v9 = vadd.f32 %v2212_v4, %v12057_v49 }
 0x188   :  { %v2141_v62 = vpop.f32.mrf.mxu0  ;;  %v2214_v34 = vpop.f32.mrf.mxu1 }
 0x189   :  { %18318 = vst [vmem:[#allocation60_spill] sm:$0xff] %v12215_v9  ;;  %v12218_v46 = vadd.f32 %v2141_v62, %v12059_v5  ;;  %v12221_v38 = vadd.f32 %v2214_v34, %v12061_v24 }
 0x18a   :  { %v2145_v2 = vpop.f32.mrf.mxu0  ;;  %v2218_v58 = vpop.f32.mrf.mxu1 }
 0x18b   :  { %18319 = vst [vmem:[#allocation61_spill] sm:$0xff] %v12218_v46  ;;  %18320 = vst [vmem:[#allocation62_spill] sm:$0xff] %v12221_v38  ;;  %v12224_v35 = vadd.f32 %v2145_v2, %v12063_v47  ;;  %v12227_v48 = vadd.f32 %v2218_v58, %v12065_v11  ;;  %v1984_v46 = vadd.f32 %v12103_v7, %v11975_v1 }
 0x18c   :  { %v2147_v32 = vpop.f32.mrf.mxu0  ;;  %v2220_v36 = vpop.f32.mrf.mxu1 }
 0x18d   :  { %18321 = vst [vmem:[#allocation63_spill] sm:$0xff] %v12227_v48  ;;  %v12230_v49 = vadd.f32 %v2147_v32, %v12067_v21  ;;  %v12233_v4 = vadd.f32 %v2220_v36, %v12069_v29 }
 0x18e   :  { %v2149_v5 = vpop.f32.mrf.mxu0  ;;  %v2222_v62 = vpop.f32.mrf.mxu1 }
 0x18f   :  { %18322 = vst [vmem:[#allocation64_spill] sm:$0xff] %v12230_v49  ;;  %18323 = vst [vmem:[#allocation65_spill] sm:$0xff] %v12233_v4  ;;  %v12236_v24 = vadd.f32 %v2149_v5, %v12071_v8  ;;  %v12239_v34 = vadd.f32 %v2222_v62, %v12073_v59 }
 0x190   :  { %v2151_v47 = vpop.f32.mrf.mxu0  ;;  %v2224_v2 = vpop.f32.mrf.mxu1 }
 0x191   :  { %18324 = vst [vmem:[#allocation66_spill] sm:$0xff] %v12239_v34  ;;  %v12242_v11 = vadd.f32 %v2151_v47, %v12075_v0  ;;  %v12245_v58 = vadd.f32 %v2224_v2, %v12077_v12  ;;  %v1974_v2 = vadd.f32 %v12087_v20, %v11957_v30  ;;  %v1994_v34 = vadd.f32 %v18336_v6, %v18335_v53 }
 0x192   :  { %v2806_v21 = vpop.f32.mrf.mxu0  ;;  %v2879_v32 = vpop.f32.mrf.mxu1 }
 0x193   :  { %18325 = vst [vmem:[#allocation67_spill] sm:$0xff] %v12242_v11  ;;  %18326 = vst [vmem:[#allocation68_spill] sm:$0xff] %v12245_v58  ;;  %v12273_v52 = vadd.f32 %v2806_v21, %v1970_v15  ;;  %v18331_v15 = vld [vmem:[#allocation12_spill] sm:$0xff]  ;;  %v18333_v21 = vld [vmem:[#allocation17_spill] sm:$0xff] }
 0x194   :  { %v12247_v29 = vpop.f32.mrf.mxu0  ;;  %v12249_v36 = vpop.f32.mrf.mxu1 }
 0x195   :  { %18328 = vst [vmem:[#allocation70_spill] sm:$0xff] %v12273_v52 }
 0x196   :  { %v2810_v4 = vpop.f32.mrf.mxu0  ;;  %v2883_v8 = vpop.f32.mrf.mxu1 }
 0x197   :  { %v12269_v11 = vadd.f32 %v2810_v4, %v1974_v2  ;;  %v12295_v10 = vadd.f32 %v2883_v8, %v2047_v22  ;;  %v18344_v22 = vld [vmem:[#allocation23_spill] sm:$0xff] }
 0x198   :  { %v12251_v5 = vpop.f32.mrf.mxu0  ;;  %v12253_v59 = vpop.f32.mrf.mxu1 }
 0x199   :  { %18327 = vst [vmem:[#allocation69_spill] sm:$0xff] %v12269_v11  ;;  %v3128_v33 = vadd.f32 %v12269_v11, %v12273_v52  ;;  %18337 = vst [vmem:[#allocation12_spill] sm:$0xff] %v12295_v10 }
 0x19a   :  { %v2816_v62 = vpop.f32.mrf.mxu0  ;;  %v2889_v38 = vpop.f32.mrf.mxu1 }
 0x19b   :  { %v12275_v30 = vadd.f32 %v2816_v62, %v1980_v45  ;;  %v18332_v45 = vld [vmem:[#allocation30_spill] sm:$0xff]  ;;  %v18334_v62 = vld [vmem:[#allocation35_spill] sm:$0xff] }
 0x19c   :  { %v12255_v55 = vpop.f32.mrf.mxu0  ;;  %v12257_v0 = vpop.f32.mrf.mxu1  ;;  %v2043_v4 = vadd.f32 %v18332_v45, %v18331_v15  ;;  %v2053_v2 = vadd.f32 %v18334_v62, %v18333_v21 }
 0x19d   :  { %18329 = vst [vmem:[#allocation71_spill] sm:$0xff] %v12275_v30  ;;  %v3129_v18 = vadd.f32 %v3128_v33, %v12275_v30  ;;  %v3240_v33 = vmul.f32 %v12269_v11, %v12269_v11 }
 0x19e   :  { %v2820_v12 = vpop.f32.mrf.mxu0  ;;  %v2893_v47 = vpop.f32.mrf.mxu1  ;;  %v12306_v15 = vadd.f32 %v2879_v32, %v2043_v4  ;;  %v12308_v45 = vadd.f32 %v2889_v38, %v2053_v2  ;;  %v18348_v4 = vld [vmem:[#allocation28_spill] sm:$0xff] }
 0x19f   :  { %v12287_v41 = vadd.f32 %v2820_v12, %v1984_v46  ;;  %v18339_v12 = vld [vmem:[#allocation20_spill] sm:$0xff]  ;;  %v2004_v2 = vadd.f32 %v12141_v23, %v18348_v4 }
 0x1a0   :  { %v12261_v58 = vpop.f32.mrf.mxu0  ;;  %v12263_v63 = vpop.f32.mrf.mxu1  ;;  %v2057_v48 = vadd.f32 %v18340_v60, %v18339_v12  ;;  %18341 = vst [vmem:[#allocation17_spill] sm:$0xff] %v12306_v15  ;;  %18342 = vst [vmem:[#allocation35_spill] sm:$0xff] %v12308_v45  ;;  %v3154_v62 = vadd.f32 %v12295_v10, %v12306_v15  ;;  %v3248_v12 = vmul.f32 %v12275_v30, %v12275_v30 }
 0x1a1   :  { %18330 = vst [vmem:[#allocation72_spill] sm:$0xff] %v12287_v41  ;;  %v3130_v21 = vadd.f32 %v3129_v18, %v12287_v41  ;;  %v3232_v18 = vmul.f32 %v12273_v52, %v12273_v52  ;;  %v3256_v23 = vmul.f32 %v12287_v41, %v12287_v41 }
 0x1a2   :  { %v2826_v39 = vpop.f32.mrf.mxu0  ;;  %v2899_v49 = vpop.f32.mrf.mxu1  ;;  %v12319_v60 = vadd.f32 %v2893_v47, %v2057_v48  ;;  %v18349_v48 = vld [vmem:[#allocation27_spill] sm:$0xff]  ;;  %v18350_v47 = vld [vmem:[#allocation45_spill] sm:$0xff] }
 0x1a3   :  { %v12298_v27 = vadd.f32 %v2826_v39, %v1990_v25  ;;  %v18345_v39 = vld [vmem:[#allocation41_spill] sm:$0xff]  ;;  %v3296_v9 = vadd.f32 %v3240_v33, %v3232_v18 }
 0x1a4   :  { %v12277_v20 = vpop.f32.mrf.mxu0  ;;  %v12279_v61 = vpop.f32.mrf.mxu1  ;;  %v2063_v25 = vadd.f32 %v18345_v39, %v18344_v22  ;;  %18346 = vst [vmem:[#allocation44_spill] sm:$0xff] %v12319_v60  ;;  %v2067_v22 = vadd.f32 %v18350_v47, %v18349_v48 }
 0x1a5   :  { %18338 = vst [vmem:[#allocation30_spill] sm:$0xff] %v12298_v27  ;;  %v3131_v38 = vadd.f32 %v3130_v21, %v12298_v27  ;;  %v3155_v21 = vadd.f32 %v3154_v62, %v12308_v45  ;;  %v3264_v33 = vmul.f32 %v12298_v27, %v12298_v27 }
 0x1a6   :  { %v2830_v1 = vpop.f32.mrf.mxu0  ;;  %v2903_v7 = vpop.f32.mrf.mxu1 }
 0x1a7   :  { %v12311_v6 = vadd.f32 %v2830_v1, %v1994_v34  ;;  %v3156_v52 = vadd.f32 %v3155_v21, %v12319_v60  ;;  %v12346_v30 = vadd.f32 %v2903_v7, %v2067_v22 }
 0x1a8   :  { %v12300_v43 = vpop.f32.mrf.mxu0  ;;  %v12302_v46 = vpop.f32.mrf.mxu1 }
 0x1a9   :  { %18343 = vst [vmem:[#allocation26_spill] sm:$0xff] %v12311_v6  ;;  %18353 = vst [vmem:[#allocation41_spill] sm:$0xff] %v12346_v30 }
 0x1aa   :  { %v2836_v53 = vpop.f32.mrf.mxu0  ;;  %v2909_v8 = vpop.f32.mrf.mxu1 }
 0x1ab   :  { %v12323_v32 = vadd.f32 %v2836_v53, %v12130_v19  ;;  %v12338_v19 = vadd.f32 %v2899_v49, %v2063_v25  ;;  %v3132_v53 = vadd.f32 %v3131_v38, %v12311_v6  ;;  %v18354_v25 = vld [vmem:[#allocation29_spill] sm:$0xff]  ;;  %v3297_v38 = vadd.f32 %v3296_v9, %v3248_v12 }
 0x1ac   :  { %v12325_v34 = vpop.f32.mrf.mxu0  ;;  %v12327_v1 = vpop.f32.mrf.mxu1  ;;  %v2077_v62 = vadd.f32 %v12143_v13, %v18354_v25  ;;  %v12361_v7 = vadd.f32 %v2909_v8, %v12133_v17  ;;  %v3272_v13 = vmul.f32 %v12311_v6, %v12311_v6  ;;  %v3234_v9 = vmul.f32 %v12306_v15, %v12306_v15 }
 0x1ad   :  { %18347 = vst [vmem:[#allocation20_spill] sm:$0xff] %v12323_v32  ;;  %18351 = vst [vmem:[#allocation38_spill] sm:$0xff] %v12338_v19  ;;  %v3133_v48 = vadd.f32 %v3132_v53, %v12323_v32  ;;  %v3157_v18 = vadd.f32 %v3156_v52, %v12338_v19  ;;  %v3250_v12 = vmul.f32 %v12308_v45, %v12308_v45 }
 0x1ae   :  { %v2840_v39 = vpop.f32.mrf.mxu0  ;;  %v2913_v11 = vpop.f32.mrf.mxu1  ;;  %18355 = vst [vmem:[#allocation28_spill] sm:$0xff] %v12361_v7  ;;  %v3258_v6 = vmul.f32 %v12319_v60, %v12319_v60 }
 0x1af   :  { %v12343_v4 = vadd.f32 %v2840_v39, %v2004_v2  ;;  %v3242_v2 = vmul.f32 %v12295_v10, %v12295_v10  ;;  %v3298_v39 = vadd.f32 %v3297_v38, %v3256_v23  ;;  %v3158_v52 = vadd.f32 %v3157_v18, %v12346_v30 }
 0x1b0   :  { %v12349_v47 = vpop.f32.mrf.mxu0  ;;  %v12351_v49 = vpop.f32.mrf.mxu1  ;;  %v12375_v17 = vadd.f32 %v2913_v11, %v2077_v62  ;;  %v3280_v23 = vmul.f32 %v12323_v32, %v12323_v32  ;;  %v18360_v32 = vld [vmem:[#allocation15_spill] sm:$0xff] }
 0x1b1   :  { %18352 = vst [vmem:[#allocation23_spill] sm:$0xff] %v12343_v4  ;;  %v3134_v22 = vadd.f32 %v3133_v48, %v12343_v4  ;;  %v3299_v25 = vadd.f32 %v3298_v39, %v3264_v33  ;;  %v3322_v38 = vadd.f32 %v3242_v2, %v3234_v9  ;;  %v3159_v27 = vadd.f32 %v3158_v52, %v12361_v7  ;;  %v18361_v52 = vld [vmem:[#allocation33_spill] sm:$0xff] }
 0x1b2   :  { %v12364_v21 = vpop.f32.mrf.mxu0  ;;  %v12366_v53 = vpop.f32.mrf.mxu1  ;;  %18356 = vst [vmem:[#allocation27_spill] sm:$0xff] %v12375_v17  ;;  %v3288_v11 = vmul.f32 %v12343_v4, %v12343_v4  ;;  %v3266_v33 = vmul.f32 %v12338_v19, %v12338_v19  ;;  %v1976_v60 = vadd.f32 %v18361_v52, %v18360_v32  ;;  %v18365_v19 = vld [vmem:[#allocation32_spill] sm:$0xff] }
 0x1b3   :  { %v3135_v41 = vrot.slane %v3134_v22, 4  ;;  %v3300_v18 = vadd.f32 %v3299_v25, %v3272_v13  ;;  %v3323_v10 = vadd.f32 %v3322_v38, %v3250_v12  ;;  %v3160_v2 = vadd.f32 %v3159_v27, %v12375_v17  ;;  %v18363_v12 = vld [vmem:[#allocation31_spill] sm:$0xff]  ;;  %v18366_v27 = vld [vmem:[#allocation16_spill] sm:$0xff] }
 0x1b4   :  { %v12377_v8 = vpop.f32.mrf.mxu0  ;;  %v12379_v48 = vpop.f32.mrf.mxu1  ;;  %v3274_v13 = vmul.f32 %v12346_v30, %v12346_v30  ;;  %v18372_v52 = vld [vmem:[#allocation36_spill] sm:$0xff] }
 0x1b5   :  { %18357 = vst [vmem:[#allocation45_spill] sm:$0xff] %v12377_v8  ;;  %18358 = vst [vmem:[#allocation29_spill] sm:$0xff] %v12379_v48  ;;  %v3301_v9 = vadd.f32 %v3300_v18, %v3280_v23  ;;  %v3324_v15 = vadd.f32 %v3323_v10, %v3258_v6  ;;  %v3136_v25 = vadd.f32 %v3135_v41, %v3134_v22  ;;  %v18362_v48 = vld [vmem:[#allocation13_spill] sm:$0xff]  ;;  %v18364_v8 = vld [vmem:[#allocation14_spill] sm:$0xff]  ;;  %v3161_v32 = vrot.slane %v3160_v2, 4 }
 0x1b6   :  { %v12386_v45 = vpop.f32.mrf.mxu0  ;;  %v12390_v62 = vpop.f32.mrf.mxu1  ;;  %v1972_v38 = vadd.f32 %v18363_v12, %v18362_v48  ;;  %v2045_v54 = vadd.f32 %v18365_v19, %v18364_v8  ;;  %v12412_v10 = vadd.f32 %v12251_v5, %v1976_v60  ;;  %v3282_v41 = vmul.f32 %v12361_v7, %v12361_v7  ;;  %v18371_v48 = vld [vmem:[#allocation18_spill] sm:$0xff]  ;;  %v18373_v19 = vld [vmem:[#allocation19_spill] sm:$0xff]  ;;  %v18374_v8 = vld [vmem:[#allocation37_spill] sm:$0xff] }
 0x1b7   :  { %v3302_v23 = vadd.f32 %v3301_v9, %v3288_v11  ;;  %v3325_v6 = vadd.f32 %v3324_v15, %v3266_v33  ;;  %v1982_v12 = vadd.f32 %v18372_v52, %v18371_v48  ;;  %v2055_v30 = vadd.f32 %v18374_v8, %v18373_v19  ;;  %v18376_v11 = vld [vmem:[#allocation39_spill] sm:$0xff]  ;;  %v18378_v48 = vld [vmem:[#allocation22_spill] sm:$0xff]  ;;  %v18379_v52 = vld [vmem:[#allocation40_spill] sm:$0xff] }
 0x1b8   :  { %v12395_v39 = vpop.f32.mrf.mxu0  ;;  %v12409_v18 = vpop.f32.mrf.mxu1  ;;  %18369 = vst [vmem:[#allocation33_spill] sm:$0xff] %v12412_v10  ;;  %v3137_v60 = vrot.slane %v3136_v25, 2  ;;  %v3290_v33 = vmul.f32 %v12375_v17, %v12375_v17  ;;  %v18380_v19 = vld [vmem:[#allocation24_spill] sm:$0xff]  ;;  %v18381_v8 = vld [vmem:[#allocation42_spill] sm:$0xff] }
 0x1b9   :  { %18359 = vst [vmem:[#allocation73_spill] sm:$0xff] %v12395_v39  ;;  %v2049_v39 = vadd.f32 %v18367_v14, %v18366_v27  ;;  %18368 = vst [vmem:[#allocation15_spill] sm:$0xff] %v12409_v18  ;;  %v18375_v14 = vld [vmem:[#allocation21_spill] sm:$0xff]  ;;  %v12425_v27 = vadd.f32 %v12247_v29, %v1972_v38  ;;  %v3326_v15 = vadd.f32 %v3325_v6, %v3274_v13  ;;  %v3303_v29 = vrot.slane %v3302_v23, 4 }
 0x1ba   :  { %v12401_v4 = vpop.f32.mrf.mxu0  ;;  %v1986_v9 = vadd.f32 %v18376_v11, %v18375_v14  ;;  %v2059_v18 = vadd.f32 %v18379_v52, %v18378_v48  ;;  %v12439_v14 = vadd.f32 %v12255_v55, %v1982_v12  ;;  %v12441_v38 = vpop.f32.mrf.mxu1  ;;  %v3162_v6 = vadd.f32 %v3161_v32, %v3160_v2  ;;  %v18383_v48 = vld [vmem:[#allocation25_spill] sm:$0xff]  ;;  %v18384_v52 = vld [vmem:[#allocation43_spill] sm:$0xff] }
 0x1bb   :  { %v12428_v5 = vadd.f32 %v12253_v59, %v2049_v39  ;;  %v12444_v59 = vadd.f32 %v12249_v36, %v2045_v54  ;;  %v3241_v39 = vmul.f32 %v12412_v10, %v12412_v10  ;;  %v3327_v13 = vadd.f32 %v3326_v15, %v3282_v41 }
 0x1bc   :  { %v12416_v22 = vpop.f32.mrf.mxu0  ;;  %18382 = vst [vmem:[#allocation14_spill] sm:$0xff] %v12439_v14  ;;  %v2065_v17 = vadd.f32 %v18384_v52, %v18383_v48  ;;  %v3141_v55 = vadd.f32 %v12412_v10, %v12425_v27  ;;  %v12455_v12 = vadd.f32 %v12257_v0, %v2055_v30  ;;  %v3233_v54 = vmul.f32 %v12425_v27, %v12425_v27  ;;  %v12470_v30 = vpop.f32.mrf.mxu1 }
 0x1bd   :  { %18370 = vst [vmem:[#allocation13_spill] sm:$0xff] %v12416_v22  ;;  %18377 = vst [vmem:[#allocation31_spill] sm:$0xff] %v12428_v5  ;;  %v1992_v22 = vadd.f32 %v18381_v8, %v18380_v19  ;;  %v12458_v19 = vadd.f32 %v12261_v58, %v1986_v9  ;;  %v3243_v36 = vmul.f32 %v12428_v5, %v12428_v5 }
 0x1be   :  { %v12432_v7 = vpop.f32.mrf.mxu0  ;;  %v3138_v2 = vadd.f32 %v3137_v60, %v3136_v25  ;;  %v3328_v41 = vadd.f32 %v3327_v13, %v3290_v33  ;;  %v3142_v32 = vadd.f32 %v3141_v55, %v12439_v14  ;;  %v3249_v15 = vmul.f32 %v12439_v14, %v12439_v14 }
 0x1bf   :  { %v12468_v8 = vadd.f32 %v12277_v20, %v1992_v22  ;;  %v3304_v0 = vadd.f32 %v3303_v29, %v3302_v23  ;;  %v3235_v9 = vmul.f32 %v12444_v59, %v12444_v59  ;;  %v3309_v48 = vadd.f32 %v3241_v39, %v3233_v54 }
 0x1c0   :  { %v12448_v11 = vpop.f32.mrf.mxu0  ;;  %v3167_v25 = vadd.f32 %v12428_v5, %v12444_v59  ;;  %v3163_v60 = vrot.slane %v3162_v6, 2  ;;  %v3251_v33 = vmul.f32 %v12455_v12, %v12455_v12  ;;  %v3143_v13 = vadd.f32 %v3142_v32, %v12458_v19  ;;  %v12492_v32 = vpop.f32.mrf.mxu1 }
 0x1c1   :  { %18385 = vst [vmem:[#allocation32_spill] sm:$0xff] %v12468_v8  ;;  %v3257_v20 = vmul.f32 %v12458_v19, %v12458_v19  ;;  %v12485_v23 = vadd.f32 %v12300_v43, %v12124_v28  ;;  %v3335_v22 = vadd.f32 %v3243_v36, %v3235_v9  ;;  %v3329_v39 = vrot.slane %v3328_v41, 4 }
 0x1c2   :  { %v12472_v58 = vpop.f32.mrf.mxu0  ;;  %v3168_v29 = vadd.f32 %v3167_v25, %v12455_v12  ;;  %v3139_v52 = vrot.slane %v3138_v2, 1  ;;  %v3310_v55 = vadd.f32 %v3309_v48, %v3249_v15  ;;  %v12489_v54 = vadd.f32 %v12263_v63, %v2059_v18 }
 0x1c3   :  { %18386 = vst [vmem:[#allocation16_spill] sm:$0xff] %v12485_v23  ;;  %v3144_v14 = vadd.f32 %v3143_v13, %v12468_v8  ;;  %v3305_v5 = vrot.slane %v3304_v0, 2  ;;  %v3265_v28 = vmul.f32 %v12468_v8, %v12468_v8  ;;  %v12500_v43 = vadd.f32 %v12325_v34, %v12136_v37  ;;  %v18390_v34 = vld [vmem:[#allocation46_spill] sm:$0xff] }
 0x1c4   :  { %v12494_v10 = vpop.f32.mrf.mxu0  ;;  %v3164_v36 = vadd.f32 %v3163_v60, %v3162_v6  ;;  %v12502_v9 = vadd.f32 %v3139_v52, %v3138_v2  ;;  %v3336_v15 = vadd.f32 %v3335_v22, %v3251_v33  ;;  %v3311_v63 = vadd.f32 %v3310_v55, %v3257_v20  ;;  %v18392_v22 = vld [vmem:[#allocation47_spill] sm:$0xff] }
 0x1c5   :  { %18387 = vst [vmem:[#allocation34_spill] sm:$0xff] %v12500_v43  ;;  %v12505_v18 = vadd.f32 %v12279_v61, %v2065_v17  ;;  %v3145_v48 = vadd.f32 %v3144_v14, %v12485_v23  ;;  %v3273_v25 = vmul.f32 %v12485_v23, %v12485_v23  ;;  %v3330_v13 = vadd.f32 %v3329_v39, %v3328_v41  ;;  %v12525_v14 = vpop.f32.mrf.mxu1 }
 0x1c6   :  { %v12512_v8 = vadd.f32 %v12349_v47, %v12146_v16  ;;  %3412 = vrot.lane.b32.xlu1 %v12502_v9, %s11147_s18  ;;  %3403 = vrot.lane.b32.xlu0 %v12502_v9, %s11154_s0  ;;  %v3169_v37 = vadd.f32 %v3168_v29, %v12489_v54  ;;  %v3259_v61 = vmul.f32 %v12489_v54, %v12489_v54  ;;  %v2976_v47 = vpop.f32.mrf.mxu0  ;;  %v3165_v60 = vrot.slane %v3164_v36, 1 }
 0x1c7   :  { %18388 = vst [vmem:[#allocation18_spill] sm:$0xff] %v12505_v18  ;;  %v12523_v17 = vadd.f32 %v12302_v46, %v18390_v34  ;;  %v3306_v16 = vadd.f32 %v3305_v5, %v3304_v0  ;;  %v3312_v6 = vadd.f32 %v3311_v63, %v3265_v28  ;;  %v3146_v2 = vadd.f32 %v3145_v48, %v12500_v43  ;;  %v12543_v63 = vpop.f32.mrf.mxu1 }
 0x1c8   :  { %18389 = vst [vmem:[#allocation36_spill] sm:$0xff] %v12512_v8  ;;  %v3281_v41 = vmul.f32 %v12500_v43, %v12500_v43  ;;  %v3170_v33 = vadd.f32 %v3169_v37, %v12505_v18  ;;  %v3267_v20 = vmul.f32 %v12505_v18, %v12505_v18  ;;  %v12535_v46 = vadd.f32 %v12327_v1, %v18392_v22  ;;  %v12547_v1 = vpop.f32.mrf.mxu0 }
 0x1c9   :  { %18391 = vst [vmem:[#allocation19_spill] sm:$0xff] %v12523_v17  ;;  %v3307_v29 = vrot.slane %v3306_v16, 1  ;;  %v3313_v39 = vadd.f32 %v3312_v6, %v3273_v25  ;;  %v3331_v5 = vrot.slane %v3330_v13, 2  ;;  %v3147_v0 = vadd.f32 %v3146_v2, %v12512_v8 }
 0x1ca   :  { %18393 = vst [vmem:[#allocation37_spill] sm:$0xff] %v12535_v46  ;;  %v3289_v52 = vmul.f32 %v12512_v8, %v12512_v8  ;;  %3420 = vrot.lane.b32.xlu0 %v12502_v9, %s11151_s26  ;;  %v3337_v55 = vadd.f32 %v3336_v15, %v3259_v61  ;;  %v3171_v28 = vadd.f32 %v3170_v33, %v12523_v17 }
 0x1cb   :  { %v12545_v48 = vadd.f32 %v3307_v29, %v3306_v16  ;;  %v3275_v25 = vmul.f32 %v12523_v17, %v12523_v17  ;;  %v3314_v37 = vadd.f32 %v3313_v39, %v3281_v41  ;;  %v12553_v34 = vadd.f32 %v12351_v49, %v12149_v44 }
 0x1cc   :  { %v12555_v6 = vadd.f32 %v3165_v60, %v3164_v36  ;;  %v3338_v2 = vadd.f32 %v3337_v55, %v3267_v20  ;;  %v3172_v15 = vadd.f32 %v3171_v28, %v12535_v46  ;;  %v12560_v61 = vadd.f32 %v12386_v45, %v12164_v56  ;;  %v12576_v45 = vpop.f32.mrf.mxu1  ;;  %v2982_v36 = vpop.f32.mrf.mxu0 }
 0x1cd   :  { %18394 = vst [vmem:[#allocation21_spill] sm:$0xff] %v12553_v34  ;;  %3416 = vrot.lane.b32.xlu1 %v12545_v48, %s11147_s18  ;;  %v3283_v16 = vmul.f32 %v12535_v46, %v12535_v46  ;;  %v3148_v41 = vrot.slane %v3147_v0, 4  ;;  %v3315_v33 = vadd.f32 %v3314_v37, %v3289_v52  ;;  %v3332_v44 = vadd.f32 %v3331_v5, %v3330_v13 }
 0x1ce   :  { %3459 = vrot.lane.b32.xlu0 %v12555_v6, %s11154_s0  ;;  %v12570_v49 = vadd.f32 %v12364_v21, %v12152_v3  ;;  %v12574_v56 = vadd.f32 %v12401_v4, %v12176_v42  ;;  %v3339_v60 = vadd.f32 %v3338_v2, %v3275_v25  ;;  %v3173_v20 = vadd.f32 %v3172_v15, %v12553_v34  ;;  %v12601_v55 = vpop.f32.mrf.mxu0 }
 0x1cf   :  { %v3291_v22 = vmul.f32 %v12553_v34, %v12553_v34  ;;  %v3244_v13 = vmul.f32 %v12560_v61, %v12560_v61  ;;  %v12585_v3 = vadd.f32 %v12432_v7, %v12188_v57  ;;  %v3333_v42 = vrot.slane %v3332_v44, 1  ;;  %v3049_v7 = vpop.f32.mrf.mxu1 }
 0x1d0   :  { %v3340_v4 = vadd.f32 %v3339_v60, %v3283_v16  ;;  %v3149_v21 = vadd.f32 %v3148_v41, %v3147_v0  ;;  %v3316_v29 = vrot.slane %v3315_v33, 4  ;;  %v3236_v39 = vmul.f32 %v12570_v49, %v12570_v49 }
 0x1d1   :  { %3424 = vrot.lane.b32.xlu1 %v12545_v48, %s11151_s26  ;;  %v3252_v5 = vmul.f32 %v12574_v56, %v12574_v56  ;;  %v12597_v57 = vadd.f32 %v12472_v58, %v12200_v50  ;;  %v12599_v52 = vadd.f32 %v3333_v42, %v3332_v44  ;;  %v3174_v0 = vrot.slane %v3173_v20, 4  ;;  %v12617_v60 = vpop.f32.mrf.mxu1 }
 0x1d2   :  { %3468 = vrot.lane.b32.xlu0 %v12555_v6, %s11147_s18  ;;  %v3180_v28 = vadd.f32 %v12560_v61, %v12570_v49  ;;  %v3341_v25 = vadd.f32 %v3340_v4, %v3291_v22  ;;  %v3348_v37 = vadd.f32 %v3244_v13, %v3236_v39  ;;  %v3260_v2 = vmul.f32 %v12585_v3, %v12585_v3  ;;  %v2986_v22 = vpop.f32.mrf.mxu0 }
 0x1d3   :  { %18395 = vst [vmem:[#allocation39_spill] sm:$0xff] %v12597_v57  ;;  %v12608_v15 = vadd.f32 %v2976_v47, %v12212_v31  ;;  %v3150_v50 = vrot.slane %v3149_v21, 2  ;;  %v3317_v58 = vadd.f32 %v3316_v29, %v3315_v33  ;;  %v3268_v44 = vmul.f32 %v12597_v57, %v12597_v57 }
 0x1d4   :  { %v3181_v16 = vadd.f32 %v3180_v28, %v12574_v56  ;;  %v3349_v41 = vadd.f32 %v3348_v37, %v3252_v5  ;;  %v3175_v13 = vadd.f32 %v3174_v0, %v3173_v20  ;;  %v12621_v47 = vadd.f32 %v2982_v36, %v12224_v35  ;;  %v3055_v36 = vpop.f32.mrf.mxu1 }
 0x1d5   :  { %18396 = vst [vmem:[#allocation22_spill] sm:$0xff] %v12608_v15  ;;  %3464 = vrot.lane.b32.xlu1 %v12599_v52, %s11154_s0  ;;  %v3342_v42 = vrot.slane %v3341_v25, 4  ;;  %v12625_v33 = vadd.f32 %v12390_v62, %v12167_v51  ;;  %v3276_v29 = vmul.f32 %v12608_v15, %v12608_v15  ;;  %v3151_v39 = vadd.f32 %v3150_v50, %v3149_v21  ;;  %v18399_v50 = vld [vmem:[#allocation54_spill] sm:$0xff] }
 0x1d6   :  { %3476 = vrot.lane.b32.xlu0 %v12555_v6, %s11151_s26  ;;  %v3182_v31 = vadd.f32 %v3181_v16, %v12585_v3  ;;  %18397 = vst [vmem:[#allocation40_spill] sm:$0xff] %v12621_v47  ;;  %v3350_v4 = vadd.f32 %v3349_v41, %v3260_v2  ;;  %v3318_v5 = vrot.slane %v3317_v58, 2  ;;  %v12633_v0 = vadd.f32 %v2986_v22, %v12236_v24  ;;  %v18400_v22 = vld [vmem:[#allocation57_spill] sm:$0xff] }
 0x1d7   :  { %v12639_v51 = vadd.f32 %v12366_v53, %v12155_v26  ;;  %v12643_v35 = vadd.f32 %v12441_v38, %v12179_v40  ;;  %v3176_v21 = vrot.slane %v3175_v13, 2  ;;  %v3284_v24 = vmul.f32 %v12621_v47, %v12621_v47 }
 0x1d8   :  { %v3183_v20 = vadd.f32 %v3182_v31, %v12597_v57  ;;  %18398 = vst [vmem:[#allocation24_spill] sm:$0xff] %v12633_v0  ;;  %v3351_v62 = vadd.f32 %v3350_v4, %v3268_v44  ;;  %v3343_v37 = vadd.f32 %v3342_v42, %v3341_v25  ;;  %v3246_v2 = vmul.f32 %v12625_v33, %v12625_v33  ;;  %v12669_v42 = vpop.f32.mrf.mxu1 }
 0x1d9   :  { %3472 = vrot.lane.b32.xlu1 %v12599_v52, %s11147_s18  ;;  %v12652_v26 = vadd.f32 %v12492_v32, %v18399_v50  ;;  %v3292_v38 = vmul.f32 %v12633_v0, %v12633_v0  ;;  %v3319_v16 = vadd.f32 %v3318_v5, %v3317_v58  ;;  %v3152_v41 = vrot.slane %v3151_v39, 1 }
 0x1da   :  { %3408 = vrot.lane.b32.xlu0 %v12545_v48, %s11154_s0  ;;  %v3184_v28 = vadd.f32 %v3183_v20, %v12608_v15  ;;  %v3352_v53 = vadd.f32 %v3351_v62, %v3276_v29  ;;  %v3238_v25 = vmul.f32 %v12639_v51, %v12639_v51  ;;  %v3206_v44 = vadd.f32 %v12625_v33, %v12639_v51 }
 0x1db   :  { %v3254_v32 = vmul.f32 %v12643_v35, %v12643_v35  ;;  %v12667_v31 = vadd.f32 %v12543_v63, %v18400_v22  ;;  %v3320_v58 = vrot.slane %v3319_v16, 1  ;;  %v12672_v5 = vadd.f32 %v3152_v41, %v3151_v39  ;;  %v18404_v41 = vld [vmem:[#allocation63_spill] sm:$0xff] }
 0x1dc   :  { %v3185_v40 = vadd.f32 %v3184_v28, %v12621_v47  ;;  %v3353_v4 = vadd.f32 %v3352_v53, %v3284_v24  ;;  %v3374_v20 = vadd.f32 %v3246_v2, %v3238_v25  ;;  %v3262_v62 = vmul.f32 %v12652_v26, %v12652_v26  ;;  %v18402_v28 = vld [vmem:[#allocation60_spill] sm:$0xff]  ;;  %v3059_v2 = vpop.f32.mrf.mxu1  ;;  %v18417_v47 = vld [vmem:[#allocation61_spill] sm:$0xff] }
 0x1dd   :  { %3480 = vrot.lane.b32.xlu1 %v12599_v52, %s11151_s26  ;;  %18401 = vst [vmem:[#allocation42_spill] sm:$0xff] %v12667_v31  ;;  %v12677_v50 = vadd.f32 %v3049_v7, %v18402_v28  ;;  %v3344_v34 = vrot.slane %v3343_v37, 2  ;;  %v3207_v8 = vadd.f32 %v3206_v44, %v12643_v35  ;;  %v12680_v22 = vadd.f32 %v3320_v58, %v3319_v16  ;;  %v18407_v16 = vld [vmem:[#allocation73_spill] sm:$0xff] }
 0x1de   :  { %v3186_v29 = vadd.f32 %v3185_v40, %v12633_v0  ;;  %v3354_v63 = vadd.f32 %v3353_v4, %v3292_v38  ;;  %3431 = vrot.lane.b32.xlu0 %v12672_v5, %s11154_s0  ;;  %v3375_v24 = vadd.f32 %v3374_v20, %v3254_v32  ;;  %v3270_v39 = vmul.f32 %v12667_v31, %v12667_v31  ;;  %v18406_v38 = vld [vmem:[#allocation50_spill] sm:$0xff]  ;;  %v18410_v20 = vld [vmem:[#allocation48_spill] sm:$0xff]  ;;  %v18411_v28 = vld [vmem:[#allocation45_spill] sm:$0xff] }
 0x1df   :  { %18403 = vst [vmem:[#allocation25_spill] sm:$0xff] %v12677_v50  ;;  %v3177_v53 = vadd.f32 %v3176_v21, %v3175_v13  ;;  %v3208_v40 = vadd.f32 %v3207_v8, %v12652_v26  ;;  %v12688_v7 = vadd.f32 %v3055_v36, %v18404_v41  ;;  %v12694_v44 = vadd.f32 %v18407_v16, %v18406_v38  ;;  %v18408_v21 = vld [vmem:[#allocation66_spill] sm:$0xff]  ;;  %v18412_v38 = vld [vmem:[#allocation52_spill] sm:$0xff]  ;;  %v18413_v16 = vld [vmem:[#allocation13_spill] sm:$0xff] }
 0x1e0   :  { %v3187_v25 = vrot.slane %v3186_v29, 4  ;;  %v3376_v4 = vadd.f32 %v3375_v24, %v3262_v62  ;;  %v3278_v32 = vmul.f32 %v12677_v50, %v12677_v50  ;;  %v3355_v13 = vrot.slane %v3354_v63, 4 }
 0x1e1   :  { %18405 = vst [vmem:[#allocation43_spill] sm:$0xff] %v12688_v7  ;;  %3436 = vrot.lane.b32.xlu1 %v12680_v22, %s11154_s0  ;;  %v3209_v58 = vadd.f32 %v3208_v40, %v12667_v31  ;;  %v12700_v8 = vadd.f32 %v3059_v2, %v18408_v21  ;;  %v3345_v36 = vadd.f32 %v3344_v34, %v3343_v37  ;;  %v3178_v21 = vrot.slane %v3177_v53, 1  ;;  %v18414_v37 = vld [vmem:[#allocation55_spill] sm:$0xff] }
 0x1e2   :  { %3440 = vrot.lane.b32.xlu0 %v12672_v5, %s11147_s18  ;;  %v12706_v41 = vadd.f32 %v18411_v28, %v18410_v20  ;;  %v12710_v62 = vadd.f32 %v18413_v16, %v18412_v38  ;;  %v3377_v24 = vadd.f32 %v3376_v4, %v3270_v39  ;;  %v3286_v40 = vmul.f32 %v12688_v7, %v12688_v7 }
 0x1e3   :  { %18409 = vst [vmem:[#allocation46_spill] sm:$0xff] %v12700_v8  ;;  %v3210_v0 = vadd.f32 %v3209_v58, %v12677_v50  ;;  %v3188_v2 = vadd.f32 %v3187_v25, %v3186_v29  ;;  %v3245_v34 = vmul.f32 %v12694_v44, %v12694_v44  ;;  %v12721_v20 = vadd.f32 %v12448_v11, %v18414_v37  ;;  %v18432_v50 = vld [vmem:[#allocation62_spill] sm:$0xff] }
 0x1e4   :  { %v3378_v28 = vadd.f32 %v3377_v24, %v3278_v32  ;;  %v3356_v4 = vadd.f32 %v3355_v13, %v3354_v63  ;;  %v3294_v58 = vmul.f32 %v12700_v8, %v12700_v8  ;;  %v3346_v29 = vrot.slane %v3345_v36, 1  ;;  %v18415_v32 = vld [vmem:[#allocation58_spill] sm:$0xff] }
 0x1e5   :  { %3444 = vrot.lane.b32.xlu1 %v12680_v22, %s11147_s18  ;;  %v3211_v39 = vadd.f32 %v3210_v0, %v12688_v7  ;;  %v3237_v25 = vmul.f32 %v12706_v41, %v12706_v41  ;;  %v3193_v38 = vadd.f32 %v12694_v44, %v12706_v41  ;;  %v3253_v11 = vmul.f32 %v12710_v62, %v12710_v62 }
 0x1e6   :  { %3448 = vrot.lane.b32.xlu0 %v12672_v5, %s11151_s26  ;;  %v12736_v0 = vadd.f32 %v12494_v10, %v18415_v32  ;;  %v3379_v63 = vadd.f32 %v3378_v28, %v3286_v40  ;;  %v3189_v13 = vrot.slane %v3188_v2, 2  ;;  %v12741_v24 = vadd.f32 %v3178_v21, %v3177_v53  ;;  %v2988_v21 = vpop.f32.mrf.mxu0 }
 0x1e7   :  { %v3212_v16 = vadd.f32 %v3211_v39, %v12700_v8  ;;  %v3361_v37 = vadd.f32 %v3245_v34, %v3237_v25  ;;  %v3261_v7 = vmul.f32 %v12721_v20, %v12721_v20  ;;  %v12747_v46 = vadd.f32 %v12547_v1, %v18417_v47  ;;  %v18419_v25 = vld [vmem:[#allocation64_spill] sm:$0xff]  ;;  %v18423_v8 = vld [vmem:[#allocation67_spill] sm:$0xff] }
 0x1e8   :  { %18416 = vst [vmem:[#allocation47_spill] sm:$0xff] %v12736_v0  ;;  %v3194_v10 = vadd.f32 %v3193_v38, %v12710_v62  ;;  %v3357_v32 = vrot.slane %v3356_v4, 2  ;;  %v3380_v40 = vadd.f32 %v3379_v63, %v3294_v58  ;;  %v12750_v28 = vadd.f32 %v3346_v29, %v3345_v36  ;;  %v18421_v36 = vld [vmem:[#allocation51_spill] sm:$0xff] }
 0x1e9   :  { %3452 = vrot.lane.b32.xlu1 %v12680_v22, %s11151_s26  ;;  %18418 = vst [vmem:[#allocation54_spill] sm:$0xff] %v12747_v46  ;;  %v3362_v39 = vadd.f32 %v3361_v37, %v3253_v11  ;;  %v3269_v53 = vmul.f32 %v12736_v0, %v12736_v0  ;;  %v12759_v1 = vadd.f32 %v12601_v55, %v18419_v25  ;;  %v3213_v38 = vrot.slane %v3212_v16, 4  ;;  %v18422_v58 = vld [vmem:[#allocation15_spill] sm:$0xff] }
 0x1ea   :  { %3487 = vrot.lane.b32.xlu0 %v12741_v24, %s11154_s0  ;;  %v3195_v34 = vadd.f32 %v3194_v10, %v12721_v20  ;;  %v3190_v47 = vadd.f32 %v3189_v13, %v3188_v2  ;;  %v12765_v29 = vadd.f32 %v18422_v58, %v18421_v36  ;;  %v3277_v63 = vmul.f32 %v12747_v46, %v12747_v46  ;;  %v18425_v2 = vld [vmem:[#allocation49_spill] sm:$0xff] }
 0x1eb   :  { %18420 = vst [vmem:[#allocation57_spill] sm:$0xff] %v12759_v1  ;;  %v3363_v11 = vadd.f32 %v3362_v39, %v3261_v7  ;;  %v3381_v10 = vrot.slane %v3380_v40, 4  ;;  %v12771_v43 = vadd.f32 %v2988_v21, %v18423_v8  ;;  %v3358_v55 = vadd.f32 %v3357_v32, %v3356_v4  ;;  %v18426_v13 = vld [vmem:[#allocation29_spill] sm:$0xff]  ;;  %v18428_v32 = vld [vmem:[#allocation56_spill] sm:$0xff] }
 0x1ec   :  { %v3196_v37 = vadd.f32 %v3195_v34, %v12736_v0  ;;  %v12777_v25 = vadd.f32 %v18426_v13, %v18425_v2  ;;  %v18427_v36 = vld [vmem:[#allocation53_spill] sm:$0xff]  ;;  %v3285_v34 = vmul.f32 %v12759_v1, %v12759_v1  ;;  %v3214_v8 = vadd.f32 %v3213_v38, %v3212_v16 }
 0x1ed   :  { %3492 = vrot.lane.b32.xlu1 %v12750_v28, %s11154_s0  ;;  %18424 = vst [vmem:[#allocation60_spill] sm:$0xff] %v12771_v43  ;;  %v12781_v7 = vadd.f32 %v12470_v30, %v18427_v36  ;;  %v3364_v39 = vadd.f32 %v3363_v11, %v3269_v53  ;;  %v3191_v21 = vrot.slane %v3190_v47, 1  ;;  %v3247_v4 = vmul.f32 %v12765_v29, %v12765_v29 }
 0x1ee   :  { %3496 = vrot.lane.b32.xlu0 %v12741_v24, %s11147_s18  ;;  %v3197_v58 = vadd.f32 %v3196_v37, %v12747_v46  ;;  %v12792_v2 = vadd.f32 %v12525_v14, %v18428_v32  ;;  %v3382_v11 = vadd.f32 %v3381_v10, %v3380_v40  ;;  %v3293_v37 = vmul.f32 %v12771_v43, %v12771_v43 }
 0x1ef   :  { %v3365_v30 = vadd.f32 %v3364_v39, %v3277_v63  ;;  %v3359_v16 = vrot.slane %v3358_v55, 1  ;;  %v3239_v38 = vmul.f32 %v12777_v25, %v12777_v25  ;;  %v3219_v13 = vadd.f32 %v12765_v29, %v12777_v25  ;;  %v18430_v63 = vld [vmem:[#allocation59_spill] sm:$0xff] }
 0x1f0   :  { %18429 = vst [vmem:[#allocation63_spill] sm:$0xff] %v12792_v2  ;;  %v3198_v53 = vadd.f32 %v3197_v58, %v12759_v1  ;;  %v3255_v14 = vmul.f32 %v12781_v7, %v12781_v7  ;;  %v12807_v36 = vadd.f32 %v12576_v45, %v18430_v63  ;;  %v3215_v10 = vrot.slane %v3214_v8, 2 }
 0x1f1   :  { %3500 = vrot.lane.b32.xlu1 %v12750_v28, %s11147_s18  ;;  %v3366_v40 = vadd.f32 %v3365_v30, %v3285_v34  ;;  %v12812_v58 = vadd.f32 %v3191_v21, %v3190_v47  ;;  %v3387_v32 = vadd.f32 %v3247_v4, %v3239_v38  ;;  %v3263_v1 = vmul.f32 %v12792_v2, %v12792_v2  ;;  %v3061_v21 = vpop.f32.mrf.mxu1  ;;  %v18434_v38 = vld [vmem:[#allocation65_spill] sm:$0xff] }
 0x1f2   :  { %3504 = vrot.lane.b32.xlu0 %v12741_v24, %s11151_s26  ;;  %18431 = vst [vmem:[#allocation50_spill] sm:$0xff] %v12807_v36  ;;  %v3199_v39 = vadd.f32 %v3198_v53, %v12771_v43  ;;  %v12818_v46 = vadd.f32 %v12617_v60, %v18432_v50  ;;  %v3220_v45 = vadd.f32 %v3219_v13, %v12781_v7  ;;  %v3383_v63 = vrot.slane %v3382_v11, 2 }
 0x1f3   :  { %v3367_v34 = vadd.f32 %v3366_v40, %v3293_v37  ;;  %v12821_v30 = vadd.f32 %v3359_v16, %v3358_v55  ;;  %v3388_v53 = vadd.f32 %v3387_v32, %v3255_v14  ;;  %v3271_v47 = vmul.f32 %v12807_v36, %v12807_v36  ;;  %v18436_v40 = vld [vmem:[#allocation68_spill] sm:$0xff] }
 0x1f4   :  { %18433 = vst [vmem:[#allocation73_spill] sm:$0xff] %v12818_v46  ;;  %v3221_v4 = vadd.f32 %v3220_v45, %v12792_v2  ;;  %v12830_v60 = vadd.f32 %v12669_v42, %v18434_v38  ;;  %v3216_v50 = vadd.f32 %v3215_v10, %v3214_v8  ;;  %v3200_v13 = vrot.slane %v3199_v39, 4 }
 0x1f5   :  { %3508 = vrot.lane.b32.xlu1 %v12750_v28, %s11151_s26  ;;  %v3389_v55 = vadd.f32 %v3388_v53, %v3263_v1  ;;  %v3279_v37 = vmul.f32 %v12818_v46, %v12818_v46  ;;  %v3368_v14 = vrot.slane %v3367_v34, 4  ;;  %v12838_v32 = vadd.f32 %v3061_v21, %v18436_v40 }
 0x1f6   :  { %3515 = vrot.lane.b32.xlu0 %v12812_v58, %s11154_s0  ;;  %18435 = vst [vmem:[#allocation66_spill] sm:$0xff] %v12830_v60  ;;  %v3222_v16 = vadd.f32 %v3221_v4, %v12807_v36  ;;  %v3384_v42 = vadd.f32 %v3383_v63, %v3382_v11  ;;  %v3287_v10 = vmul.f32 %v12830_v60, %v12830_v60  ;;  %v3217_v53 = vrot.slane %v3216_v50, 1 }
 0x1f7   :  { %18437 = vst [vmem:[#allocation48_spill] sm:$0xff] %v12838_v32  ;;  %v3390_v45 = vadd.f32 %v3389_v55, %v3271_v47  ;;  %v3201_v1 = vadd.f32 %v3200_v13, %v3199_v39  ;;  %v3369_v21 = vadd.f32 %v3368_v14, %v3367_v34  ;;  %v3295_v40 = vmul.f32 %v12838_v32, %v12838_v32 }
 0x1f8   :  { %v3223_v8 = vadd.f32 %v3222_v16, %v12818_v46  ;;  %v3385_v11 = vrot.slane %v3384_v42, 1  ;;  %v12855_v39 = vadd.f32 %v3217_v53, %v3216_v50 }
 0x1f9   :  { %3520 = vrot.lane.b32.xlu1 %v12821_v30, %s11154_s0  ;;  %v3391_v4 = vadd.f32 %v3390_v45, %v3279_v37  ;;  %v3202_v47 = vrot.slane %v3201_v1, 2  ;;  %v3370_v13 = vrot.slane %v3369_v21, 2 }
 0x1fa   :  { %3524 = vrot.lane.b32.xlu0 %v12812_v58, %s11147_s18  ;;  %v3224_v38 = vadd.f32 %v3223_v8, %v12830_v60  ;;  %v12857_v16 = vadd.f32 %v3385_v11, %v3384_v42 }
 0x1fb   :  { %v3392_v63 = vadd.f32 %v3391_v4, %v3287_v10  ;;  %v3203_v34 = vadd.f32 %v3202_v47, %v3201_v1  ;;  %v3371_v8 = vadd.f32 %v3370_v13, %v3369_v21 }
 0x1fc   :  { %v3225_v55 = vadd.f32 %v3224_v38, %v12838_v32 }
 0x1fd   :  { %3528 = vrot.lane.b32.xlu1 %v12821_v30, %s11147_s18  ;;  %v3393_v37 = vadd.f32 %v3392_v63, %v3295_v40  ;;  %v3204_v50 = vrot.slane %v3203_v34, 1  ;;  %v3372_v53 = vrot.slane %v3371_v8, 1 }
 0x1fe   :  { %3532 = vrot.lane.b32.xlu0 %v12812_v58, %s11151_s26  ;;  %v3226_v14 = vrot.slane %v3225_v55, 4 }
 0x1ff   :  { %v3394_v45 = vrot.slane %v3393_v37, 4  ;;  %v12871_v4 = vadd.f32 %v3204_v50, %v3203_v34  ;;  %v12873_v40 = vadd.f32 %v3372_v53, %v3371_v8 }
 0x200   :  { %v3227_v10 = vadd.f32 %v3226_v14, %v3225_v55 }
 0x201   :  { %3536 = vrot.lane.b32.xlu1 %v12821_v30, %s11151_s26  ;;  %v3395_v42 = vadd.f32 %v3394_v45, %v3393_v37 }
 0x202   :  { %3571 = vrot.lane.b32.xlu0 %v12855_v39, %s11154_s0  ;;  %v3228_v1 = vrot.slane %v3227_v10, 2 }
 0x203   :  { %v3396_v38 = vrot.slane %v3395_v42, 2 }
 0x204   :  { %v3229_v21 = vadd.f32 %v3228_v1, %v3227_v10 }
 0x205   :  { %3576 = vrot.lane.b32.xlu1 %v12857_v16, %s11154_s0  ;;  %v3397_v11 = vadd.f32 %v3396_v38, %v3395_v42 }
 0x206   :  { %3580 = vrot.lane.b32.xlu0 %v12855_v39, %s11147_s18  ;;  %v3230_v63 = vrot.slane %v3229_v21, 1 }
 0x207   :  { %v3398_v47 = vrot.slane %v3397_v11, 1 }
 0x208   :  { %v12887_v55 = vadd.f32 %v3230_v63, %v3229_v21 }
 0x209   :  { %3584 = vrot.lane.b32.xlu1 %v12857_v16, %s11147_s18  ;;  %v12889_v13 = vadd.f32 %v3398_v47, %v3397_v11 }
 0x20a   :  { %3588 = vrot.lane.b32.xlu0 %v12855_v39, %s11151_s26 }
 0x20d   :  { %3592 = vrot.lane.b32.xlu1 %v12857_v16, %s11151_s26 }
 0x20e   :  { %3543 = vrot.lane.b32.xlu0 %v12871_v4, %s11154_s0 }
 0x211   :  { %3548 = vrot.lane.b32.xlu1 %v12873_v40, %s11154_s0 }
 0x212   :  { %3552 = vrot.lane.b32.xlu0 %v12871_v4, %s11147_s18 }
 0x215   :  { %3556 = vrot.lane.b32.xlu1 %v12873_v40, %s11147_s18 }
 0x216   :  { %3560 = vrot.lane.b32.xlu0 %v12871_v4, %s11151_s26 }
 0x219   :  { %3564 = vrot.lane.b32.xlu1 %v12873_v40, %s11151_s26 }
 0x21a   :  { %3599 = vrot.lane.b32.xlu0 %v12887_v55, %s11154_s0 }
 0x21d   :  { %3604 = vrot.lane.b32.xlu1 %v12889_v13, %s11154_s0 }
 0x21e   :  { %3608 = vrot.lane.b32.xlu0 %v12887_v55, %s11147_s18 }
 0x221   :  { %3612 = vrot.lane.b32.xlu1 %v12889_v13, %s11147_s18 }
 0x222   :  { %3616 = vrot.lane.b32.xlu0 %v12887_v55, %s11151_s26 }
 0x225   :  { %3620 = vrot.lane.b32.xlu1 %v12889_v13, %s11151_s26 }
 0x238   :  { %v3404_v37 = vpop.permute.xlu0 %3403  ;;  %v3413_v34 = vpop.permute.xlu1 %3412 }
 0x239   :  { %v3406_v1 = vadd.f32 %v3404_v37, %v12502_v9 }
 0x23b   :  { %v3415_v63 = vadd.f32 %v3413_v34, %v3406_v1 }
 0x23c   :  { %v3421_v14 = vpop.permute.xlu0 %3420 }
 0x23d   :  { %v3423_v60 = vadd.f32 %v3421_v14, %v3415_v63 }
 0x23f   :  { %v3417_v45 = vpop.permute.xlu1 %3416  ;;  %v3428_v36 = vadd.f32 %v3423_v60, %v12672_v5 }
 0x240   :  { %v3460_v8 = vpop.permute.xlu0 %3459 }
 0x243   :  { %v3425_v10 = vpop.permute.xlu1 %3424 }
 0x244   :  { %v3469_v50 = vpop.permute.xlu0 %3468 }
 0x247   :  { %v3465_v42 = vpop.permute.xlu1 %3464 }
 0x248   :  { %v3477_v53 = vpop.permute.xlu0 %3476 }
 0x24b   :  { %v3473_v38 = vpop.permute.xlu1 %3472 }
 0x24c   :  { %v3409_v21 = vpop.permute.xlu0 %3408 }
 0x24d   :  { %v3411_v11 = vadd.f32 %v3409_v21, %v12545_v48 }
 0x24f   :  { %v3419_v47 = vadd.f32 %v3417_v45, %v3411_v11  ;;  %v3481_v32 = vpop.permute.xlu1 %3480 }
 0x250   :  { %v3432_v15 = vpop.permute.xlu0 %3431 }
 0x251   :  { %v3427_v43 = vadd.f32 %v3425_v10, %v3419_v47  ;;  %v3434_v0 = vadd.f32 %v3432_v15, %v3428_v36 }
 0x253   :  { %v3429_v46 = vadd.f32 %v3427_v43, %v12680_v22  ;;  %v3437_v17 = vpop.permute.xlu1 %3436 }
 0x254   :  { %v3441_v31 = vpop.permute.xlu0 %3440 }
 0x255   :  { %v3439_v23 = vadd.f32 %v3437_v17, %v3429_v46  ;;  %v3443_v37 = vadd.f32 %v3441_v31, %v3434_v0 }
 0x257   :  { %v3445_v57 = vpop.permute.xlu1 %3444 }
 0x258   :  { %v3447_v9 = vadd.f32 %v3445_v57, %v3439_v23  ;;  %v3449_v18 = vpop.permute.xlu0 %3448 }
 0x259   :  { %v3451_v2 = vadd.f32 %v3449_v18, %v3443_v37 }
 0x25b   :  { %v3453_v48 = vpop.permute.xlu1 %3452  ;;  %v3456_v45 = vadd.f32 %v3451_v2, %v12555_v6 }
 0x25c   :  { %v3455_v34 = vadd.f32 %v3453_v48, %v3447_v9  ;;  %v3488_v10 = vpop.permute.xlu0 %3487 }
 0x25d   :  { %v3462_v43 = vadd.f32 %v3460_v8, %v3456_v45 }
 0x25e   :  { %v3457_v14 = vadd.f32 %v3455_v34, %v12599_v52 }
 0x25f   :  { %v3493_v22 = vpop.permute.xlu1 %3492  ;;  %v3471_v17 = vadd.f32 %v3469_v50, %v3462_v43 }
 0x260   :  { %v3467_v1 = vadd.f32 %v3465_v42, %v3457_v14  ;;  %v3497_v46 = vpop.permute.xlu0 %3496 }
 0x261   :  { %v3479_v60 = vadd.f32 %v3477_v53, %v3471_v17 }
 0x262   :  { %v3475_v5 = vadd.f32 %v3473_v38, %v3467_v1 }
 0x263   :  { %v3501_v15 = vpop.permute.xlu1 %3500  ;;  %v3484_v23 = vadd.f32 %v3479_v60, %v12741_v24 }
 0x264   :  { %v3483_v36 = vadd.f32 %v3481_v32, %v3475_v5  ;;  %v3505_v57 = vpop.permute.xlu0 %3504 }
 0x265   :  { %v3490_v0 = vadd.f32 %v3488_v10, %v3484_v23 }
 0x266   :  { %v3485_v18 = vadd.f32 %v3483_v36, %v12750_v28 }
 0x267   :  { %v3509_v31 = vpop.permute.xlu1 %3508  ;;  %v3499_v52 = vadd.f32 %v3497_v46, %v3490_v0 }
 0x268   :  { %v3516_v6 = vpop.permute.xlu0 %3515  ;;  %v3495_v2 = vadd.f32 %v3493_v22, %v3485_v18 }
 0x269   :  { %v3507_v50 = vadd.f32 %v3505_v57, %v3499_v52 }
 0x26a   :  { %v3503_v11 = vadd.f32 %v3501_v15, %v3495_v2 }
 0x26b   :  { %v3521_v21 = vpop.permute.xlu1 %3520  ;;  %v3512_v32 = vadd.f32 %v3507_v50, %v12812_v58 }
 0x26c   :  { %v3525_v8 = vpop.permute.xlu0 %3524  ;;  %v3511_v38 = vadd.f32 %v3509_v31, %v3503_v11 }
 0x26d   :  { %v3518_v28 = vadd.f32 %v3516_v6, %v3512_v32 }
 0x26e   :  { %v3513_v24 = vadd.f32 %v3511_v38, %v12821_v30 }
 0x26f   :  { %v3529_v42 = vpop.permute.xlu1 %3528  ;;  %v3527_v45 = vadd.f32 %v3525_v8, %v3518_v28 }
 0x270   :  { %v3533_v63 = vpop.permute.xlu0 %3532  ;;  %v3523_v48 = vadd.f32 %v3521_v21, %v3513_v24 }
 0x271   :  { %v3535_v22 = vadd.f32 %v3533_v63, %v3527_v45 }
 0x272   :  { %v3531_v14 = vadd.f32 %v3529_v42, %v3523_v48 }
 0x273   :  { %v3537_v53 = vpop.permute.xlu1 %3536  ;;  %v3540_v5 = vadd.f32 %v3535_v22, %v12871_v4 }
 0x274   :  { %v3572_v47 = vpop.permute.xlu0 %3571  ;;  %v3539_v17 = vadd.f32 %v3537_v53, %v3531_v14 }
 0x276   :  { %v3541_v58 = vadd.f32 %v3539_v17, %v12873_v40 }
 0x277   :  { %v3577_v9 = vpop.permute.xlu1 %3576 }
 0x278   :  { %v3581_v37 = vpop.permute.xlu0 %3580 }
 0x27b   :  { %v3585_v34 = vpop.permute.xlu1 %3584 }
 0x27c   :  { %v3589_v10 = vpop.permute.xlu0 %3588 }
 0x27f   :  { %v3593_v43 = vpop.permute.xlu1 %3592 }
 0x280   :  { %v3544_v1 = vpop.permute.xlu0 %3543 }
 0x281   :  { %v3546_v15 = vadd.f32 %v3544_v1, %v3540_v5 }
 0x283   :  { %v3549_v46 = vpop.permute.xlu1 %3548 }
 0x284   :  { %v3553_v60 = vpop.permute.xlu0 %3552  ;;  %v3551_v36 = vadd.f32 %v3549_v46, %v3541_v58 }
 0x285   :  { %v3555_v23 = vadd.f32 %v3553_v60, %v3546_v15  ;;  %v3634_v60 = vld [vmem:[%s17694_s3] sm:$0x1] }
 0x287   :  { %v3557_v30 = vpop.permute.xlu1 %3556 }
 0x288   :  { %v3561_v57 = vpop.permute.xlu0 %3560  ;;  %v3559_v18 = vadd.f32 %v3557_v30, %v3551_v36 }
 0x289   :  { %v3563_v31 = vadd.f32 %v3561_v57, %v3555_v23 }
 0x28b   :  { %v3565_v0 = vpop.permute.xlu1 %3564  ;;  %v3568_v2 = vadd.f32 %v3563_v31, %v12855_v39  ;;  %v11155_v31 = vmov 1983009808  }
 0x28c   :  { %v3567_v6 = vadd.f32 %v3565_v0, %v3559_v18  ;;  %v3600_v21 = vpop.permute.xlu0 %3599  ;;  %v3943_v0 = vunpack.c.l.s4 %v11155_v31 }
 0x28d   :  { %v3574_v8 = vadd.f32 %v3572_v47, %v3568_v2 }
 0x28e   :  { %v3569_v52 = vadd.f32 %v3567_v6, %v12857_v16 }
 0x28f   :  { %v3605_v11 = vpop.permute.xlu1 %3604  ;;  %v3583_v42 = vadd.f32 %v3581_v37, %v3574_v8 }
 0x290   :  { %v3579_v4 = vadd.f32 %v3577_v9, %v3569_v52  ;;  %v3609_v63 = vpop.permute.xlu0 %3608  ;;  %v3944_v52 = vunpack.c.0.s8 %v3943_v0 }
 0x291   :  { %v3591_v40 = vadd.f32 %v3589_v10, %v3583_v42  ;;  %v18440_v42 = vld [vmem:[#allocation70_spill] sm:$0xff] }
 0x292   :  { %v3587_v50 = vadd.f32 %v3585_v34, %v3579_v4 }
 0x293   :  { %v3596_v53 = vadd.f32 %v3591_v40, %v12887_v55  ;;  %v3613_v32 = vpop.permute.xlu1 %3612  ;;  %v3630_v55 = vld [vmem:[%s17693_s2] sm:$0x1]  ;;  %s11156_s2 = smov [#allocation7]  }
 0x294   :  { %v3595_v38 = vadd.f32 %v3593_v43, %v3587_v50  ;;  %v3617_v39 = vpop.permute.xlu0 %3616  ;;  %s9911_s3 = sshll.u32 %s11156_s2, 4  ;;  %s9912_s3 = int_to_ptr.vmem [resolvable:$true] %s9911_s3 }
 0x295   :  { %v3602_v28 = vadd.f32 %v3600_v21, %v3596_v53  ;;  %s11120_s6 = scalar_lea.vmem %s9912_s3, 1024  ;;  %p11125_p11 = scmp.lt.s32.totalorder %s9912_s3, %s9912_s3 }
 0x296   :  { %v3597_v24 = vadd.f32 %v3595_v38, %v12889_v13  ;;  %v18438_v13 = vld [vmem:[#allocation11_spill] sm:$0xff]  ;;  %p11121_p10 = scmp.ne.s32.totalorder %s9912_s3, %s11120_s6  ;;  %p11126_p12 = scmp.lt.s32.totalorder %s11120_s6, %s11120_s6 }
 0x297   :  { %v3611_v45 = vadd.f32 %v3609_v63, %v3602_v28  ;;  %v3621_v16 = vpop.permute.xlu1 %3620  ;;  %v12923_v43 = vsub.s32 0, %v18438_v13  ;;  %v12943_v4 = vsub.s32 %v3944_v52, %v18438_v13  ;;  %v18441_v63 = vld [vmem:[#allocation17_spill] sm:$0xff] }
 0x298   :  { %v3607_v48 = vadd.f32 %v3605_v11, %v3597_v24  ;;  %p11127_p13 = por %p11126_p12, %p11125_p11 }
 0x299   :  { %v3619_v22 = vadd.f32 %v3617_v39, %v3611_v45  ;;  %18439 = vst [vmem:[#allocation45_spill] sm:$0xff] %v12943_v4  ;;  %v18442_v45 = vld [vmem:[#allocation69_spill] sm:$0xff] }
 0x29a   :  { %v3615_v14 = vadd.f32 %v3613_v32, %v3607_v48  ;;  %p11128_p0 = pnand %p11127_p13, %p11121_p10 }
 0x29b   :  { %v3625_v1 = vmul.f32 0.00048828125, %v3619_v22  ;;  %v18446_v22 = vld [vmem:[#allocation12_spill] sm:$0xff] }
 0x29c   :  { %v3623_v47 = vadd.f32 %v3621_v16, %v3615_v14  ;;  %v18444_v14 = vld [vmem:[#allocation33_spill] sm:$0xff]  ;;  %v18448_v16 = vld [vmem:[#allocation31_spill] sm:$0xff] }
 0x29d   :  { %v3627_v37 = vmul.f32 %v3625_v1, %v3625_v1 }
 0x29e   :  { %v3626_v9 = vmul.f32 0.00048828125, %v3623_v47 }
 0x2a0   :  { %v3628_v34 = vsub.f32 %v3626_v9, %v3627_v37  ;;  %v18450_v9 = vld [vmem:[#allocation71_spill] sm:$0xff] }
 0x2a2   :  { %v3629_v10 = vmax.f32 %v3628_v34, 0.0  ;;  %v18452_v34 = vld [vmem:[#allocation14_spill] sm:$0xff] }
 0x2a4   :  { %v3631_v17 = vadd.f32 1e-05, %v3629_v10 }
 0x2a6   :  { %11078 = vrsqrt.f32 %v3631_v17  ;;  %v18454_v17 = vld [vmem:[#allocation35_spill] sm:$0xff] }
 0x2b3   :  { %v11079_v46 = vpop.eup %11078 }
 0x2b4   :  { %v3633_v5 = vmul.f32 %v11079_v46, %v3630_v55  ;;  %v18457_v46 = vld [vmem:[#allocation72_spill] sm:$0xff] }
 0x2b6   :  { %v3635_v58 = vmul.f32 %v3633_v5, %v3625_v1  ;;  %v3641_v15 = vrot.slane %v3633_v5, %v12923_v43 }
 0x2b8   :  { %3645 = vrot.lane.b32.xlu1 %v3641_v15, %s11147_s18  ;;  %3642 = vrot.lane.b32.xlu0 %v3641_v15, %s11151_s26  ;;  %v3636_v30 = vsub.f32 %v3634_v60, %v3635_v58 }
 0x2ba   :  { %v3661_v36 = vrot.slane %v3636_v30, %v12923_v43 }
 0x2bc   :  { %3648 = vrot.lane.b32.xlu0 %v3641_v15, %s11154_s0  ;;  %3662 = vrot.lane.b32.xlu1 %v3661_v36, %s11151_s26  ;;  %v18459_v15 = vld [vmem:[#allocation63_spill] sm:$0xff] }
 0x2c0   :  { %3665 = vrot.lane.b32.xlu0 %v3661_v36, %s11147_s18  ;;  %3668 = vrot.lane.b32.xlu1 %v3661_v36, %s11154_s0  ;;  %v18460_v36 = vld [vmem:[#allocation30_spill] sm:$0xff] }
 0x32a   :  { %v3643_v23 = vpop.permute.xlu0 %3642  ;;  %v3646_v57 = vpop.permute.xlu1 %3645 }
 0x32b   :  { %v3652_v18 = vsel %vm3651_vm1, %v3633_v5, %v3643_v23  ;;  %v18461_v23 = vld [vmem:[#allocation32_spill] sm:$0xff] }
 0x32c   :  { %v3654_v2 = vsel %vm3653_vm2, %v3652_v18, %v3646_v57  ;;  %v18462_v18 = vld [vmem:[#allocation38_spill] sm:$0xff] }
 0x32e   :  { %v3649_v6 = vpop.permute.xlu0 %3648  ;;  %v3663_v11 = vpop.permute.xlu1 %3662 }
 0x32f   :  { %v3656_v21 = vsel %vm3655_vm3, %v3654_v2, %v3649_v6  ;;  %v3671_v53 = vsel %vm3651_vm1, %v3636_v30, %v3663_v11 }
 0x330   :  { %v12940_v8 = vrot.slane %v3656_v21, %v12923_v43  ;;  %v18466_v21 = vld [vmem:[#allocation42_spill] sm:$0xff] }
 0x332   :  { %v12947_v50 = vmul.f32 %v12940_v8, %v18440_v42  ;;  %v12951_v40 = vmul.f32 %v12940_v8, %v12425_v27  ;;  %v12955_v38 = vmul.f32 %v12940_v8, %v18441_v63  ;;  %v12960_v32 = vmul.f32 %v12940_v8, %v12444_v59  ;;  %v3666_v31 = vpop.permute.xlu0 %3665  ;;  %v3669_v11 = vpop.permute.xlu1 %3668  ;;  %v18467_v42 = vld [vmem:[#allocation50_spill] sm:$0xff] }
 0x333   :  { %v3682_v24 = vmul.f32 %v12940_v8, %v12570_v49  ;;  %v3683_v28 = vmul.f32 %v12940_v8, %v12706_v41  ;;  %v3684_v27 = vmul.f32 %v12940_v8, %v12639_v51  ;;  %v3685_v48 = vmul.f32 %v12940_v8, %v12777_v25 }
 0x334   :  { %v12972_v39 = vmul.f32 %v12940_v8, %v18442_v45  ;;  %v12976_v59 = vmul.f32 %v12940_v8, %v18444_v14  ;;  %v12980_v49 = vmul.f32 %v12940_v8, %v18446_v22  ;;  %v12984_v41 = vmul.f32 %v12940_v8, %v18448_v16  ;;  %v18468_v45 = vld [vmem:[#allocation26_spill] sm:$0xff]  ;;  %v18469_v22 = vld [vmem:[#allocation16_spill] sm:$0xff] }
 0x335   :  { %v3690_v51 = vmul.f32 %v12940_v8, %v12560_v61  ;;  %v3691_v25 = vmul.f32 %v12940_v8, %v12694_v44  ;;  %v3692_v47 = vmul.f32 %v12940_v8, %v12625_v33  ;;  %v3693_v1 = vmul.f32 %v12940_v8, %v12765_v29 }
 0x336   :  { %18443 = vst [vmem:[#allocation52_spill] sm:$0xff] %v12972_v39  ;;  %18445 = vst [vmem:[#allocation13_spill] sm:$0xff] %v12976_v59  ;;  %v12996_v37 = vmul.f32 %v12940_v8, %v18450_v9  ;;  %v13000_v10 = vmul.f32 %v12940_v8, %v18452_v34  ;;  %v13004_v61 = vmul.f32 %v12940_v8, %v18454_v17  ;;  %v18470_v9 = vld [vmem:[#allocation41_spill] sm:$0xff]  ;;  %v18471_v17 = vld [vmem:[#allocation19_spill] sm:$0xff] }
 0x337   :  { %18447 = vst [vmem:[#allocation55_spill] sm:$0xff] %v12980_v49  ;;  %18449 = vst [vmem:[#allocation58_spill] sm:$0xff] %v12984_v41  ;;  %v13008_v44 = vmul.f32 %v12940_v8, %v12455_v12  ;;  %v3698_v33 = vmul.f32 %v12940_v8, %v12574_v56  ;;  %v3699_v29 = vmul.f32 %v12940_v8, %v12710_v62  ;;  %v18458_v12 = vld [vmem:[#allocation44_spill] sm:$0xff]  ;;  %v18487_v41 = vld [vmem:[#allocation21_spill] sm:$0xff] }
 0x338   :  { %18451 = vst [vmem:[#allocation61_spill] sm:$0xff] %v12996_v37  ;;  %18453 = vst [vmem:[#allocation64_spill] sm:$0xff] %v13000_v10  ;;  %v3700_v55 = vmul.f32 %v12940_v8, %v12643_v35  ;;  %v3701_v13 = vmul.f32 %v12940_v8, %v12781_v7  ;;  %v3702_v5 = vmul.f32 %v12940_v8, %v18457_v46  ;;  %v18484_v10 = vld [vmem:[#allocation23_spill] sm:$0xff]  ;;  %v18485_v37 = vld [vmem:[#allocation36_spill] sm:$0xff] }
 0x339   :  { %18455 = vst [vmem:[#allocation51_spill] sm:$0xff] %v13004_v61  ;;  %18456 = vst [vmem:[#allocation15_spill] sm:$0xff] %v13008_v44  ;;  %v3703_v60 = vmul.f32 %v12940_v8, %v12458_v19  ;;  %v3704_v58 = vmul.f32 %v12940_v8, %v18458_v12  ;;  %v3705_v56 = vmul.f32 %v12940_v8, %v12489_v54  ;;  %v18472_v12 = vld [vmem:[#allocation22_spill] sm:$0xff]  ;;  %v18481_v44 = vld [vmem:[#allocation57_spill] sm:$0xff] }
 0x33a   :  { %v3706_v62 = vmul.f32 %v12940_v8, %v12585_v3  ;;  %v3707_v35 = vmul.f32 %v12940_v8, %v12721_v20  ;;  %v3708_v7 = vmul.f32 %v12940_v8, %v12652_v26  ;;  %v3709_v30 = vmul.f32 %v12940_v8, %v18459_v15  ;;  %v18463_v3 = vld [vmem:[#allocation18_spill] sm:$0xff]  ;;  %v18464_v20 = vld [vmem:[#allocation39_spill] sm:$0xff]  ;;  %v18489_v49 = vld [vmem:[#allocation24_spill] sm:$0xff] }
 0x33b   :  { %v3710_v19 = vmul.f32 %v12940_v8, %v18460_v36  ;;  %v3711_v57 = vmul.f32 %v12940_v8, %v18461_v23  ;;  %v3712_v54 = vmul.f32 %v12940_v8, %v18462_v18  ;;  %v3713_v0 = vmul.f32 %v12940_v8, %v18463_v3  ;;  %v18465_v26 = vld [vmem:[#allocation47_spill] sm:$0xff]  ;;  %v18473_v36 = vld [vmem:[#allocation54_spill] sm:$0xff]  ;;  %v18474_v3 = vld [vmem:[#allocation25_spill] sm:$0xff] }
 0x33c   :  { %v3714_v6 = vmul.f32 %v12940_v8, %v18464_v20  ;;  %v3715_v2 = vmul.f32 %v12940_v8, %v18465_v26  ;;  %v3716_v52 = vmul.f32 %v12940_v8, %v18466_v21  ;;  %v3717_v63 = vmul.f32 %v12940_v8, %v18467_v42  ;;  %v18475_v26 = vld [vmem:[#allocation73_spill] sm:$0xff]  ;;  %v18476_v42 = vld [vmem:[#allocation20_spill] sm:$0xff]  ;;  %v18482_v61 = vld [vmem:[#allocation43_spill] sm:$0xff] }
 0x33d   :  { %v3718_v14 = vmul.f32 %v12940_v8, %v18468_v45  ;;  %v3719_v16 = vmul.f32 %v12940_v8, %v18469_v22  ;;  %v3720_v34 = vmul.f32 %v12940_v8, %v18470_v9  ;;  %v3721_v46 = vmul.f32 %v12940_v8, %v18471_v17  ;;  %v18477_v9 = vld [vmem:[#allocation34_spill] sm:$0xff]  ;;  %v18490_v59 = vld [vmem:[#allocation60_spill] sm:$0xff] }
 0x33e   :  { %v3722_v15 = vmul.f32 %v12940_v8, %v18472_v12  ;;  %v3723_v23 = vmul.f32 %v12940_v8, %v18473_v36  ;;  %v3672_v18 = vsel %vm3653_vm2, %v3671_v53, %v3666_v31  ;;  %v3724_v20 = vmul.f32 %v12940_v8, %v18474_v3  ;;  %v18478_v12 = vld [vmem:[#allocation28_spill] sm:$0xff]  ;;  %v18479_v36 = vld [vmem:[#allocation37_spill] sm:$0xff]  ;;  %v18491_v39 = vld [vmem:[#allocation46_spill] sm:$0xff] }
 0x33f   :  { %v3725_v21 = vmul.f32 %v12940_v8, %v18475_v26  ;;  %v3726_v45 = vmul.f32 %v12940_v8, %v18476_v42  ;;  %v3673_v22 = vsel %vm3655_vm3, %v3672_v18, %v3669_v11  ;;  %v3727_v17 = vmul.f32 %v12940_v8, %v18477_v9  ;;  %v18480_v3 = vld [vmem:[#allocation40_spill] sm:$0xff]  ;;  %v18483_v18 = vld [vmem:[#allocation66_spill] sm:$0xff] }
 0x340   :  { %v3728_v4 = vmul.f32 %v12940_v8, %v18478_v12  ;;  %v3729_v53 = vmul.f32 %v12940_v8, %v18479_v36  ;;  %v13077_v31 = vrot.slane %v3673_v22, %v12923_v43  ;;  %v3730_v26 = vmul.f32 %v12940_v8, %v18480_v3  ;;  %v18486_v43 = vld [vmem:[#allocation27_spill] sm:$0xff] }
 0x341   :  { %v3731_v42 = vmul.f32 %v12940_v8, %v18481_v44  ;;  %v3732_v11 = vmul.f32 %v12940_v8, %v18482_v61  ;;  %v3733_v9 = vmul.f32 %v12940_v8, %v18483_v18  ;;  %v3734_v12 = vmul.f32 %v12940_v8, %v18484_v10 }
 0x342   :  { %v3735_v36 = vmul.f32 %v12940_v8, %v18485_v37  ;;  %v3736_v22 = vmul.f32 %v12940_v8, %v18486_v43  ;;  %v3737_v3 = vmul.f32 %v12940_v8, %v18487_v41  ;;  %v13096_v44 = vadd.f32 %v13077_v31, %v3682_v24  ;;  %v18492_v24 = vld [vmem:[#allocation48_spill] sm:$0xff] }
 0x343   :  { %v13099_v61 = vadd.f32 %v13077_v31, %v3683_v28  ;;  %v13102_v18 = vadd.f32 %v13077_v31, %v3684_v27  ;;  %v13105_v10 = vadd.f32 %v13077_v31, %v3685_v48  ;;  %v3738_v37 = vmul.f32 %v12940_v8, %v18489_v49 }
 0x344   :  { %18488 = vst [vmem:[#allocation67_spill] sm:$0xff] %v13096_v44  ;;  %v3739_v43 = vmul.f32 %v12940_v8, %v18490_v59  ;;  %v3740_v41 = vmul.f32 %v12940_v8, %v18491_v39  ;;  %v3741_v44 = vmul.f32 %v12940_v8, %v18492_v24  ;;  %v13116_v28 = vadd.f32 %v13077_v31, %v3690_v51  ;;  %v18516_v24 = vld [vmem:[#allocation64_spill] sm:$0xff] }
 0x345   :  { %v13119_v27 = vadd.f32 %v13077_v31, %v3691_v25  ;;  %v13122_v48 = vadd.f32 %v13077_v31, %v3692_v47  ;;  %v13125_v49 = vadd.f32 %v13077_v31, %v3693_v1  ;;  %v13129_v59 = vadd.f32 %v13077_v31, %v12947_v50 }
 0x346   :  { %v13133_v39 = vadd.f32 %v13077_v31, %v12951_v40  ;;  %v13137_v8 = vadd.f32 %v13077_v31, %v12955_v38  ;;  %v13141_v51 = vadd.f32 %v13077_v31, %v12960_v32  ;;  %v13144_v25 = vadd.f32 %v13077_v31, %v3698_v33 }
 0x347   :  { %18493 = vst [vmem:[#allocation49_spill] sm:$0xff] %v13129_v59  ;;  %v13147_v47 = vadd.f32 %v13077_v31, %v3699_v29  ;;  %v13150_v50 = vadd.f32 %v13077_v31, %v3700_v55  ;;  %v13153_v40 = vadd.f32 %v13077_v31, %v3701_v13  ;;  %v13156_v1 = vadd.f32 %v13077_v31, %v3702_v5 }
 0x348   :  { %18494 = vst [vmem:[#allocation29_spill] sm:$0xff] %v13133_v39  ;;  %v13159_v38 = vadd.f32 %v13077_v31, %v3703_v60  ;;  %v13162_v32 = vadd.f32 %v13077_v31, %v3704_v58  ;;  %v13165_v33 = vadd.f32 %v13077_v31, %v3705_v56  ;;  %v13168_v29 = vadd.f32 %v13077_v31, %v3706_v62 }
 0x349   :  { %v13171_v55 = vadd.f32 %v13077_v31, %v3707_v35  ;;  %v13174_v13 = vadd.f32 %v13077_v31, %v3708_v7  ;;  %v13177_v5 = vadd.f32 %v13077_v31, %v3709_v30  ;;  %v13180_v60 = vadd.f32 %v13077_v31, %v3710_v19 }
 0x34a   :  { %18495 = vst [vmem:[#allocation53_spill] sm:$0xff] %v13168_v29  ;;  %v13183_v58 = vadd.f32 %v13077_v31, %v3711_v57  ;;  %v13186_v56 = vadd.f32 %v13077_v31, %v3712_v54  ;;  %v13189_v62 = vadd.f32 %v13077_v31, %v3713_v0  ;;  %v13192_v35 = vadd.f32 %v13077_v31, %v3714_v6 }
 0x34b   :  { %18496 = vst [vmem:[#allocation56_spill] sm:$0xff] %v13174_v13  ;;  %v13195_v7 = vadd.f32 %v13077_v31, %v3715_v2  ;;  %v13198_v30 = vadd.f32 %v13077_v31, %v3716_v52  ;;  %v13201_v19 = vadd.f32 %v13077_v31, %v3717_v63  ;;  %v13204_v57 = vadd.f32 %v13077_v31, %v3718_v14 }
 0x34c   :  { %v13207_v54 = vadd.f32 %v13077_v31, %v3719_v16  ;;  %v13210_v0 = vadd.f32 %v13077_v31, %v3720_v34  ;;  %v13213_v6 = vadd.f32 %v13077_v31, %v3721_v46  ;;  %v13216_v2 = vadd.f32 %v13077_v31, %v3722_v15 }
 0x34d   :  { %v13219_v52 = vadd.f32 %v13077_v31, %v3723_v23  ;;  %v13222_v63 = vadd.f32 %v13077_v31, %v3724_v20  ;;  %v13225_v14 = vadd.f32 %v13077_v31, %v3725_v21  ;;  %v13228_v16 = vadd.f32 %v13077_v31, %v3726_v45 }
 0x34e   :  { %v13231_v34 = vadd.f32 %v13077_v31, %v3727_v17  ;;  %v13234_v46 = vadd.f32 %v13077_v31, %v3728_v4  ;;  %v13237_v15 = vadd.f32 %v13077_v31, %v3729_v53  ;;  %v13240_v23 = vadd.f32 %v13077_v31, %v3730_v26 }
 0x34f   :  { %18497 = vst [vmem:[#allocation59_spill] sm:$0xff] %v13228_v16  ;;  %v13243_v20 = vadd.f32 %v13077_v31, %v3731_v42  ;;  %v13246_v21 = vadd.f32 %v13077_v31, %v3732_v11  ;;  %v13249_v45 = vadd.f32 %v13077_v31, %v3733_v9  ;;  %v13252_v17 = vadd.f32 %v13077_v31, %v3734_v12  ;;  %v18538_v16 = vld [vmem:[#allocation49_spill] sm:$0xff] }
 0x350   :  { %18498 = vst [vmem:[#allocation62_spill] sm:$0xff] %v13231_v34  ;;  %v13255_v4 = vadd.f32 %v13077_v31, %v3735_v36  ;;  %v13258_v53 = vadd.f32 %v13077_v31, %v3736_v22  ;;  %v13261_v26 = vadd.f32 %v13077_v31, %v3737_v3  ;;  %v13264_v42 = vadd.f32 %v13077_v31, %v3738_v37  ;;  %v18510_v37 = vld [vmem:[#allocation52_spill] sm:$0xff]  ;;  %v18514_v22 = vld [vmem:[#allocation61_spill] sm:$0xff] }
 0x351   :  { %18499 = vst [vmem:[#allocation65_spill] sm:$0xff] %v13243_v20  ;;  %18500 = vst [vmem:[#allocation68_spill] sm:$0xff] %v13246_v21  ;;  %v13267_v11 = vadd.f32 %v13077_v31, %v3739_v43  ;;  %v13270_v9 = vadd.f32 %v13077_v31, %v3740_v41  ;;  %v13273_v12 = vadd.f32 %v13077_v31, %v3741_v44  ;;  %v18511_v43 = vld [vmem:[#allocation13_spill] sm:$0xff] }
 0x352   :  { %18501 = vst [vmem:[#allocation11_spill] sm:$0xff] %v13249_v45  ;;  %18502 = vst [vmem:[#allocation70_spill] sm:$0xff] %v13252_v17  ;;  %v13285_v41 = vadd.f32 %v13077_v31, %v18511_v43  ;;  %v13297_v3 = vadd.f32 %v13077_v31, %v18514_v22  ;;  %v18519_v43 = vmax.f32 %v13129_v59, 0.0  ;;  %v18524_v22 = vld [vmem:[#allocation15_spill] sm:$0xff]  ;;  %v18527_v20 = vld [vmem:[#allocation45_spill] sm:$0xff] }
 0x353   :  { %18503 = vst [vmem:[#allocation17_spill] sm:$0xff] %v13255_v4  ;;  %18504 = vst [vmem:[#allocation69_spill] sm:$0xff] %v13258_v53  ;;  %v18521_v53 = vmax.f32 %v13137_v8, 0.0  ;;  %v13317_v45 = vadd.f32 %v13077_v31, %v18524_v22 }
 0x354   :  { %18505 = vst [vmem:[#allocation33_spill] sm:$0xff] %v13261_v26  ;;  %18506 = vst [vmem:[#allocation12_spill] sm:$0xff] %v13264_v42  ;;  %v13281_v42 = vadd.f32 %v13077_v31, %v18510_v37  ;;  %v13301_v37 = vadd.f32 %v13077_v31, %v18516_v24  ;;  %v18526_v24 = vld [vmem:[#allocation67_spill] sm:$0xff] }
 0x355   :  { %18507 = vst [vmem:[#allocation31_spill] sm:$0xff] %v13267_v11  ;;  %18508 = vst [vmem:[#allocation71_spill] sm:$0xff] %v13270_v9  ;;  %v18512_v9 = vld [vmem:[#allocation55_spill] sm:$0xff]  ;;  %v18518_v11 = vmax.f32 %v13133_v39, 0.0 }
 0x356   :  { %18509 = vst [vmem:[#allocation14_spill] sm:$0xff] %v13273_v12  ;;  %v13289_v44 = vadd.f32 %v13077_v31, %v18512_v9  ;;  %v18513_v12 = vld [vmem:[#allocation58_spill] sm:$0xff]  ;;  %18515 = vst [vmem:[#allocation35_spill] sm:$0xff] %v13297_v3  ;;  %v18520_v9 = vmax.f32 %v13141_v51, 0.0 }
 0x357   :  { %v13293_v36 = vadd.f32 %v13077_v31, %v18513_v12  ;;  %18517 = vst [vmem:[#allocation72_spill] sm:$0xff] %v13301_v37  ;;  %v3939_v26 = vcombine.high %v18519_v43, %v18518_v11  ;;  %v18522_v12 = vld [vmem:[#allocation51_spill] sm:$0xff]  ;;  %18525 = vst [vmem:[#allocation63_spill] sm:$0xff] %v13317_v45 }
 0x358   :  { %v3941_v4 = vcombine.high %v18521_v53, %v18520_v9  ;;  %v13313_v17 = vadd.f32 %v13077_v31, %v18522_v12  ;;  %v18534_v13 = vld [vmem:[#allocation68_spill] sm:$0xff] }
 0x359   :  { %v3955_v59 = vrot.slane %v3939_v26, %v18527_v20  ;;  %v18535_v9 = vld [vmem:[#allocation11_spill] sm:$0xff] }
 0x35a   :  { %18523 = vst [vmem:[#allocation44_spill] sm:$0xff] %v13313_v17  ;;  %v13323_v11 = vrot.slane %v3941_v4, %v18527_v20  ;;  %v18542_v4 = vmax.f32 %v13099_v61, 0.0 }
 0x35c   :  { %18528 = vst [vmem:[#allocation30_spill] sm:$0xff] %v13323_v11  ;;  %v3972_v21 = vcombine.low %v3955_v59, %v13323_v11  ;;  %v3973_v39 = vcombine.high %v3955_v59, %v13323_v11 }
 0x35e   :  { %v13340_v31 = vrot.slane %v3972_v21, %v18527_v20  ;;  %v13343_v22 = vrot.slane %v3973_v39, %v18527_v20 }
 0x360   :  { %18529 = vst [vmem:[#allocation32_spill] sm:$0xff] %v13340_v31  ;;  %18530 = vst [vmem:[#allocation38_spill] sm:$0xff] %v13343_v22  ;;  %v5971_v12 = vsel %vm5858_vm4, %v13340_v31, -inf  ;;  %v6027_v21 = vsel %vm5858_vm4, %v13343_v22, -inf  ;;  %v18536_v31 = vld [vmem:[#allocation29_spill] sm:$0xff] }
 0x361   :  { %v5972_v11 = vrot.slane %v5971_v12, 4  ;;  %v6028_v26 = vrot.slane %v6027_v21, 4  ;;  %v18555_v22 = vld [vmem:[#allocation33_spill] sm:$0xff] }
 0x363   :  { %v5973_v39 = vmax.f32 %v5971_v12, %v5972_v11  ;;  %v6029_v37 = vmax.f32 %v6027_v21, %v6028_v26  ;;  %v18537_v26 = vmax.f32 %v18536_v31, 0.0  ;;  %v18539_v21 = vmax.f32 %v18538_v16, 0.0  ;;  %v18546_v31 = vld [vmem:[#allocation70_spill] sm:$0xff] }
 0x365   :  { %v5974_v29 = vrot.slane %v5973_v39, 2  ;;  %v6030_v17 = vrot.slane %v6029_v37, 2  ;;  %v3938_v34 = vcombine.low %v18539_v21, %v18537_v26  ;;  %v18548_v26 = vmax.f32 %v13102_v18, 0.0 }
 0x367   :  { %v5975_v3 = vmax.f32 %v5973_v39, %v5974_v29  ;;  %v6031_v59 = vmax.f32 %v6029_v37, %v6030_v17  ;;  %v18531_v39 = vld [vmem:[#allocation65_spill] sm:$0xff]  ;;  %v18540_v29 = vmax.f32 %v13141_v51, 0.0  ;;  %v18541_v17 = vmax.f32 %v13137_v8, 0.0 }
 0x368   :  { %v18547_v8 = vmax.f32 %v13105_v10, 0.0  ;;  %v18557_v10 = vmax.f32 %v13116_v28, 0.0  ;;  %v18568_v28 = vld [vmem:[#allocation31_spill] sm:$0xff] }
 0x369   :  { %v5976_v43 = vrot.slane %v5975_v3, 1  ;;  %v6032_v12 = vrot.slane %v6031_v59, 1  ;;  %v3940_v37 = vcombine.low %v18541_v17, %v18540_v29  ;;  %v18550_v29 = vmov %v18548_v26 }
 0x36a   :  { %v13422_v21 = vcombine.low %v18548_v26, %v18547_v8  ;;  %v18556_v26 = vmax.f32 %v13119_v27, 0.0 }
 0x36b   :  { %v13389_v53 = vmax.f32 %v5975_v3, %v5976_v43  ;;  %v13391_v45 = vmax.f32 %v6031_v59, %v6032_v12  ;;  %v18543_v3 = vmax.f32 %v18526_v24, 0.0  ;;  %v18544_v59 = vmov %v18542_v4  ;;  %v18552_v24 = vld [vmem:[#allocation17_spill] sm:$0xff] }
 0x36c   :  { %v13434_v51 = vrot.slane %v3940_v37, %v18527_v20  ;;  %v13442_v18 = vcombine.low %v18557_v10, %v18556_v26  ;;  %v18563_v37 = vmax.f32 %v13122_v48, 0.0 }
 0x36d   :  { %18532 = vst [vmem:[#allocation18_spill] sm:$0xff] %v13389_v53  ;;  %18533 = vst [vmem:[#allocation39_spill] sm:$0xff] %v13391_v45  ;;  %v13407_v43 = vcombine.low %v18543_v3, %v18542_v4  ;;  %v18545_v12 = vmov %v18543_v3  ;;  %v10299_v16 = vpack.i.bf16 %v13391_v45, %v13389_v53  ;;  %v18549_v4 = vmov %v18547_v8  ;;  %v18553_v3 = vld [vmem:[#allocation69_spill] sm:$0xff] }
 0x36e   :  { %v13413_v11 = vcombine.high %v18545_v12, %v18544_v59  ;;  %v13428_v61 = vcombine.high %v18550_v29, %v18549_v4  ;;  %v3948_v12 = vrot.slane %v3938_v34, %v18527_v20  ;;  %18554 = vst [vmem:[#allocation42_spill] sm:$0xff] %v13434_v51  ;;  %18558 = vst [vmem:[#allocation50_spill] sm:$0xff] %v13442_v18  ;;  %v18559_v4 = vmov %v18556_v26  ;;  %v18570_v18 = vld [vmem:[#allocation14_spill] sm:$0xff] }
 0x36f   :  { %10300 = vrot.lane.b32.xlu1 %v10299_v16, %s11154_s0  ;;  %v18560_v29 = vmov %v18557_v10  ;;  %v18562_v34 = vmax.f32 %v13125_v49, 0.0  ;;  %v18564_v16 = vld [vmem:[#allocation12_spill] sm:$0xff]  ;;  %v18566_v27 = vmov %v18563_v37 }
 0x370   :  { %18551 = vst [vmem:[#allocation47_spill] sm:$0xff] %v13428_v61  ;;  %v13448_v59 = vcombine.high %v18560_v29, %v18559_v4  ;;  %v3970_v53 = vcombine.low %v3948_v12, %v13434_v51  ;;  %v3971_v45 = vcombine.high %v3948_v12, %v13434_v51  ;;  %v3871_v4 = vmax.f32 %v18568_v28, 0.0  ;;  %v18569_v29 = vld [vmem:[#allocation71_spill] sm:$0xff] }
 0x371   :  { %v13454_v17 = vcombine.low %v18563_v37, %v18562_v34  ;;  %v18565_v26 = vmov %v18562_v34  ;;  %v18571_v34 = vmax.f32 %v13147_v47, 0.0  ;;  %v18572_v37 = vmax.f32 %v13144_v25, 0.0 }
 0x372   :  { %18561 = vst [vmem:[#allocation26_spill] sm:$0xff] %v13448_v59  ;;  %v13463_v10 = vcombine.high %v18566_v27, %v18565_v26  ;;  %v13475_v12 = vrot.slane %v3970_v53, %v18527_v20  ;;  %v13478_v49 = vrot.slane %v3971_v45, %v18527_v20  ;;  %v18579_v28 = vmax.f32 %v13153_v40, 0.0 }
 0x373   :  { %v13472_v8 = vcombine.low %v18572_v37, %v18571_v34  ;;  %v18576_v48 = vmov %v18571_v34  ;;  %v18577_v26 = vmov %v18572_v37  ;;  %v18580_v59 = vmax.f32 %v13150_v50, 0.0 }
 0x374   :  { %18567 = vst [vmem:[#allocation16_spill] sm:$0xff] %v13463_v10  ;;  %18574 = vst [vmem:[#allocation19_spill] sm:$0xff] %v13475_v12  ;;  %v13484_v27 = vcombine.high %v18577_v26, %v18576_v48  ;;  %v18582_v34 = vmov %v18579_v28  ;;  %v18585_v45 = vmax.f32 %v13159_v38, 0.0  ;;  %v18586_v47 = vmax.f32 %v13156_v1, 0.0 }
 0x375   :  { %18573 = vst [vmem:[#allocation41_spill] sm:$0xff] %v13472_v8  ;;  %18575 = vst [vmem:[#allocation22_spill] sm:$0xff] %v13478_v49  ;;  %v13490_v61 = vcombine.low %v18580_v59, %v18579_v28  ;;  %v18583_v53 = vmov %v18580_v59  ;;  %v18591_v59 = vmax.f32 %v13165_v33, 0.0  ;;  %v18592_v40 = vmax.f32 %v13162_v32, 0.0 }
 0x376   :  { %18578 = vst [vmem:[#allocation54_spill] sm:$0xff] %v13484_v27  ;;  %v13496_v37 = vcombine.high %v18583_v53, %v18582_v34  ;;  %v13502_v51 = vcombine.low %v18586_v47, %v18585_v45  ;;  %v18588_v25 = vmov %v18585_v45  ;;  %v18589_v48 = vmov %v18586_v47 }
 0x377   :  { %18581 = vst [vmem:[#allocation25_spill] sm:$0xff] %v13490_v61  ;;  %v13508_v26 = vcombine.high %v18589_v48, %v18588_v25  ;;  %v13514_v28 = vcombine.low %v18592_v40, %v18591_v59  ;;  %v5859_v50 = vsel %vm5858_vm4, %v13475_v12, -inf  ;;  %v5915_v34 = vsel %vm5858_vm4, %v13478_v49, -inf }
 0x378   :  { %18584 = vst [vmem:[#allocation73_spill] sm:$0xff] %v13496_v37  ;;  %18587 = vst [vmem:[#allocation20_spill] sm:$0xff] %v13502_v51  ;;  %v18594_v53 = vmax.f32 %v13285_v41, 0.0  ;;  %v18595_v38 = vmax.f32 %v13281_v42, 0.0  ;;  %v18596_v1 = vmax.f32 %v13293_v36, 0.0  ;;  %v18597_v47 = vmax.f32 %v13289_v44, 0.0 }
 0x379   :  { %18590 = vst [vmem:[#allocation34_spill] sm:$0xff] %v13508_v26  ;;  %18593 = vst [vmem:[#allocation28_spill] sm:$0xff] %v13514_v28  ;;  %v5860_v48 = vrot.slane %v5859_v50, 4  ;;  %v5916_v26 = vrot.slane %v5915_v34, 4  ;;  %v13532_v28 = vcombine.high %v18592_v40, %v18591_v59  ;;  %v18598_v51 = vmax.f32 %v13171_v55, 0.0  ;;  %v18599_v37 = vld [vmem:[#allocation53_spill] sm:$0xff] }
 0x37a   :  { %v4011_v45 = vcombine.high %v18595_v38, %v18594_v53  ;;  %v4013_v25 = vcombine.high %v18597_v47, %v18596_v1  ;;  %v18600_v61 = vmax.f32 %v18599_v37, 0.0  ;;  %v18604_v1 = vmax.f32 %v13177_v5, 0.0  ;;  %v18605_v47 = vld [vmem:[#allocation56_spill] sm:$0xff] }
 0x37b   :  { %v18601_v53 = vmov %v18598_v51  ;;  %v18606_v33 = vmax.f32 %v18605_v47, 0.0  ;;  %v18610_v55 = vmax.f32 %v13180_v60, 0.0  ;;  %v5861_v37 = vmax.f32 %v5859_v50, %v5860_v48 }
 0x37c   :  { %v13538_v27 = vcombine.low %v18600_v61, %v18598_v51  ;;  %v18602_v38 = vmov %v18600_v61  ;;  %v18607_v32 = vmov %v18604_v1  ;;  %v18609_v51 = vmax.f32 %v13183_v58, 0.0 }
 0x37d   :  { %v13544_v8 = vcombine.high %v18602_v38, %v18601_v53  ;;  %v13550_v10 = vcombine.low %v18606_v33, %v18604_v1  ;;  %v18608_v59 = vmov %v18606_v33  ;;  %v5917_v53 = vmax.f32 %v5915_v34, %v5916_v26 }
 0x37e   :  { %v13556_v40 = vcombine.high %v18608_v59, %v18607_v32  ;;  %v13562_v61 = vcombine.low %v18610_v55, %v18609_v51  ;;  %v18611_v38 = vmov %v18609_v51  ;;  %v18613_v5 = vmax.f32 %v13189_v62, 0.0 }
 0x37f   :  { %18603 = vst [vmem:[#allocation37_spill] sm:$0xff] %v13544_v8  ;;  %v18612_v8 = vmov %v18610_v55  ;;  %v18614_v47 = vmax.f32 %v13186_v56, 0.0  ;;  %v18617_v26 = vmax.f32 %v13195_v7, 0.0  ;;  %v18618_v58 = vmax.f32 %v13192_v35, 0.0 }
 0x380   :  { %v13568_v1 = vcombine.high %v18612_v8, %v18611_v38  ;;  %v18615_v32 = vmov %v18613_v5  ;;  %v18621_v48 = vmax.f32 %v13201_v19, 0.0  ;;  %v18622_v62 = vmax.f32 %v13198_v30, 0.0 }
 0x381   :  { %v13574_v33 = vcombine.low %v18614_v47, %v18613_v5  ;;  %v18616_v59 = vmov %v18614_v47  ;;  %v13586_v50 = vcombine.low %v18618_v58, %v18617_v26  ;;  %v18619_v60 = vmov %v18617_v26 }
 0x382   :  { %v13580_v51 = vcombine.high %v18616_v59, %v18615_v32  ;;  %v18620_v8 = vmov %v18618_v58  ;;  %v13598_v55 = vcombine.low %v18622_v62, %v18621_v48  ;;  %v5862_v56 = vrot.slane %v5861_v37, 2 }
 0x383   :  { %v13592_v34 = vcombine.high %v18620_v8, %v18619_v60  ;;  %v5918_v38 = vrot.slane %v5917_v53, 2  ;;  %v18623_v5 = vmov %v18621_v48  ;;  %v18624_v47 = vmov %v18622_v62 }
 0x384   :  { %v13604_v32 = vcombine.high %v18624_v47, %v18623_v5  ;;  %v18625_v7 = vmax.f32 %v13207_v54, 0.0  ;;  %v18626_v35 = vmax.f32 %v13204_v57, 0.0  ;;  %v18629_v8 = vmax.f32 %v13213_v6, 0.0 }
 0x385   :  { %v18630_v19 = vmax.f32 %v13210_v0, 0.0  ;;  %v18633_v47 = vmax.f32 %v13219_v52, 0.0  ;;  %v18634_v54 = vmax.f32 %v13216_v2, 0.0  ;;  %v5863_v57 = vmax.f32 %v5861_v37, %v5862_v56  ;;  %v18641_v37 = vld [vmem:[#allocation62_spill] sm:$0xff]  ;;  %v18643_v56 = vld [vmem:[#allocation59_spill] sm:$0xff] }
 0x386   :  { %v13610_v59 = vcombine.low %v18626_v35, %v18625_v7  ;;  %v18627_v26 = vmov %v18625_v7  ;;  %v18628_v58 = vmov %v18626_v35  ;;  %v18631_v30 = vmov %v18629_v8 }
 0x387   :  { %v13616_v60 = vcombine.high %v18628_v58, %v18627_v26  ;;  %v13622_v48 = vcombine.low %v18630_v19, %v18629_v8  ;;  %v18632_v62 = vmov %v18630_v19  ;;  %v13634_v7 = vcombine.low %v18634_v54, %v18633_v47 }
 0x388   :  { %v13628_v5 = vcombine.high %v18632_v62, %v18631_v30  ;;  %v5919_v35 = vmax.f32 %v5917_v53, %v5918_v38  ;;  %v18635_v26 = vmov %v18633_v47  ;;  %v18636_v58 = vmov %v18634_v54 }
 0x389   :  { %v13640_v8 = vcombine.high %v18636_v58, %v18635_v26  ;;  %v18637_v6 = vmax.f32 %v13225_v14, 0.0  ;;  %v18638_v0 = vmax.f32 %v13222_v63, 0.0  ;;  %v18642_v53 = vmax.f32 %v18641_v37, 0.0 }
 0x38a   :  { %v18644_v52 = vmax.f32 %v18643_v56, 0.0  ;;  %v18647_v58 = vmax.f32 %v13237_v15, 0.0  ;;  %v18648_v14 = vmax.f32 %v13234_v46, 0.0  ;;  %v5864_v63 = vrot.slane %v5863_v57, 1 }
 0x38b   :  { %v13646_v19 = vcombine.low %v18638_v0, %v18637_v6  ;;  %v18639_v30 = vmov %v18637_v6  ;;  %v18640_v62 = vmov %v18638_v0  ;;  %v18645_v2 = vmov %v18642_v53 }
 0x38c   :  { %v13652_v47 = vcombine.high %v18640_v62, %v18639_v30  ;;  %v13658_v38 = vcombine.low %v18644_v52, %v18642_v53  ;;  %v18646_v54 = vmov %v18644_v52  ;;  %v13670_v6 = vcombine.low %v18648_v14, %v18647_v58 }
 0x38d   :  { %v13664_v26 = vcombine.high %v18646_v54, %v18645_v2  ;;  %v5920_v0 = vrot.slane %v5919_v35, 1  ;;  %v18650_v30 = vmov %v18647_v58  ;;  %v18651_v62 = vmov %v18648_v14 }
 0x38e   :  { %18649 = vst [vmem:[#allocation40_spill] sm:$0xff] %v13670_v6  ;;  %v13676_v53 = vcombine.high %v18651_v62, %v18650_v30  ;;  %v18652_v37 = vmax.f32 %v18531_v39, 0.0  ;;  %v18653_v56 = vmax.f32 %v13240_v23, 0.0  ;;  %v18656_v14 = vmax.f32 %v18535_v9, 0.0 }
 0x38f   :  { %v18657_v15 = vmax.f32 %v18534_v13, 0.0  ;;  %v18661_v39 = vmax.f32 %v18546_v31, 0.0  ;;  %v13708_v23 = vmax.f32 %v5863_v57, %v5864_v63  ;;  %v18666_v13 = vmax.f32 %v18555_v22, 0.0 }
 0x390   :  { %v13682_v52 = vcombine.low %v18653_v56, %v18652_v37  ;;  %v18654_v2 = vmov %v18652_v37  ;;  %v18655_v54 = vmov %v18653_v56  ;;  %v18658_v46 = vmov %v18656_v14 }
 0x391   :  { %v13688_v58 = vcombine.high %v18655_v54, %v18654_v2  ;;  %v13694_v6 = vcombine.low %v18657_v15, %v18656_v14  ;;  %v18659_v30 = vmov %v18657_v15  ;;  %v18660_v37 = vmax.f32 %v18552_v24, 0.0  ;;  %18662 = vst [vmem:[#allocation57_spill] sm:$0xff] %v13708_v23 }
 0x392   :  { %v13700_v62 = vcombine.high %v18659_v30, %v18658_v46  ;;  %v13710_v2 = vmax.f32 %v5919_v35, %v5920_v0  ;;  %v18665_v14 = vmov %v18661_v39  ;;  %v18667_v9 = vmax.f32 %v18553_v3, 0.0 }
 0x393   :  { %v13706_v56 = vcombine.low %v18661_v39, %v18660_v37  ;;  %v18664_v54 = vmov %v18660_v37  ;;  %v18668_v30 = vmov %v18666_v13  ;;  %v18670_v35 = vmax.f32 %v18564_v16, 0.0 }
 0x394   :  { %18663 = vst [vmem:[#allocation43_spill] sm:$0xff] %v13710_v2  ;;  %v13716_v15 = vcombine.high %v18665_v14, %v18664_v54  ;;  %v13722_v46 = vcombine.low %v18667_v9, %v18666_v13  ;;  %v18669_v37 = vmov %v18667_v9  ;;  %v18672_v0 = vmax.f32 %v18570_v18, 0.0  ;;  %v18680_v18 = vld [vmem:[#allocation72_spill] sm:$0xff] }
 0x395   :  { %v13728_v57 = vcombine.high %v18669_v37, %v18668_v30  ;;  %v13732_v63 = vcombine.low %v18670_v35, %v3871_v4  ;;  %v18671_v31 = vmov %v18670_v35  ;;  %v18673_v39 = vmax.f32 %v18569_v29, 0.0  ;;  %v18682_v29 = vld [vmem:[#allocation35_spill] sm:$0xff] }
 0x396   :  { %v13736_v24 = vcombine.high %v18671_v31, %v3871_v4  ;;  %v10294_v22 = vpack.i.bf16 %v13710_v2, %v13708_v23  ;;  %v18674_v3 = vmov %v18672_v0  ;;  %v4027_v9 = vrot.slane %v4011_v45, %v18527_v20 }
 0x397   :  { %v13742_v54 = vcombine.low %v18673_v39, %v18672_v0  ;;  %v18675_v14 = vmov %v18673_v39  ;;  %v13754_v16 = vrot.slane %v4013_v25, %v18527_v20  ;;  %v18676_v4 = vmax.f32 %v13285_v41, 0.0  ;;  %v18686_v41 = vld [vmem:[#allocation63_spill] sm:$0xff] }
 0x398   :  { %v13750_v13 = vcombine.high %v18675_v14, %v18674_v3  ;;  %v18677_v30 = vmax.f32 %v13281_v42, 0.0  ;;  %v18678_v35 = vmax.f32 %v13293_v36, 0.0  ;;  %v18679_v31 = vmax.f32 %v13289_v44, 0.0  ;;  %10295 = vrot.lane.b32.xlu0 %v10294_v22, %s11154_s0 }
 0x399   :  { %v18681_v39 = vmax.f32 %v18680_v18, 0.0  ;;  %v18683_v3 = vmax.f32 %v18682_v29, 0.0  ;;  %v18687_v42 = vmax.f32 %v18686_v41, 0.0  ;;  %v4044_v2 = vcombine.low %v4027_v9, %v13754_v16  ;;  %v18695_v41 = vld [vmem:[#allocation47_spill] sm:$0xff] }
 0x39a   :  { %v4010_v37 = vcombine.low %v18677_v30, %v18676_v4  ;;  %v4012_v0 = vcombine.low %v18679_v31, %v18678_v35  ;;  %v18688_v4 = vld [vmem:[#allocation44_spill] sm:$0xff]  ;;  %v13789_v29 = vrot.slane %v13407_v43, %v18527_v20 }
 0x39b   :  { %v4082_v14 = vcombine.low %v18683_v3, %v18681_v39  ;;  %v18684_v45 = vmov %v18681_v39  ;;  %v18685_v25 = vmov %v18683_v3  ;;  %v18689_v30 = vmax.f32 %v18688_v4, 0.0 }
 0x39c   :  { %v4083_v23 = vcombine.high %v18685_v25, %v18684_v45  ;;  %v18690_v44 = vmov %v18687_v42  ;;  %v4045_v39 = vcombine.high %v4027_v9, %v13754_v16  ;;  %18692 = vst [vmem:[#allocation66_spill] sm:$0xff] %v13789_v29  ;;  %v13793_v3 = vrot.slane %v13413_v11, %v18527_v20 }
 0x39d   :  { %v4084_v36 = vcombine.low %v18689_v30, %v18687_v42  ;;  %v18691_v35 = vmov %v18689_v30  ;;  %v13796_v45 = vrot.slane %v4044_v2, %v18527_v20  ;;  %v13803_v9 = vrot.slane %v13422_v21, %v18527_v20  ;;  %v18696_v2 = vld [vmem:[#allocation50_spill] sm:$0xff] }
 0x39e   :  { %v4085_v31 = vcombine.high %v18691_v35, %v18690_v44  ;;  %v13799_v25 = vrot.slane %v4045_v39, %v18527_v20  ;;  %v13807_v42 = vrot.slane %v18695_v41, %v18527_v20  ;;  %v13810_v43 = vrot.slane %v4010_v37, %v18527_v20  ;;  %v18698_v30 = vld [vmem:[#allocation26_spill] sm:$0xff] }
 0x39f   :  { %18693 = vst [vmem:[#allocation23_spill] sm:$0xff] %v13796_v45  ;;  %v13813_v11 = vrot.slane %v4012_v0, %v18527_v20  ;;  %v13817_v4 = vrot.slane %v18696_v2, %v18527_v20  ;;  %v13821_v44 = vrot.slane %v18698_v30, %v18527_v20  ;;  %v6195_v21 = vsel %vm5858_vm4, %v13796_v45, -inf  ;;  %v18701_v0 = vld [vmem:[#allocation16_spill] sm:$0xff] }
 0x3a0   :  { %18694 = vst [vmem:[#allocation36_spill] sm:$0xff] %v13799_v25  ;;  %v6251_v35 = vsel %vm5858_vm4, %v13799_v25, -inf  ;;  %v13829_v37 = vrot.slane %v13454_v17, %v18527_v20  ;;  %v13833_v39 = vrot.slane %v18701_v0, %v18527_v20  ;;  %v6196_v41 = vrot.slane %v6195_v21, 4  ;;  %v18703_v17 = vld [vmem:[#allocation41_spill] sm:$0xff]  ;;  %v18705_v0 = vld [vmem:[#allocation54_spill] sm:$0xff] }
 0x3a1   :  { %18697 = vst [vmem:[#allocation27_spill] sm:$0xff] %v13817_v4  ;;  %18699 = vst [vmem:[#allocation21_spill] sm:$0xff] %v13821_v44  ;;  %v6252_v2 = vrot.slane %v6251_v35, 4  ;;  %v13836_v18 = vrot.slane %v4082_v14, %v18527_v20  ;;  %v13839_v30 = vrot.slane %v4083_v23, %v18527_v20  ;;  %v13842_v22 = vrot.slane %v4084_v36, %v18527_v20  ;;  %v18707_v44 = vld [vmem:[#allocation25_spill] sm:$0xff] }
 0x3a2   :  { %18700 = vst [vmem:[#allocation24_spill] sm:$0xff] %v13829_v37  ;;  %18702 = vst [vmem:[#allocation60_spill] sm:$0xff] %v13833_v39  ;;  %v13845_v49 = vrot.slane %v4085_v31, %v18527_v20  ;;  %v13849_v12 = vrot.slane %v18703_v17, %v18527_v20  ;;  %v13853_v4 = vrot.slane %v18705_v0, %v18527_v20  ;;  %v18709_v39 = vld [vmem:[#allocation73_spill] sm:$0xff] }
 0x3a3   :  { %v6197_v37 = vmax.f32 %v6195_v21, %v6196_v41  ;;  %v6253_v23 = vmax.f32 %v6251_v35, %v6252_v2  ;;  %v13861_v31 = vrot.slane %v18707_v44, %v18527_v20  ;;  %v13865_v17 = vrot.slane %v18709_v39, %v18527_v20  ;;  %v18713_v41 = vld [vmem:[#allocation28_spill] sm:$0xff] }
 0x3a4   :  { %18704 = vst [vmem:[#allocation46_spill] sm:$0xff] %v13849_v12  ;;  %18706 = vst [vmem:[#allocation48_spill] sm:$0xff] %v13853_v4  ;;  %v18711_v12 = vld [vmem:[#allocation20_spill] sm:$0xff]  ;;  %v18712_v4 = vld [vmem:[#allocation34_spill] sm:$0xff]  ;;  %v13877_v2 = vrot.slane %v18713_v41, %v18527_v20  ;;  %v13881_v44 = vrot.slane %v13532_v28, %v18527_v20  ;;  %v13885_v39 = vrot.slane %v13538_v27, %v18527_v20 }
 0x3a5   :  { %18708 = vst [vmem:[#allocation52_spill] sm:$0xff] %v13861_v31  ;;  %18710 = vst [vmem:[#allocation13_spill] sm:$0xff] %v13865_v17  ;;  %v13869_v0 = vrot.slane %v18711_v12, %v18527_v20  ;;  %v13873_v14 = vrot.slane %v18712_v4, %v18527_v20  ;;  %v6198_v21 = vrot.slane %v6197_v37, 2  ;;  %v6254_v35 = vrot.slane %v6253_v23, 2  ;;  %v18715_v12 = vld [vmem:[#allocation37_spill] sm:$0xff] }
 0x3a6   :  { %18714 = vst [vmem:[#allocation55_spill] sm:$0xff] %v13885_v39  ;;  %v13889_v36 = vrot.slane %v18715_v12, %v18527_v20  ;;  %v13893_v4 = vrot.slane %v13550_v10, %v18527_v20  ;;  %v13897_v41 = vrot.slane %v13556_v40, %v18527_v20  ;;  %v13901_v28 = vrot.slane %v13562_v61, %v18527_v20 }
 0x3a7   :  { %v6199_v25 = vmax.f32 %v6197_v37, %v6198_v21  ;;  %v6255_v45 = vmax.f32 %v6253_v23, %v6254_v35  ;;  %v13905_v27 = vrot.slane %v13568_v1, %v18527_v20  ;;  %v13909_v12 = vrot.slane %v13574_v33, %v18527_v20 }
 0x3a8   :  { %18716 = vst [vmem:[#allocation58_spill] sm:$0xff] %v13889_v36  ;;  %18717 = vst [vmem:[#allocation61_spill] sm:$0xff] %v13893_v4  ;;  %v13913_v10 = vrot.slane %v13580_v51, %v18527_v20  ;;  %v13917_v40 = vrot.slane %v13586_v50, %v18527_v20  ;;  %v13921_v61 = vrot.slane %v13592_v34, %v18527_v20 }
 0x3a9   :  { %18718 = vst [vmem:[#allocation64_spill] sm:$0xff] %v13897_v41  ;;  %v6200_v37 = vrot.slane %v6199_v25, 1  ;;  %v6256_v23 = vrot.slane %v6255_v45, 1  ;;  %v13925_v1 = vrot.slane %v13598_v55, %v18527_v20  ;;  %v13929_v33 = vrot.slane %v13604_v32, %v18527_v20 }
 0x3aa   :  { %18719 = vst [vmem:[#allocation51_spill] sm:$0xff] %v13917_v40  ;;  %18720 = vst [vmem:[#allocation15_spill] sm:$0xff] %v13921_v61  ;;  %v13933_v51 = vrot.slane %v13610_v59, %v18527_v20  ;;  %v13937_v50 = vrot.slane %v13616_v60, %v18527_v20  ;;  %v13941_v34 = vrot.slane %v13622_v48, %v18527_v20 }
 0x3ab   :  { %18721 = vst [vmem:[#allocation67_spill] sm:$0xff] %v13925_v1  ;;  %18722 = vst [vmem:[#allocation45_spill] sm:$0xff] %v13929_v33  ;;  %v13945_v55 = vrot.slane %v13628_v5, %v18527_v20  ;;  %v13947_v21 = vmax.f32 %v6199_v25, %v6200_v37  ;;  %v13949_v32 = vmax.f32 %v6255_v45, %v6256_v23  ;;  %v18729_v25 = vld [vmem:[#allocation40_spill] sm:$0xff] }
 0x3ac   :  { %v13953_v59 = vrot.slane %v13634_v7, %v18527_v20  ;;  %v13957_v60 = vrot.slane %v13640_v8, %v18527_v20  ;;  %v13961_v48 = vrot.slane %v13646_v19, %v18527_v20  ;;  %v13965_v5 = vrot.slane %v13652_v47, %v18527_v20 }
 0x3ad   :  { %18723 = vst [vmem:[#allocation65_spill] sm:$0xff] %v13947_v21  ;;  %18724 = vst [vmem:[#allocation68_spill] sm:$0xff] %v13949_v32  ;;  %v13969_v45 = vrot.slane %v13658_v38, %v18527_v20  ;;  %v13973_v7 = vrot.slane %v13664_v26, %v18527_v20  ;;  %v10309_v8 = vpack.i.bf16 %v13949_v32, %v13947_v21 }
 0x3ae   :  { %18725 = vst [vmem:[#allocation11_spill] sm:$0xff] %v13953_v59  ;;  %18726 = vst [vmem:[#allocation29_spill] sm:$0xff] %v13957_v60  ;;  %v13979_v35 = vrot.slane %v18729_v25, %v18527_v20  ;;  %v13983_v19 = vrot.slane %v13676_v53, %v18527_v20  ;;  %v13987_v47 = vrot.slane %v13682_v52, %v18527_v20 }
 0x3af   :  { %18727 = vst [vmem:[#allocation49_spill] sm:$0xff] %v13961_v48  ;;  %18728 = vst [vmem:[#allocation70_spill] sm:$0xff] %v13965_v5  ;;  %v13991_v38 = vrot.slane %v13688_v58, %v18527_v20  ;;  %v13995_v26 = vrot.slane %v13694_v6, %v18527_v20  ;;  %v13999_v37 = vrot.slane %v13700_v62, %v18527_v20  ;;  %10310 = vrot.lane.b32.xlu1 %v10309_v8, %s11154_s0 }
 0x3b0   :  { %18730 = vst [vmem:[#allocation17_spill] sm:$0xff] %v13987_v47  ;;  %v4042_v53 = vcombine.low %v13810_v43, %v13813_v11  ;;  %v4043_v52 = vcombine.high %v13810_v43, %v13813_v11  ;;  %v4116_v58 = vcombine.low %v13839_v30, %v13845_v49  ;;  %v4117_v23 = vcombine.high %v13839_v30, %v13845_v49 }
 0x3b1   :  { %18731 = vst [vmem:[#allocation69_spill] sm:$0xff] %v13991_v38  ;;  %18732 = vst [vmem:[#allocation33_spill] sm:$0xff] %v13995_v26  ;;  %v4114_v6 = vcombine.low %v13836_v18, %v13842_v22  ;;  %v14014_v62 = vrot.slane %v13706_v56, %v18527_v20  ;;  %v4115_v8 = vcombine.high %v13836_v18, %v13842_v22 }
 0x3b2   :  { %18733 = vst [vmem:[#allocation12_spill] sm:$0xff] %v13999_v37  ;;  %v14017_v25 = vrot.slane %v4042_v53, %v18527_v20  ;;  %v4188_v43 = vcombine.low %v13873_v14, %v13881_v44  ;;  %v14025_v21 = vrot.slane %v13716_v15, %v18527_v20  ;;  %v14028_v30 = vrot.slane %v4043_v52, %v18527_v20 }
 0x3b3   :  { %v14031_v32 = vrot.slane %v4116_v58, %v18527_v20  ;;  %v14034_v56 = vrot.slane %v4117_v23, %v18527_v20  ;;  %v14038_v53 = vrot.slane %v13722_v46, %v18527_v20  ;;  %v14043_v47 = vrot.slane %v4114_v6, %v18527_v20 }
 0x3b4   :  { %18734 = vst [vmem:[#allocation31_spill] sm:$0xff] %v14017_v25  ;;  %18735 = vst [vmem:[#allocation71_spill] sm:$0xff] %v14028_v30  ;;  %v6083_v18 = vsel %vm5858_vm4, %v14017_v25, -inf  ;;  %v14046_v15 = vrot.slane %v4115_v8, %v18527_v20  ;;  %v14050_v52 = vrot.slane %v13728_v57, %v18527_v20  ;;  %v6139_v23 = vsel %vm5858_vm4, %v14028_v30, -inf }
 0x3b5   :  { %18736 = vst [vmem:[#allocation14_spill] sm:$0xff] %v14031_v32  ;;  %18737 = vst [vmem:[#allocation53_spill] sm:$0xff] %v14034_v56  ;;  %v6084_v58 = vrot.slane %v6083_v18, 4  ;;  %v4189_v46 = vcombine.high %v13873_v14, %v13881_v44  ;;  %v6140_v26 = vrot.slane %v6139_v23, 4  ;;  %v6419_v38 = vsel %vm5858_vm4, %v14031_v32, -inf }
 0x3b6   :  { %18738 = vst [vmem:[#allocation56_spill] sm:$0xff] %v14043_v47  ;;  %18739 = vst [vmem:[#allocation62_spill] sm:$0xff] %v14046_v15  ;;  %v6475_v6 = vsel %vm5858_vm4, %v14034_v56, -inf  ;;  %v14061_v8 = vrot.slane %v4188_v43, %v18527_v20  ;;  %v14065_v57 = vrot.slane %v13732_v63, %v18527_v20  ;;  %v6420_v59 = vrot.slane %v6419_v38, 4 }
 0x3b7   :  { %v6085_v37 = vmax.f32 %v6083_v18, %v6084_v58  ;;  %v6476_v48 = vrot.slane %v6475_v6, 4  ;;  %v14069_v14 = vrot.slane %v13736_v24, %v18527_v20  ;;  %v6141_v60 = vmax.f32 %v6139_v23, %v6140_v26 }
 0x3b8   :  { %18740 = vst [vmem:[#allocation59_spill] sm:$0xff] %v14061_v8  ;;  %18741 = vst [vmem:[#allocation72_spill] sm:$0xff] %v14065_v57  ;;  %v6307_v5 = vsel %vm5858_vm4, %v14043_v47, -inf  ;;  %v6363_v40 = vsel %vm5858_vm4, %v14046_v15, -inf  ;;  %v6421_v1 = vmax.f32 %v6419_v38, %v6420_v59  ;;  %v14076_v18 = vrot.slane %v4189_v46, %v18527_v20 }
 0x3b9   :  { %18742 = vst [vmem:[#allocation35_spill] sm:$0xff] %v14069_v14  ;;  %v6086_v43 = vrot.slane %v6085_v37, 2  ;;  %v6477_v61 = vmax.f32 %v6475_v6, %v6476_v48  ;;  %v6308_v33 = vrot.slane %v6307_v5, 4  ;;  %v6142_v63 = vrot.slane %v6141_v60, 2 }
 0x3ba   :  { %v6364_v57 = vrot.slane %v6363_v40, 4  ;;  %18743 = vst [vmem:[#allocation63_spill] sm:$0xff] %v14076_v18  ;;  %v6643_v24 = vsel %vm5858_vm4, %v14061_v8, -inf  ;;  %v6422_v26 = vrot.slane %v6421_v1, 2  ;;  %v14082_v39 = vrot.slane %v13742_v54, %v18527_v20 }
 0x3bb   :  { %v6087_v58 = vmax.f32 %v6085_v37, %v6086_v43  ;;  %v6478_v23 = vrot.slane %v6477_v61, 2  ;;  %v6309_v14 = vmax.f32 %v6307_v5, %v6308_v33  ;;  %v6143_v4 = vmax.f32 %v6141_v60, %v6142_v63 }
 0x3bc   :  { %v6365_v59 = vmax.f32 %v6363_v40, %v6364_v57  ;;  %v6644_v48 = vrot.slane %v6643_v24, 4  ;;  %v6423_v6 = vmax.f32 %v6421_v1, %v6422_v26  ;;  %v6699_v37 = vsel %vm5858_vm4, %v14076_v18, -inf }
 0x3bd   :  { %v6088_v38 = vrot.slane %v6087_v58, 1  ;;  %v6479_v36 = vmax.f32 %v6477_v61, %v6478_v23  ;;  %v6310_v41 = vrot.slane %v6309_v14, 2  ;;  %v6144_v46 = vrot.slane %v6143_v4, 1 }
 0x3be   :  { %v6366_v31 = vrot.slane %v6365_v59, 2  ;;  %v6645_v17 = vmax.f32 %v6643_v24, %v6644_v48  ;;  %v6424_v33 = vrot.slane %v6423_v6, 1  ;;  %v6700_v57 = vrot.slane %v6699_v37, 4 }
 0x3bf   :  { %v14086_v43 = vmax.f32 %v6087_v58, %v6088_v38  ;;  %v6480_v5 = vrot.slane %v6479_v36, 1  ;;  %v6311_v29 = vmax.f32 %v6309_v14, %v6310_v41  ;;  %v14088_v54 = vmax.f32 %v6143_v4, %v6144_v46 }
 0x3c0   :  { %v6367_v60 = vmax.f32 %v6365_v59, %v6366_v31  ;;  %v6646_v40 = vrot.slane %v6645_v17, 2  ;;  %v14092_v61 = vrot.slane %v13750_v13, %v18527_v20  ;;  %v14094_v1 = vmax.f32 %v6423_v6, %v6424_v33 }
 0x3c1   :  { %v14096_v63 = vmax.f32 %v6479_v36, %v6480_v5  ;;  %v6312_v24 = vrot.slane %v6311_v29, 1  ;;  %v10304_v58 = vpack.i.bf16 %v14088_v54, %v14086_v43  ;;  %v6701_v41 = vmax.f32 %v6699_v37, %v6700_v57 }
 0x3c2   :  { %18744 = vst [vmem:[#allocation44_spill] sm:$0xff] %v14094_v1  ;;  %v6368_v26 = vrot.slane %v6367_v60, 1  ;;  %v6647_v23 = vmax.f32 %v6645_v17, %v6646_v40  ;;  %v4186_v13 = vcombine.low %v13869_v0, %v13877_v2  ;;  %v4187_v14 = vcombine.high %v13869_v0, %v13877_v2 }
 0x3c3   :  { %v10319_v31 = vpack.i.bf16 %v14096_v63, %v14094_v1  ;;  %v14102_v4 = vmax.f32 %v6311_v29, %v6312_v24  ;;  %10305 = vrot.lane.b32.xlu0 %v10304_v58, %s11154_s0  ;;  %v6702_v48 = vrot.slane %v6701_v41, 2  ;;  %v4260_v17 = vcombine.low %v13905_v27, %v13913_v10 }
 0x3c4   :  { %v14109_v36 = vmax.f32 %v6367_v60, %v6368_v26  ;;  %v6648_v59 = vrot.slane %v6647_v23, 1  ;;  %v14115_v29 = vrot.slane %v4186_v13, %v18527_v20  ;;  %v14118_v38 = vrot.slane %v4187_v14, %v18527_v20 }
 0x3c5   :  { %18745 = vst [vmem:[#allocation47_spill] sm:$0xff] %v14102_v4  ;;  %10320 = vrot.lane.b32.xlu1 %v10319_v31, %s11154_s0  ;;  %v4261_v0 = vcombine.high %v13905_v27, %v13913_v10  ;;  %v4258_v6 = vcombine.low %v13901_v28, %v13909_v12  ;;  %v6703_v33 = vmax.f32 %v6701_v41, %v6702_v48 }
 0x3c6   :  { %18746 = vst [vmem:[#allocation50_spill] sm:$0xff] %v14115_v29  ;;  %18747 = vst [vmem:[#allocation26_spill] sm:$0xff] %v14118_v38  ;;  %v10314_v37 = vpack.i.bf16 %v14109_v36, %v14102_v4  ;;  %v14129_v5 = vrot.slane %v4260_v17, %v18527_v20  ;;  %v14133_v40 = vmax.f32 %v6647_v23, %v6648_v59  ;;  %v6531_v27 = vsel %vm5858_vm4, %v14115_v29, -inf }
 0x3c7   :  { %v6587_v57 = vsel %vm5858_vm4, %v14118_v38, -inf  ;;  %v6704_v24 = vrot.slane %v6703_v33, 1  ;;  %v6532_v58 = vrot.slane %v6531_v27, 4  ;;  %v14141_v41 = vrot.slane %v4261_v0, %v18527_v20 }
 0x3c8   :  { %18748 = vst [vmem:[#allocation16_spill] sm:$0xff] %v14129_v5  ;;  %18749 = vst [vmem:[#allocation41_spill] sm:$0xff] %v14133_v40  ;;  %10315 = vrot.lane.b32.xlu0 %v10314_v37, %s11154_s0  ;;  %v6588_v26 = vrot.slane %v6587_v57, 4  ;;  %v6867_v23 = vsel %vm5858_vm4, %v14129_v5, -inf  ;;  %v4259_v13 = vcombine.high %v13901_v28, %v13909_v12  ;;  %v14150_v14 = vrot.slane %v4258_v6, %v18527_v20 }
 0x3c9   :  { %18750 = vst [vmem:[#allocation54_spill] sm:$0xff] %v14141_v41  ;;  %v14154_v48 = vmax.f32 %v6703_v33, %v6704_v24  ;;  %v6533_v17 = vmax.f32 %v6531_v27, %v6532_v58  ;;  %v6868_v37 = vrot.slane %v6867_v23, 4  ;;  %v6923_v31 = vsel %vm5858_vm4, %v14141_v41, -inf }
 0x3ca   :  { %18751 = vst [vmem:[#allocation25_spill] sm:$0xff] %v14150_v14  ;;  %v6589_v0 = vmax.f32 %v6587_v57, %v6588_v26  ;;  %v14159_v60 = vrot.slane %v4259_v13, %v18527_v20  ;;  %v6755_v28 = vsel %vm5858_vm4, %v14150_v14, -inf  ;;  %v6924_v59 = vrot.slane %v6923_v31, 4 }
 0x3cb   :  { %18752 = vst [vmem:[#allocation73_spill] sm:$0xff] %v14154_v48  ;;  %v10329_v6 = vpack.i.bf16 %v14154_v48, %v14133_v40  ;;  %v6534_v46 = vrot.slane %v6533_v17, 2  ;;  %v6869_v27 = vmax.f32 %v6867_v23, %v6868_v37  ;;  %v6756_v57 = vrot.slane %v6755_v28, 4 }
 0x3cc   :  { %18753 = vst [vmem:[#allocation20_spill] sm:$0xff] %v14159_v60  ;;  %v6590_v56 = vrot.slane %v6589_v0, 2  ;;  %v6811_v24 = vsel %vm5858_vm4, %v14159_v60, -inf  ;;  %v6925_v13 = vmax.f32 %v6923_v31, %v6924_v59  ;;  %v4332_v48 = vcombine.low %v13937_v50, %v13945_v55 }
 0x3cd   :  { %10330 = vrot.lane.b32.xlu1 %v10329_v6, %s11154_s0  ;;  %v6535_v58 = vmax.f32 %v6533_v17, %v6534_v46  ;;  %v6812_v32 = vrot.slane %v6811_v24, 4  ;;  %v6870_v25 = vrot.slane %v6869_v27, 2  ;;  %v6757_v40 = vmax.f32 %v6755_v28, %v6756_v57 }
 0x3ce   :  { %v6591_v26 = vmax.f32 %v6589_v0, %v6590_v56  ;;  %v6926_v37 = vrot.slane %v6925_v13, 2  ;;  %v4333_v46 = vcombine.high %v13937_v50, %v13945_v55  ;;  %v14177_v56 = vrot.slane %v4332_v48, %v18527_v20 }
 0x3cf   :  { %v6536_v33 = vrot.slane %v6535_v58, 1  ;;  %v6813_v15 = vmax.f32 %v6811_v24, %v6812_v32  ;;  %v6871_v4 = vmax.f32 %v6869_v27, %v6870_v25  ;;  %v6758_v1 = vrot.slane %v6757_v40, 2 }
 0x3d0   :  { %v6592_v23 = vrot.slane %v6591_v26, 1  ;;  %18754 = vst [vmem:[#allocation34_spill] sm:$0xff] %v14177_v56  ;;  %v6927_v17 = vmax.f32 %v6925_v13, %v6926_v37  ;;  %v14184_v57 = vrot.slane %v4333_v46, %v18527_v20  ;;  %v7091_v32 = vsel %vm5858_vm4, %v14177_v56, -inf }
 0x3d1   :  { %v14179_v31 = vmax.f32 %v6535_v58, %v6536_v33  ;;  %v6814_v0 = vrot.slane %v6813_v15, 2  ;;  %v6872_v28 = vrot.slane %v6871_v4, 1  ;;  %v6759_v6 = vmax.f32 %v6757_v40, %v6758_v1 }
 0x3d2   :  { %v14181_v59 = vmax.f32 %v6591_v26, %v6592_v23  ;;  %18755 = vst [vmem:[#allocation28_spill] sm:$0xff] %v14184_v57  ;;  %v6928_v25 = vrot.slane %v6927_v17, 1  ;;  %v7092_v27 = vrot.slane %v7091_v32, 4  ;;  %v7147_v1 = vsel %vm5858_vm4, %v14184_v57, -inf }
 0x3d3   :  { %v6815_v48 = vmax.f32 %v6813_v15, %v6814_v0  ;;  %v14192_v24 = vmax.f32 %v6871_v4, %v6872_v28  ;;  %v6760_v58 = vrot.slane %v6759_v6, 1  ;;  %v7148_v23 = vrot.slane %v7147_v1, 4 }
 0x3d4   :  { %v10324_v50 = vpack.i.bf16 %v14181_v59, %v14179_v31  ;;  %v14197_v40 = vmax.f32 %v6927_v17, %v6928_v25  ;;  %v7093_v13 = vmax.f32 %v7091_v32, %v7092_v27  ;;  %v4330_v4 = vcombine.low %v13933_v51, %v13941_v34 }
 0x3d5   :  { %v6816_v26 = vrot.slane %v6815_v48, 1  ;;  %v14201_v37 = vmax.f32 %v6759_v6, %v6760_v58  ;;  %v4331_v46 = vcombine.high %v13933_v51, %v13941_v34  ;;  %v4404_v6 = vcombine.low %v13973_v7, %v13983_v19 }
 0x3d6   :  { %10325 = vrot.lane.b32.xlu0 %v10324_v50, %s11154_s0  ;;  %18756 = vst [vmem:[#allocation37_spill] sm:$0xff] %v14197_v40  ;;  %v10339_v0 = vpack.i.bf16 %v14197_v40, %v14192_v24  ;;  %v7094_v17 = vrot.slane %v7093_v13, 2  ;;  %v7149_v50 = vmax.f32 %v7147_v1, %v7148_v23  ;;  %v14212_v32 = vrot.slane %v4330_v4, %v18527_v20 }
 0x3d7   :  { %18757 = vst [vmem:[#allocation40_spill] sm:$0xff] %v14201_v37  ;;  %v14209_v28 = vmax.f32 %v6815_v48, %v6816_v26  ;;  %v14215_v25 = vrot.slane %v4331_v46, %v18527_v20  ;;  %v4405_v27 = vcombine.high %v13973_v7, %v13983_v19  ;;  %v4402_v1 = vcombine.low %v13969_v45, %v13979_v35 }
 0x3d8   :  { %18758 = vst [vmem:[#allocation74_spill] sm:$0xff] %v14212_v32  ;;  %10340 = vrot.lane.b32.xlu1 %v10339_v0, %s11154_s0  ;;  %v7095_v48 = vmax.f32 %v7093_v13, %v7094_v17  ;;  %v7150_v58 = vrot.slane %v7149_v50, 2  ;;  %v6979_v4 = vsel %vm5858_vm4, %v14212_v32, -inf  ;;  %v14236_v33 = vrot.slane %v4404_v6, %v18527_v20  ;;  %v18773_v32 = vld [vmem:[#allocation42_spill] sm:$0xff] }
 0x3d9   :  { %18759 = vst [vmem:[#allocation75_spill] sm:$0xff] %v14215_v25  ;;  %v10334_v51 = vpack.i.bf16 %v14209_v28, %v14201_v37  ;;  %v7035_v7 = vsel %vm5858_vm4, %v14215_v25, -inf  ;;  %v6980_v0 = vrot.slane %v6979_v4, 4  ;;  %v14239_v26 = vrot.slane %v4405_v27, %v18527_v20 }
 0x3da   :  { %v7096_v46 = vrot.slane %v7095_v48, 1  ;;  %v7151_v13 = vmax.f32 %v7149_v50, %v7150_v58  ;;  %v7036_v17 = vrot.slane %v7035_v7, 4  ;;  %18760 = vst [vmem:[#allocation76_spill] sm:$0xff] %v14236_v33  ;;  %v4403_v23 = vcombine.high %v13969_v45, %v13979_v35 }
 0x3db   :  { %10335 = vrot.lane.b32.xlu0 %v10334_v51, %s11154_s0  ;;  %18761 = vst [vmem:[#allocation77_spill] sm:$0xff] %v14239_v26  ;;  %v14244_v15 = vrot.slane %v4402_v1, %v18527_v20  ;;  %v6981_v51 = vmax.f32 %v6979_v4, %v6980_v0  ;;  %v7315_v27 = vsel %vm5858_vm4, %v14236_v33, -inf  ;;  %v7371_v45 = vsel %vm5858_vm4, %v14239_v26, -inf }
 0x3dc   :  { %v14246_v30 = vmax.f32 %v7095_v48, %v7096_v46  ;;  %v7152_v38 = vrot.slane %v7151_v13, 1  ;;  %v7037_v29 = vmax.f32 %v7035_v7, %v7036_v17  ;;  %v7316_v46 = vrot.slane %v7315_v27, 4 }
 0x3dd   :  { %18762 = vst [vmem:[#allocation78_spill] sm:$0xff] %v14244_v15  ;;  %v6982_v1 = vrot.slane %v6981_v51, 2  ;;  %v7372_v7 = vrot.slane %v7371_v45, 4  ;;  %v14261_v0 = vrot.slane %v4403_v23, %v18527_v20  ;;  %v7203_v17 = vsel %vm5858_vm4, %v14244_v15, -inf }
 0x3de   :  { %v14256_v58 = vmax.f32 %v7151_v13, %v7152_v38  ;;  %v7038_v48 = vrot.slane %v7037_v29, 2  ;;  %v7317_v38 = vmax.f32 %v7315_v27, %v7316_v46  ;;  %v7204_v18 = vrot.slane %v7203_v17, 4 }
 0x3df   :  { %18763 = vst [vmem:[#allocation79_spill] sm:$0xff] %v14261_v0  ;;  %v6983_v6 = vmax.f32 %v6981_v51, %v6982_v1  ;;  %v7373_v5 = vmax.f32 %v7371_v45, %v7372_v7  ;;  %v7259_v4 = vsel %vm5858_vm4, %v14261_v0, -inf  ;;  %v4477_v51 = vcombine.high %v14025_v21, %v14050_v52 }
 0x3e0   :  { %v10349_v50 = vpack.i.bf16 %v14256_v58, %v14246_v30  ;;  %v7039_v41 = vmax.f32 %v7037_v29, %v7038_v48  ;;  %v7318_v8 = vrot.slane %v7317_v38, 2  ;;  %v7260_v47 = vrot.slane %v7259_v4, 4 }
 0x3e1   :  { %v6984_v23 = vrot.slane %v6983_v6, 1  ;;  %v7374_v37 = vrot.slane %v7373_v5, 2  ;;  %v7205_v40 = vmax.f32 %v7203_v17, %v7204_v18  ;;  %v4476_v29 = vcombine.low %v14025_v21, %v14050_v52 }
 0x3e2   :  { %10350 = vrot.lane.b32.xlu1 %v10349_v50, %s11154_s0  ;;  %v7040_v60 = vrot.slane %v7039_v41, 1  ;;  %v7319_v1 = vmax.f32 %v7317_v38, %v7318_v8  ;;  %v7261_v48 = vmax.f32 %v7259_v4, %v7260_v47  ;;  %v14284_v13 = vrot.slane %v4477_v51, %v18527_v20 }
 0x3e3   :  { %v14276_v27 = vmax.f32 %v6983_v6, %v6984_v23  ;;  %v7375_v46 = vmax.f32 %v7373_v5, %v7374_v37  ;;  %v7206_v50 = vrot.slane %v7205_v40, 2  ;;  %v14281_v7 = vrot.slane %v4476_v29, %v18527_v20 }
 0x3e4   :  { %v14278_v45 = vmax.f32 %v7039_v41, %v7040_v60  ;;  %18765 = vst [vmem:[#allocation81_spill] sm:$0xff] %v14284_v13  ;;  %v7320_v17 = vrot.slane %v7319_v1, 1  ;;  %v7262_v14 = vrot.slane %v7261_v48, 2  ;;  %v4474_v21 = vcombine.low %v14014_v62, %v14038_v53 }
 0x3e5   :  { %18764 = vst [vmem:[#allocation80_spill] sm:$0xff] %v14281_v7  ;;  %v7376_v47 = vrot.slane %v7375_v46, 1  ;;  %v7207_v5 = vmax.f32 %v7205_v40, %v7206_v50  ;;  %v7539_v60 = vsel %vm5858_vm4, %v14281_v7, -inf  ;;  %v7595_v4 = vsel %vm5858_vm4, %v14284_v13, -inf }
 0x3e6   :  { %v10344_v18 = vpack.i.bf16 %v14278_v45, %v14276_v27  ;;  %v14295_v41 = vmax.f32 %v7319_v1, %v7320_v17  ;;  %v7263_v37 = vmax.f32 %v7261_v48, %v7262_v14  ;;  %v7540_v6 = vrot.slane %v7539_v60, 4  ;;  %v18770_v17 = vld [vmem:[#allocation30_spill] sm:$0xff] }
 0x3e7   :  { %v14301_v23 = vmax.f32 %v7375_v46, %v7376_v47  ;;  %v7208_v29 = vrot.slane %v7207_v5, 1  ;;  %v7596_v51 = vrot.slane %v7595_v4, 4  ;;  %v4475_v8 = vcombine.high %v14014_v62, %v14038_v53 }
 0x3e8   :  { %10345 = vrot.lane.b32.xlu0 %v10344_v18, %s11154_s0  ;;  %18766 = vst [vmem:[#allocation82_spill] sm:$0xff] %v14295_v41  ;;  %v7264_v40 = vrot.slane %v7263_v37, 1  ;;  %v7541_v50 = vmax.f32 %v7539_v60, %v7540_v6  ;;  %v14306_v1 = vrot.slane %v4474_v21, %v18527_v20  ;;  %v10205_v46 = vcombine.low %v18770_v17, %v18770_v17 }
 0x3e9   :  { %18767 = vst [vmem:[#allocation83_spill] sm:$0xff] %v14301_v23  ;;  %v10359_v14 = vpack.i.bf16 %v14301_v23, %v14295_v41  ;;  %v14310_v48 = vmax.f32 %v7207_v5, %v7208_v29  ;;  %v7597_v18 = vmax.f32 %v7595_v4, %v7596_v51  ;;  %v14317_v60 = vrot.slane %v4475_v8, %v18527_v20 }
 0x3ea   :  { %18768 = vst [vmem:[#allocation84_spill] sm:$0xff] %v14306_v1  ;;  %v14314_v47 = vmax.f32 %v7263_v37, %v7264_v40  ;;  %v7542_v38 = vrot.slane %v7541_v50, 2  ;;  %v7427_v62 = vsel %vm5858_vm4, %v14306_v1, -inf  ;;  %v14325_v4 = vrot.slane %v10205_v46, %v18527_v20 }
 0x3eb   :  { %18769 = vst [vmem:[#allocation85_spill] sm:$0xff] %v14310_v48  ;;  %18771 = vst [vmem:[#allocation30_spill] sm:$0xff] %v14317_v60  ;;  %10360 = vrot.lane.b32.xlu1 %v10359_v14, %s11154_s0  ;;  %v7598_v5 = vrot.slane %v7597_v18, 2  ;;  %v7428_v6 = vrot.slane %v7427_v62, 4  ;;  %v7483_v51 = vsel %vm5858_vm4, %v14317_v60, -inf  ;;  %v10207_v14 = vcombine.high %v18770_v17, %v18770_v17 }
 0x3ec   :  { %18772 = vst [vmem:[#allocation86_spill] sm:$0xff] %v14325_v4  ;;  %v10354_v8 = vpack.i.bf16 %v14314_v47, %v14310_v48  ;;  %v7543_v29 = vmax.f32 %v7541_v50, %v7542_v38  ;;  %v7484_v21 = vrot.slane %v7483_v51, 4  ;;  %v5985_v37 = vsel %vm5858_vm4, %v14325_v4, -inf }
 0x3ed   :  { %v7599_v40 = vmax.f32 %v7597_v18, %v7598_v5  ;;  %v7429_v57 = vmax.f32 %v7427_v62, %v7428_v6  ;;  %v10201_v38 = vcombine.low %v18773_v32, %v18773_v32  ;;  %v14343_v62 = vrot.slane %v10207_v14, %v18527_v20 }
 0x3ee   :  { %10355 = vrot.lane.b32.xlu0 %v10354_v8, %s11154_s0  ;;  %v7544_v25 = vrot.slane %v7543_v29, 1  ;;  %v7485_v18 = vmax.f32 %v7483_v51, %v7484_v21  ;;  %v5986_v17 = vrot.slane %v5985_v37, 4  ;;  %v10203_v8 = vcombine.high %v18773_v32, %v18773_v32 }
 0x3ef   :  { %v7600_v50 = vrot.slane %v7599_v40, 1  ;;  %v7430_v56 = vrot.slane %v7429_v57, 2  ;;  %18774 = vst [vmem:[#allocation42_spill] sm:$0xff] %v14343_v62  ;;  %v14348_v6 = vrot.slane %v10201_v38, %v18527_v20  ;;  %v6041_v51 = vsel %vm5858_vm4, %v14343_v62, -inf }
 0x3f0   :  { %v14345_v5 = vmax.f32 %v7543_v29, %v7544_v25  ;;  %v7486_v41 = vrot.slane %v7485_v18, 2  ;;  %v5987_v21 = vmax.f32 %v5985_v37, %v5986_v17  ;;  %v14359_v25 = vrot.slane %v10203_v8, %v18527_v20 }
 0x3f1   :  { %18776 = vst [vmem:[#allocation88_spill] sm:$0xff] %v14348_v6  ;;  %v14354_v26 = vmax.f32 %v7599_v40, %v7600_v50  ;;  %v7431_v48 = vmax.f32 %v7429_v57, %v7430_v56  ;;  %v5873_v29 = vsel %vm5858_vm4, %v14348_v6, -inf  ;;  %v6042_v46 = vrot.slane %v6041_v51, 4 }
 0x3f2   :  { %18775 = vst [vmem:[#allocation87_spill] sm:$0xff] %v14345_v5  ;;  %18778 = vst [vmem:[#allocation90_spill] sm:$0xff] %v14359_v25  ;;  %v7487_v38 = vmax.f32 %v7485_v18, %v7486_v41  ;;  %v5988_v57 = vrot.slane %v5987_v21, 2  ;;  %v5874_v37 = vrot.slane %v5873_v29, 4  ;;  %v5929_v40 = vsel %vm5858_vm4, %v14359_v25, -inf }
 0x3f3   :  { %18777 = vst [vmem:[#allocation89_spill] sm:$0xff] %v14354_v26  ;;  %v10369_v32 = vpack.i.bf16 %v14354_v26, %v14345_v5  ;;  %v7432_v14 = vrot.slane %v7431_v48, 1  ;;  %v6043_v8 = vmax.f32 %v6041_v51, %v6042_v46  ;;  %v5930_v33 = vrot.slane %v5929_v40, 4 }
 0x3f4   :  { %v7488_v17 = vrot.slane %v7487_v38, 1  ;;  %v5989_v41 = vmax.f32 %v5987_v21, %v5988_v57  ;;  %v5875_v18 = vmax.f32 %v5873_v29, %v5874_v37  ;;  %v10213_v56 = vcombine.low %v13754_v16, %v13754_v16 }
 0x3f5   :  { %10370 = vrot.lane.b32.xlu1 %v10369_v32, %s11154_s0  ;;  %v14370_v50 = vmax.f32 %v7431_v48, %v7432_v14  ;;  %v6044_v26 = vrot.slane %v6043_v8, 2  ;;  %v5931_v23 = vmax.f32 %v5929_v40, %v5930_v33  ;;  %v10215_v32 = vcombine.high %v13754_v16, %v13754_v16 }
 0x3f6   :  { %v14376_v15 = vmax.f32 %v7487_v38, %v7488_v17  ;;  %v5990_v48 = vrot.slane %v5989_v41, 1  ;;  %v5876_v14 = vrot.slane %v5875_v18, 2  ;;  %v14381_v46 = vrot.slane %v10213_v56, %v18527_v20 }
 0x3f7   :  { %v10209_v51 = vcombine.low %v13813_v11, %v13813_v11  ;;  %v6045_v29 = vmax.f32 %v6043_v8, %v6044_v26  ;;  %v5932_v57 = vrot.slane %v5931_v23, 2  ;;  %v14388_v38 = vrot.slane %v10215_v32, %v18527_v20 }
 0x3f8   :  { %18779 = vst [vmem:[#allocation91_spill] sm:$0xff] %v14376_v15  ;;  %18780 = vst [vmem:[#allocation92_spill] sm:$0xff] %v14381_v46  ;;  %v10364_v21 = vpack.i.bf16 %v14376_v15, %v14370_v50  ;;  %v5877_v37 = vmax.f32 %v5875_v18, %v5876_v14  ;;  %v6209_v56 = vsel %vm5858_vm4, %v14381_v46, -inf  ;;  %v14397_v40 = vmax.f32 %v5989_v41, %v5990_v48 }
 0x3f9   :  { %18781 = vst [vmem:[#allocation93_spill] sm:$0xff] %v14388_v38  ;;  %v6046_v17 = vrot.slane %v6045_v29, 1  ;;  %v5933_v26 = vmax.f32 %v5931_v23, %v5932_v57  ;;  %v6210_v8 = vrot.slane %v6209_v56, 4  ;;  %v6265_v32 = vsel %vm5858_vm4, %v14388_v38, -inf }
 0x3fa   :  { %10365 = vrot.lane.b32.xlu0 %v10364_v21, %s11154_s0  ;;  %18782 = vst [vmem:[#allocation94_spill] sm:$0xff] %v14397_v40  ;;  %v5878_v5 = vrot.slane %v5877_v37, 1  ;;  %v14402_v33 = vrot.slane %v10209_v51, %v18527_v20  ;;  %v10211_v18 = vcombine.high %v13813_v11, %v13813_v11  ;;  %v6266_v21 = vrot.slane %v6265_v32, 4 }
 0x3fb   :  { %v14406_v14 = vmax.f32 %v6045_v29, %v6046_v17  ;;  %v5934_v16 = vrot.slane %v5933_v26, 1  ;;  %v6211_v13 = vmax.f32 %v6209_v56, %v6210_v8  ;;  %v10217_v56 = vcombine.low %v13842_v22, %v13842_v22 }
 0x3fc   :  { %18783 = vst [vmem:[#allocation95_spill] sm:$0xff] %v14402_v33  ;;  %v14410_v23 = vmax.f32 %v5877_v37, %v5878_v5  ;;  %v14413_v48 = vrot.slane %v10211_v18, %v18527_v20  ;;  %v6097_v51 = vsel %vm5858_vm4, %v14402_v33, -inf  ;;  %v6267_v17 = vmax.f32 %v6265_v32, %v6266_v21 }
 0x3fd   :  { %18784 = vst [vmem:[#allocation96_spill] sm:$0xff] %v14406_v14  ;;  %v10379_v57 = vpack.i.bf16 %v14406_v14, %v14397_v40  ;;  %v14419_v11 = vmax.f32 %v5933_v26, %v5934_v16  ;;  %v6212_v29 = vrot.slane %v6211_v13, 2  ;;  %v6098_v8 = vrot.slane %v6097_v51, 4 }
 0x3fe   :  { %18785 = vst [vmem:[#allocation97_spill] sm:$0xff] %v14410_v23  ;;  %18786 = vst [vmem:[#allocation98_spill] sm:$0xff] %v14413_v48  ;;  %v6153_v5 = vsel %vm5858_vm4, %v14413_v48, -inf  ;;  %v10221_v37 = vcombine.low %v13845_v49, %v13845_v49  ;;  %v6268_v16 = vrot.slane %v6267_v17, 2  ;;  %v10223_v21 = vcombine.high %v13845_v49, %v13845_v49 }
 0x3ff   :  { %18787 = vst [vmem:[#allocation99_spill] sm:$0xff] %v14419_v11  ;;  %10380 = vrot.lane.b32.xlu1 %v10379_v57, %s11154_s0  ;;  %v10374_v18 = vpack.i.bf16 %v14419_v11, %v14410_v23  ;;  %v6213_v41 = vmax.f32 %v6211_v13, %v6212_v29  ;;  %v6154_v26 = vrot.slane %v6153_v5, 4  ;;  %v6099_v1 = vmax.f32 %v6097_v51, %v6098_v8 }
 0x400   :  { %v14431_v32 = vrot.slane %v10221_v37, %v18527_v20  ;;  %v6269_v7 = vmax.f32 %v6267_v17, %v6268_v16  ;;  %v14441_v51 = vrot.slane %v10223_v21, %v18527_v20  ;;  %v10219_v49 = vcombine.high %v13842_v22, %v13842_v22 }
 0x401   :  { %10375 = vrot.lane.b32.xlu0 %v10374_v18, %s11154_s0  ;;  %v6214_v57 = vrot.slane %v6213_v41, 1  ;;  %v6155_v13 = vmax.f32 %v6153_v5, %v6154_v26  ;;  %v6100_v29 = vrot.slane %v6099_v1, 2  ;;  %v14454_v16 = vrot.slane %v10217_v56, %v18527_v20 }
 0x402   :  { %18788 = vst [vmem:[#allocation100_spill] sm:$0xff] %v14431_v32  ;;  %18789 = vst [vmem:[#allocation101_spill] sm:$0xff] %v14441_v51  ;;  %v6433_v8 = vsel %vm5858_vm4, %v14431_v32, -inf  ;;  %v6270_v0 = vrot.slane %v6269_v7, 1  ;;  %v6489_v5 = vsel %vm5858_vm4, %v14441_v51, -inf  ;;  %v14461_v23 = vrot.slane %v10219_v49, %v18527_v20 }
 0x403   :  { %v14447_v37 = vmax.f32 %v6213_v41, %v6214_v57  ;;  %v6156_v14 = vrot.slane %v6155_v13, 2  ;;  %v6434_v60 = vrot.slane %v6433_v8, 4  ;;  %v6101_v17 = vmax.f32 %v6099_v1, %v6100_v29  ;;  %18791 = vst [vmem:[#allocation103_spill] sm:$0xff] %v14454_v16 }
 0x404   :  { %v14456_v26 = vmax.f32 %v6269_v7, %v6270_v0  ;;  %v6490_v22 = vrot.slane %v6489_v5, 4  ;;  %18793 = vst [vmem:[#allocation105_spill] sm:$0xff] %v14461_v23  ;;  %v6321_v1 = vsel %vm5858_vm4, %v14454_v16, -inf }
 0x405   :  { %18790 = vst [vmem:[#allocation102_spill] sm:$0xff] %v14447_v37  ;;  %v6157_v21 = vmax.f32 %v6155_v13, %v6156_v14  ;;  %v6435_v4 = vmax.f32 %v6433_v8, %v6434_v60  ;;  %v6102_v57 = vrot.slane %v6101_v17, 1  ;;  %v6322_v14 = vrot.slane %v6321_v1, 4 }
 0x406   :  { %18792 = vst [vmem:[#allocation104_spill] sm:$0xff] %v14456_v26  ;;  %v10389_v29 = vpack.i.bf16 %v14456_v26, %v14447_v37  ;;  %v6491_v0 = vmax.f32 %v6489_v5, %v6490_v22  ;;  %v6377_v13 = vsel %vm5858_vm4, %v14461_v23, -inf  ;;  %v10229_v5 = vcombine.low %v13881_v44, %v13881_v44 }
 0x407   :  { %v6158_v56 = vrot.slane %v6157_v21, 1  ;;  %v6436_v18 = vrot.slane %v6435_v4, 2  ;;  %v14469_v60 = vmax.f32 %v6101_v17, %v6102_v57  ;;  %v6378_v25 = vrot.slane %v6377_v13, 4 }
 0x408   :  { %10390 = vrot.lane.b32.xlu1 %v10389_v29, %s11154_s0  ;;  %v6492_v41 = vrot.slane %v6491_v0, 2  ;;  %v6323_v62 = vmax.f32 %v6321_v1, %v6322_v14  ;;  %v10231_v22 = vcombine.high %v13881_v44, %v13881_v44  ;;  %v10225_v17 = vcombine.low %v13877_v2, %v13877_v2 }
 0x409   :  { %18794 = vst [vmem:[#allocation106_spill] sm:$0xff] %v14469_v60  ;;  %v14474_v8 = vmax.f32 %v6157_v21, %v6158_v56  ;;  %v6437_v49 = vmax.f32 %v6435_v4, %v6436_v18  ;;  %v6379_v21 = vmax.f32 %v6377_v13, %v6378_v25  ;;  %v14485_v4 = vrot.slane %v10229_v5, %v18527_v20 }
 0x40a   :  { %v6493_v29 = vmax.f32 %v6491_v0, %v6492_v41  ;;  %v6324_v56 = vrot.slane %v6323_v62, 2  ;;  %v14488_v18 = vrot.slane %v10231_v22, %v18527_v20  ;;  %v14491_v1 = vrot.slane %v10225_v17, %v18527_v20 }
 0x40b   :  { %18795 = vst [vmem:[#allocation107_spill] sm:$0xff] %v14474_v8  ;;  %v10384_v57 = vpack.i.bf16 %v14474_v8, %v14469_v60  ;;  %v6438_v7 = vrot.slane %v6437_v49, 1  ;;  %18796 = vst [vmem:[#allocation108_spill] sm:$0xff] %v14485_v4  ;;  %v6380_v6 = vrot.slane %v6379_v21, 2  ;;  %v10227_v41 = vcombine.high %v13877_v2, %v13877_v2 }
 0x40c   :  { %18797 = vst [vmem:[#allocation109_spill] sm:$0xff] %v14488_v18  ;;  %18798 = vst [vmem:[#allocation110_spill] sm:$0xff] %v14491_v1  ;;  %v6494_v14 = vrot.slane %v6493_v29, 1  ;;  %v6325_v0 = vmax.f32 %v6323_v62, %v6324_v56  ;;  %v6657_v13 = vsel %vm5858_vm4, %v14485_v4, -inf  ;;  %v6713_v5 = vsel %vm5858_vm4, %v14488_v18, -inf }
 0x40d   :  { %10385 = vrot.lane.b32.xlu0 %v10384_v57, %s11154_s0  ;;  %v14494_v44 = vmax.f32 %v6437_v49, %v6438_v7  ;;  %v6381_v17 = vmax.f32 %v6379_v21, %v6380_v6  ;;  %v6658_v7 = vrot.slane %v6657_v13, 4  ;;  %v6714_v49 = vrot.slane %v6713_v5, 4 }
 0x40e   :  { %v14504_v22 = vmax.f32 %v6493_v29, %v6494_v14  ;;  %v6326_v37 = vrot.slane %v6325_v0, 1  ;;  %v14509_v2 = vrot.slane %v10227_v41, %v18527_v20  ;;  %v6545_v62 = vsel %vm5858_vm4, %v14491_v1, -inf }
 0x40f   :  { %18799 = vst [vmem:[#allocation111_spill] sm:$0xff] %v14494_v44  ;;  %v6382_v25 = vrot.slane %v6381_v17, 1  ;;  %v6659_v46 = vmax.f32 %v6657_v13, %v6658_v7  ;;  %v6715_v29 = vmax.f32 %v6713_v5, %v6714_v49  ;;  %v6546_v14 = vrot.slane %v6545_v62, 4 }
 0x410   :  { %18800 = vst [vmem:[#allocation112_spill] sm:$0xff] %v14504_v22  ;;  %18801 = vst [vmem:[#allocation113_spill] sm:$0xff] %v14509_v2  ;;  %v10399_v56 = vpack.i.bf16 %v14504_v22, %v14494_v44  ;;  %v14517_v21 = vmax.f32 %v6325_v0, %v6326_v37  ;;  %v6601_v57 = vsel %vm5858_vm4, %v14509_v2, -inf  ;;  %v10237_v7 = vcombine.low %v13913_v10, %v13913_v10 }
 0x411   :  { %v14522_v41 = vmax.f32 %v6381_v17, %v6382_v25  ;;  %v6660_v38 = vrot.slane %v6659_v46, 2  ;;  %v6716_v26 = vrot.slane %v6715_v29, 2  ;;  %v6602_v8 = vrot.slane %v6601_v57, 4 }
 0x412   :  { %18802 = vst [vmem:[#allocation114_spill] sm:$0xff] %v14517_v21  ;;  %10400 = vrot.lane.b32.xlu1 %v10399_v56, %s11154_s0  ;;  %v6547_v5 = vmax.f32 %v6545_v62, %v6546_v14  ;;  %v10239_v37 = vcombine.high %v13913_v10, %v13913_v10  ;;  %v14533_v6 = vrot.slane %v10237_v7, %v18527_v20 }
 0x413   :  { %18803 = vst [vmem:[#allocation115_spill] sm:$0xff] %v14522_v41  ;;  %v10394_v0 = vpack.i.bf16 %v14522_v41, %v14517_v21  ;;  %v6661_v49 = vmax.f32 %v6659_v46, %v6660_v38  ;;  %v6717_v56 = vmax.f32 %v6715_v29, %v6716_v26  ;;  %v6603_v25 = vmax.f32 %v6601_v57, %v6602_v8 }
 0x414   :  { %v6548_v17 = vrot.slane %v6547_v5, 2  ;;  %18804 = vst [vmem:[#allocation116_spill] sm:$0xff] %v14533_v6  ;;  %v14536_v33 = vrot.slane %v10239_v37, %v18527_v20  ;;  %v10233_v62 = vcombine.low %v13909_v12, %v13909_v12  ;;  %v10235_v46 = vcombine.high %v13909_v12, %v13909_v12 }
 0x415   :  { %10395 = vrot.lane.b32.xlu0 %v10394_v0, %s11154_s0  ;;  %v6662_v14 = vrot.slane %v6661_v49, 1  ;;  %v6718_v10 = vrot.slane %v6717_v56, 1  ;;  %v6604_v13 = vrot.slane %v6603_v25, 2  ;;  %v6881_v8 = vsel %vm5858_vm4, %v14533_v6, -inf }
 0x416   :  { %18805 = vst [vmem:[#allocation117_spill] sm:$0xff] %v14536_v33  ;;  %v6549_v26 = vmax.f32 %v6547_v5, %v6548_v17  ;;  %v6937_v57 = vsel %vm5858_vm4, %v14536_v33, -inf  ;;  %v6882_v0 = vrot.slane %v6881_v8, 4  ;;  %v14556_v38 = vrot.slane %v10233_v62, %v18527_v20 }
 0x417   :  { %v14549_v29 = vmax.f32 %v6661_v49, %v6662_v14  ;;  %v14551_v7 = vmax.f32 %v6717_v56, %v6718_v10  ;;  %v6605_v37 = vmax.f32 %v6603_v25, %v6604_v13  ;;  %v6938_v21 = vrot.slane %v6937_v57, 4 }
 0x418   :  { %v6550_v12 = vrot.slane %v6549_v26, 1  ;;  %18808 = vst [vmem:[#allocation120_spill] sm:$0xff] %v14556_v38  ;;  %v6883_v32 = vmax.f32 %v6881_v8, %v6882_v0  ;;  %v14561_v49 = vrot.slane %v10235_v46, %v18527_v20  ;;  %v6769_v14 = vsel %vm5858_vm4, %v14556_v38, -inf }
 0x419   :  { %18806 = vst [vmem:[#allocation118_spill] sm:$0xff] %v14549_v29  ;;  %18807 = vst [vmem:[#allocation119_spill] sm:$0xff] %v14551_v7  ;;  %v10409_v5 = vpack.i.bf16 %v14551_v7, %v14549_v29  ;;  %v6606_v17 = vrot.slane %v6605_v37, 1  ;;  %v6939_v25 = vmax.f32 %v6937_v57, %v6938_v21  ;;  %v6770_v0 = vrot.slane %v6769_v14, 4 }
 0x41a   :  { %18809 = vst [vmem:[#allocation121_spill] sm:$0xff] %v14561_v49  ;;  %v14565_v56 = vmax.f32 %v6549_v26, %v6550_v12  ;;  %v6884_v8 = vrot.slane %v6883_v32, 2  ;;  %v6825_v48 = vsel %vm5858_vm4, %v14561_v49, -inf  ;;  %v10245_v26 = vcombine.low %v13945_v55, %v13945_v55 }
 0x41b   :  { %10410 = vrot.lane.b32.xlu1 %v10409_v5, %s11154_s0  ;;  %v14572_v10 = vmax.f32 %v6605_v37, %v6606_v17  ;;  %v6940_v46 = vrot.slane %v6939_v25, 2  ;;  %v10247_v21 = vcombine.high %v13945_v55, %v13945_v55  ;;  %v6771_v62 = vmax.f32 %v6769_v14, %v6770_v0 }
 0x41c   :  { %18810 = vst [vmem:[#allocation122_spill] sm:$0xff] %v14565_v56  ;;  %v6885_v12 = vmax.f32 %v6883_v32, %v6884_v8  ;;  %v6826_v5 = vrot.slane %v6825_v48, 4  ;;  %v14583_v17 = vrot.slane %v10245_v26, %v18527_v20  ;;  %v10241_v23 = vcombine.low %v13941_v34, %v13941_v34 }
 0x41d   :  { %18811 = vst [vmem:[#allocation123_spill] sm:$0xff] %v14572_v10  ;;  %v10404_v57 = vpack.i.bf16 %v14572_v10, %v14565_v56  ;;  %v6941_v37 = vmax.f32 %v6939_v25, %v6940_v46  ;;  %v14586_v13 = vrot.slane %v10247_v21, %v18527_v20  ;;  %v6772_v55 = vrot.slane %v6771_v62, 2 }
 0x41e   :  { %18812 = vst [vmem:[#allocation124_spill] sm:$0xff] %v14583_v17  ;;  %v6886_v16 = vrot.slane %v6885_v12, 1  ;;  %v6827_v51 = vmax.f32 %v6825_v48, %v6826_v5  ;;  %v10243_v32 = vcombine.high %v13941_v34, %v13941_v34  ;;  %v7105_v8 = vsel %vm5858_vm4, %v14583_v17, -inf }
 0x41f   :  { %18813 = vst [vmem:[#allocation125_spill] sm:$0xff] %v14586_v13  ;;  %10405 = vrot.lane.b32.xlu0 %v10404_v57, %s11154_s0  ;;  %v6942_v14 = vrot.slane %v6941_v37, 1  ;;  %v7161_v0 = vsel %vm5858_vm4, %v14586_v13, -inf  ;;  %v6773_v26 = vmax.f32 %v6771_v62, %v6772_v55  ;;  %v7106_v57 = vrot.slane %v7105_v8, 4 }
 0x420   :  { %v14599_v46 = vmax.f32 %v6885_v12, %v6886_v16  ;;  %v6828_v21 = vrot.slane %v6827_v51, 2  ;;  %v7162_v34 = vrot.slane %v7161_v0, 4  ;;  %v14606_v25 = vrot.slane %v10241_v23, %v18527_v20 }
 0x421   :  { %v14603_v5 = vmax.f32 %v6941_v37, %v6942_v14  ;;  %v6774_v18 = vrot.slane %v6773_v26, 1  ;;  %v7107_v56 = vmax.f32 %v7105_v8, %v7106_v57  ;;  %v14609_v29 = vrot.slane %v10243_v32, %v18527_v20 }
 0x422   :  { %18814 = vst [vmem:[#allocation126_spill] sm:$0xff] %v14599_v46  ;;  %18816 = vst [vmem:[#allocation128_spill] sm:$0xff] %v14606_v25  ;;  %v6829_v10 = vmax.f32 %v6827_v51, %v6828_v21  ;;  %v7163_v12 = vmax.f32 %v7161_v0, %v7162_v34  ;;  %v6993_v37 = vsel %vm5858_vm4, %v14606_v25, -inf  ;;  %v10253_v0 = vcombine.low %v13983_v19, %v13983_v19 }
 0x423   :  { %18815 = vst [vmem:[#allocation127_spill] sm:$0xff] %v14603_v5  ;;  %18817 = vst [vmem:[#allocation129_spill] sm:$0xff] %v14609_v29  ;;  %v10419_v62 = vpack.i.bf16 %v14603_v5, %v14599_v46  ;;  %v14619_v55 = vmax.f32 %v6773_v26, %v6774_v18  ;;  %v7108_v14 = vrot.slane %v7107_v56, 2  ;;  %v6994_v8 = vrot.slane %v6993_v37, 4 }
 0x424   :  { %v6830_v51 = vrot.slane %v6829_v10, 1  ;;  %v7164_v32 = vrot.slane %v7163_v12, 2  ;;  %v7049_v21 = vsel %vm5858_vm4, %v14609_v29, -inf  ;;  %v10255_v18 = vcombine.high %v13983_v19, %v13983_v19 }
 0x425   :  { %18818 = vst [vmem:[#allocation130_spill] sm:$0xff] %v14619_v55  ;;  %10420 = vrot.lane.b32.xlu1 %v10419_v62, %s11154_s0  ;;  %v7109_v34 = vmax.f32 %v7107_v56, %v7108_v14  ;;  %v7050_v16 = vrot.slane %v7049_v21, 4  ;;  %v6995_v23 = vmax.f32 %v6993_v37, %v6994_v8  ;;  %v14631_v48 = vrot.slane %v10253_v0, %v18527_v20 }
 0x426   :  { %v14626_v57 = vmax.f32 %v6829_v10, %v6830_v51  ;;  %v7165_v26 = vmax.f32 %v7163_v12, %v7164_v32  ;;  %v10249_v62 = vcombine.low %v13979_v35, %v13979_v35  ;;  %v14638_v10 = vrot.slane %v10255_v18, %v18527_v20 }
 0x427   :  { %18820 = vst [vmem:[#allocation132_spill] sm:$0xff] %v14631_v48  ;;  %v7110_v1 = vrot.slane %v7109_v34, 1  ;;  %v7051_v4 = vmax.f32 %v7049_v21, %v7050_v16  ;;  %v6996_v12 = vrot.slane %v6995_v23, 2  ;;  %v7329_v37 = vsel %vm5858_vm4, %v14631_v48, -inf }
 0x428   :  { %18819 = vst [vmem:[#allocation131_spill] sm:$0xff] %v14626_v57  ;;  %v10414_v2 = vpack.i.bf16 %v14626_v57, %v14619_v55  ;;  %18821 = vst [vmem:[#allocation133_spill] sm:$0xff] %v14638_v10  ;;  %v7166_v19 = vrot.slane %v7165_v26, 1  ;;  %v7330_v16 = vrot.slane %v7329_v37, 4  ;;  %v7385_v0 = vsel %vm5858_vm4, %v14638_v10, -inf }
 0x429   :  { %v14647_v14 = vmax.f32 %v7109_v34, %v7110_v1  ;;  %v7052_v32 = vrot.slane %v7051_v4, 2  ;;  %v6997_v21 = vmax.f32 %v6995_v23, %v6996_v12  ;;  %v14654_v18 = vrot.slane %v10249_v62, %v18527_v20 }
 0x42a   :  { %10415 = vrot.lane.b32.xlu0 %v10414_v2, %s11154_s0  ;;  %v14649_v8 = vmax.f32 %v7165_v26, %v7166_v19  ;;  %v7331_v33 = vmax.f32 %v7329_v37, %v7330_v16  ;;  %v7386_v55 = vrot.slane %v7385_v0, 4  ;;  %v10251_v51 = vcombine.high %v13979_v35, %v13979_v35 }
 0x42b   :  { %18822 = vst [vmem:[#allocation134_spill] sm:$0xff] %v14647_v14  ;;  %18824 = vst [vmem:[#allocation136_spill] sm:$0xff] %v14654_v18  ;;  %v7053_v56 = vmax.f32 %v7051_v4, %v7052_v32  ;;  %v6998_v34 = vrot.slane %v6997_v21, 1  ;;  %v7217_v23 = vsel %vm5858_vm4, %v14654_v18, -inf  ;;  %v10261_v37 = vcombine.low %v14050_v52, %v14050_v52 }
 0x42c   :  { %18823 = vst [vmem:[#allocation135_spill] sm:$0xff] %v14649_v8  ;;  %v10429_v2 = vpack.i.bf16 %v14649_v8, %v14647_v14  ;;  %v7332_v19 = vrot.slane %v7331_v33, 2  ;;  %v7387_v62 = vmax.f32 %v7385_v0, %v7386_v55  ;;  %v14665_v4 = vrot.slane %v10251_v51, %v18527_v20 }
 0x42d   :  { %v7054_v26 = vrot.slane %v7053_v56, 1  ;;  %v14668_v12 = vmax.f32 %v6997_v21, %v6998_v34  ;;  %v7218_v35 = vrot.slane %v7217_v23, 4  ;;  %v10263_v32 = vcombine.high %v14050_v52, %v14050_v52 }
 0x42e   :  { %18825 = vst [vmem:[#allocation137_spill] sm:$0xff] %v14665_v4  ;;  %10430 = vrot.lane.b32.xlu1 %v10429_v2, %s11154_s0  ;;  %v7333_v55 = vmax.f32 %v7331_v33, %v7332_v19  ;;  %v7388_v0 = vrot.slane %v7387_v62, 2  ;;  %v7273_v2 = vsel %vm5858_vm4, %v14665_v4, -inf  ;;  %v14681_v21 = vrot.slane %v10261_v37, %v18527_v20  ;;  %v18851_v4 = vld [vmem:[#allocation24_spill] sm:$0xff] }
 0x42f   :  { %18826 = vst [vmem:[#allocation138_spill] sm:$0xff] %v14668_v12  ;;  %v14676_v1 = vmax.f32 %v7053_v56, %v7054_v26  ;;  %v7219_v51 = vmax.f32 %v7217_v23, %v7218_v35  ;;  %v14684_v34 = vrot.slane %v10263_v32, %v18527_v20  ;;  %v7274_v16 = vrot.slane %v7273_v2, 4 }
 0x430   :  { %18828 = vst [vmem:[#allocation140_spill] sm:$0xff] %v14681_v21  ;;  %v7334_v38 = vrot.slane %v7333_v55, 1  ;;  %v7389_v6 = vmax.f32 %v7387_v62, %v7388_v0  ;;  %v7553_v23 = vsel %vm5858_vm4, %v14681_v21, -inf  ;;  %v10257_v33 = vcombine.low %v14038_v53, %v14038_v53 }
 0x431   :  { %18827 = vst [vmem:[#allocation139_spill] sm:$0xff] %v14676_v1  ;;  %18829 = vst [vmem:[#allocation141_spill] sm:$0xff] %v14684_v34  ;;  %v10424_v52 = vpack.i.bf16 %v14676_v1, %v14668_v12  ;;  %v7220_v56 = vrot.slane %v7219_v51, 2  ;;  %v7609_v26 = vsel %vm5858_vm4, %v14684_v34, -inf  ;;  %v7275_v37 = vmax.f32 %v7273_v2, %v7274_v16 }
 0x432   :  { %v14695_v19 = vmax.f32 %v7333_v55, %v7334_v38  ;;  %v7390_v35 = vrot.slane %v7389_v6, 1  ;;  %v7554_v32 = vrot.slane %v7553_v23, 4  ;;  %v7610_v49 = vrot.slane %v7609_v26, 4 }
 0x433   :  { %10425 = vrot.lane.b32.xlu0 %v10424_v52, %s11154_s0  ;;  %v7221_v0 = vmax.f32 %v7219_v51, %v7220_v56  ;;  %v7276_v14 = vrot.slane %v7275_v37, 2  ;;  %v10259_v52 = vcombine.high %v14038_v53, %v14038_v53  ;;  %v14706_v16 = vrot.slane %v10257_v33, %v18527_v20 }
 0x434   :  { %18830 = vst [vmem:[#allocation142_spill] sm:$0xff] %v14695_v19  ;;  %v14701_v13 = vmax.f32 %v7389_v6, %v7390_v35  ;;  %v7555_v1 = vmax.f32 %v7553_v23, %v7554_v32  ;;  %v7611_v55 = vmax.f32 %v7609_v26, %v7610_v49  ;;  %v4008_v2 = vcombine.low %v13793_v3, %v13807_v42 }
 0x435   :  { %v7222_v38 = vrot.slane %v7221_v0, 1  ;;  %18832 = vst [vmem:[#allocation144_spill] sm:$0xff] %v14706_v16  ;;  %v7277_v56 = vmax.f32 %v7275_v37, %v7276_v14  ;;  %v14713_v6 = vrot.slane %v10259_v52, %v18527_v20  ;;  %v7441_v33 = vsel %vm5858_vm4, %v14706_v16, -inf }
 0x436   :  { %18831 = vst [vmem:[#allocation143_spill] sm:$0xff] %v14701_v13  ;;  %v10439_v51 = vpack.i.bf16 %v14701_v13, %v14695_v19  ;;  %v7556_v62 = vrot.slane %v7555_v1, 2  ;;  %v7612_v49 = vrot.slane %v7611_v55, 2  ;;  %v7442_v37 = vrot.slane %v7441_v33, 4 }
 0x437   :  { %18833 = vst [vmem:[#allocation145_spill] sm:$0xff] %v14713_v6  ;;  %v14722_v26 = vmax.f32 %v7221_v0, %v7222_v38  ;;  %v7278_v35 = vrot.slane %v7277_v56, 1  ;;  %v7497_v52 = vsel %vm5858_vm4, %v14713_v6, -inf  ;;  %v4009_v23 = vcombine.high %v13793_v3, %v13807_v42 }
 0x438   :  { %10440 = vrot.lane.b32.xlu1 %v10439_v51, %s11154_s0  ;;  %v7557_v14 = vmax.f32 %v7555_v1, %v7556_v62  ;;  %v7613_v32 = vmax.f32 %v7611_v55, %v7612_v49  ;;  %v14729_v53 = vrot.slane %v4008_v2, %v18527_v20  ;;  %v7443_v17 = vmax.f32 %v7441_v33, %v7442_v37 }
 0x439   :  { %18834 = vst [vmem:[#allocation146_spill] sm:$0xff] %v14722_v26  ;;  %v14731_v29 = vmax.f32 %v7277_v56, %v7278_v35  ;;  %v7498_v51 = vrot.slane %v7497_v52, 4  ;;  %v14736_v62 = vrot.slane %v4009_v23, %v18527_v20 }
 0x43a   :  { %18835 = vst [vmem:[#allocation147_spill] sm:$0xff] %v14729_v53  ;;  %v7558_v25 = vrot.slane %v7557_v14, 1  ;;  %v7614_v1 = vrot.slane %v7613_v32, 1  ;;  %v5999_v38 = vsel %vm5858_vm4, %v14729_v53, -inf  ;;  %v7444_v2 = vrot.slane %v7443_v17, 2 }
 0x43b   :  { %18836 = vst [vmem:[#allocation148_spill] sm:$0xff] %v14731_v29  ;;  %18837 = vst [vmem:[#allocation149_spill] sm:$0xff] %v14736_v62  ;;  %v10434_v3 = vpack.i.bf16 %v14731_v29, %v14722_v26  ;;  %v7499_v56 = vmax.f32 %v7497_v52, %v7498_v51  ;;  %v6000_v35 = vrot.slane %v5999_v38, 4  ;;  %v6055_v23 = vsel %vm5858_vm4, %v14736_v62, -inf  ;;  %v18840_v26 = vld [vmem:[#allocation66_spill] sm:$0xff]  ;;  %v18841_v51 = vld [vmem:[#allocation60_spill] sm:$0xff] }
 0x43c   :  { %v14742_v55 = vmax.f32 %v7557_v14, %v7558_v25  ;;  %v14746_v33 = vmax.f32 %v7613_v32, %v7614_v1  ;;  %v7445_v37 = vmax.f32 %v7443_v17, %v7444_v2  ;;  %v6056_v48 = vrot.slane %v6055_v23, 4  ;;  %v18842_v1 = vld [vmem:[#allocation21_spill] sm:$0xff]  ;;  %v18868_v62 = vld [vmem:[#allocation58_spill] sm:$0xff] }
 0x43d   :  { %10435 = vrot.lane.b32.xlu0 %v10434_v3, %s11154_s0  ;;  %v7500_v0 = vrot.slane %v7499_v56, 2  ;;  %v4006_v25 = vcombine.low %v18840_v26, %v13803_v9  ;;  %v6001_v52 = vmax.f32 %v5999_v38, %v6000_v35  ;;  %v4007_v32 = vcombine.high %v18840_v26, %v13803_v9 }
 0x43e   :  { %18838 = vst [vmem:[#allocation150_spill] sm:$0xff] %v14742_v55  ;;  %18839 = vst [vmem:[#allocation151_spill] sm:$0xff] %v14746_v33  ;;  %v10449_v14 = vpack.i.bf16 %v14746_v33, %v14742_v55  ;;  %v4080_v49 = vcombine.low %v18842_v1, %v18841_v51  ;;  %v7446_v10 = vrot.slane %v7445_v37, 1  ;;  %v6057_v13 = vmax.f32 %v6055_v23, %v6056_v48 }
 0x43f   :  { %v7501_v19 = vmax.f32 %v7499_v56, %v7500_v0  ;;  %v14760_v17 = vrot.slane %v4006_v25, %v18527_v20  ;;  %v6002_v3 = vrot.slane %v6001_v52, 2  ;;  %v14764_v2 = vrot.slane %v4007_v32, %v18527_v20 }
 0x440   :  { %10450 = vrot.lane.b32.xlu1 %v10449_v14, %s11154_s0  ;;  %v4081_v38 = vcombine.high %v18842_v1, %v18841_v51  ;;  %v14769_v26 = vrot.slane %v4080_v49, %v18527_v20  ;;  %v14771_v35 = vmax.f32 %v7445_v37, %v7446_v10  ;;  %v6058_v0 = vrot.slane %v6057_v13, 2 }
 0x441   :  { %18843 = vst [vmem:[#allocation66_spill] sm:$0xff] %v14760_v17  ;;  %18844 = vst [vmem:[#allocation60_spill] sm:$0xff] %v14764_v2  ;;  %v7502_v55 = vrot.slane %v7501_v19, 1  ;;  %v5887_v48 = vsel %vm5858_vm4, %v14760_v17, -inf  ;;  %v6003_v23 = vmax.f32 %v6001_v52, %v6002_v3  ;;  %v5943_v14 = vsel %vm5858_vm4, %v14764_v2, -inf }
 0x442   :  { %18845 = vst [vmem:[#allocation21_spill] sm:$0xff] %v14769_v26  ;;  %18846 = vst [vmem:[#allocation152_spill] sm:$0xff] %v14771_v35  ;;  %v5888_v25 = vrot.slane %v5887_v48, 4  ;;  %v6059_v10 = vmax.f32 %v6057_v13, %v6058_v0  ;;  %v5944_v37 = vrot.slane %v5943_v14, 4  ;;  %v14784_v29 = vrot.slane %v4081_v38, %v18527_v20 }
 0x443   :  { %v14781_v49 = vmax.f32 %v7501_v19, %v7502_v55  ;;  %v6004_v1 = vrot.slane %v6003_v23, 1  ;;  %v6223_v56 = vsel %vm5858_vm4, %v14769_v26, -inf }
 0x444   :  { %v5889_v33 = vmax.f32 %v5887_v48, %v5888_v25  ;;  %18848 = vst [vmem:[#allocation154_spill] sm:$0xff] %v14784_v29  ;;  %v6060_v3 = vrot.slane %v6059_v10, 1  ;;  %v5945_v18 = vmax.f32 %v5943_v14, %v5944_v37  ;;  %v6224_v12 = vrot.slane %v6223_v56, 4 }
 0x445   :  { %18847 = vst [vmem:[#allocation153_spill] sm:$0xff] %v14781_v49  ;;  %v10444_v52 = vpack.i.bf16 %v14781_v49, %v14771_v35  ;;  %v14792_v55 = vmax.f32 %v6003_v23, %v6004_v1  ;;  %v6279_v0 = vsel %vm5858_vm4, %v14784_v29, -inf  ;;  %v18852_v49 = vld [vmem:[#allocation27_spill] sm:$0xff] }
 0x446   :  { %v5890_v13 = vrot.slane %v5889_v33, 2  ;;  %v14797_v38 = vmax.f32 %v6059_v10, %v6060_v3  ;;  %v5946_v48 = vrot.slane %v5945_v18, 2  ;;  %v6225_v25 = vmax.f32 %v6223_v56, %v6224_v12  ;;  %v18879_v29 = vld [vmem:[#allocation15_spill] sm:$0xff] }
 0x447   :  { %18849 = vst [vmem:[#allocation155_spill] sm:$0xff] %v14792_v55  ;;  %10445 = vrot.lane.b32.xlu0 %v10444_v52, %s11154_s0  ;;  %v6280_v32 = vrot.slane %v6279_v0, 4  ;;  %v4078_v19 = vcombine.low %v18852_v49, %v18851_v4  ;;  %v4079_v23 = vcombine.high %v18852_v49, %v18851_v4 }
 0x448   :  { %18850 = vst [vmem:[#allocation156_spill] sm:$0xff] %v14797_v38  ;;  %v5891_v37 = vmax.f32 %v5889_v33, %v5890_v13  ;;  %v10459_v1 = vpack.i.bf16 %v14797_v38, %v14792_v55  ;;  %v5947_v34 = vmax.f32 %v5945_v18, %v5946_v48  ;;  %v6226_v52 = vrot.slane %v6225_v25, 2  ;;  %v18855_v33 = vld [vmem:[#allocation13_spill] sm:$0xff]  ;;  %v18856_v13 = vld [vmem:[#allocation48_spill] sm:$0xff] }
 0x449   :  { %v6281_v10 = vmax.f32 %v6279_v0, %v6280_v32  ;;  %v14808_v12 = vrot.slane %v4078_v19, %v18527_v20  ;;  %v14811_v56 = vrot.slane %v4079_v23, %v18527_v20  ;;  %v4152_v14 = vcombine.low %v18856_v13, %v18855_v33 }
 0x44a   :  { %v5892_v3 = vrot.slane %v5891_v37, 1  ;;  %10460 = vrot.lane.b32.xlu1 %v10459_v1, %s11154_s0  ;;  %v5948_v21 = vrot.slane %v5947_v34, 1  ;;  %v6227_v49 = vmax.f32 %v6225_v25, %v6226_v52  ;;  %v4153_v18 = vcombine.high %v18856_v13, %v18855_v33 }
 0x44b   :  { %18853 = vst [vmem:[#allocation24_spill] sm:$0xff] %v14808_v12  ;;  %18854 = vst [vmem:[#allocation27_spill] sm:$0xff] %v14811_v56  ;;  %v6282_v35 = vrot.slane %v6281_v10, 2  ;;  %v6111_v19 = vsel %vm5858_vm4, %v14808_v12, -inf  ;;  %v6167_v48 = vsel %vm5858_vm4, %v14811_v56, -inf  ;;  %v14831_v55 = vrot.slane %v4152_v14, %v18527_v20 }
 0x44c   :  { %v14820_v0 = vmax.f32 %v5891_v37, %v5892_v3  ;;  %v14826_v23 = vmax.f32 %v5947_v34, %v5948_v21  ;;  %v6228_v1 = vrot.slane %v6227_v49, 1  ;;  %v6112_v25 = vrot.slane %v6111_v19, 4 }
 0x44d   :  { %v6283_v38 = vmax.f32 %v6281_v10, %v6282_v35  ;;  %v6168_v13 = vrot.slane %v6167_v48, 4  ;;  %18859 = vst [vmem:[#allocation157_spill] sm:$0xff] %v14831_v55  ;;  %v14834_v37 = vrot.slane %v4153_v18, %v18527_v20  ;;  %v6447_v52 = vsel %vm5858_vm4, %v14831_v55, -inf  ;;  %v18864_v35 = vld [vmem:[#allocation46_spill] sm:$0xff] }
 0x44e   :  { %18857 = vst [vmem:[#allocation13_spill] sm:$0xff] %v14820_v0  ;;  %18858 = vst [vmem:[#allocation48_spill] sm:$0xff] %v14826_v23  ;;  %v10454_v3 = vpack.i.bf16 %v14826_v23, %v14820_v0  ;;  %v14838_v32 = vmax.f32 %v6227_v49, %v6228_v1  ;;  %v6113_v34 = vmax.f32 %v6111_v19, %v6112_v25  ;;  %v6448_v16 = vrot.slane %v6447_v52, 4  ;;  %v18863_v25 = vld [vmem:[#allocation52_spill] sm:$0xff] }
 0x44f   :  { %18860 = vst [vmem:[#allocation158_spill] sm:$0xff] %v14834_v37  ;;  %v6284_v21 = vrot.slane %v6283_v38, 1  ;;  %v6169_v10 = vmax.f32 %v6167_v48, %v6168_v13  ;;  %v6503_v14 = vsel %vm5858_vm4, %v14834_v37, -inf  ;;  %v4150_v48 = vcombine.low %v18864_v35, %v18863_v25  ;;  %v18867_v19 = vld [vmem:[#allocation64_spill] sm:$0xff] }
 0x450   :  { %18861 = vst [vmem:[#allocation159_spill] sm:$0xff] %v14838_v32  ;;  %10455 = vrot.lane.b32.xlu0 %v10454_v3, %s11154_s0  ;;  %v6114_v6 = vrot.slane %v6113_v34, 2  ;;  %v6504_v49 = vrot.slane %v6503_v14, 4  ;;  %v4151_v13 = vcombine.high %v18864_v35, %v18863_v25  ;;  %v6449_v3 = vmax.f32 %v6447_v52, %v6448_v16 }
 0x451   :  { %v14847_v18 = vmax.f32 %v6283_v38, %v6284_v21  ;;  %v6170_v1 = vrot.slane %v6169_v10, 2  ;;  %v14858_v23 = vrot.slane %v4150_v48, %v18527_v20  ;;  %v4224_v46 = vcombine.low %v18868_v62, %v18867_v19 }
 0x452   :  { %v6115_v0 = vmax.f32 %v6113_v34, %v6114_v6  ;;  %v6505_v38 = vmax.f32 %v6503_v14, %v6504_v49  ;;  %v14861_v8 = vrot.slane %v4151_v13, %v18527_v20  ;;  %v6450_v35 = vrot.slane %v6449_v3, 2 }
 0x453   :  { %18862 = vst [vmem:[#allocation160_spill] sm:$0xff] %v14847_v18  ;;  %v10469_v53 = vpack.i.bf16 %v14847_v18, %v14838_v32  ;;  %v6171_v21 = vmax.f32 %v6169_v10, %v6170_v1  ;;  %18865 = vst [vmem:[#allocation52_spill] sm:$0xff] %v14858_v23  ;;  %v4225_v6 = vcombine.high %v18868_v62, %v18867_v19  ;;  %v6335_v34 = vsel %vm5858_vm4, %v14858_v23, -inf }
 0x454   :  { %18866 = vst [vmem:[#allocation46_spill] sm:$0xff] %v14861_v8  ;;  %v6116_v5 = vrot.slane %v6115_v0, 1  ;;  %v6506_v57 = vrot.slane %v6505_v38, 2  ;;  %v6391_v10 = vsel %vm5858_vm4, %v14861_v8, -inf  ;;  %v6451_v49 = vmax.f32 %v6449_v3, %v6450_v35 }
 0x455   :  { %10470 = vrot.lane.b32.xlu1 %v10469_v53, %s11154_s0  ;;  %v6172_v52 = vrot.slane %v6171_v21, 1  ;;  %v6336_v1 = vrot.slane %v6335_v34, 4  ;;  %v6392_v62 = vrot.slane %v6391_v10, 4  ;;  %v14881_v16 = vrot.slane %v4224_v46, %v18527_v20 }
 0x456   :  { %v14874_v14 = vmax.f32 %v6115_v0, %v6116_v5  ;;  %v6507_v53 = vmax.f32 %v6505_v38, %v6506_v57  ;;  %v6452_v2 = vrot.slane %v6451_v49, 1  ;;  %v14884_v7 = vrot.slane %v4225_v6, %v18527_v20 }
 0x457   :  { %v14878_v13 = vmax.f32 %v6171_v21, %v6172_v52  ;;  %18871 = vst [vmem:[#allocation161_spill] sm:$0xff] %v14881_v16  ;;  %v6337_v18 = vmax.f32 %v6335_v34, %v6336_v1  ;;  %v6393_v0 = vmax.f32 %v6391_v10, %v6392_v62  ;;  %v6671_v3 = vsel %vm5858_vm4, %v14881_v16, -inf  ;;  %v18875_v1 = vld [vmem:[#allocation61_spill] sm:$0xff]  ;;  %v18876_v10 = vld [vmem:[#allocation55_spill] sm:$0xff] }
 0x458   :  { %18869 = vst [vmem:[#allocation64_spill] sm:$0xff] %v14874_v14  ;;  %v6508_v32 = vrot.slane %v6507_v53, 1  ;;  %18872 = vst [vmem:[#allocation162_spill] sm:$0xff] %v14884_v7  ;;  %v14894_v38 = vmax.f32 %v6451_v49, %v6452_v2  ;;  %v6672_v52 = vrot.slane %v6671_v3, 4  ;;  %v6727_v34 = vsel %vm5858_vm4, %v14884_v7, -inf }
 0x459   :  { %18870 = vst [vmem:[#allocation58_spill] sm:$0xff] %v14878_v13  ;;  %v10464_v57 = vpack.i.bf16 %v14878_v13, %v14874_v14  ;;  %v6338_v35 = vrot.slane %v6337_v18, 2  ;;  %v6394_v6 = vrot.slane %v6393_v0, 2  ;;  %v4222_v62 = vcombine.low %v18876_v10, %v18875_v1 }
 0x45a   :  { %18873 = vst [vmem:[#allocation163_spill] sm:$0xff] %v14894_v38  ;;  %v14896_v21 = vmax.f32 %v6507_v53, %v6508_v32  ;;  %v6728_v46 = vrot.slane %v6727_v34, 4  ;;  %v4223_v2 = vcombine.high %v18876_v10, %v18875_v1  ;;  %v6673_v49 = vmax.f32 %v6671_v3, %v6672_v52 }
 0x45b   :  { %10465 = vrot.lane.b32.xlu0 %v10464_v57, %s11154_s0  ;;  %v6339_v48 = vmax.f32 %v6337_v18, %v6338_v35  ;;  %v6395_v32 = vmax.f32 %v6393_v0, %v6394_v6  ;;  %v14908_v53 = vrot.slane %v4222_v62, %v18527_v20  ;;  %v18878_v57 = vld [vmem:[#allocation45_spill] sm:$0xff] }
 0x45c   :  { %18874 = vst [vmem:[#allocation164_spill] sm:$0xff] %v14896_v21  ;;  %v10479_v5 = vpack.i.bf16 %v14896_v21, %v14894_v38  ;;  %v4296_v26 = vcombine.low %v18879_v29, %v18878_v57  ;;  %v6729_v13 = vmax.f32 %v6727_v34, %v6728_v46  ;;  %v14914_v14 = vrot.slane %v4223_v2, %v18527_v20 }
 0x45d   :  { %18877 = vst [vmem:[#allocation61_spill] sm:$0xff] %v14908_v53  ;;  %v6340_v17 = vrot.slane %v6339_v48, 1  ;;  %v4297_v18 = vcombine.high %v18879_v29, %v18878_v57  ;;  %v6396_v3 = vrot.slane %v6395_v32, 1  ;;  %v6674_v35 = vrot.slane %v6673_v49, 2 }
 0x45e   :  { %10480 = vrot.lane.b32.xlu1 %v10479_v5, %s11154_s0  ;;  %18880 = vst [vmem:[#allocation55_spill] sm:$0xff] %v14914_v14  ;;  %v6559_v6 = vsel %vm5858_vm4, %v14908_v53, -inf  ;;  %v6730_v46 = vrot.slane %v6729_v13, 2  ;;  %v6615_v29 = vsel %vm5858_vm4, %v14914_v14, -inf  ;;  %v14931_v2 = vrot.slane %v4296_v26, %v18527_v20  ;;  %v18901_v14 = vld [vmem:[#allocation17_spill] sm:$0xff] }
 0x45f   :  { %v14924_v5 = vmax.f32 %v6339_v48, %v6340_v17  ;;  %v6560_v34 = vrot.slane %v6559_v6, 4  ;;  %v14926_v10 = vmax.f32 %v6395_v32, %v6396_v3  ;;  %v6675_v62 = vmax.f32 %v6673_v49, %v6674_v35  ;;  %v18885_v17 = vld [vmem:[#allocation51_spill] sm:$0xff] }
 0x460   :  { %v6731_v0 = vmax.f32 %v6729_v13, %v6730_v46  ;;  %v6616_v38 = vrot.slane %v6615_v29, 4  ;;  %v14934_v21 = vrot.slane %v4297_v18, %v18527_v20  ;;  %v6895_v49 = vsel %vm5858_vm4, %v14931_v2, -inf }
 0x461   :  { %18881 = vst [vmem:[#allocation45_spill] sm:$0xff] %v14924_v5  ;;  %18882 = vst [vmem:[#allocation15_spill] sm:$0xff] %v14926_v10  ;;  %v6561_v56 = vmax.f32 %v6559_v6, %v6560_v34  ;;  %v10474_v48 = vpack.i.bf16 %v14926_v10, %v14924_v5  ;;  %v6676_v32 = vrot.slane %v6675_v62, 1  ;;  %v6896_v6 = vrot.slane %v6895_v49, 4  ;;  %v18884_v34 = vld [vmem:[#allocation67_spill] sm:$0xff] }
 0x462   :  { %v6732_v3 = vrot.slane %v6731_v0, 1  ;;  %v6617_v35 = vmax.f32 %v6615_v29, %v6616_v38  ;;  %v6951_v46 = vsel %vm5858_vm4, %v14934_v21, -inf  ;;  %v4294_v52 = vcombine.low %v18885_v17, %v18884_v34 }
 0x463   :  { %v6562_v13 = vrot.slane %v6561_v56, 2  ;;  %10475 = vrot.lane.b32.xlu0 %v10474_v48, %s11154_s0  ;;  %v14945_v18 = vmax.f32 %v6675_v62, %v6676_v32  ;;  %v6952_v10 = vrot.slane %v6951_v46, 4  ;;  %v6897_v38 = vmax.f32 %v6895_v49, %v6896_v6  ;;  %v18887_v49 = vld [vmem:[#allocation70_spill] sm:$0xff]  ;;  %v18888_v6 = vld [vmem:[#allocation29_spill] sm:$0xff] }
 0x464   :  { %v14951_v37 = vmax.f32 %v6731_v0, %v6732_v3  ;;  %v6618_v5 = vrot.slane %v6617_v35, 2  ;;  %v4295_v62 = vcombine.high %v18885_v17, %v18884_v34  ;;  %v14958_v29 = vrot.slane %v4294_v52, %v18527_v20 }
 0x465   :  { %18883 = vst [vmem:[#allocation165_spill] sm:$0xff] %v14945_v18  ;;  %v6563_v12 = vmax.f32 %v6561_v56, %v6562_v13  ;;  %v6953_v0 = vmax.f32 %v6951_v46, %v6952_v10  ;;  %v6898_v3 = vrot.slane %v6897_v38, 2  ;;  %v4368_v26 = vcombine.low %v18888_v6, %v18887_v49 }
 0x466   :  { %18886 = vst [vmem:[#allocation67_spill] sm:$0xff] %v14951_v37  ;;  %v10489_v48 = vpack.i.bf16 %v14951_v37, %v14945_v18  ;;  %v6619_v55 = vmax.f32 %v6617_v35, %v6618_v5  ;;  %v14963_v56 = vrot.slane %v4295_v62, %v18527_v20  ;;  %v6783_v13 = vsel %vm5858_vm4, %v14958_v29, -inf  ;;  %v18891_v5 = vld [vmem:[#allocation49_spill] sm:$0xff] }
 0x467   :  { %v6564_v32 = vrot.slane %v6563_v12, 1  ;;  %v6954_v8 = vrot.slane %v6953_v0, 2  ;;  %v6784_v18 = vrot.slane %v6783_v13, 4  ;;  %v6899_v10 = vmax.f32 %v6897_v38, %v6898_v3  ;;  %v18892_v38 = vld [vmem:[#allocation11_spill] sm:$0xff] }
 0x468   :  { %10490 = vrot.lane.b32.xlu1 %v10489_v48, %s11154_s0  ;;  %v6620_v17 = vrot.slane %v6619_v55, 1  ;;  %v6839_v35 = vsel %vm5858_vm4, %v14963_v56, -inf  ;;  %v4369_v46 = vcombine.high %v18888_v6, %v18887_v49  ;;  %v4366_v3 = vcombine.low %v18892_v38, %v18891_v5 }
 0x469   :  { %v14970_v52 = vmax.f32 %v6563_v12, %v6564_v32  ;;  %v6955_v37 = vmax.f32 %v6953_v0, %v6954_v8  ;;  %v6785_v44 = vmax.f32 %v6783_v13, %v6784_v18  ;;  %v6840_v48 = vrot.slane %v6839_v35, 4 }
 0x46a   :  { %v14978_v62 = vmax.f32 %v6619_v55, %v6620_v17  ;;  %v6900_v12 = vrot.slane %v6899_v10, 1  ;;  %v14981_v32 = vrot.slane %v4368_v26, %v18527_v20  ;;  %v14984_v22 = vrot.slane %v4369_v46, %v18527_v20 }
 0x46b   :  { %18889 = vst [vmem:[#allocation51_spill] sm:$0xff] %v14970_v52  ;;  %v6956_v41 = vrot.slane %v6955_v37, 1  ;;  %v6786_v6 = vrot.slane %v6785_v44, 2  ;;  %v6841_v55 = vmax.f32 %v6839_v35, %v6840_v48 }
 0x46c   :  { %18890 = vst [vmem:[#allocation70_spill] sm:$0xff] %v14978_v62  ;;  %v10484_v23 = vpack.i.bf16 %v14978_v62, %v14970_v52  ;;  %v14992_v18 = vmax.f32 %v6899_v10, %v6900_v12  ;;  %v7119_v26 = vsel %vm5858_vm4, %v14981_v32, -inf  ;;  %v7175_v0 = vsel %vm5858_vm4, %v14984_v22, -inf }
 0x46d   :  { %v14999_v13 = vmax.f32 %v6955_v37, %v6956_v41  ;;  %v6787_v17 = vmax.f32 %v6785_v44, %v6786_v6  ;;  %v6842_v46 = vrot.slane %v6841_v55, 2  ;;  %v7120_v62 = vrot.slane %v7119_v26, 4 }
 0x46e   :  { %18893 = vst [vmem:[#allocation29_spill] sm:$0xff] %v14992_v18  ;;  %10485 = vrot.lane.b32.xlu0 %v10484_v23, %s11154_s0  ;;  %v7176_v48 = vrot.slane %v7175_v0, 4  ;;  %v4367_v10 = vcombine.high %v18892_v38, %v18891_v5  ;;  %v15006_v12 = vrot.slane %v4366_v3, %v18527_v20 }
 0x46f   :  { %18894 = vst [vmem:[#allocation49_spill] sm:$0xff] %v14999_v13  ;;  %v10499_v8 = vpack.i.bf16 %v14999_v13, %v14992_v18  ;;  %v6788_v16 = vrot.slane %v6787_v17, 1  ;;  %v6843_v23 = vmax.f32 %v6841_v55, %v6842_v46  ;;  %v7121_v41 = vmax.f32 %v7119_v26, %v7120_v62  ;;  %v18897_v46 = vld [vmem:[#allocation69_spill] sm:$0xff] }
 0x470   :  { %v7177_v37 = vmax.f32 %v7175_v0, %v7176_v48  ;;  %v15013_v6 = vrot.slane %v4367_v10, %v18527_v20  ;;  %v7007_v35 = vsel %vm5858_vm4, %v15006_v12, -inf  ;;  %v18896_v0 = vld [vmem:[#allocation12_spill] sm:$0xff]  ;;  %v18900_v62 = vld [vmem:[#allocation33_spill] sm:$0xff] }
 0x471   :  { %10500 = vrot.lane.b32.xlu1 %v10499_v8, %s11154_s0  ;;  %v15018_v38 = vmax.f32 %v6787_v17, %v6788_v16  ;;  %v6844_v3 = vrot.slane %v6843_v23, 1  ;;  %v7122_v7 = vrot.slane %v7121_v41, 2  ;;  %v7008_v18 = vrot.slane %v7007_v35, 4 }
 0x472   :  { %v7178_v55 = vrot.slane %v7177_v37, 2  ;;  %v7063_v26 = vsel %vm5858_vm4, %v15013_v6, -inf  ;;  %v4440_v48 = vcombine.low %v18897_v46, %v18896_v0  ;;  %v4441_v17 = vcombine.high %v18897_v46, %v18896_v0 }
 0x473   :  { %18895 = vst [vmem:[#allocation11_spill] sm:$0xff] %v15018_v38  ;;  %v15026_v10 = vmax.f32 %v6843_v23, %v6844_v3  ;;  %v7123_v44 = vmax.f32 %v7121_v41, %v7122_v7  ;;  %v7009_v53 = vmax.f32 %v7007_v35, %v7008_v18  ;;  %v7064_v8 = vrot.slane %v7063_v26, 4 }
 0x474   :  { %v7179_v16 = vmax.f32 %v7177_v37, %v7178_v55  ;;  %v15031_v13 = vrot.slane %v4440_v48, %v18527_v20  ;;  %v4438_v52 = vcombine.low %v18901_v14, %v18900_v62  ;;  %v15038_v7 = vrot.slane %v4441_v17, %v18527_v20 }
 0x475   :  { %18898 = vst [vmem:[#allocation12_spill] sm:$0xff] %v15026_v10  ;;  %v10494_v60 = vpack.i.bf16 %v15026_v10, %v15018_v38  ;;  %v7124_v40 = vrot.slane %v7123_v44, 1  ;;  %v7010_v11 = vrot.slane %v7009_v53, 2  ;;  %v7065_v23 = vmax.f32 %v7063_v26, %v7064_v8 }
 0x476   :  { %18899 = vst [vmem:[#allocation69_spill] sm:$0xff] %v15031_v13  ;;  %v7180_v3 = vrot.slane %v7179_v16, 1  ;;  %18902 = vst [vmem:[#allocation33_spill] sm:$0xff] %v15038_v7  ;;  %v7343_v18 = vsel %vm5858_vm4, %v15031_v13, -inf  ;;  %v4439_v35 = vcombine.high %v18901_v14, %v18900_v62  ;;  %v7399_v26 = vsel %vm5858_vm4, %v15038_v7, -inf }
 0x477   :  { %10495 = vrot.lane.b32.xlu0 %v10494_v60, %s11154_s0  ;;  %v15045_v41 = vmax.f32 %v7123_v44, %v7124_v40  ;;  %v7011_v37 = vmax.f32 %v7009_v53, %v7010_v11  ;;  %v7066_v55 = vrot.slane %v7065_v23, 2  ;;  %v7344_v46 = vrot.slane %v7343_v18, 4  ;;  %v18907_v44 = vld [vmem:[#allocation35_spill] sm:$0xff] }
 0x478   :  { %v15047_v48 = vmax.f32 %v7179_v16, %v7180_v3  ;;  %v15052_v8 = vrot.slane %v4438_v52, %v18527_v20  ;;  %v15055_v17 = vrot.slane %v4439_v35, %v18527_v20  ;;  %v7400_v60 = vrot.slane %v7399_v26, 4 }
 0x479   :  { %18903 = vst [vmem:[#allocation17_spill] sm:$0xff] %v15045_v41  ;;  %v7012_v13 = vrot.slane %v7011_v37, 1  ;;  %v7067_v14 = vmax.f32 %v7065_v23, %v7066_v55  ;;  %v7345_v38 = vmax.f32 %v7343_v18, %v7344_v46  ;;  %v4512_v52 = vcombine.low %v18907_v44, %v14092_v61 }
 0x47a   :  { %18904 = vst [vmem:[#allocation166_spill] sm:$0xff] %v15047_v48  ;;  %18905 = vst [vmem:[#allocation167_spill] sm:$0xff] %v15052_v8  ;;  %v10509_v40 = vpack.i.bf16 %v15047_v48, %v15045_v41  ;;  %v7231_v11 = vsel %vm5858_vm4, %v15052_v8, -inf  ;;  %v7287_v53 = vsel %vm5858_vm4, %v15055_v17, -inf  ;;  %v7401_v7 = vmax.f32 %v7399_v26, %v7400_v60 }
 0x47b   :  { %18906 = vst [vmem:[#allocation168_spill] sm:$0xff] %v15055_v17  ;;  %v15065_v16 = vmax.f32 %v7011_v37, %v7012_v13  ;;  %v7068_v3 = vrot.slane %v7067_v14, 1  ;;  %v7346_v35 = vrot.slane %v7345_v38, 2  ;;  %v7232_v23 = vrot.slane %v7231_v11, 4  ;;  %v18911_v13 = vld [vmem:[#allocation72_spill] sm:$0xff] }
 0x47c   :  { %10510 = vrot.lane.b32.xlu1 %v10509_v40, %s11154_s0  ;;  %v7288_v18 = vrot.slane %v7287_v53, 4  ;;  %v4513_v55 = vcombine.high %v18907_v44, %v14092_v61  ;;  %v15071_v46 = vrot.slane %v4512_v52, %v18527_v20  ;;  %v7402_v41 = vrot.slane %v7401_v7, 2 }
 0x47d   :  { %18908 = vst [vmem:[#allocation35_spill] sm:$0xff] %v15065_v16  ;;  %v15073_v8 = vmax.f32 %v7067_v14, %v7068_v3  ;;  %v7347_v17 = vmax.f32 %v7345_v38, %v7346_v35  ;;  %v4510_v37 = vcombine.low %v18911_v13, %v14082_v39  ;;  %v7233_v48 = vmax.f32 %v7231_v11, %v7232_v23 }
 0x47e   :  { %18909 = vst [vmem:[#allocation169_spill] sm:$0xff] %v15071_v46  ;;  %v7289_v10 = vmax.f32 %v7287_v53, %v7288_v18  ;;  %v15078_v26 = vrot.slane %v4513_v55, %v18527_v20  ;;  %v7567_v60 = vsel %vm5858_vm4, %v15071_v46, -inf  ;;  %v7403_v52 = vmax.f32 %v7401_v7, %v7402_v41 }
 0x47f   :  { %18910 = vst [vmem:[#allocation170_spill] sm:$0xff] %v15073_v8  ;;  %v10504_v40 = vpack.i.bf16 %v15073_v8, %v15065_v16  ;;  %v7348_v44 = vrot.slane %v7347_v17, 1  ;;  %v7568_v14 = vrot.slane %v7567_v60, 4  ;;  %v7234_v3 = vrot.slane %v7233_v48, 2 }
 0x480   :  { %18912 = vst [vmem:[#allocation72_spill] sm:$0xff] %v15078_v26  ;;  %v7290_v38 = vrot.slane %v7289_v10, 2  ;;  %v7623_v35 = vsel %vm5858_vm4, %v15078_v26, -inf  ;;  %v4511_v11 = vcombine.high %v18911_v13, %v14082_v39  ;;  %v7404_v23 = vrot.slane %v7403_v52, 1 }
 0x481   :  { %10505 = vrot.lane.b32.xlu0 %v10504_v40, %s11154_s0  ;;  %v15089_v53 = vmax.f32 %v7347_v17, %v7348_v44  ;;  %v7569_v18 = vmax.f32 %v7567_v60, %v7568_v14  ;;  %v7624_v55 = vrot.slane %v7623_v35, 4  ;;  %v7235_v46 = vmax.f32 %v7233_v48, %v7234_v3 }
 0x482   :  { %v7291_v8 = vmax.f32 %v7289_v10, %v7290_v38  ;;  %v15092_v7 = vrot.slane %v4510_v37, %v18527_v20  ;;  %v15095_v41 = vrot.slane %v4511_v11, %v18527_v20  ;;  %v15097_v16 = vmax.f32 %v7403_v52, %v7404_v23 }
 0x483   :  { %v7570_v26 = vrot.slane %v7569_v18, 2  ;;  %v7625_v15 = vmax.f32 %v7623_v35, %v7624_v55  ;;  %v10206_v13 = vcombine.low %v13807_v42, %v13807_v42  ;;  %v7236_v17 = vrot.slane %v7235_v46, 1 }
 0x484   :  { %18913 = vst [vmem:[#allocation171_spill] sm:$0xff] %v15092_v7  ;;  %18914 = vst [vmem:[#allocation172_spill] sm:$0xff] %v15095_v41  ;;  %v7292_v40 = vrot.slane %v7291_v8, 1  ;;  %v7455_v60 = vsel %vm5858_vm4, %v15092_v7, -inf  ;;  %v7511_v10 = vsel %vm5858_vm4, %v15095_v41, -inf  ;;  %v10519_v48 = vpack.i.bf16 %v15097_v16, %v15089_v53 }
 0x485   :  { %v7571_v37 = vmax.f32 %v7569_v18, %v7570_v26  ;;  %v7626_v44 = vrot.slane %v7625_v15, 2  ;;  %v7456_v52 = vrot.slane %v7455_v60, 4  ;;  %v15107_v14 = vmax.f32 %v7235_v46, %v7236_v17 }
 0x486   :  { %v15109_v3 = vmax.f32 %v7291_v8, %v7292_v40  ;;  %v7512_v38 = vrot.slane %v7511_v10, 4  ;;  %v15112_v35 = vrot.slane %v10206_v13, %v18527_v20  ;;  %10520 = vrot.lane.b32.xlu1 %v10519_v48, %s11154_s0  ;;  %v10208_v41 = vcombine.high %v13807_v42, %v13807_v42 }
 0x487   :  { %18915 = vst [vmem:[#allocation173_spill] sm:$0xff] %v15107_v14  ;;  %v7572_v11 = vrot.slane %v7571_v37, 1  ;;  %v7627_v23 = vmax.f32 %v7625_v15, %v7626_v44  ;;  %v7457_v55 = vmax.f32 %v7455_v60, %v7456_v52  ;;  %v10202_v46 = vcombine.low %v13803_v9, %v13803_v9 }
 0x488   :  { %18916 = vst [vmem:[#allocation174_spill] sm:$0xff] %v15112_v35  ;;  %v10514_v26 = vpack.i.bf16 %v15109_v3, %v15107_v14  ;;  %v7513_v18 = vmax.f32 %v7511_v10, %v7512_v38  ;;  %v6013_v8 = vsel %vm5858_vm4, %v15112_v35, -inf  ;;  %v15126_v15 = vrot.slane %v10208_v41, %v18527_v20 }
 0x489   :  { %v15123_v13 = vmax.f32 %v7571_v37, %v7572_v11  ;;  %v7628_v17 = vrot.slane %v7627_v23, 1  ;;  %v7458_v40 = vrot.slane %v7457_v55, 2  ;;  %v6014_v60 = vrot.slane %v6013_v8, 4 }
 0x48a   :  { %18918 = vst [vmem:[#allocation176_spill] sm:$0xff] %v15126_v15  ;;  %10515 = vrot.lane.b32.xlu0 %v10514_v26, %s11154_s0  ;;  %v7514_v42 = vrot.slane %v7513_v18, 2  ;;  %v15130_v48 = vrot.slane %v10202_v46, %v18527_v20  ;;  %v10204_v10 = vcombine.high %v13803_v9, %v13803_v9  ;;  %v6069_v37 = vsel %vm5858_vm4, %v15126_v15, -inf }
 0x48b   :  { %18917 = vst [vmem:[#allocation175_spill] sm:$0xff] %v15123_v13  ;;  %v15134_v44 = vmax.f32 %v7627_v23, %v7628_v17  ;;  %v7459_v52 = vmax.f32 %v7457_v55, %v7458_v40  ;;  %v10214_v41 = vcombine.low %v18841_v51, %v18841_v51  ;;  %v6015_v11 = vmax.f32 %v6013_v8, %v6014_v60 }
 0x48c   :  { %18919 = vst [vmem:[#allocation177_spill] sm:$0xff] %v15130_v48  ;;  %v7515_v38 = vmax.f32 %v7513_v18, %v7514_v42  ;;  %v6070_v26 = vrot.slane %v6069_v37, 4  ;;  %v15141_v35 = vrot.slane %v10204_v10, %v18527_v20  ;;  %v5901_v9 = vsel %vm5858_vm4, %v15130_v48, -inf }
 0x48d   :  { %18920 = vst [vmem:[#allocation178_spill] sm:$0xff] %v15134_v44  ;;  %v10529_v46 = vpack.i.bf16 %v15134_v44, %v15123_v13  ;;  %v7460_v7 = vrot.slane %v7459_v52, 1  ;;  %v15148_v23 = vrot.slane %v10214_v41, %v18527_v20  ;;  %v6016_v17 = vrot.slane %v6015_v11, 2 }
 0x48e   :  { %18921 = vst [vmem:[#allocation179_spill] sm:$0xff] %v15141_v35  ;;  %v7516_v55 = vrot.slane %v7515_v38, 1  ;;  %v6071_v40 = vmax.f32 %v6069_v37, %v6070_v26  ;;  %v5902_v15 = vrot.slane %v5901_v9, 4  ;;  %v5957_v8 = vsel %vm5858_vm4, %v15141_v35, -inf }
 0x48f   :  { %18922 = vst [vmem:[#allocation180_spill] sm:$0xff] %v15148_v23  ;;  %10530 = vrot.lane.b32.xlu1 %v10529_v46, %s11154_s0  ;;  %v15151_v18 = vmax.f32 %v7459_v52, %v7460_v7  ;;  %v10216_v42 = vcombine.high %v18841_v51, %v18841_v51  ;;  %v6237_v60 = vsel %vm5858_vm4, %v15148_v23, -inf  ;;  %v6017_v41 = vmax.f32 %v6015_v11, %v6016_v17 }
 0x490   :  { %v15159_v10 = vmax.f32 %v7515_v38, %v7516_v55  ;;  %v6072_v48 = vrot.slane %v6071_v40, 2  ;;  %v5903_v13 = vmax.f32 %v5901_v9, %v5902_v15  ;;  %v5958_v37 = vrot.slane %v5957_v8, 4 }
 0x491   :  { %v15162_v26 = vrot.slane %v10216_v42, %v18527_v20  ;;  %v6238_v7 = vrot.slane %v6237_v60, 4  ;;  %v10210_v52 = vcombine.low %v18851_v4, %v18851_v4  ;;  %v6018_v51 = vrot.slane %v6017_v41, 1 }
 0x492   :  { %18923 = vst [vmem:[#allocation181_spill] sm:$0xff] %v15159_v10  ;;  %v10524_v46 = vpack.i.bf16 %v15159_v10, %v15151_v18  ;;  %v6073_v35 = vmax.f32 %v6071_v40, %v6072_v48  ;;  %v5904_v44 = vrot.slane %v5903_v13, 2  ;;  %v5959_v23 = vmax.f32 %v5957_v8, %v5958_v37 }
 0x493   :  { %18924 = vst [vmem:[#allocation182_spill] sm:$0xff] %v15162_v26  ;;  %v6239_v38 = vmax.f32 %v6237_v60, %v6238_v7  ;;  %v6293_v11 = vsel %vm5858_vm4, %v15162_v26, -inf  ;;  %v15171_v15 = vrot.slane %v10210_v52, %v18527_v20  ;;  %v15174_v9 = vmax.f32 %v6017_v41, %v6018_v51 }
 0x494   :  { %10525 = vrot.lane.b32.xlu0 %v10524_v46, %s11154_s0  ;;  %v6074_v55 = vrot.slane %v6073_v35, 1  ;;  %v5905_v17 = vmax.f32 %v5903_v13, %v5904_v44  ;;  %v6294_v42 = vrot.slane %v6293_v11, 4  ;;  %v5960_v14 = vrot.slane %v5959_v23, 2 }
 0x495   :  { %18925 = vst [vmem:[#allocation183_spill] sm:$0xff] %v15171_v15  ;;  %v6240_v10 = vrot.slane %v6239_v38, 2  ;;  %v10212_v48 = vcombine.high %v18851_v4, %v18851_v4  ;;  %v6125_v40 = vsel %vm5858_vm4, %v15171_v15, -inf  ;;  %v10222_v13 = vcombine.low %v18855_v33, %v18855_v33 }
 0x496   :  { %v15180_v8 = vmax.f32 %v6073_v35, %v6074_v55  ;;  %v5906_v60 = vrot.slane %v5905_v17, 1  ;;  %v6295_v37 = vmax.f32 %v6293_v11, %v6294_v42  ;;  %v6126_v7 = vrot.slane %v6125_v40, 4 }
 0x497   :  { %v5961_v52 = vmax.f32 %v5959_v23, %v5960_v14  ;;  %v6241_v46 = vmax.f32 %v6239_v38, %v6240_v10  ;;  %v15183_v41 = vrot.slane %v10212_v48, %v18527_v20  ;;  %v15194_v14 = vrot.slane %v10222_v13, %v18527_v20 }
 0x498   :  { %v10539_v44 = vpack.i.bf16 %v15180_v8, %v15174_v9  ;;  %v15189_v4 = vmax.f32 %v5905_v17, %v5906_v60  ;;  %v6296_v51 = vrot.slane %v6295_v37, 2  ;;  %v6127_v15 = vmax.f32 %v6125_v40, %v6126_v7 }
 0x499   :  { %18926 = vst [vmem:[#allocation184_spill] sm:$0xff] %v15183_v41  ;;  %v5962_v35 = vrot.slane %v5961_v52, 1  ;;  %v6242_v55 = vrot.slane %v6241_v46, 1  ;;  %v6181_v11 = vsel %vm5858_vm4, %v15183_v41, -inf  ;;  %18927 = vst [vmem:[#allocation185_spill] sm:$0xff] %v15194_v14  ;;  %v10224_v42 = vcombine.high %v18855_v33, %v18855_v33 }
 0x49a   :  { %10540 = vrot.lane.b32.xlu1 %v10539_v44, %s11154_s0  ;;  %v6297_v23 = vmax.f32 %v6295_v37, %v6296_v51  ;;  %v6128_v10 = vrot.slane %v6127_v15, 2  ;;  %v6182_v38 = vrot.slane %v6181_v11, 4  ;;  %v6461_v40 = vsel %vm5858_vm4, %v15194_v14, -inf }
 0x49b   :  { %v15199_v17 = vmax.f32 %v5961_v52, %v5962_v35  ;;  %v15201_v48 = vmax.f32 %v6241_v46, %v6242_v55  ;;  %v10218_v60 = vcombine.low %v18863_v25, %v18863_v25  ;;  %v15208_v37 = vrot.slane %v10224_v42, %v18527_v20 }
 0x49c   :  { %v6298_v7 = vrot.slane %v6297_v23, 1  ;;  %v6129_v13 = vmax.f32 %v6127_v15, %v6128_v10  ;;  %v6183_v41 = vmax.f32 %v6181_v11, %v6182_v38  ;;  %v6462_v33 = vrot.slane %v6461_v40, 4 }
 0x49d   :  { %18928 = vst [vmem:[#allocation186_spill] sm:$0xff] %v15201_v48  ;;  %18929 = vst [vmem:[#allocation187_spill] sm:$0xff] %v15208_v37  ;;  %v10534_v44 = vpack.i.bf16 %v15199_v17, %v15189_v4  ;;  %v15213_v52 = vrot.slane %v10218_v60, %v18527_v20  ;;  %v10220_v46 = vcombine.high %v18863_v25, %v18863_v25  ;;  %v6517_v15 = vsel %vm5858_vm4, %v15208_v37, -inf }
 0x49e   :  { %v15217_v51 = vmax.f32 %v6297_v23, %v6298_v7  ;;  %v6130_v35 = vrot.slane %v6129_v13, 1  ;;  %v6184_v55 = vrot.slane %v6183_v41, 2  ;;  %v6463_v11 = vmax.f32 %v6461_v40, %v6462_v33 }
 0x49f   :  { %18930 = vst [vmem:[#allocation188_spill] sm:$0xff] %v15213_v52  ;;  %10535 = vrot.lane.b32.xlu0 %v10534_v44, %s11154_s0  ;;  %v6518_v10 = vrot.slane %v6517_v15, 4  ;;  %v15223_v38 = vrot.slane %v10220_v46, %v18527_v20  ;;  %v6349_v42 = vsel %vm5858_vm4, %v15213_v52, -inf  ;;  %v10230_v40 = vcombine.low %v18867_v19, %v18867_v19 }
 0x4a0   :  { %18931 = vst [vmem:[#allocation189_spill] sm:$0xff] %v15217_v51  ;;  %v10549_v25 = vpack.i.bf16 %v15217_v51, %v15201_v48  ;;  %v15229_v23 = vmax.f32 %v6129_v13, %v6130_v35  ;;  %v6185_v60 = vmax.f32 %v6183_v41, %v6184_v55  ;;  %v6350_v7 = vrot.slane %v6349_v42, 4 }
 0x4a1   :  { %18932 = vst [vmem:[#allocation190_spill] sm:$0xff] %v15223_v38  ;;  %v6464_v14 = vrot.slane %v6463_v11, 2  ;;  %v6519_v26 = vmax.f32 %v6517_v15, %v6518_v10  ;;  %v6405_v44 = vsel %vm5858_vm4, %v15223_v38, -inf  ;;  %v10232_v37 = vcombine.high %v18867_v19, %v18867_v19 }
 0x4a2   :  { %10550 = vrot.lane.b32.xlu1 %v10549_v25, %s11154_s0  ;;  %v6186_v33 = vrot.slane %v6185_v60, 1  ;;  %v6351_v46 = vmax.f32 %v6349_v42, %v6350_v7  ;;  %v6406_v52 = vrot.slane %v6405_v44, 4  ;;  %v15239_v41 = vrot.slane %v10230_v40, %v18527_v20 }
 0x4a3   :  { %v6465_v13 = vmax.f32 %v6463_v11, %v6464_v14  ;;  %v6520_v35 = vrot.slane %v6519_v26, 2  ;;  %v10226_v55 = vcombine.low %v18875_v1, %v18875_v1  ;;  %v15246_v25 = vrot.slane %v10232_v37, %v18527_v20 }
 0x4a4   :  { %18933 = vst [vmem:[#allocation191_spill] sm:$0xff] %v15239_v41  ;;  %v15243_v15 = vmax.f32 %v6185_v60, %v6186_v33  ;;  %v6352_v10 = vrot.slane %v6351_v46, 2  ;;  %v6407_v38 = vmax.f32 %v6405_v44, %v6406_v52  ;;  %v6685_v19 = vsel %vm5858_vm4, %v15239_v41, -inf }
 0x4a5   :  { %18935 = vst [vmem:[#allocation193_spill] sm:$0xff] %v15246_v25  ;;  %v6466_v42 = vrot.slane %v6465_v13, 1  ;;  %v6521_v7 = vmax.f32 %v6519_v26, %v6520_v35  ;;  %v15251_v14 = vrot.slane %v10226_v55, %v18527_v20  ;;  %v6686_v60 = vrot.slane %v6685_v19, 4 }
 0x4a6   :  { %18934 = vst [vmem:[#allocation192_spill] sm:$0xff] %v15243_v15  ;;  %v10544_v11 = vpack.i.bf16 %v15243_v15, %v15229_v23  ;;  %v6353_v40 = vmax.f32 %v6351_v46, %v6352_v10  ;;  %v6408_v48 = vrot.slane %v6407_v38, 2  ;;  %v6741_v37 = vsel %vm5858_vm4, %v15246_v25, -inf }
 0x4a7   :  { %18936 = vst [vmem:[#allocation194_spill] sm:$0xff] %v15251_v14  ;;  %v15255_v33 = vmax.f32 %v6465_v13, %v6466_v42  ;;  %v6522_v52 = vrot.slane %v6521_v7, 1  ;;  %v10228_v26 = vcombine.high %v18875_v1, %v18875_v1  ;;  %v6687_v55 = vmax.f32 %v6685_v19, %v6686_v60 }
 0x4a8   :  { %10545 = vrot.lane.b32.xlu0 %v10544_v11, %s11154_s0  ;;  %v6354_v44 = vrot.slane %v6353_v40, 1  ;;  %v6409_v35 = vmax.f32 %v6407_v38, %v6408_v48  ;;  %v6742_v41 = vrot.slane %v6741_v37, 4  ;;  %v6573_v13 = vsel %vm5858_vm4, %v15251_v14, -inf }
 0x4a9   :  { %18937 = vst [vmem:[#allocation195_spill] sm:$0xff] %v15255_v33  ;;  %v15262_v51 = vmax.f32 %v6521_v7, %v6522_v52  ;;  %v15265_v46 = vrot.slane %v10228_v26, %v18527_v20  ;;  %v10238_v10 = vcombine.low %v18878_v57, %v18878_v57  ;;  %v6688_v25 = vrot.slane %v6687_v55, 2 }
 0x4aa   :  { %v15271_v42 = vmax.f32 %v6353_v40, %v6354_v44  ;;  %v6410_v1 = vrot.slane %v6409_v35, 1  ;;  %v6743_v11 = vmax.f32 %v6741_v37, %v6742_v41  ;;  %v6574_v38 = vrot.slane %v6573_v13, 4 }
 0x4ab   :  { %18938 = vst [vmem:[#allocation196_spill] sm:$0xff] %v15262_v51  ;;  %18939 = vst [vmem:[#allocation197_spill] sm:$0xff] %v15265_v46  ;;  %v10559_v48 = vpack.i.bf16 %v15262_v51, %v15255_v33  ;;  %v6629_v7 = vsel %vm5858_vm4, %v15265_v46, -inf  ;;  %v15278_v19 = vrot.slane %v10238_v10, %v18527_v20  ;;  %v6689_v52 = vmax.f32 %v6687_v55, %v6688_v25 }
 0x4ac   :  { %18940 = vst [vmem:[#allocation198_spill] sm:$0xff] %v15271_v42  ;;  %v15280_v60 = vmax.f32 %v6409_v35, %v6410_v1  ;;  %v6744_v26 = vrot.slane %v6743_v11, 2  ;;  %v6630_v14 = vrot.slane %v6629_v7, 4  ;;  %v6575_v40 = vmax.f32 %v6573_v13, %v6574_v38 }
 0x4ad   :  { %18941 = vst [vmem:[#allocation199_spill] sm:$0xff] %v15278_v19  ;;  %10560 = vrot.lane.b32.xlu1 %v10559_v48, %s11154_s0  ;;  %v10240_v41 = vcombine.high %v18878_v57, %v18878_v57  ;;  %v6909_v37 = vsel %vm5858_vm4, %v15278_v19, -inf  ;;  %v10234_v44 = vcombine.low %v18884_v34, %v18884_v34  ;;  %v6690_v35 = vrot.slane %v6689_v52, 1 }
 0x4ae   :  { %18942 = vst [vmem:[#allocation200_spill] sm:$0xff] %v15280_v60  ;;  %v10554_v10 = vpack.i.bf16 %v15280_v60, %v15271_v42  ;;  %v6745_v1 = vmax.f32 %v6743_v11, %v6744_v26  ;;  %v6631_v25 = vmax.f32 %v6629_v7, %v6630_v14  ;;  %v6576_v55 = vrot.slane %v6575_v40, 2 }
 0x4af   :  { %v15292_v46 = vrot.slane %v10240_v41, %v18527_v20  ;;  %v6910_v13 = vrot.slane %v6909_v37, 4  ;;  %v15295_v48 = vrot.slane %v10234_v44, %v18527_v20  ;;  %v15298_v57 = vmax.f32 %v6689_v52, %v6690_v35 }
 0x4b0   :  { %10555 = vrot.lane.b32.xlu0 %v10554_v10, %s11154_s0  ;;  %v6746_v38 = vrot.slane %v6745_v1, 1  ;;  %v6632_v19 = vrot.slane %v6631_v25, 2  ;;  %v10236_v42 = vcombine.high %v18884_v34, %v18884_v34  ;;  %v6577_v60 = vmax.f32 %v6575_v40, %v6576_v55 }
 0x4b1   :  { %18943 = vst [vmem:[#allocation201_spill] sm:$0xff] %v15292_v46  ;;  %18944 = vst [vmem:[#allocation202_spill] sm:$0xff] %v15295_v48  ;;  %v6911_v11 = vmax.f32 %v6909_v37, %v6910_v13  ;;  %v6965_v14 = vsel %vm5858_vm4, %v15292_v46, -inf  ;;  %v6797_v7 = vsel %vm5858_vm4, %v15295_v48, -inf }
 0x4b2   :  { %18945 = vst [vmem:[#allocation203_spill] sm:$0xff] %v15298_v57  ;;  %v15306_v26 = vmax.f32 %v6745_v1, %v6746_v38  ;;  %v6633_v41 = vmax.f32 %v6631_v25, %v6632_v19  ;;  %v6966_v44 = vrot.slane %v6965_v14, 4  ;;  %v15309_v52 = vrot.slane %v10236_v42, %v18527_v20 }
 0x4b3   :  { %v6578_v35 = vrot.slane %v6577_v60, 1  ;;  %v6912_v34 = vrot.slane %v6911_v11, 2  ;;  %v6798_v40 = vrot.slane %v6797_v7, 4 }
 0x4b4   :  { %18946 = vst [vmem:[#allocation204_spill] sm:$0xff] %v15306_v26  ;;  %18947 = vst [vmem:[#allocation205_spill] sm:$0xff] %v15309_v52  ;;  %v10569_v37 = vpack.i.bf16 %v15306_v26, %v15298_v57  ;;  %v6634_v55 = vrot.slane %v6633_v41, 1  ;;  %v6967_v13 = vmax.f32 %v6965_v14, %v6966_v44  ;;  %v6853_v1 = vsel %vm5858_vm4, %v15309_v52, -inf  ;;  %v10301_v14 = vpop.permute.xlu1 %10300 }
 0x4b5   :  { %v15317_v38 = vmax.f32 %v6577_v60, %v6578_v35  ;;  %v6913_v19 = vmax.f32 %v6911_v11, %v6912_v34  ;;  %v6799_v25 = vmax.f32 %v6797_v7, %v6798_v40  ;;  %v6854_v42 = vrot.slane %v6853_v1, 4  ;;  %v10296_v7 = vpop.permute.xlu0 %10295 }
 0x4b6   :  { %10570 = vrot.lane.b32.xlu1 %v10569_v37, %s11154_s0  ;;  %v15324_v48 = vmax.f32 %v6633_v41, %v6634_v55  ;;  %v6968_v57 = vrot.slane %v6967_v13, 2  ;;  %v10303_v44 = vunpack.i.h.bf16 %v10301_v14  ;;  %v10302_v52 = vunpack.i.l.bf16 %v10301_v14 }
 0x4b7   :  { %18948 = vst [vmem:[#allocation206_spill] sm:$0xff] %v15317_v38  ;;  %v6914_v60 = vrot.slane %v6913_v19, 1  ;;  %v6800_v35 = vrot.slane %v6799_v25, 2  ;;  %v6855_v11 = vmax.f32 %v6853_v1, %v6854_v42  ;;  %v10298_v34 = vunpack.i.h.bf16 %v10296_v7 }
 0x4b8   :  { %18949 = vst [vmem:[#allocation207_spill] sm:$0xff] %v15324_v48  ;;  %v10564_v37 = vpack.i.bf16 %v15324_v48, %v15317_v38  ;;  %v6969_v41 = vmax.f32 %v6967_v13, %v6968_v57  ;;  %v10246_v40 = vcombine.low %v18887_v49, %v18887_v49  ;;  %v10248_v57 = vcombine.high %v18887_v49, %v18887_v49 }
 0x4b9   :  { %v6801_v10 = vmax.f32 %v6799_v25, %v6800_v35  ;;  %v6856_v46 = vrot.slane %v6855_v11, 2  ;;  %v15337_v1 = vmax.f32 %v6913_v19, %v6914_v60  ;;  %v18952_v25 = vld [vmem:[#allocation43_spill] sm:$0xff]  ;;  %v10297_v55 = vunpack.i.l.bf16 %v10296_v7 }
 0x4ba   :  { %10565 = vrot.lane.b32.xlu0 %v10564_v37, %s11154_s0  ;;  %v6970_v42 = vrot.slane %v6969_v41, 1  ;;  %v7780_v35 = vmax.f32 %v18952_v25, %v10298_v34  ;;  %v10242_v19 = vcombine.low %v18891_v5, %v18891_v5  ;;  %v15351_v37 = vrot.slane %v10246_v40, %v18527_v20  ;;  %v18959_v34 = vld [vmem:[#allocation18_spill] sm:$0xff] }
 0x4bb   :  { %18950 = vst [vmem:[#allocation208_spill] sm:$0xff] %v15337_v1  ;;  %v6802_v26 = vrot.slane %v6801_v10, 1  ;;  %v6857_v51 = vmax.f32 %v6855_v11, %v6856_v46  ;;  %v15354_v46 = vrot.slane %v10248_v57, %v18527_v20  ;;  %v18956_v11 = vld [vmem:[#allocation39_spill] sm:$0xff]  ;;  %v7781_v40 = vmax.f32 %v18959_v34, %v10302_v52 }
 0x4bc   :  { %v15343_v13 = vmax.f32 %v6969_v41, %v6970_v42  ;;  %18954 = vst [vmem:[#allocation210_spill] sm:$0xff] %v15351_v37  ;;  %v15359_v41 = vmax.f32 %v18956_v11, %v10303_v44  ;;  %v15362_v7 = vrot.slane %v10242_v19, %v18527_v20  ;;  %v7133_v42 = vsel %vm5858_vm4, %v15351_v37, -inf }
 0x4bd   :  { %v15348_v60 = vmax.f32 %v6801_v10, %v6802_v26  ;;  %v6858_v14 = vrot.slane %v6857_v51, 1  ;;  %18955 = vst [vmem:[#allocation211_spill] sm:$0xff] %v15354_v46  ;;  %v10244_v26 = vcombine.high %v18891_v5, %v18891_v5  ;;  %v7189_v57 = vsel %vm5858_vm4, %v15354_v46, -inf }
 0x4be   :  { %18951 = vst [vmem:[#allocation209_spill] sm:$0xff] %v15343_v13  ;;  %v10579_v49 = vpack.i.bf16 %v15343_v13, %v15337_v1  ;;  %18957 = vst [vmem:[#allocation39_spill] sm:$0xff] %v15362_v7  ;;  %v8963_v44 = vrot.slane %v7780_v35, 7  ;;  %v7134_v25 = vrot.slane %v7133_v42, 4  ;;  %v7190_v11 = vrot.slane %v7189_v57, 4  ;;  %v10306_v1 = vpop.permute.xlu0 %10305 }
 0x4bf   :  { %18953 = vst [vmem:[#allocation43_spill] sm:$0xff] %v15348_v60  ;;  %v15366_v10 = vmax.f32 %v6857_v51, %v6858_v14  ;;  %v15375_v19 = vrot.slane %v10244_v26, %v18527_v20  ;;  %v18961_v51 = vld [vmem:[#allocation57_spill] sm:$0xff]  ;;  %v7021_v14 = vsel %vm5858_vm4, %v15362_v7, -inf  ;;  %v10307_v26 = vunpack.i.l.bf16 %v10306_v1 }
 0x4c0   :  { %10580 = vrot.lane.b32.xlu1 %v10579_v49, %s11154_s0  ;;  %v7779_v52 = vmax.f32 %v18961_v51, %v10297_v55  ;;  %v7135_v34 = vmax.f32 %v7133_v42, %v7134_v25  ;;  %v7191_v37 = vmax.f32 %v7189_v57, %v7190_v11  ;;  %v7022_v46 = vrot.slane %v7021_v14, 4  ;;  %v15384_v49 = vpop.permute.xlu1 %10310 }
 0x4c1   :  { %18958 = vst [vmem:[#allocation212_spill] sm:$0xff] %v15366_v10  ;;  %18960 = vst [vmem:[#allocation18_spill] sm:$0xff] %v15375_v19  ;;  %v10574_v5 = vpack.i.bf16 %v15366_v10, %v15348_v60  ;;  %v7077_v35 = vsel %vm5858_vm4, %v15375_v19, -inf  ;;  %v8966_v60 = vrot.slane %v7781_v40, 6  ;;  %v8969_v25 = vrot.slane %v15359_v41, 5 }
 0x4c2   :  { %v7078_v55 = vrot.slane %v7077_v35, 4  ;;  %v8965_v51 = vsel %vm8964_vm5, %v8963_v44, %v7779_v52  ;;  %v7136_v7 = vrot.slane %v7135_v34, 2  ;;  %v7192_v42 = vrot.slane %v7191_v37, 2 }
 0x4c3   :  { %10575 = vrot.lane.b32.xlu0 %v10574_v5, %s11154_s0  ;;  %v7023_v57 = vmax.f32 %v7021_v14, %v7022_v46  ;;  %v10313_v19 = vunpack.i.h.bf16 %v15384_v49  ;;  %v10308_v10 = vunpack.i.h.bf16 %v10306_v1  ;;  %v8968_v5 = vsel %vm8967_vm6, %v8966_v60, %v8965_v51 }
 0x4c4   :  { %v7079_v11 = vmax.f32 %v7077_v35, %v7078_v55  ;;  %v7137_v13 = vmax.f32 %v7135_v34, %v7136_v7  ;;  %v7193_v48 = vmax.f32 %v7191_v37, %v7192_v42  ;;  %v10312_v33 = vunpack.i.l.bf16 %v15384_v49 }
 0x4c5   :  { %v7024_v38 = vrot.slane %v7023_v57, 2  ;;  %v7783_v41 = vmax.f32 %v14086_v43, %v10307_v26  ;;  %v10254_v14 = vcombine.low %v18896_v0, %v18896_v0  ;;  %v10256_v37 = vcombine.high %v18896_v0, %v18896_v0  ;;  %v10316_v26 = vpop.permute.xlu0 %10315 }
 0x4c6   :  { %v7080_v40 = vrot.slane %v7079_v11, 2  ;;  %v7138_v44 = vrot.slane %v7137_v13, 1  ;;  %v7194_v52 = vrot.slane %v7193_v48, 1  ;;  %v15404_v34 = vmax.f32 %v14088_v54, %v10308_v10  ;;  %v10321_v10 = vpop.permute.xlu1 %10320 }
 0x4c7   :  { %v7025_v15 = vmax.f32 %v7023_v57, %v7024_v38  ;;  %v15407_v38 = vrot.slane %v10254_v14, %v18527_v20  ;;  %v15410_v43 = vrot.slane %v10256_v37, %v18527_v20  ;;  %v10250_v49 = vcombine.low %v18900_v62, %v18900_v62 }
 0x4c8   :  { %v7081_v46 = vmax.f32 %v7079_v11, %v7080_v40  ;;  %v15399_v1 = vmax.f32 %v7137_v13, %v7138_v44  ;;  %v15401_v60 = vmax.f32 %v7193_v48, %v7194_v52  ;;  %v8971_v48 = vsel %vm8970_vm7, %v8969_v25, %v8968_v5 }
 0x4c9   :  { %v7026_v7 = vrot.slane %v7025_v15, 1  ;;  %18963 = vst [vmem:[#allocation213_spill] sm:$0xff] %v15407_v38  ;;  %18964 = vst [vmem:[#allocation214_spill] sm:$0xff] %v15410_v43  ;;  %v10252_v54 = vcombine.high %v18900_v62, %v18900_v62  ;;  %v8972_v51 = vrot.slane %v7783_v41, 4  ;;  %v7357_v42 = vsel %vm5858_vm4, %v15407_v38, -inf }
 0x4ca   :  { %18962 = vst [vmem:[#allocation57_spill] sm:$0xff] %v15399_v1  ;;  %v7082_v35 = vrot.slane %v7081_v46, 1  ;;  %v10589_v0 = vpack.i.bf16 %v15401_v60, %v15399_v1  ;;  %v7413_v57 = vsel %vm5858_vm4, %v15410_v43, -inf  ;;  %v15429_v25 = vrot.slane %v10250_v49, %v18527_v20  ;;  %v18970_v49 = vld [vmem:[#allocation65_spill] sm:$0xff] }
 0x4cb   :  { %v15416_v13 = vmax.f32 %v7025_v15, %v7026_v7  ;;  %v7358_v15 = vrot.slane %v7357_v42, 4  ;;  %v7414_v11 = vrot.slane %v7413_v57, 4  ;;  %v15432_v62 = vrot.slane %v10252_v54, %v18527_v20  ;;  %v18968_v7 = vld [vmem:[#allocation68_spill] sm:$0xff] }
 0x4cc   :  { %v15421_v55 = vmax.f32 %v7081_v46, %v7082_v35  ;;  %10590 = vrot.lane.b32.xlu1 %v10589_v0, %s11154_s0  ;;  %18966 = vst [vmem:[#allocation216_spill] sm:$0xff] %v15429_v25  ;;  %v10323_v40 = vunpack.i.h.bf16 %v10321_v10  ;;  %v10322_v44 = vunpack.i.l.bf16 %v10321_v10  ;;  %v10318_v52 = vunpack.i.h.bf16 %v10316_v26 }
 0x4cd   :  { %18967 = vst [vmem:[#allocation217_spill] sm:$0xff] %v15432_v62  ;;  %v7359_v46 = vmax.f32 %v7357_v42, %v7358_v15  ;;  %v7415_v41 = vmax.f32 %v7413_v57, %v7414_v11  ;;  %v7245_v14 = vsel %vm5858_vm4, %v15429_v25, -inf  ;;  %v7301_v37 = vsel %vm5858_vm4, %v15432_v62, -inf }
 0x4ce   :  { %18965 = vst [vmem:[#allocation215_spill] sm:$0xff] %v15421_v55  ;;  %v10584_v5 = vpack.i.bf16 %v15421_v55, %v15416_v13  ;;  %v15442_v35 = vmax.f32 %v18968_v7, %v10313_v19  ;;  %v15445_v0 = vmax.f32 %v18970_v49, %v10312_v33  ;;  %v7246_v54 = vrot.slane %v7245_v14, 4  ;;  %v18972_v33 = vld [vmem:[#allocation44_spill] sm:$0xff] }
 0x4cf   :  { %v7302_v43 = vrot.slane %v7301_v37, 4  ;;  %v8975_v10 = vrot.slane %v15404_v34, 3  ;;  %v7360_v42 = vrot.slane %v7359_v46, 2  ;;  %v7416_v57 = vrot.slane %v7415_v41, 2 }
 0x4d0   :  { %10585 = vrot.lane.b32.xlu0 %v10584_v5, %s11154_s0  ;;  %18969 = vst [vmem:[#allocation68_spill] sm:$0xff] %v15442_v35  ;;  %18971 = vst [vmem:[#allocation65_spill] sm:$0xff] %v15445_v0  ;;  %v7788_v15 = vmax.f32 %v14109_v36, %v10318_v52  ;;  %v8974_v11 = vsel %vm8973_vm8, %v8972_v51, %v8971_v48  ;;  %v7247_v25 = vmax.f32 %v7245_v14, %v7246_v54 }
 0x4d1   :  { %v7303_v38 = vmax.f32 %v7301_v37, %v7302_v43  ;;  %v10317_v62 = vunpack.i.l.bf16 %v10316_v26  ;;  %v7361_v5 = vmax.f32 %v7359_v46, %v7360_v42  ;;  %v7417_v19 = vmax.f32 %v7415_v41, %v7416_v57 }
 0x4d2   :  { %v15451_v7 = vmax.f32 %v14096_v63, %v10323_v40  ;;  %v7789_v49 = vmax.f32 %v18972_v33, %v10322_v44  ;;  %v7248_v1 = vrot.slane %v7247_v25, 2  ;;  %v10262_v34 = vcombine.low %v14092_v61, %v14092_v61  ;;  %v18973_v63 = vld [vmem:[#allocation47_spill] sm:$0xff] }
 0x4d3   :  { %v7304_v55 = vrot.slane %v7303_v38, 2  ;;  %v10264_v36 = vcombine.high %v14092_v61, %v14092_v61  ;;  %v7362_v48 = vrot.slane %v7361_v5, 1  ;;  %v7418_v51 = vrot.slane %v7417_v19, 1 }
 0x4d4   :  { %v8984_v43 = vrot.slane %v7788_v15, 7  ;;  %v10258_v26 = vcombine.low %v14082_v39, %v14082_v39  ;;  %v7249_v52 = vmax.f32 %v7247_v25, %v7248_v1  ;;  %v7787_v40 = vmax.f32 %v18973_v63, %v10317_v62  ;;  %v10331_v15 = vpop.permute.xlu1 %10330 }
 0x4d5   :  { %v7305_v46 = vmax.f32 %v7303_v38, %v7304_v55  ;;  %v15462_v44 = vrot.slane %v10262_v34, %v18527_v20  ;;  %v15464_v41 = vmax.f32 %v7361_v5, %v7362_v48  ;;  %v15466_v14 = vmax.f32 %v7417_v19, %v7418_v51 }
 0x4d6   :  { %v15469_v37 = vrot.slane %v10264_v36, %v18527_v20  ;;  %v15472_v61 = vrot.slane %v10258_v26, %v18527_v20  ;;  %v7250_v54 = vrot.slane %v7249_v52, 1  ;;  %v10260_v38 = vcombine.high %v14082_v39, %v14082_v39 }
 0x4d7   :  { %18974 = vst [vmem:[#allocation44_spill] sm:$0xff] %v15462_v44  ;;  %v7306_v42 = vrot.slane %v7305_v46, 1  ;;  %v7581_v1 = vsel %vm5858_vm4, %v15462_v44, -inf  ;;  %v10599_v55 = vpack.i.bf16 %v15466_v14, %v15464_v41  ;;  %v8986_v39 = vrot.slane %v7789_v49, 6 }
 0x4d8   :  { %18975 = vst [vmem:[#allocation47_spill] sm:$0xff] %v15469_v37  ;;  %18976 = vst [vmem:[#allocation218_spill] sm:$0xff] %v15472_v61  ;;  %v7582_v25 = vrot.slane %v7581_v1, 4  ;;  %v7637_v62 = vsel %vm5858_vm4, %v15469_v37, -inf  ;;  %v7469_v57 = vsel %vm5858_vm4, %v15472_v61, -inf  ;;  %v15484_v5 = vmax.f32 %v7249_v52, %v7250_v54 }
 0x4d9   :  { %v15486_v19 = vmax.f32 %v7305_v46, %v7306_v42  ;;  %v7638_v33 = vrot.slane %v7637_v62, 4  ;;  %v15489_v34 = vrot.slane %v10260_v38, %v18527_v20  ;;  %10600 = vrot.lane.b32.xlu1 %v10599_v55, %s11154_s0  ;;  %v8985_v36 = vsel %vm8964_vm5, %v8984_v43, %v7787_v40  ;;  %v10326_v38 = vpop.permute.xlu0 %10325 }
 0x4da   :  { %v7583_v48 = vmax.f32 %v7581_v1, %v7582_v25  ;;  %v7470_v51 = vrot.slane %v7469_v57, 4  ;;  %v10333_v46 = vunpack.i.h.bf16 %v10331_v15  ;;  %v10332_v20 = vunpack.i.l.bf16 %v10331_v15  ;;  %v18979_v15 = vld [vmem:[#allocation73_spill] sm:$0xff] }
 0x4db   :  { %18977 = vst [vmem:[#allocation219_spill] sm:$0xff] %v15489_v34  ;;  %v10594_v26 = vpack.i.bf16 %v15486_v19, %v15484_v5  ;;  %v7639_v63 = vmax.f32 %v7637_v62, %v7638_v33  ;;  %v7525_v52 = vsel %vm5858_vm4, %v15489_v34, -inf  ;;  %v15500_v43 = vsel %vm8976_vm9, %v8975_v10, %v8974_v11  ;;  %v18981_v10 = vld [vmem:[#allocation41_spill] sm:$0xff]  ;;  %v18983_v34 = vld [vmem:[#allocation32_spill] sm:$0xff] }
 0x4dc   :  { %v7584_v54 = vrot.slane %v7583_v48, 2  ;;  %v7471_v42 = vmax.f32 %v7469_v57, %v7470_v51  ;;  %v7526_v44 = vrot.slane %v7525_v52, 4  ;;  %18978 = vst [vmem:[#allocation220_spill] sm:$0xff] %v15500_v43  ;;  %v8988_v1 = vrot.slane %v15451_v7, 5 }
 0x4dd   :  { %10595 = vrot.lane.b32.xlu0 %v10594_v26, %s11154_s0  ;;  %v7640_v40 = vrot.slane %v7639_v63, 2  ;;  %v8987_v57 = vsel %vm8967_vm6, %v8986_v39, %v8985_v36  ;;  %v15506_v37 = vmax.f32 %v18979_v15, %v10333_v46  ;;  %v10328_v55 = vunpack.i.h.bf16 %v10326_v38 }
 0x4de   :  { %v7585_v25 = vmax.f32 %v7583_v48, %v7584_v54  ;;  %v7472_v62 = vrot.slane %v7471_v42, 2  ;;  %v7527_v33 = vmax.f32 %v7525_v52, %v7526_v44  ;;  %v15509_v11 = vmax.f32 %v18981_v10, %v10332_v20  ;;  %v18985_v48 = vld [vmem:[#allocation38_spill] sm:$0xff] }
 0x4df   :  { %v7641_v51 = vmax.f32 %v7639_v63, %v7640_v40  ;;  %18980 = vst [vmem:[#allocation73_spill] sm:$0xff] %v15506_v37  ;;  %v10327_v43 = vunpack.i.l.bf16 %v10326_v38  ;;  %v18984_v7 = vcombine.high %v18983_v34, %v18983_v34  ;;  %v18986_v39 = vcombine.high %v18985_v48, %v18985_v48  ;;  %v18988_v40 = vld [vmem:[#allocation19_spill] sm:$0xff] }
 0x4e0   :  { %v7586_v35 = vrot.slane %v7585_v25, 1  ;;  %v7473_v49 = vmax.f32 %v7471_v42, %v7472_v62  ;;  %v7528_v0 = vrot.slane %v7527_v33, 2  ;;  %18982 = vst [vmem:[#allocation41_spill] sm:$0xff] %v15509_v11  ;;  %v15524_v20 = vmax.f32 %v14181_v59, %v10328_v55  ;;  %v18991_v55 = vld [vmem:[#allocation22_spill] sm:$0xff] }
 0x4e1   :  { %v7642_v26 = vrot.slane %v7641_v51, 1  ;;  %v5978_v44 = vsel %vm5858_vm4, %v18984_v7, -inf  ;;  %v6034_v36 = vsel %vm5858_vm4, %v18986_v39, -inf  ;;  %v18989_v34 = vcombine.high %v18988_v40, %v18988_v40  ;;  %v10341_v7 = vpop.permute.xlu1 %10340 }
 0x4e2   :  { %v15519_v63 = vmax.f32 %v7585_v25, %v7586_v35  ;;  %v7474_v52 = vrot.slane %v7473_v49, 1  ;;  %v7529_v46 = vmax.f32 %v7527_v33, %v7528_v0  ;;  %v5979_v54 = vrot.slane %v5978_v44, 4  ;;  %v10336_v0 = vpop.permute.xlu0 %10335 }
 0x4e3   :  { %v15521_v42 = vmax.f32 %v7641_v51, %v7642_v26  ;;  %v6035_v38 = vrot.slane %v6034_v36, 4  ;;  %v5866_v62 = vsel %vm5858_vm4, %v18989_v34, -inf  ;;  %v18992_v26 = vcombine.high %v18991_v55, %v18991_v55 }
 0x4e4   :  { %18987 = vst [vmem:[#allocation32_spill] sm:$0xff] %v15519_v63  ;;  %v15530_v15 = vmax.f32 %v7473_v49, %v7474_v52  ;;  %v7530_v10 = vrot.slane %v7529_v46, 1  ;;  %v5980_v25 = vmax.f32 %v5978_v44, %v5979_v54  ;;  %v5867_v59 = vrot.slane %v5866_v62, 4 }
 0x4e5   :  { %v10609_v33 = vpack.i.bf16 %v15521_v42, %v15519_v63  ;;  %v6036_v51 = vmax.f32 %v6034_v36, %v6035_v38  ;;  %v5922_v48 = vsel %vm5858_vm4, %v18992_v26, -inf  ;;  %v7791_v49 = vmax.f32 %v14179_v31, %v10327_v43 }
 0x4e6   :  { %18990 = vst [vmem:[#allocation38_spill] sm:$0xff] %v15530_v15  ;;  %v15539_v39 = vmax.f32 %v7529_v46, %v7530_v10  ;;  %v5981_v52 = vrot.slane %v5980_v25, 2  ;;  %v5923_v40 = vrot.slane %v5922_v48, 4  ;;  %v5868_v54 = vmax.f32 %v5866_v62, %v5867_v59 }
 0x4e7   :  { %10610 = vrot.lane.b32.xlu1 %v10609_v33, %s11154_s0  ;;  %v6037_v44 = vrot.slane %v6036_v51, 2  ;;  %v10342_v34 = vunpack.i.l.bf16 %v10341_v7  ;;  %v10338_v35 = vunpack.i.h.bf16 %v10336_v0  ;;  %v8989_v46 = vsel %vm8970_vm7, %v8988_v1, %v8987_v57  ;;  %v18994_v1 = vld [vmem:[#allocation23_spill] sm:$0xff] }
 0x4e8   :  { %18993 = vst [vmem:[#allocation19_spill] sm:$0xff] %v15539_v39  ;;  %v10604_v36 = vpack.i.bf16 %v15539_v39, %v15530_v15  ;;  %v5982_v55 = vmax.f32 %v5980_v25, %v5981_v52  ;;  %v5924_v37 = vmax.f32 %v5922_v48, %v5923_v40  ;;  %v5869_v26 = vrot.slane %v5868_v54, 2  ;;  %v18997_v52 = vld [vmem:[#allocation36_spill] sm:$0xff] }
 0x4e9   :  { %v6038_v10 = vmax.f32 %v6036_v51, %v6037_v44  ;;  %v7796_v31 = vmax.f32 %v14209_v28, %v10338_v35  ;;  %v8990_v43 = vrot.slane %v7791_v49, 4  ;;  %v10343_v59 = vunpack.i.h.bf16 %v10341_v7 }
 0x4ea   :  { %10605 = vrot.lane.b32.xlu0 %v10604_v36, %s11154_s0  ;;  %v5983_v33 = vrot.slane %v5982_v55, 1  ;;  %v5925_v62 = vrot.slane %v5924_v37, 2  ;;  %v5870_v63 = vmax.f32 %v5868_v54, %v5869_v26  ;;  %v7797_v39 = vmax.f32 %v14192_v24, %v10342_v34 }
 0x4eb   :  { %v6039_v61 = vrot.slane %v6038_v10, 1  ;;  %v10337_v15 = vunpack.i.l.bf16 %v10336_v0  ;;  %v8998_v48 = vrot.slane %v7796_v31, 7  ;;  %v18995_v57 = vcombine.high %v18994_v1, %v18994_v1  ;;  %v18999_v0 = vld [vmem:[#allocation37_spill] sm:$0xff] }
 0x4ec   :  { %v15550_v38 = vmax.f32 %v5982_v55, %v5983_v33  ;;  %v5926_v25 = vmax.f32 %v5924_v37, %v5925_v62  ;;  %v5871_v51 = vrot.slane %v5870_v63, 1  ;;  %v18998_v7 = vcombine.high %v18997_v52, %v18997_v52  ;;  %v19000_v37 = vld [vmem:[#allocation31_spill] sm:$0xff]  ;;  %v15572_v33 = vpop.permute.xlu1 %10350 }
 0x4ed   :  { %v6202_v28 = vsel %vm5858_vm4, %v18995_v57, -inf  ;;  %v15556_v35 = vmax.f32 %v6038_v10, %v6039_v61  ;;  %v7798_v44 = vmax.f32 %v18999_v0, %v10343_v59  ;;  %v19001_v34 = vcombine.high %v19000_v37, %v19000_v37  ;;  %v19003_v10 = vld [vmem:[#allocation40_spill] sm:$0xff]  ;;  %v19004_v57 = vld [vmem:[#allocation71_spill] sm:$0xff] }
 0x4ee   :  { %v6203_v49 = vrot.slane %v6202_v28, 4  ;;  %v6258_v40 = vsel %vm5858_vm4, %v18998_v7, -inf  ;;  %v5927_v24 = vrot.slane %v5926_v25, 1  ;;  %v15569_v55 = vmax.f32 %v5870_v63, %v5871_v51 }
 0x4ef   :  { %18996 = vst [vmem:[#allocation22_spill] sm:$0xff] %v15556_v35  ;;  %v6259_v54 = vrot.slane %v6258_v40, 4  ;;  %v6090_v36 = vsel %vm5858_vm4, %v19001_v34, -inf  ;;  %v10619_v61 = vpack.i.bf16 %v15556_v35, %v15550_v38  ;;  %v7795_v26 = vmax.f32 %v19003_v10, %v10337_v15  ;;  %v10346_v15 = vpop.permute.xlu0 %10345 }
 0x4f0   :  { %19002 = vst [vmem:[#allocation23_spill] sm:$0xff] %v15569_v55  ;;  %v6204_v31 = vmax.f32 %v6202_v28, %v6203_v49  ;;  %v15574_v62 = vmax.f32 %v5926_v25, %v5927_v24  ;;  %v6091_v59 = vrot.slane %v6090_v36, 4  ;;  %v19005_v52 = vcombine.high %v19004_v57, %v19004_v57 }
 0x4f1   :  { %v6260_v1 = vmax.f32 %v6258_v40, %v6259_v54  ;;  %10620 = vrot.lane.b32.xlu1 %v10619_v61, %s11154_s0  ;;  %v9000_v0 = vrot.slane %v7797_v39, 6  ;;  %v8999_v63 = vsel %vm8964_vm5, %v8998_v48, %v7795_v26  ;;  %v10353_v40 = vunpack.i.h.bf16 %v15572_v33 }
 0x4f2   :  { %v6146_v7 = vsel %vm5858_vm4, %v19005_v52, -inf  ;;  %v6205_v51 = vrot.slane %v6204_v31, 2  ;;  %v10614_v28 = vpack.i.bf16 %v15574_v62, %v15569_v55  ;;  %v6092_v49 = vmax.f32 %v6090_v36, %v6091_v59 }
 0x4f3   :  { %v6147_v37 = vrot.slane %v6146_v7, 4  ;;  %v6261_v25 = vrot.slane %v6260_v1, 2  ;;  %v8992_v24 = vrot.slane %v15524_v20, 3  ;;  %v8991_v54 = vsel %vm8973_vm8, %v8990_v43, %v8989_v46 }
 0x4f4   :  { %v6206_v34 = vmax.f32 %v6204_v31, %v6205_v51  ;;  %10615 = vrot.lane.b32.xlu0 %v10614_v28, %s11154_s0  ;;  %v6093_v48 = vrot.slane %v6092_v49, 2  ;;  %v10348_v61 = vunpack.i.h.bf16 %v10346_v15  ;;  %v10347_v26 = vunpack.i.l.bf16 %v10346_v15  ;;  %v19009_v15 = vld [vmem:[#allocation53_spill] sm:$0xff] }
 0x4f5   :  { %v6148_v10 = vmax.f32 %v6146_v7, %v6147_v37  ;;  %v6262_v39 = vmax.f32 %v6260_v1, %v6261_v25  ;;  %v9002_v57 = vrot.slane %v7798_v44, 5  ;;  %v9001_v52 = vsel %vm8967_vm6, %v9000_v0, %v8999_v63  ;;  %v19007_v1 = vld [vmem:[#allocation14_spill] sm:$0xff] }
 0x4f6   :  { %v6207_v11 = vrot.slane %v6206_v34, 1  ;;  %v6094_v59 = vmax.f32 %v6092_v49, %v6093_v48  ;;  %v15590_v55 = vmax.f32 %v14256_v58, %v10353_v40  ;;  %v10352_v20 = vunpack.i.l.bf16 %v15572_v33  ;;  %v19011_v33 = vld [vmem:[#allocation56_spill] sm:$0xff]  ;;  %v19013_v25 = vld [vmem:[#allocation62_spill] sm:$0xff] }
 0x4f7   :  { %v6149_v35 = vrot.slane %v6148_v10, 2  ;;  %v6263_v36 = vrot.slane %v6262_v39, 1  ;;  %v7799_v31 = vmax.f32 %v14276_v27, %v10347_v26  ;;  %v19008_v7 = vcombine.high %v19007_v1, %v19007_v1 }
 0x4f8   :  { %19006 = vst [vmem:[#allocation36_spill] sm:$0xff] %v15590_v55  ;;  %v15593_v46 = vmax.f32 %v6206_v34, %v6207_v11  ;;  %v6095_v63 = vrot.slane %v6094_v59, 1  ;;  %v15603_v51 = vmax.f32 %v14278_v45, %v10348_v61  ;;  %v19010_v11 = vcombine.high %v19009_v15, %v19009_v15  ;;  %v10361_v34 = vpop.permute.xlu1 %10360  ;;  %v10356_v61 = vpop.permute.xlu0 %10355 }
 0x4f9   :  { %v6150_v43 = vmax.f32 %v6148_v10, %v6149_v35  ;;  %v6426_v44 = vsel %vm5858_vm4, %v19008_v7, -inf  ;;  %v15600_v0 = vmax.f32 %v6262_v39, %v6263_v36  ;;  %v19012_v27 = vcombine.high %v19011_v33, %v19011_v33 }
 0x4fa   :  { %v6427_v58 = vrot.slane %v6426_v44, 4  ;;  %v6482_v35 = vsel %vm5858_vm4, %v19010_v11, -inf  ;;  %v19014_v49 = vcombine.high %v19013_v25, %v19013_v25  ;;  %v15619_v10 = vmax.f32 %v6094_v59, %v6095_v63 }
 0x4fb   :  { %v6151_v37 = vrot.slane %v6150_v43, 1  ;;  %v6314_v28 = vsel %vm5858_vm4, %v19012_v27, -inf  ;;  %v10629_v45 = vpack.i.bf16 %v15600_v0, %v15593_v46  ;;  %v9003_v39 = vsel %vm8970_vm7, %v9002_v57, %v9001_v52 }
 0x4fc   :  { %v6370_v40 = vsel %vm5858_vm4, %v19014_v49, -inf  ;;  %v6428_v48 = vmax.f32 %v6426_v44, %v6427_v58  ;;  %v9004_v36 = vrot.slane %v7799_v31, 4  ;;  %v6483_v1 = vrot.slane %v6482_v35, 4  ;;  %v19021_v44 = vld [vmem:[#allocation63_spill] sm:$0xff] }
 0x4fd   :  { %v15622_v26 = vmax.f32 %v6150_v43, %v6151_v37  ;;  %v6315_v7 = vrot.slane %v6314_v28, 4  ;;  %10630 = vrot.lane.b32.xlu1 %v10629_v45, %s11154_s0  ;;  %v6371_v11 = vrot.slane %v6370_v40, 4  ;;  %v10363_v33 = vunpack.i.h.bf16 %v10361_v34 }
 0x4fe   :  { %v6429_v15 = vrot.slane %v6428_v48, 2  ;;  %v10362_v27 = vunpack.i.l.bf16 %v10361_v34  ;;  %v6484_v59 = vmax.f32 %v6482_v35, %v6483_v1  ;;  %v10358_v49 = vunpack.i.h.bf16 %v10356_v61 }
 0x4ff   :  { %v10624_v25 = vpack.i.bf16 %v15622_v26, %v15619_v10  ;;  %v6316_v63 = vmax.f32 %v6314_v28, %v6315_v7  ;;  %v15628_v57 = vsel %vm8976_vm9, %v8992_v24, %v8991_v54  ;;  %v15631_v52 = vmax.f32 %v14246_v30, %v10352_v20  ;;  %v19017_v30 = vld [vmem:[#allocation83_spill] sm:$0xff] }
 0x500   :  { %19015 = vst [vmem:[#allocation37_spill] sm:$0xff] %v15628_v57  ;;  %v6430_v43 = vmax.f32 %v6428_v48, %v6429_v15  ;;  %v6372_v31 = vmax.f32 %v6370_v40, %v6371_v11  ;;  %v9006_v58 = vrot.slane %v15603_v51, 3  ;;  %v6485_v37 = vrot.slane %v6484_v59, 2  ;;  %v19018_v40 = vld [vmem:[#allocation82_spill] sm:$0xff]  ;;  %v19019_v11 = vld [vmem:[#allocation59_spill] sm:$0xff] }
 0x501   :  { %19016 = vst [vmem:[#allocation31_spill] sm:$0xff] %v15631_v52  ;;  %10625 = vrot.lane.b32.xlu0 %v10624_v25, %s11154_s0  ;;  %v6317_v34 = vrot.slane %v6316_v63, 2  ;;  %v9005_v35 = vsel %vm8973_vm8, %v9004_v36, %v9003_v39  ;;  %v7804_v24 = vmax.f32 %v14314_v47, %v10358_v49  ;;  %v15639_v20 = vmax.f32 %v19017_v30, %v10363_v33 }
 0x502   :  { %v6431_v28 = vrot.slane %v6430_v43, 1  ;;  %v6373_v45 = vrot.slane %v6372_v31, 2  ;;  %v6486_v54 = vmax.f32 %v6484_v59, %v6485_v37  ;;  %v7805_v48 = vmax.f32 %v19018_v40, %v10362_v27 }
 0x503   :  { %v6318_v1 = vmax.f32 %v6316_v63, %v6317_v34  ;;  %v10357_v15 = vunpack.i.l.bf16 %v10356_v61  ;;  %v19020_v51 = vcombine.high %v19019_v11, %v19019_v11  ;;  %v19022_v39 = vcombine.high %v19021_v44, %v19021_v44  ;;  %v15660_v11 = vpop.permute.xlu1 %10370 }
 0x504   :  { %v6374_v7 = vmax.f32 %v6372_v31, %v6373_v45  ;;  %v15650_v47 = vmax.f32 %v6430_v43, %v6431_v28  ;;  %v6487_v59 = vrot.slane %v6486_v54, 1  ;;  %v9012_v37 = vrot.slane %v7804_v24, 7  ;;  %v19024_v31 = vld [vmem:[#allocation50_spill] sm:$0xff]  ;;  %v19029_v28 = vld [vmem:[#allocation85_spill] sm:$0xff] }
 0x505   :  { %v6650_v25 = vsel %vm5858_vm4, %v19020_v51, -inf  ;;  %v6706_v36 = vsel %vm5858_vm4, %v19022_v39, -inf  ;;  %v6319_v63 = vrot.slane %v6318_v1, 1  ;;  %v19025_v61 = vcombine.high %v19024_v31, %v19024_v31  ;;  %v19030_v24 = vld [vmem:[#allocation26_spill] sm:$0xff] }
 0x506   :  { %19023 = vst [vmem:[#allocation40_spill] sm:$0xff] %v15650_v47  ;;  %v6651_v33 = vrot.slane %v6650_v25, 4  ;;  %v6375_v49 = vrot.slane %v6374_v7, 1  ;;  %v6707_v27 = vrot.slane %v6706_v36, 4  ;;  %v15656_v45 = vmax.f32 %v6486_v54, %v6487_v59 }
 0x507   :  { %v6538_v34 = vsel %vm5858_vm4, %v19025_v61, -inf  ;;  %v15658_v30 = vmax.f32 %v6318_v1, %v6319_v63  ;;  %v7803_v51 = vmax.f32 %v19029_v28, %v10357_v15  ;;  %v19031_v57 = vcombine.high %v19030_v24, %v19030_v24 }
 0x508   :  { %19026 = vst [vmem:[#allocation71_spill] sm:$0xff] %v15656_v45  ;;  %v6652_v44 = vmax.f32 %v6650_v25, %v6651_v33  ;;  %v6539_v40 = vrot.slane %v6538_v34, 4  ;;  %v15662_v43 = vmax.f32 %v6374_v7, %v6375_v49  ;;  %v6708_v39 = vmax.f32 %v6706_v36, %v6707_v27  ;;  %v10366_v25 = vpop.permute.xlu0 %10365 }
 0x509   :  { %19027 = vst [vmem:[#allocation14_spill] sm:$0xff] %v15658_v30  ;;  %v6594_v31 = vsel %vm5858_vm4, %v19031_v57, -inf  ;;  %v10639_v54 = vpack.i.bf16 %v15656_v45, %v15650_v47  ;;  %v9014_v7 = vrot.slane %v7805_v48, 6  ;;  %v10373_v15 = vunpack.i.h.bf16 %v15660_v11 }
 0x50a   :  { %19028 = vst [vmem:[#allocation53_spill] sm:$0xff] %v15662_v43  ;;  %v6653_v59 = vrot.slane %v6652_v44, 2  ;;  %v6540_v1 = vmax.f32 %v6538_v34, %v6539_v40  ;;  %v6595_v63 = vrot.slane %v6594_v31, 4  ;;  %v10634_v33 = vpack.i.bf16 %v15662_v43, %v15658_v30 }
 0x50b   :  { %v6709_v49 = vrot.slane %v6708_v39, 2  ;;  %10640 = vrot.lane.b32.xlu1 %v10639_v54, %s11154_s0  ;;  %v9013_v36 = vsel %vm8964_vm5, %v9012_v37, %v7803_v51  ;;  %v15678_v34 = vsel %vm8976_vm9, %v9006_v58, %v9005_v35  ;;  %v10367_v24 = vunpack.i.l.bf16 %v10366_v25 }
 0x50c   :  { %v6654_v27 = vmax.f32 %v6652_v44, %v6653_v59  ;;  %v6541_v57 = vrot.slane %v6540_v1, 2  ;;  %v6596_v61 = vmax.f32 %v6594_v31, %v6595_v63  ;;  %19032 = vst [vmem:[#allocation56_spill] sm:$0xff] %v15678_v34  ;;  %10635 = vrot.lane.b32.xlu0 %v10634_v33, %s11154_s0  ;;  %v9016_v48 = vrot.slane %v15639_v20, 5  ;;  %v19033_v44 = vld [vmem:[#allocation89_spill] sm:$0xff]  ;;  %v19037_v33 = vld [vmem:[#allocation16_spill] sm:$0xff] }
 0x50d   :  { %v6710_v40 = vmax.f32 %v6708_v39, %v6709_v49  ;;  %v9015_v54 = vsel %vm8967_vm6, %v9014_v7, %v9013_v36  ;;  %v15684_v51 = vmax.f32 %v19033_v44, %v10373_v15  ;;  %v10368_v31 = vunpack.i.h.bf16 %v10366_v25  ;;  %v19039_v49 = vld [vmem:[#allocation54_spill] sm:$0xff]  ;;  %v19045_v44 = vld [vmem:[#allocation20_spill] sm:$0xff] }
 0x50e   :  { %v6655_v55 = vrot.slane %v6654_v27, 1  ;;  %v6542_v45 = vmax.f32 %v6540_v1, %v6541_v57  ;;  %v6597_v30 = vrot.slane %v6596_v61, 2  ;;  %v10372_v63 = vunpack.i.l.bf16 %v15660_v11  ;;  %v10381_v11 = vpop.permute.xlu1 %10380 }
 0x50f   :  { %v6711_v37 = vrot.slane %v6710_v40, 1  ;;  %19034 = vst [vmem:[#allocation62_spill] sm:$0xff] %v15684_v51  ;;  %v7807_v20 = vmax.f32 %v14370_v50, %v10367_v24  ;;  %v19038_v1 = vcombine.high %v19037_v33, %v19037_v33  ;;  %v19040_v15 = vcombine.high %v19039_v49, %v19039_v49  ;;  %v19042_v50 = vld [vmem:[#allocation91_spill] sm:$0xff] }
 0x510   :  { %v15686_v59 = vmax.f32 %v6654_v27, %v6655_v55  ;;  %v6543_v58 = vrot.slane %v6542_v45, 1  ;;  %v6598_v35 = vmax.f32 %v6596_v61, %v6597_v30  ;;  %v15705_v61 = vmax.f32 %v19042_v50, %v10368_v31 }
 0x511   :  { %v15689_v39 = vmax.f32 %v6710_v40, %v6711_v37  ;;  %v6874_v7 = vsel %vm5858_vm4, %v19038_v1, -inf  ;;  %v6930_v25 = vsel %vm5858_vm4, %v19040_v15, -inf  ;;  %v19043_v40 = vld [vmem:[#allocation25_spill] sm:$0xff]  ;;  %v19046_v33 = vcombine.high %v19045_v44, %v19045_v44 }
 0x512   :  { %19035 = vst [vmem:[#allocation83_spill] sm:$0xff] %v15686_v59  ;;  %v15700_v55 = vmax.f32 %v6542_v45, %v6543_v58  ;;  %v6599_v36 = vrot.slane %v6598_v35, 1  ;;  %v6875_v30 = vrot.slane %v6874_v7, 4  ;;  %v6931_v27 = vrot.slane %v6930_v25, 4  ;;  %v10376_v58 = vpop.permute.xlu0 %10375 }
 0x513   :  { %19036 = vst [vmem:[#allocation82_spill] sm:$0xff] %v15689_v39  ;;  %v10649_v57 = vpack.i.bf16 %v15689_v39, %v15686_v59  ;;  %v19044_v24 = vcombine.high %v19043_v40, %v19043_v40  ;;  %v6818_v45 = vsel %vm5858_vm4, %v19046_v33, -inf  ;;  %v9017_v49 = vsel %vm8970_vm7, %v9016_v48, %v9015_v54 }
 0x514   :  { %19041 = vst [vmem:[#allocation59_spill] sm:$0xff] %v15700_v55  ;;  %v15715_v1 = vmax.f32 %v6598_v35, %v6599_v36  ;;  %v6876_v15 = vmax.f32 %v6874_v7, %v6875_v30  ;;  %v6932_v28 = vmax.f32 %v6930_v25, %v6931_v27  ;;  %v9018_v31 = vrot.slane %v7807_v20, 4  ;;  %v19048_v35 = vld [vmem:[#allocation87_spill] sm:$0xff] }
 0x515   :  { %v6762_v37 = vsel %vm5858_vm4, %v19044_v24, -inf  ;;  %10650 = vrot.lane.b32.xlu1 %v10649_v57, %s11154_s0  ;;  %v6819_v59 = vrot.slane %v6818_v45, 4  ;;  %v10382_v40 = vunpack.i.l.bf16 %v10381_v11  ;;  %v10378_v34 = vunpack.i.h.bf16 %v10376_v58  ;;  %v19050_v30 = vld [vmem:[#allocation99_spill] sm:$0xff] }
 0x516   :  { %19047 = vst [vmem:[#allocation63_spill] sm:$0xff] %v15715_v1  ;;  %v6763_v50 = vrot.slane %v6762_v37, 4  ;;  %v10644_v24 = vpack.i.bf16 %v15715_v1, %v15700_v55  ;;  %v6877_v52 = vrot.slane %v6876_v15, 2  ;;  %v6933_v44 = vrot.slane %v6932_v28, 2 }
 0x517   :  { %v15723_v36 = vmax.f32 %v19048_v35, %v10372_v63  ;;  %v6820_v54 = vmax.f32 %v6818_v45, %v6819_v59  ;;  %v9020_v20 = vrot.slane %v15705_v61, 3  ;;  %v8100_v27 = vmax.f32 %v19050_v30, %v10378_v34  ;;  %v19051_v63 = vld [vmem:[#allocation94_spill] sm:$0xff] }
 0x518   :  { %v6764_v48 = vmax.f32 %v6762_v37, %v6763_v50  ;;  %10645 = vrot.lane.b32.xlu0 %v10644_v24, %s11154_s0  ;;  %v6878_v7 = vmax.f32 %v6876_v15, %v6877_v52  ;;  %v6934_v25 = vmax.f32 %v6932_v28, %v6933_v44  ;;  %v9019_v57 = vsel %vm8973_vm8, %v9018_v31, %v9017_v49  ;;  %v19052_v45 = vld [vmem:[#allocation34_spill] sm:$0xff]  ;;  %v19054_v28 = vld [vmem:[#allocation28_spill] sm:$0xff] }
 0x519   :  { %19049 = vst [vmem:[#allocation50_spill] sm:$0xff] %v15723_v36  ;;  %v6821_v39 = vrot.slane %v6820_v54, 2  ;;  %v10377_v55 = vunpack.i.l.bf16 %v10376_v58  ;;  %v10383_v51 = vunpack.i.h.bf16 %v10381_v11  ;;  %v8101_v35 = vmax.f32 %v19051_v63, %v10382_v40  ;;  %v19085_v36 = vld [vmem:[#allocation115_spill] sm:$0xff] }
 0x51a   :  { %v6765_v1 = vrot.slane %v6764_v48, 2  ;;  %v6879_v43 = vrot.slane %v6878_v7, 1  ;;  %v6935_v33 = vrot.slane %v6934_v25, 1  ;;  %v19053_v50 = vcombine.high %v19052_v45, %v19052_v45 }
 0x51b   :  { %v6822_v59 = vmax.f32 %v6820_v54, %v6821_v39  ;;  %v19055_v34 = vcombine.high %v19054_v28, %v19054_v28  ;;  %v9186_v15 = vrot.slane %v8100_v27, 7  ;;  %v19059_v54 = vld [vmem:[#allocation74_spill] sm:$0xff]  ;;  %v9188_v28 = vrot.slane %v8101_v35, 6 }
 0x51c   :  { %v6766_v37 = vmax.f32 %v6764_v48, %v6765_v1  ;;  %v7098_v52 = vsel %vm5858_vm4, %v19053_v50, -inf  ;;  %v15738_v49 = vmax.f32 %v6878_v7, %v6879_v43  ;;  %v15740_v58 = vmax.f32 %v6934_v25, %v6935_v33  ;;  %v19058_v1 = vld [vmem:[#allocation97_spill] sm:$0xff]  ;;  %v19061_v43 = vld [vmem:[#allocation75_spill] sm:$0xff]  ;;  %v19065_v50 = vld [vmem:[#allocation96_spill] sm:$0xff] }
 0x51d   :  { %v7154_v61 = vsel %vm5858_vm4, %v19055_v34, -inf  ;;  %v7099_v11 = vrot.slane %v7098_v52, 4  ;;  %v6823_v40 = vrot.slane %v6822_v59, 1  ;;  %v8099_v39 = vmax.f32 %v19058_v1, %v10377_v55  ;;  %v10386_v1 = vpop.permute.xlu0 %10385 }
 0x51e   :  { %19056 = vst [vmem:[#allocation85_spill] sm:$0xff] %v15738_v49  ;;  %19057 = vst [vmem:[#allocation26_spill] sm:$0xff] %v15740_v58  ;;  %v6767_v31 = vrot.slane %v6766_v37, 1  ;;  %v7155_v24 = vrot.slane %v7154_v61, 4  ;;  %v10659_v44 = vpack.i.bf16 %v15740_v58, %v15738_v49  ;;  %v19060_v30 = vcombine.high %v19059_v54, %v19059_v54 }
 0x51f   :  { %v7100_v48 = vmax.f32 %v7098_v52, %v7099_v11  ;;  %v19062_v33 = vcombine.high %v19061_v43, %v19061_v43  ;;  %v15755_v27 = vmax.f32 %v6822_v59, %v6823_v40  ;;  %v8102_v52 = vmax.f32 %v19065_v50, %v10383_v51 }
 0x520   :  { %v6986_v63 = vsel %vm5858_vm4, %v19060_v30, -inf  ;;  %v15753_v25 = vmax.f32 %v6766_v37, %v6767_v31  ;;  %v7156_v55 = vmax.f32 %v7154_v61, %v7155_v24  ;;  %10660 = vrot.lane.b32.xlu1 %v10659_v44, %s11154_s0  ;;  %v9187_v30 = vsel %vm8964_vm5, %v9186_v15, %v8099_v39  ;;  %v10391_v24 = vpop.permute.xlu1 %10390 }
 0x521   :  { %v7042_v7 = vsel %vm5858_vm4, %v19062_v33, -inf  ;;  %19064 = vst [vmem:[#allocation16_spill] sm:$0xff] %v15755_v27  ;;  %v6987_v45 = vrot.slane %v6986_v63, 4  ;;  %v7101_v34 = vrot.slane %v7100_v48, 2  ;;  %v15764_v61 = vsel %vm8976_vm9, %v9020_v20, %v9019_v57 }
 0x522   :  { %19063 = vst [vmem:[#allocation89_spill] sm:$0xff] %v15753_v25  ;;  %v7043_v11 = vrot.slane %v7042_v7, 4  ;;  %v10654_v54 = vpack.i.bf16 %v15755_v27, %v15753_v25  ;;  %v7157_v43 = vrot.slane %v7156_v55, 2  ;;  %19066 = vst [vmem:[#allocation54_spill] sm:$0xff] %v15764_v61  ;;  %v10388_v44 = vunpack.i.h.bf16 %v10386_v1 }
 0x523   :  { %v6988_v37 = vmax.f32 %v6986_v63, %v6987_v45  ;;  %v7102_v31 = vmax.f32 %v7100_v48, %v7101_v34  ;;  %v10387_v33 = vunpack.i.l.bf16 %v10386_v1  ;;  %v9190_v50 = vrot.slane %v8102_v52, 5  ;;  %v19068_v48 = vld [vmem:[#allocation106_spill] sm:$0xff]  ;;  %v19069_v34 = vld [vmem:[#allocation76_spill] sm:$0xff] }
 0x524   :  { %v7044_v40 = vmax.f32 %v7042_v7, %v7043_v11  ;;  %10655 = vrot.lane.b32.xlu0 %v10654_v54, %s11154_s0  ;;  %v7158_v51 = vmax.f32 %v7156_v55, %v7157_v43  ;;  %v9189_v25 = vsel %vm8967_vm6, %v9188_v28, %v9187_v30  ;;  %v10393_v59 = vunpack.i.h.bf16 %v10391_v24  ;;  %v19072_v28 = vld [vmem:[#allocation107_spill] sm:$0xff] }
 0x525   :  { %v6989_v35 = vrot.slane %v6988_v37, 2  ;;  %v7103_v15 = vrot.slane %v7102_v31, 1  ;;  %v10392_v27 = vunpack.i.l.bf16 %v10391_v24  ;;  %v8103_v7 = vmax.f32 %v19068_v48, %v10387_v33  ;;  %v19075_v24 = vld [vmem:[#allocation78_spill] sm:$0xff] }
 0x526   :  { %v7045_v39 = vrot.slane %v7044_v40, 2  ;;  %v7159_v63 = vrot.slane %v7158_v51, 1  ;;  %v19070_v55 = vcombine.high %v19069_v34, %v19069_v34  ;;  %v15778_v54 = vmax.f32 %v19072_v28, %v10388_v44  ;;  %v10396_v28 = vpop.permute.xlu0 %10395 }
 0x527   :  { %v6990_v45 = vmax.f32 %v6988_v37, %v6989_v35  ;;  %v15768_v20 = vmax.f32 %v7102_v31, %v7103_v15  ;;  %v19073_v37 = vld [vmem:[#allocation77_spill] sm:$0xff]  ;;  %v19076_v35 = vcombine.high %v19075_v24, %v19075_v24  ;;  %v19077_v15 = vld [vmem:[#allocation79_spill] sm:$0xff]  ;;  %v9191_v34 = vsel %vm8970_vm7, %v9190_v50, %v9189_v25  ;;  %v19081_v25 = vld [vmem:[#allocation104_spill] sm:$0xff] }
 0x528   :  { %v7046_v57 = vmax.f32 %v7044_v40, %v7045_v39  ;;  %v7322_v11 = vsel %vm5858_vm4, %v19070_v55, -inf  ;;  %v15775_v1 = vmax.f32 %v7158_v51, %v7159_v63  ;;  %v19074_v31 = vcombine.high %v19073_v37, %v19073_v37  ;;  %v10401_v63 = vpop.permute.xlu1 %10400 }
 0x529   :  { %19067 = vst [vmem:[#allocation91_spill] sm:$0xff] %v15768_v20  ;;  %v6991_v52 = vrot.slane %v6990_v45, 1  ;;  %v7323_v30 = vrot.slane %v7322_v11, 4  ;;  %v7210_v33 = vsel %vm5858_vm4, %v19076_v35, -inf  ;;  %v19078_v51 = vcombine.high %v19077_v15, %v19077_v15 }
 0x52a   :  { %19071 = vst [vmem:[#allocation25_spill] sm:$0xff] %v15775_v1  ;;  %v7047_v43 = vrot.slane %v7046_v57, 1  ;;  %v7378_v40 = vsel %vm5858_vm4, %v19074_v31, -inf  ;;  %v10669_v44 = vpack.i.bf16 %v15775_v1, %v15768_v20  ;;  %v9192_v31 = vrot.slane %v8103_v7, 4 }
 0x52b   :  { %v7266_v39 = vsel %vm5858_vm4, %v19078_v51, -inf  ;;  %v15794_v48 = vmax.f32 %v6990_v45, %v6991_v52  ;;  %v7324_v55 = vmax.f32 %v7322_v11, %v7323_v30  ;;  %v7379_v24 = vrot.slane %v7378_v40, 4 }
 0x52c   :  { %v15797_v37 = vmax.f32 %v7046_v57, %v7047_v43  ;;  %v7211_v35 = vrot.slane %v7210_v33, 4  ;;  %10670 = vrot.lane.b32.xlu1 %v10669_v44, %s11154_s0  ;;  %v7267_v49 = vrot.slane %v7266_v39, 4  ;;  %v10403_v51 = vunpack.i.h.bf16 %v10401_v63  ;;  %v19083_v57 = vld [vmem:[#allocation102_spill] sm:$0xff] }
 0x52d   :  { %19079 = vst [vmem:[#allocation20_spill] sm:$0xff] %v15794_v48  ;;  %v7325_v15 = vrot.slane %v7324_v55, 2  ;;  %v10402_v58 = vunpack.i.l.bf16 %v10401_v63  ;;  %v7380_v45 = vmax.f32 %v7378_v40, %v7379_v24  ;;  %v10398_v1 = vunpack.i.h.bf16 %v10396_v28 }
 0x52e   :  { %19080 = vst [vmem:[#allocation87_spill] sm:$0xff] %v15797_v37  ;;  %v10664_v20 = vpack.i.bf16 %v15797_v37, %v15794_v48  ;;  %v7212_v52 = vmax.f32 %v7210_v33, %v7211_v35  ;;  %v15803_v50 = vmax.f32 %v19081_v25, %v10393_v59  ;;  %v15806_v11 = vmax.f32 %v19083_v57, %v10392_v27  ;;  %v19086_v37 = vld [vmem:[#allocation112_spill] sm:$0xff] }
 0x52f   :  { %v7326_v7 = vmax.f32 %v7324_v55, %v7325_v15  ;;  %v7268_v30 = vmax.f32 %v7266_v39, %v7267_v49  ;;  %v9194_v43 = vrot.slane %v15778_v54, 3  ;;  %v7381_v44 = vrot.slane %v7380_v45, 2  ;;  %v19087_v55 = vld [vmem:[#allocation111_spill] sm:$0xff]  ;;  %v19088_v15 = vld [vmem:[#allocation80_spill] sm:$0xff] }
 0x530   :  { %19082 = vst [vmem:[#allocation99_spill] sm:$0xff] %v15803_v50  ;;  %19084 = vst [vmem:[#allocation94_spill] sm:$0xff] %v15806_v11  ;;  %10665 = vrot.lane.b32.xlu0 %v10664_v20, %s11154_s0  ;;  %v7213_v63 = vrot.slane %v7212_v52, 2  ;;  %v8108_v61 = vmax.f32 %v19085_v36, %v10398_v1  ;;  %v9193_v40 = vsel %vm8973_vm8, %v9192_v31, %v9191_v34  ;;  %v10397_v35 = vunpack.i.l.bf16 %v10396_v28  ;;  %v19090_v36 = vld [vmem:[#allocation81_spill] sm:$0xff] }
 0x531   :  { %v7327_v33 = vrot.slane %v7326_v7, 1  ;;  %v7269_v24 = vrot.slane %v7268_v30, 2  ;;  %v7382_v59 = vmax.f32 %v7380_v45, %v7381_v44  ;;  %v15813_v27 = vmax.f32 %v19086_v37, %v10403_v51  ;;  %v10411_v51 = vpop.permute.xlu1 %10410  ;;  %v19094_v44 = vld [vmem:[#allocation84_spill] sm:$0xff] }
 0x532   :  { %v7214_v25 = vmax.f32 %v7212_v52, %v7213_v63  ;;  %v8109_v49 = vmax.f32 %v19087_v55, %v10402_v58  ;;  %v9200_v20 = vrot.slane %v8108_v61, 7  ;;  %v19089_v54 = vcombine.high %v19088_v15, %v19088_v15  ;;  %v19093_v58 = vld [vmem:[#allocation114_spill] sm:$0xff] }
 0x533   :  { %v7270_v39 = vmax.f32 %v7268_v30, %v7269_v24  ;;  %v19091_v1 = vcombine.high %v19090_v36, %v19090_v36  ;;  %v15824_v28 = vmax.f32 %v7326_v7, %v7327_v33  ;;  %v7383_v31 = vrot.slane %v7382_v59, 1 }
 0x534   :  { %v7546_v57 = vsel %vm5858_vm4, %v19089_v54, -inf  ;;  %v7215_v45 = vrot.slane %v7214_v25, 1  ;;  %v8107_v30 = vmax.f32 %v19093_v58, %v10397_v35  ;;  %v19095_v63 = vcombine.high %v19094_v44, %v19094_v44 }
 0x535   :  { %v7602_v34 = vsel %vm5858_vm4, %v19091_v1, -inf  ;;  %19092 = vst [vmem:[#allocation34_spill] sm:$0xff] %v15824_v28  ;;  %v7547_v37 = vrot.slane %v7546_v57, 4  ;;  %v7271_v52 = vrot.slane %v7270_v39, 1  ;;  %v15831_v55 = vmax.f32 %v7382_v59, %v7383_v31  ;;  %v19099_v1 = vld [vmem:[#allocation30_spill] sm:$0xff] }
 0x536   :  { %v7603_v61 = vrot.slane %v7602_v34, 4  ;;  %v7434_v24 = vsel %vm5858_vm4, %v19095_v63, -inf  ;;  %v15833_v15 = vmax.f32 %v7214_v25, %v7215_v45  ;;  %v19100_v48 = vcombine.high %v19099_v1, %v19099_v1  ;;  %v19102_v1 = vld [vmem:[#allocation119_spill] sm:$0xff] }
 0x537   :  { %19096 = vst [vmem:[#allocation28_spill] sm:$0xff] %v15831_v55  ;;  %v7548_v54 = vmax.f32 %v7546_v57, %v7547_v37  ;;  %v7435_v7 = vrot.slane %v7434_v24, 4  ;;  %v15835_v33 = vmax.f32 %v7270_v39, %v7271_v52  ;;  %v10413_v58 = vunpack.i.h.bf16 %v10411_v51  ;;  %v10406_v52 = vpop.permute.xlu0 %10405 }
 0x538   :  { %19097 = vst [vmem:[#allocation97_spill] sm:$0xff] %v15833_v15  ;;  %v7604_v36 = vmax.f32 %v7602_v34, %v7603_v61  ;;  %v7490_v35 = vsel %vm5858_vm4, %v19100_v48, -inf  ;;  %v10679_v44 = vpack.i.bf16 %v15831_v55, %v15824_v28  ;;  %v9202_v39 = vrot.slane %v8109_v49, 6 }
 0x539   :  { %19098 = vst [vmem:[#allocation74_spill] sm:$0xff] %v15835_v33  ;;  %v7549_v47 = vrot.slane %v7548_v54, 2  ;;  %v7436_v63 = vmax.f32 %v7434_v24, %v7435_v7  ;;  %v7491_v59 = vrot.slane %v7490_v35, 4  ;;  %v10674_v57 = vpack.i.bf16 %v15835_v33, %v15833_v15 }
 0x53a   :  { %v7605_v31 = vrot.slane %v7604_v36, 2  ;;  %10680 = vrot.lane.b32.xlu1 %v10679_v44, %s11154_s0  ;;  %v9201_v34 = vsel %vm8964_vm5, %v9200_v20, %v8107_v30  ;;  %v15850_v24 = vsel %vm8976_vm9, %v9194_v43, %v9193_v40  ;;  %v15854_v25 = vmax.f32 %v19102_v1, %v10413_v58  ;;  %v19106_v58 = vld [vmem:[#allocation86_spill] sm:$0xff] }
 0x53b   :  { %v7550_v45 = vmax.f32 %v7548_v54, %v7549_v47  ;;  %v7437_v48 = vrot.slane %v7436_v63, 2  ;;  %v7492_v37 = vmax.f32 %v7490_v35, %v7491_v59  ;;  %19101 = vst [vmem:[#allocation75_spill] sm:$0xff] %v15850_v24  ;;  %10675 = vrot.lane.b32.xlu0 %v10674_v57, %s11154_s0  ;;  %v9204_v49 = vrot.slane %v15813_v27, 5  ;;  %v19111_v1 = vld [vmem:[#allocation118_spill] sm:$0xff]  ;;  %v19121_v24 = vld [vmem:[#allocation127_spill] sm:$0xff] }
 0x53c   :  { %v7606_v7 = vmax.f32 %v7604_v36, %v7605_v31  ;;  %19103 = vst [vmem:[#allocation96_spill] sm:$0xff] %v15854_v25  ;;  %v9203_v47 = vsel %vm8967_vm6, %v9202_v39, %v9201_v34  ;;  %v10412_v54 = vunpack.i.l.bf16 %v10411_v51  ;;  %v10408_v35 = vunpack.i.h.bf16 %v10406_v52  ;;  %v19108_v31 = vld [vmem:[#allocation42_spill] sm:$0xff] }
 0x53d   :  { %v7551_v44 = vrot.slane %v7550_v45, 1  ;;  %v7438_v15 = vmax.f32 %v7436_v63, %v7437_v48  ;;  %v7493_v20 = vrot.slane %v7492_v37, 2  ;;  %v10407_v61 = vunpack.i.l.bf16 %v10406_v52  ;;  %v10421_v52 = vpop.permute.xlu1 %10420  ;;  %v19118_v36 = vld [vmem:[#allocation122_spill] sm:$0xff] }
 0x53e   :  { %v7607_v30 = vrot.slane %v7606_v7, 1  ;;  %v19107_v27 = vcombine.high %v19106_v58, %v19106_v58  ;;  %v19109_v39 = vcombine.high %v19108_v31, %v19108_v31  ;;  %v10422_v28 = vunpack.i.l.bf16 %v10421_v52 }
 0x53f   :  { %v15858_v59 = vmax.f32 %v7550_v45, %v7551_v44  ;;  %v7439_v43 = vrot.slane %v7438_v15, 1  ;;  %v7494_v40 = vmax.f32 %v7492_v37, %v7493_v20  ;;  %v15876_v44 = vmax.f32 %v19111_v1, %v10412_v54  ;;  %v19113_v20 = vld [vmem:[#allocation88_spill] sm:$0xff] }
 0x540   :  { %v15860_v57 = vmax.f32 %v7606_v7, %v7607_v30  ;;  %v5992_v63 = vsel %vm5858_vm4, %v19107_v27, -inf  ;;  %v6048_v51 = vsel %vm5858_vm4, %v19109_v39, -inf  ;;  %v19114_v30 = vcombine.high %v19113_v20, %v19113_v20  ;;  %v19115_v27 = vld [vmem:[#allocation90_spill] sm:$0xff] }
 0x541   :  { %19104 = vst [vmem:[#allocation106_spill] sm:$0xff] %v15858_v59  ;;  %v15871_v34 = vmax.f32 %v7438_v15, %v7439_v43  ;;  %v7495_v45 = vrot.slane %v7494_v40, 1  ;;  %v5993_v48 = vrot.slane %v5992_v63, 4  ;;  %v6049_v37 = vrot.slane %v6048_v51, 4  ;;  %19112 = vst [vmem:[#allocation77_spill] sm:$0xff] %v15876_v44  ;;  %v10416_v43 = vpop.permute.xlu0 %10415 }
 0x542   :  { %19105 = vst [vmem:[#allocation76_spill] sm:$0xff] %v15860_v57  ;;  %v10689_v7 = vpack.i.bf16 %v15860_v57, %v15858_v59  ;;  %v5880_v58 = vsel %vm5858_vm4, %v19114_v30, -inf  ;;  %v19116_v31 = vcombine.high %v19115_v27, %v19115_v27  ;;  %v15889_v33 = vmax.f32 %v19118_v36, %v10407_v61 }
 0x543   :  { %19110 = vst [vmem:[#allocation107_spill] sm:$0xff] %v15871_v34  ;;  %v15886_v39 = vmax.f32 %v7494_v40, %v7495_v45  ;;  %v5994_v59 = vmax.f32 %v5992_v63, %v5993_v48  ;;  %v6050_v57 = vmax.f32 %v6048_v51, %v6049_v37  ;;  %v5881_v54 = vrot.slane %v5880_v58, 4  ;;  %v19119_v45 = vld [vmem:[#allocation123_spill] sm:$0xff] }
 0x544   :  { %v5936_v15 = vsel %vm5858_vm4, %v19116_v31, -inf  ;;  %10690 = vrot.lane.b32.xlu1 %v10689_v7, %s11154_s0  ;;  %v10423_v20 = vunpack.i.h.bf16 %v10421_v52  ;;  %v10418_v31 = vunpack.i.h.bf16 %v10416_v43  ;;  %v15896_v50 = vmax.f32 %v19119_v45, %v10408_v35  ;;  %v19120_v37 = vld [vmem:[#allocation131_spill] sm:$0xff] }
 0x545   :  { %19117 = vst [vmem:[#allocation78_spill] sm:$0xff] %v15886_v39  ;;  %v5937_v1 = vrot.slane %v5936_v15, 4  ;;  %v10684_v30 = vpack.i.bf16 %v15886_v39, %v15871_v34  ;;  %v5995_v27 = vrot.slane %v5994_v59, 2  ;;  %v6051_v55 = vrot.slane %v6050_v57, 2 }
 0x546   :  { %v5882_v61 = vmax.f32 %v5880_v58, %v5881_v54  ;;  %v9205_v63 = vsel %vm8970_vm7, %v9204_v49, %v9203_v47  ;;  %v8116_v52 = vmax.f32 %v19120_v37, %v10418_v31  ;;  %v9206_v7 = vrot.slane %v15889_v33, 4  ;;  %v19122_v58 = vld [vmem:[#allocation126_spill] sm:$0xff]  ;;  %v19125_v47 = vld [vmem:[#allocation93_spill] sm:$0xff] }
 0x547   :  { %v5938_v36 = vmax.f32 %v5936_v15, %v5937_v1  ;;  %10685 = vrot.lane.b32.xlu0 %v10684_v30, %s11154_s0  ;;  %v5996_v51 = vmax.f32 %v5994_v59, %v5995_v27  ;;  %v6052_v48 = vmax.f32 %v6050_v57, %v6051_v55  ;;  %v10417_v25 = vunpack.i.l.bf16 %v10416_v43  ;;  %v19123_v30 = vld [vmem:[#allocation92_spill] sm:$0xff] }
 0x548   :  { %v5883_v39 = vrot.slane %v5882_v61, 2  ;;  %v15903_v35 = vmax.f32 %v19121_v24, %v10423_v20  ;;  %v8117_v15 = vmax.f32 %v19122_v58, %v10422_v28  ;;  %v19124_v49 = vcombine.high %v19123_v30, %v19123_v30 }
 0x549   :  { %v5939_v34 = vrot.slane %v5938_v36, 2  ;;  %v5997_v11 = vrot.slane %v5996_v51, 1  ;;  %v6053_v40 = vrot.slane %v6052_v48, 1  ;;  %v19126_v33 = vcombine.high %v19125_v47, %v19125_v47 }
 0x54a   :  { %v5884_v54 = vmax.f32 %v5882_v61, %v5883_v39  ;;  %v6216_v55 = vsel %vm5858_vm4, %v19124_v49, -inf  ;;  %v9214_v24 = vrot.slane %v8116_v52, 7  ;;  %v19129_v39 = vld [vmem:[#allocation130_spill] sm:$0xff] }
 0x54b   :  { %v5940_v1 = vmax.f32 %v5938_v36, %v5939_v34  ;;  %v6272_v59 = vsel %vm5858_vm4, %v19126_v33, -inf  ;;  %v15914_v57 = vmax.f32 %v5996_v51, %v5997_v11  ;;  %v15916_v43 = vmax.f32 %v6052_v48, %v6053_v40  ;;  %v19130_v36 = vld [vmem:[#allocation95_spill] sm:$0xff]  ;;  %v19132_v11 = vld [vmem:[#allocation98_spill] sm:$0xff]  ;;  %v15929_v48 = vpop.permute.xlu1 %10430 }
 0x54c   :  { %v6217_v20 = vrot.slane %v6216_v55, 4  ;;  %v5885_v27 = vrot.slane %v5884_v54, 1  ;;  %v8115_v34 = vmax.f32 %v19129_v39, %v10417_v25  ;;  %v6273_v31 = vrot.slane %v6272_v59, 4  ;;  %v10426_v39 = vpop.permute.xlu0 %10425 }
 0x54d   :  { %19127 = vst [vmem:[#allocation79_spill] sm:$0xff] %v15914_v57  ;;  %19128 = vst [vmem:[#allocation104_spill] sm:$0xff] %v15916_v43  ;;  %v5941_v28 = vrot.slane %v5940_v1, 1  ;;  %v10699_v45 = vpack.i.bf16 %v15916_v43, %v15914_v57  ;;  %v19131_v37 = vcombine.high %v19130_v36, %v19130_v36  ;;  %v19133_v40 = vcombine.high %v19132_v11, %v19132_v11 }
 0x54e   :  { %v6218_v61 = vmax.f32 %v6216_v55, %v6217_v20  ;;  %v15931_v52 = vmax.f32 %v5884_v54, %v5885_v27  ;;  %v6274_v30 = vmax.f32 %v6272_v59, %v6273_v31  ;;  %v9216_v55 = vrot.slane %v8117_v15, 6 }
 0x54f   :  { %v6104_v58 = vsel %vm5858_vm4, %v19131_v37, -inf  ;;  %v6160_v51 = vsel %vm5858_vm4, %v19133_v40, -inf  ;;  %v15933_v25 = vmax.f32 %v5940_v1, %v5941_v28  ;;  %10700 = vrot.lane.b32.xlu1 %v10699_v45, %s11154_s0  ;;  %v9215_v47 = vsel %vm8964_vm5, %v9214_v24, %v8115_v34 }
 0x550   :  { %19134 = vst [vmem:[#allocation102_spill] sm:$0xff] %v15931_v52  ;;  %v6105_v49 = vrot.slane %v6104_v58, 4  ;;  %v6219_v33 = vrot.slane %v6218_v61, 2  ;;  %v6161_v20 = vrot.slane %v6160_v51, 4  ;;  %v6275_v37 = vrot.slane %v6274_v30, 2 }
 0x551   :  { %19135 = vst [vmem:[#allocation115_spill] sm:$0xff] %v15933_v25  ;;  %v10694_v36 = vpack.i.bf16 %v15933_v25, %v15931_v52  ;;  %v10433_v54 = vunpack.i.h.bf16 %v15929_v48  ;;  %v9208_v1 = vrot.slane %v15896_v50, 3  ;;  %v9207_v59 = vsel %vm8973_vm8, %v9206_v7, %v9205_v63  ;;  %v19136_v25 = vld [vmem:[#allocation135_spill] sm:$0xff] }
 0x552   :  { %v6106_v11 = vmax.f32 %v6104_v58, %v6105_v49  ;;  %v6220_v27 = vmax.f32 %v6218_v61, %v6219_v33  ;;  %v6162_v28 = vmax.f32 %v6160_v51, %v6161_v20  ;;  %v6276_v15 = vmax.f32 %v6274_v30, %v6275_v37  ;;  %v19139_v51 = vld [vmem:[#allocation138_spill] sm:$0xff]  ;;  %v19140_v33 = vld [vmem:[#allocation100_spill] sm:$0xff] }
 0x553   :  { %10695 = vrot.lane.b32.xlu0 %v10694_v36, %s11154_s0  ;;  %v10428_v34 = vunpack.i.h.bf16 %v10426_v39  ;;  %v10427_v31 = vunpack.i.l.bf16 %v10426_v39  ;;  %v9218_v45 = vrot.slane %v15903_v35, 5  ;;  %v9217_v40 = vsel %vm8967_vm6, %v9216_v55, %v9215_v47  ;;  %v19143_v39 = vld [vmem:[#allocation139_spill] sm:$0xff] }
 0x554   :  { %v6107_v24 = vrot.slane %v6106_v11, 2  ;;  %v6221_v52 = vrot.slane %v6220_v27, 1  ;;  %v6163_v58 = vrot.slane %v6162_v28, 2  ;;  %v6277_v49 = vrot.slane %v6276_v15, 1 }
 0x555   :  { %v15946_v50 = vmax.f32 %v19136_v25, %v10433_v54  ;;  %v10432_v63 = vunpack.i.l.bf16 %v15929_v48  ;;  %v8119_v30 = vmax.f32 %v19139_v51, %v10427_v31  ;;  %v19141_v20 = vcombine.high %v19140_v33, %v19140_v33  ;;  %v19146_v54 = vld [vmem:[#allocation103_spill] sm:$0xff] }
 0x556   :  { %v6108_v43 = vmax.f32 %v6106_v11, %v6107_v24  ;;  %v15949_v7 = vmax.f32 %v6220_v27, %v6221_v52  ;;  %v6164_v61 = vmax.f32 %v6162_v28, %v6163_v58  ;;  %v15956_v55 = vmax.f32 %v6276_v15, %v6277_v49  ;;  %v19144_v11 = vld [vmem:[#allocation101_spill] sm:$0xff]  ;;  %v10441_v58 = vpop.permute.xlu1 %10440 }
 0x557   :  { %19137 = vst [vmem:[#allocation112_spill] sm:$0xff] %v15946_v50  ;;  %v6440_v35 = vsel %vm5858_vm4, %v19141_v20, -inf  ;;  %v15959_v36 = vmax.f32 %v19143_v39, %v10428_v34  ;;  %v19145_v48 = vcombine.high %v19144_v11, %v19144_v11  ;;  %v19147_v27 = vcombine.high %v19146_v54, %v19146_v54  ;;  %v19148_v24 = vld [vmem:[#allocation105_spill] sm:$0xff]  ;;  %v10436_v20 = vpop.permute.xlu0 %10435 }
 0x558   :  { %19138 = vst [vmem:[#allocation111_spill] sm:$0xff] %v15949_v7  ;;  %19142 = vst [vmem:[#allocation80_spill] sm:$0xff] %v15956_v55  ;;  %v6109_v47 = vrot.slane %v6108_v43, 1  ;;  %v6441_v25 = vrot.slane %v6440_v35, 4  ;;  %v6165_v37 = vrot.slane %v6164_v61, 1  ;;  %v19149_v15 = vcombine.high %v19148_v24, %v19148_v24 }
 0x559   :  { %v6496_v52 = vsel %vm5858_vm4, %v19145_v48, -inf  ;;  %v6328_v28 = vsel %vm5858_vm4, %v19147_v27, -inf  ;;  %v10709_v34 = vpack.i.bf16 %v15956_v55, %v15949_v7  ;;  %v9219_v51 = vsel %vm8970_vm7, %v9218_v45, %v9217_v40  ;;  %v19153_v40 = vld [vmem:[#allocation134_spill] sm:$0xff] }
 0x55a   :  { %v6384_v31 = vsel %vm5858_vm4, %v19149_v15, -inf  ;;  %v15975_v49 = vmax.f32 %v6108_v43, %v6109_v47  ;;  %v6442_v33 = vmax.f32 %v6440_v35, %v6441_v25  ;;  %v15978_v39 = vmax.f32 %v6164_v61, %v6165_v37 }
 0x55b   :  { %v9220_v11 = vrot.slane %v8119_v30, 4  ;;  %v6497_v48 = vrot.slane %v6496_v52, 4  ;;  %v6329_v54 = vrot.slane %v6328_v28, 4  ;;  %10710 = vrot.lane.b32.xlu1 %v10709_v34, %s11154_s0  ;;  %v6385_v24 = vrot.slane %v6384_v31, 4 }
 0x55c   :  { %19150 = vst [vmem:[#allocation81_spill] sm:$0xff] %v15975_v49  ;;  %19151 = vst [vmem:[#allocation114_spill] sm:$0xff] %v15978_v39  ;;  %v6443_v27 = vrot.slane %v6442_v33, 2  ;;  %v10443_v15 = vunpack.i.h.bf16 %v10441_v58  ;;  %v10442_v57 = vunpack.i.l.bf16 %v10441_v58  ;;  %v10704_v7 = vpack.i.bf16 %v15978_v39, %v15975_v49  ;;  %v19160_v49 = vld [vmem:[#allocation109_spill] sm:$0xff] }
 0x55d   :  { %v6498_v43 = vmax.f32 %v6496_v52, %v6497_v48  ;;  %v6330_v47 = vmax.f32 %v6328_v28, %v6329_v54  ;;  %v10438_v55 = vunpack.i.h.bf16 %v10436_v20  ;;  %v15984_v45 = vsel %vm8976_vm9, %v9208_v1, %v9207_v59  ;;  %v19155_v54 = vld [vmem:[#allocation148_spill] sm:$0xff] }
 0x55e   :  { %19152 = vst [vmem:[#allocation84_spill] sm:$0xff] %v15984_v45  ;;  %v15987_v61 = vmax.f32 %v19153_v40, %v10432_v63  ;;  %v6444_v30 = vmax.f32 %v6442_v33, %v6443_v27  ;;  %v6386_v35 = vmax.f32 %v6384_v31, %v6385_v24  ;;  %10705 = vrot.lane.b32.xlu0 %v10704_v7, %s11154_s0  ;;  %v9222_v37 = vrot.slane %v15959_v36, 3  ;;  %v19156_v63 = vld [vmem:[#allocation143_spill] sm:$0xff]  ;;  %v19157_v31 = vld [vmem:[#allocation142_spill] sm:$0xff]  ;;  %v19158_v24 = vld [vmem:[#allocation108_spill] sm:$0xff] }
 0x55f   :  { %v6499_v58 = vrot.slane %v6498_v43, 2  ;;  %v6331_v34 = vrot.slane %v6330_v47, 2  ;;  %v9221_v52 = vsel %vm8973_vm8, %v9220_v11, %v9219_v51  ;;  %v8124_v1 = vmax.f32 %v19155_v54, %v10438_v55 }
 0x560   :  { %19154 = vst [vmem:[#allocation30_spill] sm:$0xff] %v15987_v61  ;;  %v6445_v28 = vrot.slane %v6444_v30, 1  ;;  %v6387_v48 = vrot.slane %v6386_v35, 2  ;;  %v15995_v40 = vmax.f32 %v19156_v63, %v10443_v15  ;;  %v8125_v33 = vmax.f32 %v19157_v31, %v10442_v57 }
 0x561   :  { %v6500_v59 = vmax.f32 %v6498_v43, %v6499_v58  ;;  %v6332_v39 = vmax.f32 %v6330_v47, %v6331_v34  ;;  %v10437_v27 = vunpack.i.l.bf16 %v10436_v20  ;;  %v19159_v36 = vcombine.high %v19158_v24, %v19158_v24  ;;  %v16016_v24 = vpop.permute.xlu1 %10450 }
 0x562   :  { %v6388_v7 = vmax.f32 %v6386_v35, %v6387_v48  ;;  %v19161_v51 = vcombine.high %v19160_v49, %v19160_v49  ;;  %v16006_v55 = vmax.f32 %v6444_v30, %v6445_v28  ;;  %v9228_v34 = vrot.slane %v8124_v1, 7  ;;  %v19163_v35 = vld [vmem:[#allocation110_spill] sm:$0xff]  ;;  %v19169_v1 = vld [vmem:[#allocation113_spill] sm:$0xff] }
 0x563   :  { %v6664_v25 = vsel %vm5858_vm4, %v19159_v36, -inf  ;;  %v6501_v43 = vrot.slane %v6500_v59, 1  ;;  %v6333_v47 = vrot.slane %v6332_v39, 1  ;;  %v19164_v20 = vcombine.high %v19163_v35, %v19163_v35  ;;  %v19168_v28 = vld [vmem:[#allocation146_spill] sm:$0xff] }
 0x564   :  { %v6720_v11 = vsel %vm5858_vm4, %v19161_v51, -inf  ;;  %19162 = vst [vmem:[#allocation119_spill] sm:$0xff] %v16006_v55  ;;  %v6665_v15 = vrot.slane %v6664_v25, 4  ;;  %v6389_v58 = vrot.slane %v6388_v7, 1  ;;  %v8123_v36 = vmax.f32 %v19168_v28, %v10437_v27 }
 0x565   :  { %v6721_v57 = vrot.slane %v6720_v11, 4  ;;  %v6552_v48 = vsel %vm5858_vm4, %v19164_v20, -inf  ;;  %v16012_v54 = vmax.f32 %v6500_v59, %v6501_v43  ;;  %v16014_v63 = vmax.f32 %v6332_v39, %v6333_v47 }
 0x566   :  { %v6666_v49 = vmax.f32 %v6664_v25, %v6665_v15  ;;  %v6553_v31 = vrot.slane %v6552_v48, 4  ;;  %v16018_v30 = vmax.f32 %v6388_v7, %v6389_v58  ;;  %v19170_v50 = vcombine.high %v19169_v1, %v19169_v1  ;;  %v10446_v25 = vpop.permute.xlu0 %10445 }
 0x567   :  { %19165 = vst [vmem:[#allocation86_spill] sm:$0xff] %v16012_v54  ;;  %19166 = vst [vmem:[#allocation42_spill] sm:$0xff] %v16014_v63  ;;  %v6722_v51 = vmax.f32 %v6720_v11, %v6721_v57  ;;  %v10719_v59 = vpack.i.bf16 %v16012_v54, %v16006_v55  ;;  %v9230_v7 = vrot.slane %v8125_v33, 6  ;;  %v10453_v27 = vunpack.i.h.bf16 %v16016_v24 }
 0x568   :  { %19167 = vst [vmem:[#allocation118_spill] sm:$0xff] %v16018_v30  ;;  %v6608_v35 = vsel %vm5858_vm4, %v19170_v50, -inf  ;;  %v6667_v43 = vrot.slane %v6666_v49, 2  ;;  %v6554_v39 = vmax.f32 %v6552_v48, %v6553_v31  ;;  %v10714_v15 = vpack.i.bf16 %v16018_v30, %v16014_v63 }
 0x569   :  { %v6609_v47 = vrot.slane %v6608_v35, 4  ;;  %v6723_v58 = vrot.slane %v6722_v51, 2  ;;  %10720 = vrot.lane.b32.xlu1 %v10719_v59, %s11154_s0  ;;  %v9229_v11 = vsel %vm8964_vm5, %v9228_v34, %v8123_v36  ;;  %v16034_v48 = vsel %vm8976_vm9, %v9222_v37, %v9221_v52 }
 0x56a   :  { %v6668_v57 = vmax.f32 %v6666_v49, %v6667_v43  ;;  %v6555_v50 = vrot.slane %v6554_v39, 2  ;;  %19171 = vst [vmem:[#allocation88_spill] sm:$0xff] %v16034_v48  ;;  %10715 = vrot.lane.b32.xlu0 %v10714_v15, %s11154_s0  ;;  %v10447_v1 = vunpack.i.l.bf16 %v10446_v25  ;;  %v9232_v33 = vrot.slane %v15995_v40, 5  ;;  %v19172_v49 = vld [vmem:[#allocation151_spill] sm:$0xff]  ;;  %v19176_v15 = vld [vmem:[#allocation152_spill] sm:$0xff] }
 0x56b   :  { %v6610_v20 = vmax.f32 %v6608_v35, %v6609_v47  ;;  %v6724_v31 = vmax.f32 %v6722_v51, %v6723_v58  ;;  %v9231_v59 = vsel %vm8967_vm6, %v9230_v7, %v9229_v11  ;;  %v16040_v36 = vmax.f32 %v19172_v49, %v10453_v27  ;;  %v19177_v58 = vld [vmem:[#allocation116_spill] sm:$0xff]  ;;  %v19179_v11 = vld [vmem:[#allocation117_spill] sm:$0xff] }
 0x56c   :  { %v6669_v63 = vrot.slane %v6668_v57, 1  ;;  %v6556_v54 = vmax.f32 %v6554_v39, %v6555_v50  ;;  %v10448_v35 = vunpack.i.h.bf16 %v10446_v25  ;;  %v10452_v47 = vunpack.i.l.bf16 %v16016_v24  ;;  %v10461_v24 = vpop.permute.xlu1 %10460 }
 0x56d   :  { %v6611_v30 = vrot.slane %v6610_v20, 2  ;;  %v6725_v34 = vrot.slane %v6724_v31, 1  ;;  %19173 = vst [vmem:[#allocation90_spill] sm:$0xff] %v16040_v36  ;;  %v8127_v40 = vmax.f32 %v19176_v15, %v10447_v1  ;;  %v19178_v39 = vcombine.high %v19177_v58, %v19177_v58  ;;  %v19185_v58 = vld [vmem:[#allocation121_spill] sm:$0xff] }
 0x56e   :  { %v16042_v43 = vmax.f32 %v6668_v57, %v6669_v63  ;;  %v6557_v37 = vrot.slane %v6556_v54, 1  ;;  %v19180_v27 = vcombine.high %v19179_v11, %v19179_v11  ;;  %v10463_v36 = vunpack.i.h.bf16 %v10461_v24 }
 0x56f   :  { %v6612_v52 = vmax.f32 %v6610_v20, %v6611_v30  ;;  %v16045_v51 = vmax.f32 %v6724_v31, %v6725_v34  ;;  %v6888_v7 = vsel %vm5858_vm4, %v19178_v39, -inf  ;;  %v19182_v31 = vld [vmem:[#allocation153_spill] sm:$0xff]  ;;  %v19183_v34 = vld [vmem:[#allocation120_spill] sm:$0xff]  ;;  %v19186_v39 = vcombine.high %v19185_v58, %v19185_v58 }
 0x570   :  { %19174 = vst [vmem:[#allocation122_spill] sm:$0xff] %v16042_v43  ;;  %v6944_v25 = vsel %vm5858_vm4, %v19180_v27, -inf  ;;  %v16056_v63 = vmax.f32 %v6556_v54, %v6557_v37  ;;  %v6889_v30 = vrot.slane %v6888_v7, 4  ;;  %v16061_v1 = vmax.f32 %v19182_v31, %v10448_v35  ;;  %v10456_v37 = vpop.permute.xlu0 %10455 }
 0x571   :  { %19175 = vst [vmem:[#allocation123_spill] sm:$0xff] %v16045_v51  ;;  %v6613_v57 = vrot.slane %v6612_v52, 1  ;;  %v6945_v50 = vrot.slane %v6944_v25, 4  ;;  %v10729_v20 = vpack.i.bf16 %v16045_v51, %v16042_v43  ;;  %v19184_v49 = vcombine.high %v19183_v34, %v19183_v34 }
 0x572   :  { %19181 = vst [vmem:[#allocation131_spill] sm:$0xff] %v16056_v63  ;;  %v6832_v54 = vsel %vm5858_vm4, %v19186_v39, -inf  ;;  %v9233_v27 = vsel %vm8970_vm7, %v9232_v33, %v9231_v59  ;;  %v6890_v28 = vmax.f32 %v6888_v7, %v6889_v30  ;;  %v9234_v35 = vrot.slane %v8127_v40, 4  ;;  %v19190_v30 = vld [vmem:[#allocation48_spill] sm:$0xff] }
 0x573   :  { %v6776_v15 = vsel %vm5858_vm4, %v19184_v49, -inf  ;;  %v16071_v11 = vmax.f32 %v6612_v52, %v6613_v57  ;;  %v6946_v43 = vmax.f32 %v6944_v25, %v6945_v50  ;;  %10730 = vrot.lane.b32.xlu1 %v10729_v20, %s11154_s0  ;;  %v6833_v51 = vrot.slane %v6832_v54, 4  ;;  %v19188_v52 = vld [vmem:[#allocation150_spill] sm:$0xff] }
 0x574   :  { %v6777_v31 = vrot.slane %v6776_v15, 4  ;;  %v10462_v34 = vunpack.i.l.bf16 %v10461_v24  ;;  %v6891_v55 = vrot.slane %v6890_v28, 2  ;;  %v10458_v44 = vunpack.i.h.bf16 %v10456_v37 }
 0x575   :  { %19187 = vst [vmem:[#allocation127_spill] sm:$0xff] %v16071_v11  ;;  %v10724_v49 = vpack.i.bf16 %v16071_v11, %v16056_v63  ;;  %v6947_v58 = vrot.slane %v6946_v43, 2  ;;  %v16079_v57 = vmax.f32 %v19188_v52, %v10452_v47  ;;  %v6834_v59 = vmax.f32 %v6832_v54, %v6833_v51  ;;  %v19191_v47 = vld [vmem:[#allocation155_spill] sm:$0xff]  ;;  %v19192_v54 = vld [vmem:[#allocation124_spill] sm:$0xff] }
 0x576   :  { %v6778_v33 = vmax.f32 %v6776_v15, %v6777_v31  ;;  %v9236_v40 = vrot.slane %v16061_v1, 3  ;;  %v6892_v7 = vmax.f32 %v6890_v28, %v6891_v55  ;;  %v8420_v50 = vmax.f32 %v19190_v30, %v10458_v44  ;;  %v19194_v28 = vld [vmem:[#allocation125_spill] sm:$0xff] }
 0x577   :  { %19189 = vst [vmem:[#allocation126_spill] sm:$0xff] %v16079_v57  ;;  %10725 = vrot.lane.b32.xlu0 %v10724_v49, %s11154_s0  ;;  %v6948_v25 = vmax.f32 %v6946_v43, %v6947_v58  ;;  %v9235_v20 = vsel %vm8973_vm8, %v9234_v35, %v9233_v27  ;;  %v6835_v11 = vrot.slane %v6834_v59, 2  ;;  %v10457_v45 = vunpack.i.l.bf16 %v10456_v37  ;;  %v19225_v57 = vld [vmem:[#allocation15_spill] sm:$0xff] }
 0x578   :  { %v6779_v63 = vrot.slane %v6778_v33, 2  ;;  %v6893_v61 = vrot.slane %v6892_v7, 1  ;;  %v8421_v52 = vmax.f32 %v19191_v47, %v10462_v34  ;;  %v19193_v31 = vcombine.high %v19192_v54, %v19192_v54 }
 0x579   :  { %v6949_v39 = vrot.slane %v6948_v25, 1  ;;  %v6836_v51 = vmax.f32 %v6834_v59, %v6835_v11  ;;  %v19195_v44 = vcombine.high %v19194_v28, %v19194_v28  ;;  %v9402_v27 = vrot.slane %v8420_v50, 7  ;;  %v19199_v59 = vld [vmem:[#allocation128_spill] sm:$0xff] }
 0x57a   :  { %v6780_v15 = vmax.f32 %v6778_v33, %v6779_v63  ;;  %v7112_v55 = vsel %vm5858_vm4, %v19193_v31, -inf  ;;  %v16094_v1 = vmax.f32 %v6892_v7, %v6893_v61  ;;  %v19198_v63 = vld [vmem:[#allocation13_spill] sm:$0xff]  ;;  %v19200_v30 = vcombine.high %v19199_v59, %v19199_v59  ;;  %v19205_v31 = vld [vmem:[#allocation156_spill] sm:$0xff] }
 0x57b   :  { %v7168_v43 = vsel %vm5858_vm4, %v19195_v44, -inf  ;;  %v16096_v37 = vmax.f32 %v6948_v25, %v6949_v39  ;;  %v7113_v24 = vrot.slane %v7112_v55, 4  ;;  %v6837_v34 = vrot.slane %v6836_v51, 1  ;;  %v19201_v61 = vld [vmem:[#allocation129_spill] sm:$0xff] }
 0x57c   :  { %19196 = vst [vmem:[#allocation92_spill] sm:$0xff] %v16094_v1  ;;  %v6781_v35 = vrot.slane %v6780_v15, 1  ;;  %v8419_v11 = vmax.f32 %v19198_v63, %v10457_v45  ;;  %v7169_v49 = vrot.slane %v7168_v43, 4  ;;  %v7000_v47 = vsel %vm5858_vm4, %v19200_v30, -inf  ;;  %v10466_v63 = vpop.permute.xlu0 %10465 }
 0x57d   :  { %19197 = vst [vmem:[#allocation93_spill] sm:$0xff] %v16096_v37  ;;  %v10739_v58 = vpack.i.bf16 %v16096_v37, %v16094_v1  ;;  %v7114_v33 = vmax.f32 %v7112_v55, %v7113_v24  ;;  %v19202_v39 = vcombine.high %v19201_v61, %v19201_v61  ;;  %v16111_v50 = vmax.f32 %v6836_v51, %v6837_v34 }
 0x57e   :  { %v16109_v25 = vmax.f32 %v6780_v15, %v6781_v35  ;;  %v7170_v45 = vmax.f32 %v7168_v43, %v7169_v49  ;;  %v7001_v54 = vrot.slane %v7000_v47, 4  ;;  %v8422_v55 = vmax.f32 %v19205_v31, %v10463_v36  ;;  %v10471_v49 = vpop.permute.xlu1 %10470 }
 0x57f   :  { %v7056_v7 = vsel %vm5858_vm4, %v19202_v39, -inf  ;;  %19204 = vst [vmem:[#allocation95_spill] sm:$0xff] %v16111_v50  ;;  %10740 = vrot.lane.b32.xlu1 %v10739_v58, %s11154_s0  ;;  %v9404_v28 = vrot.slane %v8421_v52, 6  ;;  %v7115_v44 = vrot.slane %v7114_v33, 2  ;;  %v9403_v30 = vsel %vm8964_vm5, %v9402_v27, %v8419_v11 }
 0x580   :  { %19203 = vst [vmem:[#allocation130_spill] sm:$0xff] %v16109_v25  ;;  %v7057_v24 = vrot.slane %v7056_v7, 4  ;;  %v10734_v59 = vpack.i.bf16 %v16111_v50, %v16109_v25  ;;  %v7171_v61 = vrot.slane %v7170_v45, 2  ;;  %v7002_v15 = vmax.f32 %v7000_v47, %v7001_v54 }
 0x581   :  { %v16120_v43 = vsel %vm8976_vm9, %v9236_v40, %v9235_v20  ;;  %v7116_v35 = vmax.f32 %v7114_v33, %v7115_v44  ;;  %v10468_v58 = vunpack.i.h.bf16 %v10466_v63  ;;  %v10467_v39 = vunpack.i.l.bf16 %v10466_v63  ;;  %v19208_v33 = vld [vmem:[#allocation64_spill] sm:$0xff] }
 0x582   :  { %19206 = vst [vmem:[#allocation98_spill] sm:$0xff] %v16120_v43  ;;  %v7058_v34 = vmax.f32 %v7056_v7, %v7057_v24  ;;  %10735 = vrot.lane.b32.xlu0 %v10734_v59, %s11154_s0  ;;  %v7172_v36 = vmax.f32 %v7170_v45, %v7171_v61  ;;  %v7003_v52 = vrot.slane %v7002_v15, 2  ;;  %v9406_v31 = vrot.slane %v8422_v55, 5  ;;  %v19209_v44 = vld [vmem:[#allocation132_spill] sm:$0xff] }
 0x583   :  { %v9405_v25 = vsel %vm8967_vm6, %v9404_v28, %v9403_v30  ;;  %v7117_v27 = vrot.slane %v7116_v35, 1  ;;  %v10473_v51 = vunpack.i.h.bf16 %v10471_v49  ;;  %v10472_v37 = vunpack.i.l.bf16 %v10471_v49  ;;  %v19212_v28 = vld [vmem:[#allocation58_spill] sm:$0xff]  ;;  %v19215_v49 = vld [vmem:[#allocation136_spill] sm:$0xff] }
 0x584   :  { %v7059_v11 = vrot.slane %v7058_v34, 2  ;;  %v7173_v47 = vrot.slane %v7172_v36, 1  ;;  %v7004_v54 = vmax.f32 %v7002_v15, %v7003_v52  ;;  %v8423_v7 = vmax.f32 %v19208_v33, %v10467_v39  ;;  %v19213_v15 = vld [vmem:[#allocation133_spill] sm:$0xff] }
 0x585   :  { %v16124_v40 = vmax.f32 %v7116_v35, %v7117_v27  ;;  %v19210_v45 = vcombine.high %v19209_v44, %v19209_v44  ;;  %v16134_v59 = vmax.f32 %v19212_v28, %v10468_v58  ;;  %v19214_v35 = vcombine.high %v19213_v15, %v19213_v15  ;;  %v19217_v27 = vld [vmem:[#allocation137_spill] sm:$0xff]  ;;  %v10476_v28 = vpop.permute.xlu0 %10475 }
 0x586   :  { %v7060_v20 = vmax.f32 %v7058_v34, %v7059_v11  ;;  %v16131_v63 = vmax.f32 %v7172_v36, %v7173_v47  ;;  %v7005_v55 = vrot.slane %v7004_v54, 1  ;;  %v19216_v52 = vcombine.high %v19215_v49, %v19215_v49  ;;  %v10481_v47 = vpop.permute.xlu1 %10480 }
 0x587   :  { %19207 = vst [vmem:[#allocation135_spill] sm:$0xff] %v16124_v40  ;;  %v7336_v24 = vsel %vm5858_vm4, %v19210_v45, -inf  ;;  %v7392_v34 = vsel %vm5858_vm4, %v19214_v35, -inf  ;;  %v19218_v36 = vcombine.high %v19217_v27, %v19217_v27  ;;  %v9407_v44 = vsel %vm8970_vm7, %v9406_v31, %v9405_v25  ;;  %v19221_v25 = vld [vmem:[#allocation160_spill] sm:$0xff] }
 0x588   :  { %19211 = vst [vmem:[#allocation138_spill] sm:$0xff] %v16131_v63  ;;  %v7337_v30 = vrot.slane %v7336_v24, 4  ;;  %v7061_v61 = vrot.slane %v7060_v20, 1  ;;  %v7224_v39 = vsel %vm5858_vm4, %v19216_v52, -inf  ;;  %v10749_v58 = vpack.i.bf16 %v16131_v63, %v16124_v40 }
 0x589   :  { %v7280_v11 = vsel %vm5858_vm4, %v19218_v36, -inf  ;;  %v16150_v33 = vmax.f32 %v7004_v54, %v7005_v55  ;;  %v9408_v35 = vrot.slane %v8423_v7, 4  ;;  %v7393_v49 = vrot.slane %v7392_v34, 4 }
 0x58a   :  { %v7338_v45 = vmax.f32 %v7336_v24, %v7337_v30  ;;  %v16153_v15 = vmax.f32 %v7060_v20, %v7061_v61  ;;  %v7225_v52 = vrot.slane %v7224_v39, 4  ;;  %10750 = vrot.lane.b32.xlu1 %v10749_v58, %s11154_s0  ;;  %v7281_v50 = vrot.slane %v7280_v11, 4  ;;  %v19223_v20 = vld [vmem:[#allocation159_spill] sm:$0xff] }
 0x58b   :  { %19219 = vst [vmem:[#allocation100_spill] sm:$0xff] %v16150_v33  ;;  %v10483_v36 = vunpack.i.h.bf16 %v10481_v47  ;;  %v10482_v1 = vunpack.i.l.bf16 %v10481_v47  ;;  %v7394_v54 = vmax.f32 %v7392_v34, %v7393_v49  ;;  %v10478_v63 = vunpack.i.h.bf16 %v10476_v28 }
 0x58c   :  { %19220 = vst [vmem:[#allocation139_spill] sm:$0xff] %v16153_v15  ;;  %v7339_v27 = vrot.slane %v7338_v45, 2  ;;  %v10744_v40 = vpack.i.bf16 %v16153_v15, %v16150_v33  ;;  %v7226_v55 = vmax.f32 %v7224_v39, %v7225_v52  ;;  %v16159_v31 = vmax.f32 %v19221_v25, %v10473_v51  ;;  %v19226_v15 = vld [vmem:[#allocation164_spill] sm:$0xff] }
 0x58d   :  { %v16162_v24 = vmax.f32 %v19223_v20, %v10472_v37  ;;  %v7282_v30 = vmax.f32 %v7280_v11, %v7281_v50  ;;  %v9410_v61 = vrot.slane %v16134_v59, 3  ;;  %v7395_v58 = vrot.slane %v7394_v54, 2 }
 0x58e   :  { %19222 = vst [vmem:[#allocation101_spill] sm:$0xff] %v16159_v31  ;;  %v7340_v7 = vmax.f32 %v7338_v45, %v7339_v27  ;;  %10745 = vrot.lane.b32.xlu0 %v10744_v40, %s11154_s0  ;;  %v7227_v47 = vrot.slane %v7226_v55, 2  ;;  %v8428_v43 = vmax.f32 %v19225_v57, %v10478_v63  ;;  %v9409_v34 = vsel %vm8973_vm8, %v9408_v35, %v9407_v44  ;;  %v19227_v45 = vld [vmem:[#allocation163_spill] sm:$0xff]  ;;  %v19228_v27 = vld [vmem:[#allocation140_spill] sm:$0xff]  ;;  %v19230_v57 = vld [vmem:[#allocation141_spill] sm:$0xff] }
 0x58f   :  { %19224 = vst [vmem:[#allocation103_spill] sm:$0xff] %v16162_v24  ;;  %v7283_v49 = vrot.slane %v7282_v30, 2  ;;  %v10477_v52 = vunpack.i.l.bf16 %v10476_v28  ;;  %v7396_v51 = vmax.f32 %v7394_v54, %v7395_v58  ;;  %v16169_v37 = vmax.f32 %v19226_v15, %v10483_v36  ;;  %v10491_v36 = vpop.permute.xlu1 %10490  ;;  %v19234_v58 = vld [vmem:[#allocation144_spill] sm:$0xff] }
 0x590   :  { %v7341_v39 = vrot.slane %v7340_v7, 1  ;;  %v7228_v25 = vmax.f32 %v7226_v55, %v7227_v47  ;;  %v8429_v50 = vmax.f32 %v19227_v45, %v10482_v1  ;;  %v9416_v40 = vrot.slane %v8428_v43, 7  ;;  %v19233_v1 = vld [vmem:[#allocation45_spill] sm:$0xff] }
 0x591   :  { %v7284_v11 = vmax.f32 %v7282_v30, %v7283_v49  ;;  %v19229_v59 = vcombine.high %v19228_v27, %v19228_v27  ;;  %v19231_v63 = vcombine.high %v19230_v57, %v19230_v57  ;;  %v7397_v35 = vrot.slane %v7396_v51, 1 }
 0x592   :  { %v16180_v28 = vmax.f32 %v7340_v7, %v7341_v39  ;;  %v7229_v54 = vrot.slane %v7228_v25, 1  ;;  %v8427_v30 = vmax.f32 %v19233_v1, %v10477_v52  ;;  %v19235_v47 = vcombine.high %v19234_v58, %v19234_v58 }
 0x593   :  { %v7560_v20 = vsel %vm5858_vm4, %v19229_v59, -inf  ;;  %v7616_v44 = vsel %vm5858_vm4, %v19231_v63, -inf  ;;  %v7285_v55 = vrot.slane %v7284_v11, 1  ;;  %v16187_v45 = vmax.f32 %v7396_v51, %v7397_v35  ;;  %v19239_v63 = vld [vmem:[#allocation145_spill] sm:$0xff] }
 0x594   :  { %19232 = vst [vmem:[#allocation105_spill] sm:$0xff] %v16180_v28  ;;  %v7561_v15 = vrot.slane %v7560_v20, 4  ;;  %v7617_v43 = vrot.slane %v7616_v44, 4  ;;  %v7448_v49 = vsel %vm5858_vm4, %v19235_v47, -inf  ;;  %v16189_v27 = vmax.f32 %v7228_v25, %v7229_v54 }
 0x595   :  { %19236 = vst [vmem:[#allocation134_spill] sm:$0xff] %v16187_v45  ;;  %v7449_v7 = vrot.slane %v7448_v49, 4  ;;  %v16191_v39 = vmax.f32 %v7284_v11, %v7285_v55  ;;  %v19240_v33 = vcombine.high %v19239_v63, %v19239_v63  ;;  %v10493_v1 = vunpack.i.h.bf16 %v10491_v36  ;;  %v10486_v55 = vpop.permute.xlu0 %10485  ;;  %v19241_v63 = vld [vmem:[#allocation67_spill] sm:$0xff] }
 0x596   :  { %19237 = vst [vmem:[#allocation148_spill] sm:$0xff] %v16189_v27  ;;  %v7562_v59 = vmax.f32 %v7560_v20, %v7561_v15  ;;  %v7618_v57 = vmax.f32 %v7616_v44, %v7617_v43  ;;  %v10759_v58 = vpack.i.bf16 %v16187_v45, %v16180_v28  ;;  %v9418_v11 = vrot.slane %v8429_v50, 6 }
 0x597   :  { %19238 = vst [vmem:[#allocation143_spill] sm:$0xff] %v16191_v39  ;;  %v7504_v52 = vsel %vm5858_vm4, %v19240_v33, -inf  ;;  %v7450_v47 = vmax.f32 %v7448_v49, %v7449_v7  ;;  %v10754_v20 = vpack.i.bf16 %v16191_v39, %v16189_v27  ;;  %v9417_v44 = vsel %vm8964_vm5, %v9416_v40, %v8427_v30 }
 0x598   :  { %v7563_v48 = vrot.slane %v7562_v59, 2  ;;  %v7505_v51 = vrot.slane %v7504_v52, 4  ;;  %v7619_v35 = vrot.slane %v7618_v57, 2  ;;  %10760 = vrot.lane.b32.xlu1 %v10759_v58, %s11154_s0  ;;  %v16206_v49 = vsel %vm8976_vm9, %v9410_v61, %v9409_v34 }
 0x599   :  { %v7451_v33 = vrot.slane %v7450_v47, 2  ;;  %10755 = vrot.lane.b32.xlu0 %v10754_v20, %s11154_s0  ;;  %v16210_v25 = vmax.f32 %v19241_v63, %v10493_v1  ;;  %v9420_v50 = vrot.slane %v16169_v37, 5  ;;  %v10487_v43 = vunpack.i.l.bf16 %v10486_v55  ;;  %v19245_v1 = vld [vmem:[#allocation147_spill] sm:$0xff]  ;;  %v19250_v63 = vld [vmem:[#allocation165_spill] sm:$0xff] }
 0x59a   :  { %v7564_v54 = vmax.f32 %v7562_v59, %v7563_v48  ;;  %v7506_v15 = vmax.f32 %v7504_v52, %v7505_v51  ;;  %v7620_v7 = vmax.f32 %v7618_v57, %v7619_v35  ;;  %v9419_v48 = vsel %vm8967_vm6, %v9418_v11, %v9417_v44  ;;  %v19247_v35 = vld [vmem:[#allocation149_spill] sm:$0xff]  ;;  %v19257_v57 = vld [vmem:[#allocation51_spill] sm:$0xff] }
 0x59b   :  { %19242 = vst [vmem:[#allocation142_spill] sm:$0xff] %v16210_v25  ;;  %v7452_v27 = vmax.f32 %v7450_v47, %v7451_v33  ;;  %v10492_v59 = vunpack.i.l.bf16 %v10491_v36  ;;  %v10488_v52 = vunpack.i.h.bf16 %v10486_v55  ;;  %v19246_v37 = vcombine.high %v19245_v1, %v19245_v1  ;;  %v10501_v55 = vpop.permute.xlu1 %10500 }
 0x59c   :  { %v7565_v58 = vrot.slane %v7564_v54, 1  ;;  %v7507_v40 = vrot.slane %v7506_v15, 2  ;;  %v7621_v30 = vrot.slane %v7620_v7, 1  ;;  %v19248_v11 = vcombine.high %v19247_v35, %v19247_v35 }
 0x59d   :  { %v7453_v61 = vrot.slane %v7452_v27, 1  ;;  %v6006_v47 = vsel %vm5858_vm4, %v19246_v37, -inf  ;;  %v19254_v37 = vld [vmem:[#allocation60_spill] sm:$0xff]  ;;  %v16245_v45 = vmax.f32 %v19257_v57, %v10487_v43  ;;  %v10502_v39 = vunpack.i.l.bf16 %v10501_v55 }
 0x59e   :  { %v16214_v51 = vmax.f32 %v7564_v54, %v7565_v58  ;;  %v7508_v34 = vmax.f32 %v7506_v15, %v7507_v40  ;;  %v16216_v20 = vmax.f32 %v7620_v7, %v7621_v30  ;;  %v6062_v36 = vsel %vm5858_vm4, %v19248_v11, -inf  ;;  %v19252_v40 = vld [vmem:[#allocation66_spill] sm:$0xff] }
 0x59f   :  { %v16227_v44 = vmax.f32 %v7452_v27, %v7453_v61  ;;  %v6007_v33 = vrot.slane %v6006_v47, 4  ;;  %v6063_v15 = vrot.slane %v6062_v36, 4  ;;  %v16232_v58 = vmax.f32 %v19250_v63, %v10492_v59  ;;  %v10496_v61 = vpop.permute.xlu0 %10495 }
 0x5a0   :  { %19243 = vst [vmem:[#allocation108_spill] sm:$0xff] %v16214_v51  ;;  %19244 = vst [vmem:[#allocation109_spill] sm:$0xff] %v16216_v20  ;;  %v7509_v54 = vrot.slane %v7508_v34, 1  ;;  %v10769_v7 = vpack.i.bf16 %v16216_v20, %v16214_v51  ;;  %v19253_v30 = vcombine.high %v19252_v40, %v19252_v40  ;;  %v19255_v35 = vcombine.high %v19254_v37, %v19254_v37 }
 0x5a1   :  { %19249 = vst [vmem:[#allocation110_spill] sm:$0xff] %v16227_v44  ;;  %19251 = vst [vmem:[#allocation146_spill] sm:$0xff] %v16232_v58  ;;  %v6008_v51 = vmax.f32 %v6006_v47, %v6007_v33  ;;  %v6064_v20 = vmax.f32 %v6062_v36, %v6063_v15  ;;  %v10503_v40 = vunpack.i.h.bf16 %v10501_v55  ;;  %v9421_v47 = vsel %vm8970_vm7, %v9420_v50, %v9419_v48  ;;  %v19259_v15 = vld [vmem:[#allocation12_spill] sm:$0xff]  ;;  %v19260_v58 = vld [vmem:[#allocation49_spill] sm:$0xff] }
 0x5a2   :  { %v5894_v1 = vsel %vm5858_vm4, %v19253_v30, -inf  ;;  %v5950_v27 = vsel %vm5858_vm4, %v19255_v35, -inf  ;;  %v16242_v11 = vmax.f32 %v7508_v34, %v7509_v54  ;;  %10770 = vrot.lane.b32.xlu1 %v10769_v7, %s11154_s0  ;;  %v10498_v35 = vunpack.i.h.bf16 %v10496_v61  ;;  %v19258_v54 = vld [vmem:[#allocation70_spill] sm:$0xff] }
 0x5a3   :  { %v5895_v59 = vrot.slane %v5894_v1, 4  ;;  %v5951_v63 = vrot.slane %v5950_v27, 4  ;;  %v6009_v37 = vrot.slane %v6008_v51, 2  ;;  %v6065_v28 = vrot.slane %v6064_v20, 2  ;;  %v19264_v48 = vld [vmem:[#allocation154_spill] sm:$0xff] }
 0x5a4   :  { %19256 = vst [vmem:[#allocation113_spill] sm:$0xff] %v16242_v11  ;;  %v10764_v30 = vpack.i.bf16 %v16242_v11, %v16227_v44  ;;  %v16252_v25 = vmax.f32 %v19258_v54, %v10488_v52  ;;  %v8436_v55 = vmax.f32 %v19259_v15, %v10498_v35  ;;  %v9422_v7 = vrot.slane %v16245_v45, 4 }
 0x5a5   :  { %v5896_v43 = vmax.f32 %v5894_v1, %v5895_v59  ;;  %v5952_v57 = vmax.f32 %v5950_v27, %v5951_v63  ;;  %v6010_v36 = vmax.f32 %v6008_v51, %v6009_v37  ;;  %v6066_v33 = vmax.f32 %v6064_v20, %v6065_v28  ;;  %v19261_v1 = vld [vmem:[#allocation29_spill] sm:$0xff] }
 0x5a6   :  { %10765 = vrot.lane.b32.xlu0 %v10764_v30, %s11154_s0  ;;  %v10497_v31 = vunpack.i.l.bf16 %v10496_v61  ;;  %v16259_v52 = vmax.f32 %v19260_v58, %v10503_v40  ;;  %v8437_v27 = vmax.f32 %v19261_v1, %v10502_v39  ;;  %v19262_v30 = vld [vmem:[#allocation21_spill] sm:$0xff]  ;;  %v19265_v45 = vcombine.high %v19264_v48, %v19264_v48 }
 0x5a7   :  { %v5897_v44 = vrot.slane %v5896_v43, 2  ;;  %v5953_v11 = vrot.slane %v5952_v57, 2  ;;  %v6011_v24 = vrot.slane %v6010_v36, 1  ;;  %v6067_v34 = vrot.slane %v6066_v33, 1 }
 0x5a8   :  { %v19263_v50 = vcombine.high %v19262_v30, %v19262_v30  ;;  %v6286_v51 = vsel %vm5858_vm4, %v19265_v45, -inf  ;;  %v9430_v58 = vrot.slane %v8436_v55, 7 }
 0x5a9   :  { %v5898_v59 = vmax.f32 %v5896_v43, %v5897_v44  ;;  %v5954_v63 = vmax.f32 %v5952_v57, %v5953_v11  ;;  %v16270_v20 = vmax.f32 %v6010_v36, %v6011_v24  ;;  %v16272_v61 = vmax.f32 %v6066_v33, %v6067_v34  ;;  %v19268_v44 = vld [vmem:[#allocation11_spill] sm:$0xff]  ;;  %v19269_v57 = vld [vmem:[#allocation24_spill] sm:$0xff]  ;;  %v16285_v33 = vpop.permute.xlu1 %10510 }
 0x5aa   :  { %v6230_v28 = vsel %vm5858_vm4, %v19263_v50, -inf  ;;  %v8435_v11 = vmax.f32 %v19268_v44, %v10497_v31  ;;  %v6287_v35 = vrot.slane %v6286_v51, 4  ;;  %v19270_v15 = vcombine.high %v19269_v57, %v19269_v57  ;;  %v19271_v24 = vld [vmem:[#allocation27_spill] sm:$0xff]  ;;  %v10506_v44 = vpop.permute.xlu0 %10505 }
 0x5ab   :  { %19266 = vst [vmem:[#allocation151_spill] sm:$0xff] %v16270_v20  ;;  %19267 = vst [vmem:[#allocation152_spill] sm:$0xff] %v16272_v61  ;;  %v6231_v40 = vrot.slane %v6230_v28, 4  ;;  %v5899_v37 = vrot.slane %v5898_v59, 1  ;;  %v5955_v39 = vrot.slane %v5954_v63, 1  ;;  %v10779_v54 = vpack.i.bf16 %v16272_v61, %v16270_v20 }
 0x5ac   :  { %v6118_v1 = vsel %vm5858_vm4, %v19270_v15, -inf  ;;  %v19272_v34 = vcombine.high %v19271_v24, %v19271_v24  ;;  %v6288_v30 = vmax.f32 %v6286_v51, %v6287_v35  ;;  %v9431_v48 = vsel %vm8964_vm5, %v9430_v58, %v8435_v11 }
 0x5ad   :  { %v6232_v43 = vmax.f32 %v6230_v28, %v6231_v40  ;;  %v16287_v55 = vmax.f32 %v5898_v59, %v5899_v37  ;;  %v16289_v31 = vmax.f32 %v5954_v63, %v5955_v39  ;;  %v6119_v50 = vrot.slane %v6118_v1, 4  ;;  %10780 = vrot.lane.b32.xlu1 %v10779_v54, %s11154_s0 }
 0x5ae   :  { %v6174_v36 = vsel %vm5858_vm4, %v19272_v34, -inf  ;;  %v9432_v28 = vrot.slane %v8437_v27, 6  ;;  %v6289_v15 = vrot.slane %v6288_v30, 2  ;;  %v10513_v59 = vunpack.i.h.bf16 %v16285_v33 }
 0x5af   :  { %19273 = vst [vmem:[#allocation116_spill] sm:$0xff] %v16287_v55  ;;  %19274 = vst [vmem:[#allocation117_spill] sm:$0xff] %v16289_v31  ;;  %v6233_v45 = vrot.slane %v6232_v43, 2  ;;  %v6175_v40 = vrot.slane %v6174_v36, 4  ;;  %v10774_v57 = vpack.i.bf16 %v16289_v31, %v16287_v55  ;;  %v6120_v24 = vmax.f32 %v6118_v1, %v6119_v50  ;;  %v19275_v31 = vld [vmem:[#allocation166_spill] sm:$0xff] }
 0x5b0   :  { %v9424_v63 = vrot.slane %v16252_v25, 3  ;;  %v9423_v51 = vsel %vm8973_vm8, %v9422_v7, %v9421_v47  ;;  %v6290_v27 = vmax.f32 %v6288_v30, %v6289_v15  ;;  %v10508_v11 = vunpack.i.h.bf16 %v10506_v44 }
 0x5b1   :  { %v6234_v37 = vmax.f32 %v6232_v43, %v6233_v45  ;;  %v6176_v39 = vmax.f32 %v6174_v36, %v6175_v40  ;;  %10775 = vrot.lane.b32.xlu0 %v10774_v57, %s11154_s0  ;;  %v6121_v58 = vrot.slane %v6120_v24, 2  ;;  %v10507_v35 = vunpack.i.l.bf16 %v10506_v44  ;;  %v19277_v36 = vld [vmem:[#allocation35_spill] sm:$0xff]  ;;  %v19278_v45 = vld [vmem:[#allocation157_spill] sm:$0xff]  ;;  %v19281_v44 = vld [vmem:[#allocation170_spill] sm:$0xff] }
 0x5b2   :  { %v9434_v54 = vrot.slane %v16259_v52, 5  ;;  %v9433_v34 = vsel %vm8967_vm6, %v9432_v28, %v9431_v48  ;;  %v6291_v50 = vrot.slane %v6290_v27, 1  ;;  %v16302_v25 = vmax.f32 %v19275_v31, %v10513_v59  ;;  %v19284_v59 = vld [vmem:[#allocation52_spill] sm:$0xff] }
 0x5b3   :  { %v6235_v55 = vrot.slane %v6234_v37, 1  ;;  %v6177_v1 = vrot.slane %v6176_v39, 2  ;;  %v6122_v61 = vmax.f32 %v6120_v24, %v6121_v58  ;;  %v10512_v47 = vunpack.i.l.bf16 %v16285_v33  ;;  %v19282_v24 = vld [vmem:[#allocation158_spill] sm:$0xff] }
 0x5b4   :  { %v8439_v30 = vmax.f32 %v19277_v36, %v10507_v35  ;;  %v19279_v40 = vcombine.high %v19278_v45, %v19278_v45  ;;  %v16312_v28 = vmax.f32 %v6290_v27, %v6291_v50  ;;  %v16315_v57 = vmax.f32 %v19281_v44, %v10508_v11  ;;  %v19286_v58 = vld [vmem:[#allocation46_spill] sm:$0xff] }
 0x5b5   :  { %v16305_v7 = vmax.f32 %v6234_v37, %v6235_v55  ;;  %v6178_v43 = vmax.f32 %v6176_v39, %v6177_v1  ;;  %v6123_v48 = vrot.slane %v6122_v61, 1  ;;  %v19283_v33 = vcombine.high %v19282_v24, %v19282_v24  ;;  %v10521_v1 = vpop.permute.xlu1 %10520 }
 0x5b6   :  { %v6454_v52 = vsel %vm5858_vm4, %v19279_v40, -inf  ;;  %19280 = vst [vmem:[#allocation120_spill] sm:$0xff] %v16312_v28  ;;  %v19285_v37 = vcombine.high %v19284_v59, %v19284_v59  ;;  %v19287_v27 = vcombine.high %v19286_v58, %v19286_v58  ;;  %v9435_v36 = vsel %vm8970_vm7, %v9434_v54, %v9433_v34  ;;  %v10516_v40 = vpop.permute.xlu0 %10515  ;;  %v19290_v34 = vld [vmem:[#allocation17_spill] sm:$0xff] }
 0x5b7   :  { %19276 = vst [vmem:[#allocation153_spill] sm:$0xff] %v16305_v7  ;;  %v6455_v31 = vrot.slane %v6454_v52, 4  ;;  %v6179_v15 = vrot.slane %v6178_v43, 1  ;;  %v6510_v55 = vsel %vm5858_vm4, %v19283_v33, -inf  ;;  %v10789_v11 = vpack.i.bf16 %v16312_v28, %v16305_v7 }
 0x5b8   :  { %v6342_v39 = vsel %vm5858_vm4, %v19285_v37, -inf  ;;  %v6398_v35 = vsel %vm5858_vm4, %v19287_v27, -inf  ;;  %v16331_v50 = vmax.f32 %v6122_v61, %v6123_v48  ;;  %v9436_v24 = vrot.slane %v8439_v30, 4 }
 0x5b9   :  { %v6456_v45 = vmax.f32 %v6454_v52, %v6455_v31  ;;  %v16334_v44 = vmax.f32 %v6178_v43, %v6179_v15  ;;  %v6511_v33 = vrot.slane %v6510_v55, 4  ;;  %v6343_v59 = vrot.slane %v6342_v39, 4  ;;  %10790 = vrot.lane.b32.xlu1 %v10789_v11, %s11154_s0 }
 0x5ba   :  { %19288 = vst [vmem:[#allocation121_spill] sm:$0xff] %v16331_v50  ;;  %v6399_v58 = vrot.slane %v6398_v35, 4  ;;  %v10523_v27 = vunpack.i.h.bf16 %v10521_v1  ;;  %v10522_v20 = vunpack.i.l.bf16 %v10521_v1  ;;  %v10518_v28 = vunpack.i.h.bf16 %v10516_v40 }
 0x5bb   :  { %19289 = vst [vmem:[#allocation150_spill] sm:$0xff] %v16334_v44  ;;  %v6457_v37 = vrot.slane %v6456_v45, 2  ;;  %v10784_v7 = vpack.i.bf16 %v16334_v44, %v16331_v50  ;;  %v6512_v61 = vmax.f32 %v6510_v55, %v6511_v33  ;;  %v6344_v48 = vmax.f32 %v6342_v39, %v6343_v59 }
 0x5bc   :  { %v16340_v54 = vsel %vm8976_vm9, %v9424_v63, %v9423_v51  ;;  %v16343_v43 = vmax.f32 %v19290_v34, %v10512_v47  ;;  %v6400_v52 = vmax.f32 %v6398_v35, %v6399_v58  ;;  %v9438_v15 = vrot.slane %v16315_v57, 3  ;;  %v19293_v34 = vld [vmem:[#allocation162_spill] sm:$0xff] }
 0x5bd   :  { %v6458_v30 = vmax.f32 %v6456_v45, %v6457_v37  ;;  %10785 = vrot.lane.b32.xlu0 %v10784_v7, %s11154_s0  ;;  %v6513_v1 = vrot.slane %v6512_v61, 2  ;;  %v6345_v11 = vrot.slane %v6344_v48, 2  ;;  %v9437_v55 = vsel %vm8973_vm8, %v9436_v24, %v9435_v36  ;;  %v19291_v37 = vld [vmem:[#allocation161_spill] sm:$0xff] }
 0x5be   :  { %v6401_v33 = vrot.slane %v6400_v52, 2  ;;  %v8444_v63 = vmax.f32 %v15109_v3, %v10518_v28  ;;  %v16351_v47 = vmax.f32 %v15097_v16, %v10523_v27  ;;  %v8445_v35 = vmax.f32 %v15089_v53, %v10522_v20  ;;  %v19296_v20 = vld [vmem:[#allocation61_spill] sm:$0xff] }
 0x5bf   :  { %v6459_v39 = vrot.slane %v6458_v30, 1  ;;  %v6514_v51 = vmax.f32 %v6512_v61, %v6513_v1  ;;  %v6346_v59 = vmax.f32 %v6344_v48, %v6345_v11  ;;  %v10517_v45 = vunpack.i.l.bf16 %v10516_v40 }
 0x5c0   :  { %v6402_v7 = vmax.f32 %v6400_v52, %v6401_v33  ;;  %v19292_v57 = vcombine.high %v19291_v37, %v19291_v37  ;;  %v19294_v36 = vcombine.high %v19293_v34, %v19293_v34  ;;  %v9444_v48 = vrot.slane %v8444_v63, 7  ;;  %v19302_v63 = vld [vmem:[#allocation55_spill] sm:$0xff] }
 0x5c1   :  { %v16362_v3 = vmax.f32 %v6458_v30, %v6459_v39  ;;  %v6515_v28 = vrot.slane %v6514_v51, 1  ;;  %v6347_v61 = vrot.slane %v6346_v59, 1  ;;  %v19297_v40 = vcombine.high %v19296_v20, %v19296_v20  ;;  %v19301_v39 = vld [vmem:[#allocation173_spill] sm:$0xff] }
 0x5c2   :  { %v6678_v58 = vsel %vm5858_vm4, %v19292_v57, -inf  ;;  %v6734_v24 = vsel %vm5858_vm4, %v19294_v36, -inf  ;;  %v6403_v27 = vrot.slane %v6402_v7, 1  ;;  %v16372_v57 = vpop.permute.xlu1 %10530  ;;  %v8443_v34 = vmax.f32 %v19301_v39, %v10517_v45 }
 0x5c3   :  { %19295 = vst [vmem:[#allocation48_spill] sm:$0xff] %v16362_v3  ;;  %v6679_v16 = vrot.slane %v6678_v58, 4  ;;  %v6735_v53 = vrot.slane %v6734_v24, 4  ;;  %v6566_v52 = vsel %vm5858_vm4, %v19297_v40, -inf  ;;  %v16368_v1 = vmax.f32 %v6514_v51, %v6515_v28 }
 0x5c4   :  { %v16370_v11 = vmax.f32 %v6346_v59, %v6347_v61  ;;  %v6567_v37 = vrot.slane %v6566_v52, 4  ;;  %v16374_v30 = vmax.f32 %v6402_v7, %v6403_v27  ;;  %v19303_v31 = vcombine.high %v19302_v63, %v19302_v63 }
 0x5c5   :  { %19298 = vst [vmem:[#allocation155_spill] sm:$0xff] %v16368_v1  ;;  %v6680_v33 = vmax.f32 %v6678_v58, %v6679_v16  ;;  %v6736_v36 = vmax.f32 %v6734_v24, %v6735_v53  ;;  %v10799_v51 = vpack.i.bf16 %v16368_v1, %v16362_v3  ;;  %v10526_v58 = vpop.permute.xlu0 %10525  ;;  %v9446_v7 = vrot.slane %v8445_v35, 6 }
 0x5c6   :  { %19299 = vst [vmem:[#allocation124_spill] sm:$0xff] %v16370_v11  ;;  %19300 = vst [vmem:[#allocation125_spill] sm:$0xff] %v16374_v30  ;;  %v6622_v20 = vsel %vm5858_vm4, %v19303_v31, -inf  ;;  %v6568_v59 = vmax.f32 %v6566_v52, %v6567_v37  ;;  %v10794_v16 = vpack.i.bf16 %v16374_v30, %v16370_v11  ;;  %v10533_v45 = vunpack.i.h.bf16 %v16372_v57 }
 0x5c7   :  { %v6681_v28 = vrot.slane %v6680_v33, 2  ;;  %v6623_v61 = vrot.slane %v6622_v20, 4  ;;  %v6737_v27 = vrot.slane %v6736_v36, 2  ;;  %10800 = vrot.lane.b32.xlu1 %v10799_v51, %s11154_s0  ;;  %v9445_v24 = vsel %vm8964_vm5, %v9444_v48, %v8443_v34 }
 0x5c8   :  { %v6569_v31 = vrot.slane %v6568_v59, 2  ;;  %v16390_v52 = vsel %vm8976_vm9, %v9438_v15, %v9437_v55  ;;  %10795 = vrot.lane.b32.xlu0 %v10794_v16, %s11154_s0  ;;  %v10527_v63 = vunpack.i.l.bf16 %v10526_v58  ;;  %v9448_v35 = vrot.slane %v16351_v47, 5 }
 0x5c9   :  { %v6682_v53 = vmax.f32 %v6680_v33, %v6681_v28  ;;  %v6624_v40 = vmax.f32 %v6622_v20, %v6623_v61  ;;  %v6738_v37 = vmax.f32 %v6736_v36, %v6737_v27  ;;  %v9447_v51 = vsel %vm8967_vm6, %v9446_v7, %v9445_v24  ;;  %v19304_v33 = vld [vmem:[#allocation178_spill] sm:$0xff] }
 0x5ca   :  { %v6570_v11 = vmax.f32 %v6568_v59, %v6569_v31  ;;  %v16396_v34 = vmax.f32 %v19304_v33, %v10533_v45  ;;  %v10528_v20 = vunpack.i.h.bf16 %v10526_v58  ;;  %v10532_v61 = vunpack.i.l.bf16 %v16372_v57  ;;  %v10541_v57 = vpop.permute.xlu1 %10540 }
 0x5cb   :  { %v6683_v44 = vrot.slane %v6682_v53, 1  ;;  %v6625_v1 = vrot.slane %v6624_v40, 2  ;;  %v6739_v48 = vrot.slane %v6738_v37, 1  ;;  %v8447_v47 = vmax.f32 %v15151_v18, %v10527_v63  ;;  %v19310_v18 = vld [vmem:[#allocation181_spill] sm:$0xff] }
 0x5cc   :  { %v6571_v15 = vrot.slane %v6570_v11, 1  ;;  %v19307_v59 = vcombine.high %v14931_v2, %v14931_v2  ;;  %v19308_v7 = vcombine.high %v14934_v21, %v14934_v21  ;;  %v19311_v2 = vcombine.high %v14958_v29, %v14958_v29 }
 0x5cd   :  { %v16398_v28 = vmax.f32 %v6682_v53, %v6683_v44  ;;  %v6626_v55 = vmax.f32 %v6624_v40, %v6625_v1  ;;  %v16401_v36 = vmax.f32 %v6738_v37, %v6739_v48  ;;  %v16417_v53 = vmax.f32 %v19310_v18, %v10528_v20  ;;  %v10536_v40 = vpop.permute.xlu0 %10535 }
 0x5ce   :  { %v6902_v16 = vsel %vm5858_vm4, %v19307_v59, -inf  ;;  %v6958_v58 = vsel %vm5858_vm4, %v19308_v7, -inf  ;;  %v16412_v44 = vmax.f32 %v6570_v11, %v6571_v15  ;;  %v6790_v31 = vsel %vm5858_vm4, %v19311_v2, -inf }
 0x5cf   :  { %19305 = vst [vmem:[#allocation13_spill] sm:$0xff] %v16398_v28  ;;  %19306 = vst [vmem:[#allocation128_spill] sm:$0xff] %v16401_v36  ;;  %v6627_v27 = vrot.slane %v6626_v55, 1  ;;  %v6903_v1 = vrot.slane %v6902_v16, 4  ;;  %v6959_v45 = vrot.slane %v6958_v58, 4  ;;  %v10809_v24 = vpack.i.bf16 %v16401_v36, %v16398_v28 }
 0x5d0   :  { %19309 = vst [vmem:[#allocation129_spill] sm:$0xff] %v16412_v44  ;;  %v19312_v21 = vcombine.high %v14963_v56, %v14963_v56  ;;  %v9449_v63 = vsel %vm8970_vm7, %v9448_v35, %v9447_v51  ;;  %v9450_v20 = vrot.slane %v8447_v47, 4  ;;  %v6791_v15 = vrot.slane %v6790_v31, 4 }
 0x5d1   :  { %v16427_v37 = vmax.f32 %v6626_v55, %v6627_v27  ;;  %v6904_v48 = vmax.f32 %v6902_v16, %v6903_v1  ;;  %v6960_v33 = vmax.f32 %v6958_v58, %v6959_v45  ;;  %10810 = vrot.lane.b32.xlu1 %v10809_v24, %s11154_s0  ;;  %v10542_v29 = vunpack.i.l.bf16 %v10541_v57  ;;  %v19314_v55 = vld [vmem:[#allocation175_spill] sm:$0xff] }
 0x5d2   :  { %v6846_v11 = vsel %vm5858_vm4, %v19312_v21, -inf  ;;  %v10538_v2 = vunpack.i.h.bf16 %v10536_v40  ;;  %v16435_v27 = vmax.f32 %v19314_v55, %v10532_v61  ;;  %v6792_v35 = vmax.f32 %v6790_v31, %v6791_v15 }
 0x5d3   :  { %19313 = vst [vmem:[#allocation156_spill] sm:$0xff] %v16427_v37  ;;  %v6847_v59 = vrot.slane %v6846_v11, 4  ;;  %v10804_v7 = vpack.i.bf16 %v16427_v37, %v16412_v44  ;;  %v6905_v18 = vrot.slane %v6904_v48, 2  ;;  %v6961_v56 = vrot.slane %v6960_v33, 2  ;;  %v19401_v37 = vld [vmem:[#allocation218_spill] sm:$0xff] }
 0x5d4   :  { %v9452_v47 = vrot.slane %v16417_v53, 3  ;;  %v8740_v1 = vmax.f32 %v15199_v17, %v10538_v2  ;;  %v9451_v45 = vsel %vm8973_vm8, %v9450_v20, %v9449_v63  ;;  %v6793_v24 = vrot.slane %v6792_v35, 2 }
 0x5d5   :  { %v6848_v51 = vmax.f32 %v6846_v11, %v6847_v59  ;;  %10805 = vrot.lane.b32.xlu0 %v10804_v7, %s11154_s0  ;;  %v6906_v16 = vmax.f32 %v6904_v48, %v6905_v18  ;;  %v6962_v58 = vmax.f32 %v6960_v33, %v6961_v56  ;;  %v10537_v28 = vunpack.i.l.bf16 %v10536_v40 }
 0x5d6   :  { %v10543_v44 = vunpack.i.h.bf16 %v10541_v57  ;;  %v8741_v61 = vmax.f32 %v15174_v9, %v10542_v29  ;;  %v6794_v31 = vmax.f32 %v6792_v35, %v6793_v24  ;;  %v19315_v15 = vcombine.high %v14981_v32, %v14981_v32  ;;  %v19334_v24 = vld [vmem:[#allocation195_spill] sm:$0xff] }
 0x5d7   :  { %v6849_v39 = vrot.slane %v6848_v51, 2  ;;  %v6907_v36 = vrot.slane %v6906_v16, 1  ;;  %v6963_v21 = vrot.slane %v6962_v58, 1  ;;  %v19316_v17 = vcombine.high %v14984_v22, %v14984_v22 }
 0x5d8   :  { %v7126_v53 = vsel %vm5858_vm4, %v19315_v15, -inf  ;;  %v9618_v33 = vrot.slane %v8740_v1, 7  ;;  %v6795_v20 = vrot.slane %v6794_v31, 1  ;;  %v19319_v22 = vcombine.high %v15006_v12, %v15006_v12 }
 0x5d9   :  { %v6850_v11 = vmax.f32 %v6848_v51, %v6849_v39  ;;  %v7182_v63 = vsel %vm5858_vm4, %v19316_v17, -inf  ;;  %v16450_v48 = vmax.f32 %v6906_v16, %v6907_v36  ;;  %v16452_v40 = vmax.f32 %v6962_v58, %v6963_v21  ;;  %v10546_v51 = vpop.permute.xlu0 %10545 }
 0x5da   :  { %v7127_v57 = vrot.slane %v7126_v53, 4  ;;  %v8739_v39 = vmax.f32 %v15189_v4, %v10537_v28  ;;  %v7183_v59 = vrot.slane %v7182_v63, 4  ;;  %v7014_v7 = vsel %vm5858_vm4, %v19319_v22, -inf  ;;  %v19324_v22 = vld [vmem:[#allocation69_spill] sm:$0xff] }
 0x5db   :  { %19317 = vst [vmem:[#allocation64_spill] sm:$0xff] %v16450_v48  ;;  %19318 = vst [vmem:[#allocation132_spill] sm:$0xff] %v16452_v40  ;;  %v6851_v9 = vrot.slane %v6850_v11, 1  ;;  %v10819_v32 = vpack.i.bf16 %v16452_v40, %v16450_v48  ;;  %v19320_v36 = vcombine.high %v15013_v6, %v15013_v6  ;;  %v16465_v56 = vmax.f32 %v6794_v31, %v6795_v20  ;;  %v19362_v40 = vld [vmem:[#allocation180_spill] sm:$0xff] }
 0x5dc   :  { %v7128_v29 = vmax.f32 %v7126_v53, %v7127_v57  ;;  %v7184_v4 = vmax.f32 %v7182_v63, %v7183_v59  ;;  %v7015_v28 = vrot.slane %v7014_v7, 4  ;;  %v8742_v21 = vmax.f32 %v15180_v8, %v10543_v44  ;;  %v10551_v53 = vpop.permute.xlu1 %10550 }
 0x5dd   :  { %v7070_v18 = vsel %vm5858_vm4, %v19320_v36, -inf  ;;  %19321 = vst [vmem:[#allocation58_spill] sm:$0xff] %v16465_v56  ;;  %v16467_v2 = vmax.f32 %v6850_v11, %v6851_v9  ;;  %10820 = vrot.lane.b32.xlu1 %v10819_v32, %s11154_s0  ;;  %v9620_v55 = vrot.slane %v8741_v61, 6  ;;  %v9619_v6 = vsel %vm8964_vm5, %v9618_v33, %v8739_v39 }
 0x5de   :  { %v7129_v35 = vrot.slane %v7128_v29, 2  ;;  %v7071_v12 = vrot.slane %v7070_v18, 4  ;;  %v7185_v58 = vrot.slane %v7184_v4, 2  ;;  %v7016_v1 = vmax.f32 %v7014_v7, %v7015_v28 }
 0x5df   :  { %19322 = vst [vmem:[#allocation133_spill] sm:$0xff] %v16467_v2  ;;  %v10814_v16 = vpack.i.bf16 %v16467_v2, %v16465_v56  ;;  %v16476_v31 = vsel %vm8976_vm9, %v9452_v47, %v9451_v45  ;;  %v10548_v61 = vunpack.i.h.bf16 %v10546_v51  ;;  %v10547_v17 = vunpack.i.l.bf16 %v10546_v51  ;;  %v19328_v51 = vld [vmem:[#allocation167_spill] sm:$0xff] }
 0x5e0   :  { %v7130_v11 = vmax.f32 %v7128_v29, %v7129_v35  ;;  %v7072_v15 = vmax.f32 %v7070_v18, %v7071_v12  ;;  %v7186_v8 = vmax.f32 %v7184_v4, %v7185_v58  ;;  %v7017_v44 = vrot.slane %v7016_v1, 2  ;;  %v19326_v4 = vld [vmem:[#allocation192_spill] sm:$0xff] }
 0x5e1   :  { %10815 = vrot.lane.b32.xlu0 %v10814_v16, %s11154_s0  ;;  %v9622_v63 = vrot.slane %v8742_v21, 5  ;;  %v9621_v57 = vsel %vm8967_vm6, %v9620_v55, %v9619_v6  ;;  %v10553_v59 = vunpack.i.h.bf16 %v10551_v53  ;;  %v10552_v32 = vunpack.i.l.bf16 %v10551_v53  ;;  %v19327_v21 = vld [vmem:[#allocation33_spill] sm:$0xff]  ;;  %v19329_v6 = vld [vmem:[#allocation168_spill] sm:$0xff]  ;;  %v10561_v53 = vpop.permute.xlu1 %10560 }
 0x5e2   :  { %v7131_v33 = vrot.slane %v7130_v11, 1  ;;  %v7073_v20 = vrot.slane %v7072_v15, 2  ;;  %v7187_v9 = vrot.slane %v7186_v8, 1  ;;  %v7018_v39 = vmax.f32 %v7016_v1, %v7017_v44 }
 0x5e3   :  { %v8743_v29 = vmax.f32 %v15229_v23, %v10547_v17  ;;  %v5430_v7 = vcombine.high %v19324_v22, %v19324_v22  ;;  %v16488_v28 = vmax.f32 %v19326_v4, %v10548_v61  ;;  %v5464_v55 = vcombine.high %v19327_v21, %v19327_v21 }
 0x5e4   :  { %v16480_v47 = vmax.f32 %v7130_v11, %v7131_v33  ;;  %v7074_v45 = vmax.f32 %v7072_v15, %v7073_v20  ;;  %v16485_v36 = vmax.f32 %v7186_v8, %v7187_v9  ;;  %v7019_v18 = vrot.slane %v7018_v39, 1  ;;  %v10556_v33 = vpop.permute.xlu0 %10555 }
 0x5e5   :  { %v7350_v12 = vsel %vm5858_vm4, %v5430_v7, -inf  ;;  %v5362_v16 = vcombine.high %v19328_v51, %v19328_v51  ;;  %v5396_v23 = vcombine.high %v19329_v6, %v19329_v6  ;;  %v9623_v11 = vsel %vm8970_vm7, %v9622_v63, %v9621_v57 }
 0x5e6   :  { %19323 = vst [vmem:[#allocation136_spill] sm:$0xff] %v16480_v47  ;;  %19325 = vst [vmem:[#allocation137_spill] sm:$0xff] %v16485_v36  ;;  %v7075_v35 = vrot.slane %v7074_v45, 1  ;;  %v10829_v58 = vpack.i.bf16 %v16485_v36, %v16480_v47  ;;  %v16499_v1 = vmax.f32 %v7018_v39, %v7019_v18  ;;  %v7351_v15 = vrot.slane %v7350_v12, 4 }
 0x5e7   :  { %v9624_v44 = vrot.slane %v8743_v29, 4  ;;  %v7406_v61 = vsel %vm5858_vm4, %v5464_v55, -inf  ;;  %v7238_v17 = vsel %vm5858_vm4, %v5362_v16, -inf  ;;  %v7294_v39 = vsel %vm5858_vm4, %v5396_v23, -inf  ;;  %v19332_v55 = vld [vmem:[#allocation189_spill] sm:$0xff] }
 0x5e8   :  { %19330 = vst [vmem:[#allocation160_spill] sm:$0xff] %v16499_v1  ;;  %v16502_v8 = vmax.f32 %v7074_v45, %v7075_v35  ;;  %10830 = vrot.lane.b32.xlu1 %v10829_v58, %s11154_s0  ;;  %v7352_v20 = vmax.f32 %v7350_v12, %v7351_v15  ;;  %v7407_v9 = vrot.slane %v7406_v61, 4  ;;  %v7239_v22 = vrot.slane %v7238_v17, 4  ;;  %v19333_v12 = vld [vmem:[#allocation186_spill] sm:$0xff] }
 0x5e9   :  { %v7295_v57 = vrot.slane %v7294_v39, 4  ;;  %v10563_v7 = vunpack.i.h.bf16 %v10561_v53  ;;  %v10562_v45 = vunpack.i.l.bf16 %v10561_v53  ;;  %v10558_v21 = vunpack.i.h.bf16 %v10556_v33 }
 0x5ea   :  { %19331 = vst [vmem:[#allocation159_spill] sm:$0xff] %v16502_v8  ;;  %v10824_v63 = vpack.i.bf16 %v16502_v8, %v16499_v1  ;;  %v7353_v18 = vrot.slane %v7352_v20, 2  ;;  %v7408_v29 = vmax.f32 %v7406_v61, %v7407_v9  ;;  %v7240_v4 = vmax.f32 %v7238_v17, %v7239_v22  ;;  %v19335_v9 = vld [vmem:[#allocation196_spill] sm:$0xff] }
 0x5eb   :  { %v16512_v35 = vmax.f32 %v19332_v55, %v10553_v59  ;;  %v16515_v51 = vmax.f32 %v19333_v12, %v10552_v32  ;;  %v9626_v16 = vrot.slane %v16488_v28, 3  ;;  %v7296_v6 = vmax.f32 %v7294_v39, %v7295_v57  ;;  %v19337_v28 = vld [vmem:[#allocation169_spill] sm:$0xff]  ;;  %v19338_v39 = vld [vmem:[#allocation72_spill] sm:$0xff] }
 0x5ec   :  { %10825 = vrot.lane.b32.xlu0 %v10824_v63, %s11154_s0  ;;  %v7354_v23 = vmax.f32 %v7352_v20, %v7353_v18  ;;  %v7409_v58 = vrot.slane %v7408_v29, 2  ;;  %v7241_v15 = vrot.slane %v7240_v4, 2  ;;  %v8749_v53 = vmax.f32 %v19334_v24, %v10562_v45  ;;  %v19336_v63 = vld [vmem:[#allocation200_spill] sm:$0xff]  ;;  %v19339_v24 = vld [vmem:[#allocation171_spill] sm:$0xff] }
 0x5ed   :  { %v9625_v61 = vsel %vm8973_vm8, %v9624_v44, %v9623_v11  ;;  %v7297_v17 = vrot.slane %v7296_v6, 2  ;;  %v16521_v22 = vmax.f32 %v19335_v9, %v10563_v7  ;;  %v8748_v59 = vmax.f32 %v19336_v63, %v10558_v21 }
 0x5ee   :  { %v7355_v55 = vrot.slane %v7354_v23, 1  ;;  %v7410_v36 = vmax.f32 %v7408_v29, %v7409_v58  ;;  %v7242_v32 = vmax.f32 %v7240_v4, %v7241_v15  ;;  %v10557_v12 = vunpack.i.l.bf16 %v10556_v33 }
 0x5ef   :  { %v7298_v47 = vmax.f32 %v7296_v6, %v7297_v17  ;;  %v5566_v20 = vcombine.high %v19337_v28, %v19337_v28  ;;  %v5600_v57 = vcombine.high %v19338_v39, %v19338_v39  ;;  %v5498_v11 = vcombine.high %v19339_v24, %v19339_v24  ;;  %v16538_v17 = vpop.permute.xlu1 %10570  ;;  %v19345_v28 = vld [vmem:[#allocation172_spill] sm:$0xff] }
 0x5f0   :  { %v16530_v44 = vmax.f32 %v7354_v23, %v7355_v55  ;;  %v7411_v7 = vrot.slane %v7410_v36, 1  ;;  %v7243_v45 = vrot.slane %v7242_v32, 1  ;;  %v9634_v18 = vrot.slane %v8749_v53, 6  ;;  %v19344_v23 = vld [vmem:[#allocation198_spill] sm:$0xff] }
 0x5f1   :  { %v7299_v21 = vrot.slane %v7298_v47, 1  ;;  %v9632_v9 = vrot.slane %v8748_v59, 7  ;;  %v7574_v29 = vsel %vm5858_vm4, %v5566_v20, -inf  ;;  %v7630_v33 = vsel %vm5858_vm4, %v5600_v57, -inf  ;;  %v10566_v57 = vpop.permute.xlu0 %10565 }
 0x5f2   :  { %19340 = vst [vmem:[#allocation15_spill] sm:$0xff] %v16530_v44  ;;  %v16534_v4 = vmax.f32 %v7410_v36, %v7411_v7  ;;  %v16536_v6 = vmax.f32 %v7242_v32, %v7243_v45  ;;  %v7575_v58 = vrot.slane %v7574_v29, 4  ;;  %v7631_v15 = vrot.slane %v7630_v33, 4 }
 0x5f3   :  { %v16540_v63 = vmax.f32 %v7298_v47, %v7299_v21  ;;  %v8747_v55 = vmax.f32 %v19344_v23, %v10557_v12  ;;  %v5532_v53 = vcombine.high %v19345_v28, %v19345_v28  ;;  %v7462_v59 = vsel %vm5858_vm4, %v5498_v11, -inf }
 0x5f4   :  { %19341 = vst [vmem:[#allocation164_spill] sm:$0xff] %v16534_v4  ;;  %19342 = vst [vmem:[#allocation163_spill] sm:$0xff] %v16536_v6  ;;  %v10839_v20 = vpack.i.bf16 %v16534_v4, %v16530_v44  ;;  %v7576_v36 = vmax.f32 %v7574_v29, %v7575_v58  ;;  %v7632_v39 = vmax.f32 %v7630_v33, %v7631_v15  ;;  %v7463_v32 = vrot.slane %v7462_v59, 4 }
 0x5f5   :  { %19343 = vst [vmem:[#allocation140_spill] sm:$0xff] %v16540_v63  ;;  %v10834_v24 = vpack.i.bf16 %v16540_v63, %v16536_v6  ;;  %v9633_v47 = vsel %vm8964_vm5, %v9632_v9, %v8747_v55  ;;  %v7518_v7 = vsel %vm5858_vm4, %v5532_v53, -inf  ;;  %v10573_v12 = vunpack.i.h.bf16 %v16538_v17 }
 0x5f6   :  { %10840 = vrot.lane.b32.xlu1 %v10839_v20, %s11154_s0  ;;  %v7577_v45 = vrot.slane %v7576_v36, 2  ;;  %v7633_v11 = vrot.slane %v7632_v39, 2  ;;  %v7464_v21 = vmax.f32 %v7462_v59, %v7463_v32  ;;  %v7519_v23 = vrot.slane %v7518_v7, 4  ;;  %v19346_v59 = vld [vmem:[#allocation204_spill] sm:$0xff] }
 0x5f7   :  { %v16557_v58 = vsel %vm8976_vm9, %v9626_v16, %v9625_v61  ;;  %10835 = vrot.lane.b32.xlu0 %v10834_v24, %s11154_s0  ;;  %v10567_v9 = vunpack.i.l.bf16 %v10566_v57  ;;  %v9636_v20 = vrot.slane %v16521_v22, 5  ;;  %v9635_v8 = vsel %vm8967_vm6, %v9634_v18, %v9633_v47  ;;  %v19348_v24 = vld [vmem:[#allocation206_spill] sm:$0xff] }
 0x5f8   :  { %v7578_v15 = vmax.f32 %v7576_v36, %v7577_v45  ;;  %v7634_v55 = vmax.f32 %v7632_v39, %v7633_v11  ;;  %v7465_v28 = vrot.slane %v7464_v21, 2  ;;  %v7520_v53 = vmax.f32 %v7518_v7, %v7519_v23  ;;  %v19349_v36 = vld [vmem:[#allocation174_spill] sm:$0xff]  ;;  %v19350_v7 = vld [vmem:[#allocation176_spill] sm:$0xff]  ;;  %v19354_v23 = vld [vmem:[#allocation177_spill] sm:$0xff] }
 0x5f9   :  { %v16563_v32 = vmax.f32 %v19346_v59, %v10573_v12  ;;  %v10568_v29 = vunpack.i.h.bf16 %v10566_v57  ;;  %v10572_v61 = vunpack.i.l.bf16 %v16538_v17  ;;  %v8751_v4 = vmax.f32 %v19348_v24, %v10567_v9  ;;  %v19353_v12 = vld [vmem:[#allocation207_spill] sm:$0xff]  ;;  %v16582_v59 = vpop.permute.xlu0 %10575 }
 0x5fa   :  { %v7579_v6 = vrot.slane %v7578_v15, 1  ;;  %v7635_v33 = vrot.slane %v7634_v55, 1  ;;  %v7466_v63 = vmax.f32 %v7464_v21, %v7465_v28  ;;  %v7521_v16 = vrot.slane %v7520_v53, 2  ;;  %v10581_v28 = vpop.permute.xlu1 %10580 }
 0x5fb   :  { %19347 = vst [vmem:[#allocation141_spill] sm:$0xff] %v16563_v32  ;;  %v4615_v39 = vcombine.high %v19349_v36, %v19349_v36  ;;  %v4649_v22 = vcombine.high %v19350_v7, %v19350_v7  ;;  %v16576_v11 = vmax.f32 %v19353_v12, %v10568_v29  ;;  %v4547_v9 = vcombine.high %v19354_v23, %v19354_v23 }
 0x5fc   :  { %v16571_v45 = vmax.f32 %v7578_v15, %v7579_v6  ;;  %v16573_v18 = vmax.f32 %v7634_v55, %v7635_v33  ;;  %v7467_v47 = vrot.slane %v7466_v63, 1  ;;  %v7522_v57 = vmax.f32 %v7520_v53, %v7521_v16  ;;  %v19356_v16 = vld [vmem:[#allocation179_spill] sm:$0xff] }
 0x5fd   :  { %v6020_v21 = vsel %vm5858_vm4, %v4615_v39, -inf  ;;  %v6076_v17 = vsel %vm5858_vm4, %v4649_v22, -inf  ;;  %v9637_v55 = vsel %vm8970_vm7, %v9636_v20, %v9635_v8  ;;  %v4581_v24 = vcombine.high %v19356_v16, %v19356_v16  ;;  %v16603_v1 = vpop.permute.xlu0 %10585 }
 0x5fe   :  { %19351 = vst [vmem:[#allocation45_spill] sm:$0xff] %v16571_v45  ;;  %19352 = vst [vmem:[#allocation144_spill] sm:$0xff] %v16573_v18  ;;  %v10849_v6 = vpack.i.bf16 %v16573_v18, %v16571_v45  ;;  %v16586_v33 = vmax.f32 %v7466_v63, %v7467_v47  ;;  %v7523_v15 = vrot.slane %v7522_v57, 1  ;;  %v6021_v29 = vrot.slane %v6020_v21, 4  ;;  %v16615_v56 = vpop.permute.xlu1 %10590 }
 0x5ff   :  { %v6077_v53 = vrot.slane %v6076_v17, 4  ;;  %v5908_v36 = vsel %vm5858_vm4, %v4547_v9, -inf  ;;  %v9638_v7 = vrot.slane %v8751_v4, 4  ;;  %v10583_v12 = vunpack.i.h.bf16 %v10581_v28  ;;  %v19360_v9 = vld [vmem:[#allocation212_spill] sm:$0xff] }
 0x600   :  { %19355 = vst [vmem:[#allocation145_spill] sm:$0xff] %v16586_v33  ;;  %10850 = vrot.lane.b32.xlu1 %v10849_v6, %s11154_s0  ;;  %v16593_v39 = vmax.f32 %v7522_v57, %v7523_v15  ;;  %v5909_v22 = vrot.slane %v5908_v36, 4  ;;  %v6022_v23 = vmax.f32 %v6020_v21, %v6021_v29  ;;  %v5964_v47 = vsel %vm5858_vm4, %v4581_v24, -inf  ;;  %v19358_v6 = vld [vmem:[#allocation203_spill] sm:$0xff] }
 0x601   :  { %v6078_v63 = vmax.f32 %v6076_v17, %v6077_v53  ;;  %v10578_v8 = vunpack.i.h.bf16 %v16582_v59  ;;  %v5965_v16 = vrot.slane %v5964_v47, 4  ;;  %v10582_v45 = vunpack.i.l.bf16 %v10581_v28  ;;  %v19359_v28 = vld [vmem:[#allocation209_spill] sm:$0xff] }
 0x602   :  { %19357 = vst [vmem:[#allocation67_spill] sm:$0xff] %v16593_v39  ;;  %v10844_v20 = vpack.i.bf16 %v16593_v39, %v16586_v33  ;;  %v5910_v18 = vmax.f32 %v5908_v36, %v5909_v22  ;;  %v16601_v57 = vmax.f32 %v19358_v6, %v10572_v61  ;;  %v6023_v4 = vrot.slane %v6022_v23, 2  ;;  %v19361_v39 = vld [vmem:[#allocation208_spill] sm:$0xff] }
 0x603   :  { %v6079_v15 = vrot.slane %v6078_v63, 2  ;;  %v9640_v21 = vrot.slane %v16576_v11, 3  ;;  %v9639_v17 = vsel %vm8973_vm8, %v9638_v7, %v9637_v55  ;;  %v5966_v53 = vmax.f32 %v5964_v47, %v5965_v16  ;;  %v19363_v7 = vld [vmem:[#allocation182_spill] sm:$0xff] }
 0x604   :  { %10845 = vrot.lane.b32.xlu0 %v10844_v20, %s11154_s0  ;;  %v5911_v29 = vrot.slane %v5910_v18, 2  ;;  %v6024_v24 = vmax.f32 %v6022_v23, %v6023_v4  ;;  %v16609_v22 = vmax.f32 %v19359_v28, %v10583_v12  ;;  %v8756_v61 = vmax.f32 %v19360_v9, %v10578_v8  ;;  %v16627_v4 = vpop.permute.xlu0 %10595 }
 0x605   :  { %v6080_v36 = vmax.f32 %v6078_v63, %v6079_v15  ;;  %v5967_v33 = vrot.slane %v5966_v53, 2  ;;  %v8757_v44 = vmax.f32 %v19361_v39, %v10582_v45  ;;  %v4751_v20 = vcombine.high %v19362_v40, %v19362_v40  ;;  %v19364_v63 = vld [vmem:[#allocation183_spill] sm:$0xff] }
 0x606   :  { %v5912_v6 = vmax.f32 %v5910_v18, %v5911_v29  ;;  %v6025_v11 = vrot.slane %v6024_v24, 1  ;;  %v4785_v23 = vcombine.high %v19363_v7, %v19363_v7  ;;  %v4683_v12 = vcombine.high %v19364_v63, %v19364_v63  ;;  %v19368_v7 = vld [vmem:[#allocation184_spill] sm:$0xff]  ;;  %v16641_v63 = vpop.permute.xlu1 %10600 }
 0x607   :  { %v6081_v55 = vrot.slane %v6080_v36, 1  ;;  %v5968_v16 = vmax.f32 %v5966_v53, %v5967_v33  ;;  %v10577_v18 = vunpack.i.l.bf16 %v16582_v59  ;;  %v6244_v8 = vsel %vm5858_vm4, %v4751_v20, -inf }
 0x608   :  { %v5913_v47 = vrot.slane %v5912_v6, 1  ;;  %v16623_v45 = vmax.f32 %v6024_v24, %v6025_v11  ;;  %v9646_v40 = vrot.slane %v8756_v61, 7  ;;  %v6245_v9 = vrot.slane %v6244_v8, 4  ;;  %v19370_v61 = vld [vmem:[#allocation43_spill] sm:$0xff] }
 0x609   :  { %v16625_v39 = vmax.f32 %v6080_v36, %v6081_v55  ;;  %v5969_v29 = vrot.slane %v5968_v16, 1  ;;  %v6300_v28 = vsel %vm5858_vm4, %v4785_v23, -inf  ;;  %v4717_v33 = vcombine.high %v19368_v7, %v19368_v7 }
 0x60a   :  { %19365 = vst [vmem:[#allocation147_spill] sm:$0xff] %v16623_v45  ;;  %v16629_v15 = vmax.f32 %v5912_v6, %v5913_v47  ;;  %v6246_v53 = vmax.f32 %v6244_v8, %v6245_v9  ;;  %v6301_v24 = vrot.slane %v6300_v28, 4  ;;  %v6132_v36 = vsel %vm5858_vm4, %v4683_v12, -inf }
 0x60b   :  { %19366 = vst [vmem:[#allocation149_spill] sm:$0xff] %v16625_v39  ;;  %v10859_v59 = vpack.i.bf16 %v16625_v39, %v16623_v45  ;;  %v16637_v20 = vmax.f32 %v5968_v16, %v5969_v29  ;;  %v8755_v11 = vmax.f32 %v19370_v61, %v10577_v18  ;;  %v6133_v55 = vrot.slane %v6132_v36, 4  ;;  %v16649_v39 = vpop.permute.xlu0 %10605  ;;  %v19372_v18 = vld [vmem:[#allocation185_spill] sm:$0xff] }
 0x60c   :  { %19367 = vst [vmem:[#allocation165_spill] sm:$0xff] %v16629_v15  ;;  %v6188_v6 = vsel %vm5858_vm4, %v4717_v33, -inf  ;;  %v9648_v23 = vrot.slane %v8757_v44, 6  ;;  %v6247_v47 = vrot.slane %v6246_v53, 2  ;;  %v6302_v7 = vmax.f32 %v6300_v28, %v6301_v24 }
 0x60d   :  { %19369 = vst [vmem:[#allocation66_spill] sm:$0xff] %v16637_v20  ;;  %10860 = vrot.lane.b32.xlu1 %v10859_v59, %s11154_s0  ;;  %v6189_v48 = vrot.slane %v6188_v6, 4  ;;  %v10854_v8 = vpack.i.bf16 %v16637_v20, %v16629_v15  ;;  %v9647_v12 = vsel %vm8964_vm5, %v9646_v40, %v8755_v11  ;;  %v6134_v16 = vmax.f32 %v6132_v36, %v6133_v55 }
 0x60e   :  { %v10593_v9 = vunpack.i.h.bf16 %v16615_v56  ;;  %v6248_v29 = vmax.f32 %v6246_v53, %v6247_v47  ;;  %v6303_v33 = vrot.slane %v6302_v7, 2  ;;  %v16652_v44 = vsel %vm8976_vm9, %v9640_v21, %v9639_v17  ;;  %v16663_v17 = vpop.permute.xlu1 %10610 }
 0x60f   :  { %v6190_v61 = vmax.f32 %v6188_v6, %v6189_v48  ;;  %10855 = vrot.lane.b32.xlu0 %v10854_v8, %s11154_s0  ;;  %v9650_v28 = vrot.slane %v16609_v22, 5  ;;  %v6135_v59 = vrot.slane %v6134_v16, 2  ;;  %v10587_v40 = vunpack.i.l.bf16 %v16603_v1 }
 0x610   :  { %v9649_v24 = vsel %vm8967_vm6, %v9648_v23, %v9647_v12  ;;  %v6249_v36 = vrot.slane %v6248_v29, 1  ;;  %v6304_v11 = vmax.f32 %v6302_v7, %v6303_v33  ;;  %v16659_v48 = vmax.f32 %v15401_v60, %v10593_v9  ;;  %v19374_v9 = vld [vmem:[#allocation188_spill] sm:$0xff] }
 0x611   :  { %v6191_v55 = vrot.slane %v6190_v61, 2  ;;  %v6136_v53 = vmax.f32 %v6134_v16, %v6135_v59  ;;  %v10592_v6 = vunpack.i.l.bf16 %v16615_v56  ;;  %v10588_v21 = vunpack.i.h.bf16 %v16603_v1  ;;  %v19373_v16 = vld [vmem:[#allocation187_spill] sm:$0xff]  ;;  %v19376_v59 = vld [vmem:[#allocation190_spill] sm:$0xff] }
 0x612   :  { %v16665_v47 = vmax.f32 %v6248_v29, %v6249_v36  ;;  %v6305_v22 = vrot.slane %v6304_v11, 1  ;;  %v4887_v23 = vcombine.high %v19372_v18, %v19372_v18  ;;  %v8759_v7 = vmax.f32 %v15416_v13, %v10587_v40  ;;  %v16679_v36 = vpop.permute.xlu0 %10615 }
 0x613   :  { %v6192_v8 = vmax.f32 %v6190_v61, %v6191_v55  ;;  %v6137_v12 = vrot.slane %v6136_v53, 1  ;;  %v4921_v60 = vcombine.high %v19373_v16, %v19373_v16  ;;  %v4819_v56 = vcombine.high %v19374_v9, %v19374_v9  ;;  %v19378_v55 = vld [vmem:[#allocation215_spill] sm:$0xff] }
 0x614   :  { %19371 = vst [vmem:[#allocation60_spill] sm:$0xff] %v16665_v47  ;;  %v16674_v33 = vmax.f32 %v6304_v11, %v6305_v22  ;;  %v6468_v29 = vsel %vm5858_vm4, %v4887_v23, -inf  ;;  %v4853_v61 = vcombine.high %v19376_v59, %v19376_v59  ;;  %v16684_v13 = vmax.f32 %v19378_v55, %v10588_v21 }
 0x615   :  { %v6193_v1 = vrot.slane %v6192_v8, 1  ;;  %v16681_v18 = vmax.f32 %v6136_v53, %v6137_v12  ;;  %v6469_v40 = vrot.slane %v6468_v29, 4  ;;  %v6524_v16 = vsel %vm5858_vm4, %v4921_v60, -inf  ;;  %v16694_v12 = vpop.permute.xlu1 %10620 }
 0x616   :  { %19375 = vst [vmem:[#allocation51_spill] sm:$0xff] %v16674_v33  ;;  %v10869_v11 = vpack.i.bf16 %v16674_v33, %v16665_v47  ;;  %v9651_v23 = vsel %vm8970_vm7, %v9650_v28, %v9649_v24  ;;  %v6525_v9 = vrot.slane %v6524_v16, 4  ;;  %v9652_v15 = vrot.slane %v8759_v7, 4 }
 0x617   :  { %19377 = vst [vmem:[#allocation70_spill] sm:$0xff] %v16681_v18  ;;  %v16689_v22 = vmax.f32 %v6192_v8, %v6193_v1  ;;  %v6470_v59 = vmax.f32 %v6468_v29, %v6469_v40  ;;  %v6356_v45 = vsel %vm5858_vm4, %v4819_v56, -inf  ;;  %v6412_v53 = vsel %vm5858_vm4, %v4853_v61, -inf  ;;  %v19380_v1 = vld [vmem:[#allocation57_spill] sm:$0xff] }
 0x618   :  { %10870 = vrot.lane.b32.xlu1 %v10869_v11, %s11154_s0  ;;  %v6526_v60 = vmax.f32 %v6524_v16, %v6525_v9  ;;  %v6357_v55 = vrot.slane %v6356_v45, 4  ;;  %v6413_v8 = vrot.slane %v6412_v53, 4  ;;  %v16700_v33 = vmax.f32 %v19380_v1, %v10592_v6  ;;  %v16706_v11 = vpop.permute.xlu0 %10625 }
 0x619   :  { %19379 = vst [vmem:[#allocation12_spill] sm:$0xff] %v16689_v22  ;;  %v10864_v21 = vpack.i.bf16 %v16689_v22, %v16681_v18  ;;  %v6471_v28 = vrot.slane %v6470_v59, 2  ;;  %v10603_v24 = vunpack.i.h.bf16 %v16641_v63  ;;  %v10598_v7 = vunpack.i.h.bf16 %v16627_v4 }
 0x61a   :  { %v6527_v29 = vrot.slane %v6526_v60, 2  ;;  %v6358_v61 = vmax.f32 %v6356_v45, %v6357_v55  ;;  %v6414_v40 = vmax.f32 %v6412_v53, %v6413_v8  ;;  %v9654_v16 = vrot.slane %v16684_v13, 3  ;;  %v19381_v53 = vld [vmem:[#allocation205_spill] sm:$0xff]  ;;  %v16718_v13 = vpop.permute.xlu1 %10630 }
 0x61b   :  { %10865 = vrot.lane.b32.xlu0 %v10864_v21, %s11154_s0  ;;  %v9653_v9 = vsel %vm8973_vm8, %v9652_v15, %v9651_v23  ;;  %v6472_v6 = vmax.f32 %v6470_v59, %v6471_v28  ;;  %v10602_v1 = vunpack.i.l.bf16 %v16641_v63  ;;  %v8764_v20 = vmax.f32 %v15486_v19, %v10598_v7  ;;  %v19382_v63 = vld [vmem:[#allocation217_spill] sm:$0xff]  ;;  %v19384_v28 = vld [vmem:[#allocation194_spill] sm:$0xff] }
 0x61c   :  { %v6528_v22 = vmax.f32 %v6526_v60, %v6527_v29  ;;  %v6359_v18 = vrot.slane %v6358_v61, 2  ;;  %v6415_v47 = vrot.slane %v6414_v40, 2  ;;  %v16713_v56 = vmax.f32 %v15466_v14, %v10603_v24  ;;  %v16730_v2 = vpop.permute.xlu0 %10635 }
 0x61d   :  { %v6473_v21 = vrot.slane %v6472_v6, 1  ;;  %v10597_v45 = vunpack.i.l.bf16 %v16627_v4  ;;  %v5125_v55 = vcombine.high %v19381_v53, %v19381_v53  ;;  %v5397_v60 = vcombine.high %v19382_v63, %v19382_v63 }
 0x61e   :  { %v6529_v15 = vrot.slane %v6528_v22, 1  ;;  %v6360_v23 = vmax.f32 %v6358_v61, %v6359_v18  ;;  %v6416_v59 = vmax.f32 %v6414_v40, %v6415_v47  ;;  %v8765_v19 = vmax.f32 %v15464_v41, %v10602_v1  ;;  %v19386_v61 = vld [vmem:[#allocation197_spill] sm:$0xff] }
 0x61f   :  { %v16722_v8 = vmax.f32 %v6472_v6, %v6473_v21  ;;  %v6860_v14 = vsel %vm5858_vm4, %v5125_v55, -inf  ;;  %v4955_v4 = vcombine.high %v19384_v28, %v19384_v28  ;;  %v9660_v53 = vrot.slane %v8764_v20, 7 }
 0x620   :  { %v16728_v24 = vmax.f32 %v6528_v22, %v6529_v15  ;;  %v6361_v7 = vrot.slane %v6360_v23, 1  ;;  %v6417_v29 = vrot.slane %v6416_v59, 1  ;;  %v6861_v47 = vrot.slane %v6860_v14, 4 }
 0x621   :  { %19383 = vst [vmem:[#allocation49_spill] sm:$0xff] %v16722_v8  ;;  %v7308_v18 = vsel %vm5858_vm4, %v5397_v60, -inf  ;;  %v4989_v40 = vcombine.high %v19386_v61, %v19386_v61  ;;  %v6580_v41 = vsel %vm5858_vm4, %v4955_v4, -inf  ;;  %v8763_v20 = vmax.f32 %v15484_v5, %v10597_v45  ;;  %v16744_v60 = vpop.permute.xlu1 %10640 }
 0x622   :  { %19385 = vst [vmem:[#allocation29_spill] sm:$0xff] %v16728_v24  ;;  %v10879_v6 = vpack.i.bf16 %v16728_v24, %v16722_v8  ;;  %v16738_v1 = vmax.f32 %v6360_v23, %v6361_v7  ;;  %v16740_v22 = vmax.f32 %v6416_v59, %v6417_v29  ;;  %v7309_v21 = vrot.slane %v7308_v18, 4 }
 0x623   :  { %v6862_v55 = vmax.f32 %v6860_v14, %v6861_v47  ;;  %v6581_v15 = vrot.slane %v6580_v41, 4  ;;  %v6636_v63 = vsel %vm5858_vm4, %v4989_v40, -inf  ;;  %v9662_v4 = vrot.slane %v8765_v19, 6 }
 0x624   :  { %19387 = vst [vmem:[#allocation21_spill] sm:$0xff] %v16738_v1  ;;  %19388 = vst [vmem:[#allocation154_spill] sm:$0xff] %v16740_v22  ;;  %10880 = vrot.lane.b32.xlu1 %v10879_v6, %s11154_s0  ;;  %v10874_v28 = vpack.i.bf16 %v16740_v22, %v16738_v1  ;;  %v7310_v61 = vmax.f32 %v7308_v18, %v7309_v21  ;;  %v6637_v23 = vrot.slane %v6636_v63, 4  ;;  %v10613_v5 = vunpack.i.h.bf16 %v16663_v17  ;;  %v16754_v6 = vpop.permute.xlu0 %10645 }
 0x625   :  { %v9661_v59 = vsel %vm8964_vm5, %v9660_v53, %v8763_v20  ;;  %v6863_v7 = vrot.slane %v6862_v55, 2  ;;  %v6582_v29 = vmax.f32 %v6580_v41, %v6581_v15  ;;  %v10607_v40 = vunpack.i.l.bf16 %v16649_v39  ;;  %v16766_v1 = vpop.permute.xlu1 %10650 }
 0x626   :  { %10875 = vrot.lane.b32.xlu0 %v10874_v28, %s11154_s0  ;;  %v7311_v14 = vrot.slane %v7310_v61, 2  ;;  %v6638_v47 = vmax.f32 %v6636_v63, %v6637_v23  ;;  %v16757_v19 = vsel %vm8976_vm9, %v9654_v16, %v9653_v9  ;;  %v9664_v18 = vrot.slane %v16713_v56, 5  ;;  %v19389_v56 = vld [vmem:[#allocation38_spill] sm:$0xff] }
 0x627   :  { %v6864_v53 = vmax.f32 %v6862_v55, %v6863_v7  ;;  %v6583_v21 = vrot.slane %v6582_v29, 2  ;;  %v9663_v41 = vsel %vm8967_vm6, %v9662_v4, %v9661_v59  ;;  %v10612_v45 = vunpack.i.l.bf16 %v16663_v17  ;;  %v19390_v7 = vld [vmem:[#allocation202_spill] sm:$0xff]  ;;  %v19392_v17 = vld [vmem:[#allocation201_spill] sm:$0xff] }
 0x628   :  { %v7312_v20 = vmax.f32 %v7310_v61, %v7311_v14  ;;  %v6639_v15 = vrot.slane %v6638_v47, 2  ;;  %v16763_v63 = vmax.f32 %v15521_v42, %v10613_v5  ;;  %v10608_v23 = vunpack.i.h.bf16 %v16649_v39  ;;  %v19393_v14 = vld [vmem:[#allocation199_spill] sm:$0xff] }
 0x629   :  { %v6865_v28 = vrot.slane %v6864_v53, 1  ;;  %v6584_v24 = vmax.f32 %v6582_v29, %v6583_v21  ;;  %v8767_v55 = vmax.f32 %v19389_v56, %v10607_v40  ;;  %v5091_v4 = vcombine.high %v19390_v7, %v19390_v7  ;;  %v19395_v21 = vld [vmem:[#allocation32_spill] sm:$0xff]  ;;  %v16783_v40 = vpop.permute.xlu0 %10655 }
 0x62a   :  { %v7313_v16 = vrot.slane %v7312_v20, 1  ;;  %v6640_v9 = vmax.f32 %v6638_v47, %v6639_v15  ;;  %v5193_v29 = vcombine.high %v19392_v17, %v19392_v17  ;;  %v5159_v42 = vcombine.high %v19393_v14, %v19393_v14 }
 0x62b   :  { %v16771_v61 = vmax.f32 %v6864_v53, %v6865_v28  ;;  %v6585_v59 = vrot.slane %v6584_v24, 1  ;;  %v16780_v8 = vmax.f32 %v19395_v21, %v10612_v45  ;;  %v6804_v47 = vsel %vm5858_vm4, %v5091_v4, -inf  ;;  %v19397_v53 = vld [vmem:[#allocation19_spill] sm:$0xff]  ;;  %v19399_v45 = vld [vmem:[#allocation213_spill] sm:$0xff] }
 0x62c   :  { %v16777_v5 = vmax.f32 %v7312_v20, %v7313_v16  ;;  %v6641_v39 = vrot.slane %v6640_v9, 1  ;;  %v16788_v28 = vmax.f32 %v19397_v53, %v10608_v23  ;;  %v6805_v56 = vrot.slane %v6804_v47, 4  ;;  %v16799_v23 = vpop.permute.xlu1 %10660 }
 0x62d   :  { %19391 = vst [vmem:[#allocation11_spill] sm:$0xff] %v16771_v61  ;;  %v16785_v15 = vmax.f32 %v6584_v24, %v6585_v59  ;;  %v6972_v7 = vsel %vm5858_vm4, %v5193_v29, -inf  ;;  %v5431_v14 = vcombine.high %v19399_v45, %v19399_v45  ;;  %v9665_v4 = vsel %vm8970_vm7, %v9664_v18, %v9663_v41 }
 0x62e   :  { %19394 = vst [vmem:[#allocation24_spill] sm:$0xff] %v16777_v5  ;;  %v10889_v20 = vpack.i.bf16 %v16777_v5, %v16771_v61  ;;  %v16793_v16 = vmax.f32 %v6640_v9, %v6641_v39  ;;  %v6973_v17 = vrot.slane %v6972_v7, 4  ;;  %v9666_v21 = vrot.slane %v8767_v55, 4 }
 0x62f   :  { %19396 = vst [vmem:[#allocation27_spill] sm:$0xff] %v16785_v15  ;;  %v6806_v24 = vmax.f32 %v6804_v47, %v6805_v56  ;;  %v6916_v59 = vsel %vm5858_vm4, %v5159_v42, -inf  ;;  %v7364_v39 = vsel %vm5858_vm4, %v5431_v14, -inf  ;;  %v10622_v47 = vunpack.i.l.bf16 %v16694_v12 }
 0x630   :  { %19398 = vst [vmem:[#allocation166_spill] sm:$0xff] %v16793_v16  ;;  %10890 = vrot.lane.b32.xlu1 %v10889_v20, %s11154_s0  ;;  %v10884_v29 = vpack.i.bf16 %v16793_v16, %v16785_v15  ;;  %v6974_v53 = vmax.f32 %v6972_v7, %v6973_v17  ;;  %v6917_v9 = vrot.slane %v6916_v59, 4  ;;  %v7365_v41 = vrot.slane %v7364_v39, 4  ;;  %v16810_v20 = vpop.permute.xlu0 %10665  ;;  %v16820_v3 = vpop.permute.xlu1 %10670 }
 0x631   :  { %v6807_v18 = vrot.slane %v6806_v24, 2  ;;  %v10618_v56 = vunpack.i.h.bf16 %v16679_v36  ;;  %v9667_v7 = vsel %vm8973_vm8, %v9666_v21, %v9665_v4  ;;  %v10623_v61 = vunpack.i.h.bf16 %v16694_v12 }
 0x632   :  { %10885 = vrot.lane.b32.xlu0 %v10884_v29, %s11154_s0  ;;  %v6975_v55 = vrot.slane %v6974_v53, 2  ;;  %v6918_v42 = vmax.f32 %v6916_v59, %v6917_v9  ;;  %v7366_v14 = vmax.f32 %v7364_v39, %v7365_v41  ;;  %v10617_v29 = vunpack.i.l.bf16 %v16679_v36  ;;  %v19400_v9 = vld [vmem:[#allocation39_spill] sm:$0xff] }
 0x633   :  { %v6808_v17 = vmax.f32 %v6806_v24, %v6807_v18  ;;  %v7940_v16 = vmax.f32 %v15574_v62, %v10618_v56  ;;  %v5227_v22 = vcombine.high %v19400_v9, %v19400_v9  ;;  %v5499_v30 = vcombine.high %v19401_v37, %v19401_v37  ;;  %v19402_v24 = vld [vmem:[#allocation216_spill] sm:$0xff]  ;;  %v19405_v37 = vld [vmem:[#allocation23_spill] sm:$0xff] }
 0x634   :  { %v6976_v15 = vmax.f32 %v6974_v53, %v6975_v55  ;;  %v6919_v45 = vrot.slane %v6918_v42, 2  ;;  %v7367_v59 = vrot.slane %v7366_v14, 2  ;;  %v7941_v12 = vmax.f32 %v15550_v38, %v10622_v47  ;;  %v16832_v50 = vpop.permute.xlu0 %10675  ;;  %v19406_v47 = vld [vmem:[#allocation214_spill] sm:$0xff] }
 0x635   :  { %v6809_v5 = vrot.slane %v6808_v17, 1  ;;  %v5363_v53 = vcombine.high %v19402_v24, %v19402_v24  ;;  %v7028_v39 = vsel %vm5858_vm4, %v5227_v22, -inf  ;;  %v7476_v18 = vsel %vm5858_vm4, %v5499_v30, -inf  ;;  %v16844_v24 = vpop.permute.xlu1 %10680 }
 0x636   :  { %v6977_v4 = vrot.slane %v6976_v15, 1  ;;  %v6920_v21 = vmax.f32 %v6918_v42, %v6919_v45  ;;  %v7368_v36 = vmax.f32 %v7366_v14, %v7367_v59  ;;  %v7939_v56 = vmax.f32 %v19405_v37, %v10617_v29 }
 0x637   :  { %v16825_v62 = vmax.f32 %v6808_v17, %v6809_v5  ;;  %v7029_v9 = vrot.slane %v7028_v39, 4  ;;  %v9074_v38 = vrot.slane %v7940_v16, 7  ;;  %v7477_v42 = vrot.slane %v7476_v18, 4  ;;  %v19409_v16 = vld [vmem:[#allocation22_spill] sm:$0xff] }
 0x638   :  { %v16829_v41 = vmax.f32 %v6976_v15, %v6977_v4  ;;  %v6921_v55 = vrot.slane %v6920_v21, 1  ;;  %v7369_v45 = vrot.slane %v7368_v36, 1  ;;  %v5465_v5 = vcombine.high %v19406_v47, %v19406_v47 }
 0x639   :  { %19403 = vst [vmem:[#allocation35_spill] sm:$0xff] %v16825_v62  ;;  %v7030_v30 = vmax.f32 %v7028_v39, %v7029_v9  ;;  %v7252_v15 = vsel %vm5858_vm4, %v5363_v53, -inf  ;;  %v7478_v29 = vmax.f32 %v7476_v18, %v7477_v42  ;;  %v7942_v37 = vmax.f32 %v19409_v16, %v10623_v61  ;;  %v16853_v42 = vpop.permute.xlu0 %10685  ;;  %v16865_v16 = vpop.permute.xlu1 %10690 }
 0x63a   :  { %19404 = vst [vmem:[#allocation157_spill] sm:$0xff] %v16829_v41  ;;  %v10899_v17 = vpack.i.bf16 %v16829_v41, %v16825_v62  ;;  %v16838_v22 = vmax.f32 %v6920_v21, %v6921_v55  ;;  %v16841_v14 = vmax.f32 %v7368_v36, %v7369_v45  ;;  %v7253_v59 = vrot.slane %v7252_v15, 4 }
 0x63b   :  { %v7420_v4 = vsel %vm5858_vm4, %v5465_v5, -inf  ;;  %v9076_v47 = vrot.slane %v7941_v12, 6  ;;  %v7031_v32 = vrot.slane %v7030_v30, 2  ;;  %v9075_v53 = vsel %vm8964_vm5, %v9074_v38, %v7939_v56 }
 0x63c   :  { %19407 = vst [vmem:[#allocation170_spill] sm:$0xff] %v16838_v22  ;;  %19408 = vst [vmem:[#allocation158_spill] sm:$0xff] %v16841_v14  ;;  %10900 = vrot.lane.b32.xlu1 %v10899_v17, %s11154_s0  ;;  %v7421_v41 = vrot.slane %v7420_v4, 4  ;;  %v10894_v21 = vpack.i.bf16 %v16841_v14, %v16838_v22  ;;  %v7479_v36 = vrot.slane %v7478_v29, 2  ;;  %v7254_v39 = vmax.f32 %v7252_v15, %v7253_v59  ;;  %v19420_v14 = vld [vmem:[#allocation53_spill] sm:$0xff] }
 0x63d   :  { %v7032_v55 = vmax.f32 %v7030_v30, %v7031_v32  ;;  %v10633_v45 = vunpack.i.h.bf16 %v16718_v13  ;;  %v19410_v61 = vrot.slane %v16788_v28, 3  ;;  %v10627_v56 = vunpack.i.l.bf16 %v16706_v11 }
 0x63e   :  { %v7422_v9 = vmax.f32 %v7420_v4, %v7421_v41  ;;  %10895 = vrot.lane.b32.xlu0 %v10894_v21, %s11154_s0  ;;  %v7480_v5 = vmax.f32 %v7478_v29, %v7479_v36  ;;  %v7255_v17 = vrot.slane %v7254_v39, 2  ;;  %v9078_v38 = vrot.slane %v7942_v37, 5  ;;  %v19412_v36 = vld [vmem:[#allocation191_spill] sm:$0xff] }
 0x63f   :  { %v16858_v12 = vsel %vm8976_vm9, %v19410_v61, %v9667_v7  ;;  %v9077_v15 = vsel %vm8967_vm6, %v9076_v47, %v9075_v53  ;;  %v7033_v32 = vrot.slane %v7032_v55, 1  ;;  %v10632_v4 = vunpack.i.l.bf16 %v16718_v13  ;;  %v19414_v61 = vld [vmem:[#allocation210_spill] sm:$0xff] }
 0x640   :  { %v7423_v41 = vrot.slane %v7422_v9, 2  ;;  %v7481_v30 = vrot.slane %v7480_v5, 1  ;;  %v7256_v59 = vmax.f32 %v7254_v39, %v7255_v17  ;;  %v10628_v28 = vunpack.i.h.bf16 %v16706_v11 }
 0x641   :  { %v16867_v7 = vmax.f32 %v7032_v55, %v7033_v32  ;;  %v16870_v29 = vmax.f32 %v15600_v0, %v10633_v45  ;;  %v5023_v37 = vcombine.high %v19412_v36, %v19412_v36  ;;  %v7943_v39 = vmax.f32 %v15619_v10, %v10627_v56  ;;  %v19415_v55 = vld [vmem:[#allocation18_spill] sm:$0xff]  ;;  %v19416_v32 = vld [vmem:[#allocation219_spill] sm:$0xff]  ;;  %v16884_v45 = vpop.permute.xlu0 %10695 }
 0x642   :  { %v7424_v21 = vmax.f32 %v7422_v9, %v7423_v41  ;;  %v16874_v47 = vmax.f32 %v7480_v5, %v7481_v30  ;;  %v7257_v53 = vrot.slane %v7256_v59, 1  ;;  %v5295_v13 = vcombine.high %v19414_v61, %v19414_v61 }
 0x643   :  { %19411 = vst [vmem:[#allocation52_spill] sm:$0xff] %v16867_v7  ;;  %v6692_v17 = vsel %vm5858_vm4, %v5023_v37, -inf  ;;  %v5261_v9 = vcombine.high %v19415_v55, %v19415_v55  ;;  %v5533_v0 = vcombine.high %v19416_v32, %v19416_v32  ;;  %v16891_v10 = vmax.f32 %v15622_v26, %v10628_v28 }
 0x644   :  { %19413 = vst [vmem:[#allocation46_spill] sm:$0xff] %v16874_v47  ;;  %v7425_v11 = vrot.slane %v7424_v21, 1  ;;  %v10909_v5 = vpack.i.bf16 %v16874_v47, %v16867_v7  ;;  %v16888_v41 = vmax.f32 %v7256_v59, %v7257_v53  ;;  %v6693_v56 = vrot.slane %v6692_v17, 4  ;;  %v16900_v53 = vpop.permute.xlu1 %10700 }
 0x645   :  { %v9079_v36 = vsel %vm8970_vm7, %v9078_v38, %v9077_v15  ;;  %v7140_v37 = vsel %vm5858_vm4, %v5295_v13, -inf  ;;  %v7084_v61 = vsel %vm5858_vm4, %v5261_v9, -inf  ;;  %v7532_v59 = vsel %vm5858_vm4, %v5533_v0, -inf }
 0x646   :  { %19417 = vst [vmem:[#allocation17_spill] sm:$0xff] %v16888_v41  ;;  %v16893_v30 = vmax.f32 %v7424_v21, %v7425_v11  ;;  %10910 = vrot.lane.b32.xlu1 %v10909_v5, %s11154_s0  ;;  %v6694_v55 = vmax.f32 %v6692_v17, %v6693_v56  ;;  %v7141_v32 = vrot.slane %v7140_v37, 4  ;;  %v7085_v18 = vrot.slane %v7084_v61, 4  ;;  %v19419_v56 = vld [vmem:[#allocation40_spill] sm:$0xff] }
 0x647   :  { %v9080_v28 = vrot.slane %v7943_v39, 4  ;;  %v7533_v21 = vrot.slane %v7532_v59, 4  ;;  %v10642_v38 = vunpack.i.l.bf16 %v16744_v60  ;;  %v10638_v9 = vunpack.i.h.bf16 %v16730_v2 }
 0x648   :  { %19418 = vst [vmem:[#allocation161_spill] sm:$0xff] %v16893_v30  ;;  %v10904_v26 = vpack.i.bf16 %v16893_v30, %v16888_v41  ;;  %v6695_v15 = vrot.slane %v6694_v55, 2  ;;  %v7142_v13 = vmax.f32 %v7140_v37, %v7141_v32  ;;  %v7086_v11 = vmax.f32 %v7084_v61, %v7085_v18  ;;  %v16912_v30 = vpop.permute.xlu0 %10705 }
 0x649   :  { %v16908_v17 = vmax.f32 %v15593_v46, %v10632_v4  ;;  %v9082_v0 = vrot.slane %v16891_v10, 3  ;;  %v7534_v5 = vmax.f32 %v7532_v59, %v7533_v21  ;;  %v7949_v47 = vmax.f32 %v19419_v56, %v10642_v38  ;;  %v16918_v21 = vpop.permute.xlu1 %10710  ;;  %v19421_v56 = vld [vmem:[#allocation211_spill] sm:$0xff] }
 0x64a   :  { %10905 = vrot.lane.b32.xlu0 %v10904_v26, %s11154_s0  ;;  %v6696_v39 = vmax.f32 %v6694_v55, %v6695_v15  ;;  %v7143_v41 = vrot.slane %v7142_v13, 2  ;;  %v7087_v7 = vrot.slane %v7086_v11, 2  ;;  %v7948_v37 = vmax.f32 %v19420_v14, %v10638_v9  ;;  %v19422_v15 = vld [vmem:[#allocation47_spill] sm:$0xff]  ;;  %v19423_v9 = vld [vmem:[#allocation193_spill] sm:$0xff] }
 0x64b   :  { %v9081_v18 = vsel %vm8973_vm8, %v9080_v28, %v9079_v36  ;;  %v7535_v61 = vrot.slane %v7534_v5, 2  ;;  %v10643_v32 = vunpack.i.h.bf16 %v16744_v60  ;;  %v10637_v46 = vunpack.i.l.bf16 %v16730_v2 }
 0x64c   :  { %v6697_v4 = vrot.slane %v6696_v39, 1  ;;  %v7144_v26 = vmax.f32 %v7142_v13, %v7143_v41  ;;  %v7088_v10 = vmax.f32 %v7086_v11, %v7087_v7  ;;  %v9088_v59 = vrot.slane %v7948_v37, 7  ;;  %v19425_v7 = vld [vmem:[#allocation14_spill] sm:$0xff]  ;;  %v16931_v37 = vpop.permute.xlu0 %10715 }
 0x64d   :  { %v7536_v38 = vmax.f32 %v7534_v5, %v7535_v61  ;;  %v5329_v55 = vcombine.high %v19421_v56, %v19421_v56  ;;  %v5601_v14 = vcombine.high %v19422_v15, %v19422_v15  ;;  %v5057_v36 = vcombine.high %v19423_v9, %v19423_v9 }
 0x64e   :  { %v16926_v28 = vmax.f32 %v6696_v39, %v6697_v4  ;;  %v7145_v60 = vrot.slane %v7144_v26, 1  ;;  %v7089_v2 = vrot.slane %v7088_v10, 1  ;;  %v9090_v62 = vrot.slane %v7949_v47, 6  ;;  %v19429_v47 = vld [vmem:[#allocation44_spill] sm:$0xff] }
 0x64f   :  { %v7537_v41 = vrot.slane %v7536_v38, 1  ;;  %v7947_v13 = vmax.f32 %v19425_v7, %v10637_v46  ;;  %v7196_v11 = vsel %vm5858_vm4, %v5329_v55, -inf  ;;  %v7644_v5 = vsel %vm5858_vm4, %v5601_v14, -inf }
 0x650   :  { %19424 = vst [vmem:[#allocation162_spill] sm:$0xff] %v16926_v28  ;;  %v16933_v61 = vmax.f32 %v7144_v26, %v7145_v60  ;;  %v16935_v56 = vmax.f32 %v7088_v10, %v7089_v2  ;;  %v7197_v15 = vrot.slane %v7196_v11, 4  ;;  %v7645_v9 = vrot.slane %v7644_v5, 4  ;;  %v16945_v60 = vpop.permute.xlu1 %10720  ;;  %v19430_v2 = vld [vmem:[#allocation71_spill] sm:$0xff] }
 0x651   :  { %v16937_v39 = vmax.f32 %v7536_v38, %v7537_v41  ;;  %v9089_v4 = vsel %vm8964_vm5, %v9088_v59, %v7947_v13  ;;  %v5567_v22 = vcombine.high %v19429_v47, %v19429_v47  ;;  %v6748_v46 = vsel %vm5858_vm4, %v5057_v36, -inf }
 0x652   :  { %19426 = vst [vmem:[#allocation61_spill] sm:$0xff] %v16933_v61  ;;  %19427 = vst [vmem:[#allocation173_spill] sm:$0xff] %v16935_v56  ;;  %v10919_v55 = vpack.i.bf16 %v16933_v61, %v16926_v28  ;;  %v7198_v14 = vmax.f32 %v7196_v11, %v7197_v15  ;;  %v7646_v7 = vmax.f32 %v7644_v5, %v7645_v9  ;;  %v6749_v26 = vrot.slane %v6748_v46, 4  ;;  %v19432_v11 = vld [vmem:[#allocation59_spill] sm:$0xff] }
 0x653   :  { %19428 = vst [vmem:[#allocation55_spill] sm:$0xff] %v16937_v39  ;;  %v10914_v38 = vpack.i.bf16 %v16937_v39, %v16935_v56  ;;  %v7950_v59 = vmax.f32 %v19430_v2, %v10643_v32  ;;  %v7588_v41 = vsel %vm5858_vm4, %v5567_v22, -inf  ;;  %v16955_v5 = vsel %vm8976_vm9, %v9082_v0, %v9081_v18  ;;  %v16960_v32 = vpop.permute.xlu0 %10725 }
 0x654   :  { %10920 = vrot.lane.b32.xlu1 %v10919_v55, %s11154_s0  ;;  %v7199_v36 = vrot.slane %v7198_v14, 2  ;;  %v7647_v13 = vrot.slane %v7646_v7, 2  ;;  %v6750_v47 = vmax.f32 %v6748_v46, %v6749_v26  ;;  %v7589_v28 = vrot.slane %v7588_v41, 4  ;;  %19431 = vst [vmem:[#allocation178_spill] sm:$0xff] %v16960_v32  ;;  %v19441_v32 = vld [vmem:[#allocation50_spill] sm:$0xff] }
 0x655   :  { %10915 = vrot.lane.b32.xlu0 %v10914_v38, %s11154_s0  ;;  %v9091_v15 = vsel %vm8967_vm6, %v9090_v62, %v9089_v4  ;;  %v10647_v9 = vunpack.i.l.bf16 %v16754_v6  ;;  %v9092_v39 = vrot.slane %v7950_v59, 5  ;;  %v10653_v46 = vunpack.i.h.bf16 %v16766_v1  ;;  %v16965_v62 = vpop.permute.xlu1 %10730 }
 0x656   :  { %v7200_v22 = vmax.f32 %v7198_v14, %v7199_v36  ;;  %v7648_v2 = vmax.f32 %v7646_v7, %v7647_v13  ;;  %v6751_v55 = vrot.slane %v6750_v47, 2  ;;  %v7590_v10 = vmax.f32 %v7588_v41, %v7589_v28  ;;  %19433 = vst [vmem:[#allocation181_spill] sm:$0xff] %v16965_v62  ;;  %v19436_v36 = vld [vmem:[#allocation82_spill] sm:$0xff] }
 0x657   :  { %v10652_v26 = vunpack.i.l.bf16 %v16766_v1  ;;  %v7951_v0 = vmax.f32 %v19432_v11, %v10647_v9  ;;  %v10648_v4 = vunpack.i.h.bf16 %v16754_v6  ;;  %v9093_v14 = vsel %vm8970_vm7, %v9092_v39, %v9091_v15  ;;  %v19438_v11 = vld [vmem:[#allocation31_spill] sm:$0xff]  ;;  %v19440_v6 = vld [vmem:[#allocation54_spill] sm:$0xff] }
 0x658   :  { %v7201_v18 = vrot.slane %v7200_v22, 1  ;;  %v7649_v61 = vrot.slane %v7648_v2, 1  ;;  %v6752_v38 = vmax.f32 %v6750_v47, %v6751_v55  ;;  %v7591_v56 = vrot.slane %v7590_v10, 2  ;;  %v19437_v47 = vld [vmem:[#allocation56_spill] sm:$0xff] }
 0x659   :  { %v9094_v7 = vrot.slane %v7951_v0, 4  ;;  %v16974_v13 = vmax.f32 %v19436_v36, %v10653_v46  ;;  %v19439_v9 = vrot.slane %v19438_v11, 2  ;;  %v19442_v39 = vrot.slane %v19441_v32, 2  ;;  %v19446_v46 = vld [vmem:[#allocation65_spill] sm:$0xff]  ;;  %v19448_v36 = vld [vmem:[#allocation83_spill] sm:$0xff] }
 0x65a   :  { %v16969_v28 = vmax.f32 %v7200_v22, %v7201_v18  ;;  %v16971_v59 = vmax.f32 %v7648_v2, %v7649_v61  ;;  %v6753_v41 = vrot.slane %v6752_v38, 1  ;;  %v7592_v1 = vmax.f32 %v7590_v10, %v7591_v56  ;;  %v16984_v22 = vpop.permute.xlu0 %10735  ;;  %v19445_v2 = vld [vmem:[#allocation220_spill] sm:$0xff]  ;;  %v19449_v11 = vld [vmem:[#allocation63_spill] sm:$0xff] }
 0x65b   :  { %v9009_v55 = vsel %vm8979_vm10, %v19439_v9, %v19437_v47  ;;  %v9023_v15 = vsel %vm8979_vm10, %v19442_v39, %v19440_v6  ;;  %19443 = vst [vmem:[#allocation192_spill] sm:$0xff] %v16984_v22  ;;  %v19447_v0 = vrot.slane %v19446_v46, 2  ;;  %v16995_v47 = vmax.f32 %v19448_v36, %v10652_v26  ;;  %v19450_v6 = vld [vmem:[#allocation62_spill] sm:$0xff]  ;;  %v19457_v26 = vld [vmem:[#allocation37_spill] sm:$0xff] }
 0x65c   :  { %19434 = vst [vmem:[#allocation175_spill] sm:$0xff] %v16969_v28  ;;  %19435 = vst [vmem:[#allocation69_spill] sm:$0xff] %v16971_v59  ;;  %v10929_v61 = vpack.i.bf16 %v16971_v59, %v16969_v28  ;;  %v16988_v56 = vmax.f32 %v6752_v38, %v6753_v41  ;;  %v7593_v10 = vrot.slane %v7592_v1, 1  ;;  %v7952_v32 = vmax.f32 %v19449_v11, %v10648_v4  ;;  %v19454_v41 = vld [vmem:[#allocation36_spill] sm:$0xff]  ;;  %v19471_v28 = vld [vmem:[#allocation26_spill] sm:$0xff] }
 0x65d   :  { %v8980_v18 = vsel %vm8979_vm10, %v19447_v0, %v19445_v2  ;;  %v9095_v9 = vsel %vm8973_vm8, %v9094_v7, %v9093_v14  ;;  %v19451_v39 = vrot.slane %v19450_v6, 1  ;;  %v19455_v46 = vrot.slane %v19454_v41, 1  ;;  %v19458_v0 = vld [vmem:[#allocation41_spill] sm:$0xff]  ;;  %v17017_v7 = vpop.permute.xlu1 %10740  ;;  %v19463_v41 = vld [vmem:[#allocation88_spill] sm:$0xff] }
 0x65e   :  { %19444 = vst [vmem:[#allocation33_spill] sm:$0xff] %v16988_v56  ;;  %10930 = vrot.lane.b32.xlu1 %v10929_v61, %s11154_s0  ;;  %v17005_v38 = vmax.f32 %v7592_v1, %v7593_v10  ;;  %v19459_v36 = vrot.slane %v19458_v0, 2  ;;  %v10663_v14 = vunpack.i.h.bf16 %v16799_v23  ;;  %19460 = vst [vmem:[#allocation186_spill] sm:$0xff] %v17017_v7  ;;  %v10662_v1 = vunpack.i.l.bf16 %v16799_v23  ;;  %v17047_v62 = vpop.permute.xlu0 %10745 }
 0x65f   :  { %v17002_v22 = vsel %vm8982_vm11, %v19451_v39, %v9023_v15  ;;  %v17010_v2 = vsel %vm8982_vm11, %v19455_v46, %v9009_v55  ;;  %v19461_v15 = vld [vmem:[#allocation68_spill] sm:$0xff]  ;;  %v10658_v10 = vunpack.i.h.bf16 %v16783_v40  ;;  %v10657_v55 = vunpack.i.l.bf16 %v16783_v40  ;;  %v19464_v46 = vld [vmem:[#allocation30_spill] sm:$0xff] }
 0x660   :  { %19452 = vst [vmem:[#allocation167_spill] sm:$0xff] %v17002_v22  ;;  %19453 = vst [vmem:[#allocation168_spill] sm:$0xff] %v17005_v38  ;;  %v8995_v4 = vsel %vm8979_vm10, %v19459_v36, %v19457_v26  ;;  %v19462_v11 = vrot.slane %v19461_v15, 1  ;;  %v10924_v6 = vpack.i.bf16 %v16988_v56, %v17005_v38  ;;  %v10939_v39 = vpack.i.bf16 %v17002_v22, %v17010_v2  ;;  %v19466_v36 = vld [vmem:[#allocation98_spill] sm:$0xff]  ;;  %v19472_v56 = vld [vmem:[#allocation85_spill] sm:$0xff] }
 0x661   :  { %19456 = vst [vmem:[#allocation189_spill] sm:$0xff] %v17010_v2  ;;  %v19465_v26 = vrot.slane %v19464_v46, 2  ;;  %v7958_v38 = vmax.f32 %v19471_v28, %v10663_v14  ;;  %v7957_v7 = vmax.f32 %v19472_v56, %v10662_v1  ;;  %v19473_v2 = vld [vmem:[#allocation16_spill] sm:$0xff]  ;;  %v19474_v46 = vld [vmem:[#allocation89_spill] sm:$0xff] }
 0x662   :  { %v17022_v61 = vsel %vm8982_vm11, %v19462_v11, %v8980_v18  ;;  %v19467_v18 = vld [vmem:[#allocation126_spill] sm:$0xff]  ;;  %v19469_v11 = vld [vmem:[#allocation73_spill] sm:$0xff]  ;;  %v7956_v22 = vmax.f32 %v19473_v2, %v10658_v10  ;;  %10925 = vrot.lane.b32.xlu0 %v10924_v6, %s11154_s0  ;;  %10940 = vrot.lane.b32.xlu1 %v10939_v39, %s11154_s0  ;;  %v19480_v10 = vld [vmem:[#allocation112_spill] sm:$0xff] }
 0x663   :  { %v9225_v0 = vsel %vm8979_vm10, %v19465_v26, %v19463_v41  ;;  %v19468_v15 = vrot.slane %v19467_v18, 2  ;;  %v19470_v59 = vrot.slane %v19469_v11, 1  ;;  %v9096_v41 = vrot.slane %v7952_v32, 3  ;;  %v19478_v28 = vld [vmem:[#allocation77_spill] sm:$0xff]  ;;  %v19482_v6 = vld [vmem:[#allocation75_spill] sm:$0xff]  ;;  %v19483_v39 = vld [vmem:[#allocation94_spill] sm:$0xff] }
 0x664   :  { %v7955_v26 = vmax.f32 %v19474_v46, %v10657_v55  ;;  %v19479_v14 = vrot.slane %v19478_v28, 2  ;;  %v9104_v2 = vrot.slane %v7957_v7, 6  ;;  %v9102_v1 = vrot.slane %v7956_v22, 7  ;;  %v19485_v7 = vld [vmem:[#allocation96_spill] sm:$0xff] }
 0x665   :  { %v9239_v23 = vsel %vm8979_vm10, %v19468_v15, %v19466_v36  ;;  %v17042_v40 = vsel %vm8982_vm11, %v19470_v59, %v8995_v4  ;;  %v19475_v36 = vld [vmem:[#allocation90_spill] sm:$0xff]  ;;  %v19477_v4 = vld [vmem:[#allocation84_spill] sm:$0xff]  ;;  %v19481_v15 = vrot.slane %v19480_v10, 1  ;;  %v19484_v55 = vrot.slane %v19483_v39, 2 }
 0x666   :  { %v19476_v18 = vrot.slane %v19475_v36, 1  ;;  %v9211_v56 = vsel %vm8979_vm10, %v19479_v14, %v19477_v4  ;;  %v10934_v46 = vpack.i.bf16 %v17042_v40, %v17022_v61  ;;  %v19486_v22 = vrot.slane %v19485_v7, 1 }
 0x667   :  { %v17064_v32 = vsel %vm8982_vm11, %v19481_v15, %v9225_v0  ;;  %v9197_v11 = vsel %vm8979_vm10, %v19484_v55, %v19482_v6  ;;  %v17080_v0 = vpop.permute.xlu1 %10750  ;;  %v9103_v4 = vsel %vm8964_vm5, %v9102_v1, %v7955_v26  ;;  %v10673_v28 = vunpack.i.h.bf16 %v16820_v3 }
 0x668   :  { %v17055_v59 = vsel %vm8982_vm11, %v19476_v18, %v9239_v23  ;;  %v9100_v23 = vrot.slane %v16974_v13, 1  ;;  %v17078_v18 = vsel %vm8982_vm11, %v19486_v22, %v9211_v56  ;;  %v10668_v14 = vunpack.i.h.bf16 %v16810_v20  ;;  %10935 = vrot.lane.b32.xlu0 %v10934_v46, %s11154_s0  ;;  %v19487_v56 = vld [vmem:[#allocation99_spill] sm:$0xff]  ;;  %v17105_v46 = vpop.permute.xlu0 %10755 }
 0x669   :  { %v10949_v36 = vpack.i.bf16 %v17055_v59, %v17064_v32  ;;  %v10667_v10 = vunpack.i.l.bf16 %v16810_v20  ;;  %v9098_v15 = vrot.slane %v16995_v47, 2  ;;  %v17088_v6 = vsel %vm8976_vm9, %v9096_v41, %v9095_v9 }
 0x66a   :  { %v19488_v39 = vrot.slane %v19487_v56, 1  ;;  %v19489_v26 = vrot.slane %v16343_v43, 2  ;;  %v9106_v20 = vrot.slane %v7958_v38, 5  ;;  %v9105_v7 = vsel %vm8967_vm6, %v9104_v2, %v9103_v4  ;;  %v19492_v43 = vld [vmem:[#allocation103_spill] sm:$0xff]  ;;  %v19494_v4 = vld [vmem:[#allocation25_spill] sm:$0xff] }
 0x66b   :  { %10950 = vrot.lane.b32.xlu1 %v10949_v36, %s11154_s0  ;;  %v10672_v41 = vunpack.i.l.bf16 %v16820_v3  ;;  %v19490_v36 = vld [vmem:[#allocation20_spill] sm:$0xff]  ;;  %v10683_v2 = vunpack.i.h.bf16 %v16844_v24  ;;  %v19495_v3 = vld [vmem:[#allocation87_spill] sm:$0xff]  ;;  %v10703_v47 = vunpack.i.h.bf16 %v16900_v53 }
 0x66c   :  { %v17095_v55 = vsel %vm8982_vm11, %v19488_v39, %v9197_v11  ;;  %v9441_v1 = vsel %vm8979_vm10, %v19489_v26, %v16390_v52  ;;  %v7959_v22 = vmax.f32 %v19490_v36, %v10667_v10  ;;  %v19491_v11 = vrot.slane %v16435_v27, 2 }
 0x66d   :  { %v10944_v9 = vpack.i.bf16 %v17078_v18, %v17095_v55  ;;  %v19493_v52 = vrot.slane %v19492_v43, 2  ;;  %v17118_v39 = vmax.f32 %v19494_v4, %v10673_v28  ;;  %v17121_v26 = vmax.f32 %v19495_v3, %v10668_v14  ;;  %v19498_v14 = vld [vmem:[#allocation146_spill] sm:$0xff]  ;;  %v17142_v43 = vpop.permute.xlu1 %10760 }
 0x66e   :  { %v9455_v56 = vsel %vm8979_vm10, %v19491_v11, %v16476_v31  ;;  %v19496_v10 = vrot.slane %v16302_v25, 1  ;;  %v19497_v27 = vrot.slane %v16396_v34, 1  ;;  %v19499_v11 = vrot.slane %v19498_v14, 2  ;;  %v19500_v34 = vld [vmem:[#allocation101_spill] sm:$0xff]  ;;  %v19505_v14 = vld [vmem:[#allocation34_spill] sm:$0xff] }
 0x66f   :  { %v9413_v38 = vsel %vm8979_vm10, %v19493_v52, %v16206_v49  ;;  %10945 = vrot.lane.b32.xlu0 %v10944_v9, %s11154_s0  ;;  %v9107_v49 = vsel %vm8970_vm7, %v9106_v20, %v9105_v7  ;;  %v19501_v52 = vrot.slane %v19500_v34, 1  ;;  %v19502_v9 = vld [vmem:[#allocation142_spill] sm:$0xff]  ;;  %v10678_v7 = vunpack.i.h.bf16 %v16832_v50 }
 0x670   :  { %v17126_v36 = vsel %vm8982_vm11, %v19496_v10, %v9441_v1  ;;  %v17131_v31 = vsel %vm8982_vm11, %v19497_v27, %v9455_v56  ;;  %v9427_v25 = vsel %vm8979_vm10, %v19499_v11, %v16340_v54  ;;  %v10682_v1 = vunpack.i.l.bf16 %v16844_v24  ;;  %v19504_v24 = vld [vmem:[#allocation28_spill] sm:$0xff]  ;;  %v19506_v11 = vld [vmem:[#allocation74_spill] sm:$0xff] }
 0x671   :  { %v10959_v28 = vpack.i.bf16 %v17131_v31, %v17126_v36  ;;  %v17147_v56 = vsel %vm8982_vm11, %v19501_v52, %v9413_v38  ;;  %v19503_v4 = vrot.slane %v19502_v9, 1  ;;  %v10677_v3 = vunpack.i.l.bf16 %v16832_v50  ;;  %v19507_v52 = vld [vmem:[#allocation97_spill] sm:$0xff] }
 0x672   :  { %v9108_v10 = vrot.slane %v7959_v22, 4  ;;  %v7966_v27 = vmax.f32 %v19504_v24, %v10683_v2  ;;  %v7965_v38 = vmax.f32 %v19505_v14, %v10682_v1  ;;  %v7964_v34 = vmax.f32 %v19506_v11, %v10678_v7 }
 0x673   :  { %v17152_v20 = vsel %vm8982_vm11, %v19503_v4, %v9427_v25  ;;  %10960 = vrot.lane.b32.xlu1 %v10959_v28, %s11154_s0  ;;  %v7963_v9 = vmax.f32 %v19507_v52, %v10677_v3  ;;  %v19508_v25 = vrot.slane %v16700_v33, 2  ;;  %v19509_v50 = vrot.slane %v16780_v8, 2  ;;  %v17171_v28 = vpop.permute.xlu0 %10765 }
 0x674   :  { %v10954_v54 = vpack.i.bf16 %v17152_v20, %v17147_v56  ;;  %v9118_v2 = vrot.slane %v7965_v38, 6  ;;  %v19510_v1 = vrot.slane %v16659_v48, 1  ;;  %v19511_v3 = vrot.slane %v16763_v63, 1  ;;  %v19515_v38 = vld [vmem:[#allocation141_spill] sm:$0xff] }
 0x675   :  { %v9657_v4 = vsel %vm8979_vm10, %v19508_v25, %v16757_v19  ;;  %v9671_v22 = vsel %vm8979_vm10, %v19509_v50, %v16858_v12  ;;  %v19512_v8 = vrot.slane %v16515_v51, 2  ;;  %v9116_v12 = vrot.slane %v7964_v34, 7 }
 0x676   :  { %10955 = vrot.lane.b32.xlu0 %v10954_v54, %s11154_s0  ;;  %v17177_v7 = vsel %vm8982_vm11, %v19510_v1, %v9657_v4  ;;  %v17182_v33 = vsel %vm8982_vm11, %v19511_v3, %v9671_v22  ;;  %v19513_v24 = vrot.slane %v16512_v35, 1  ;;  %v19514_v63 = vrot.slane %v16601_v57, 2  ;;  %v17207_v35 = vpop.permute.xlu1 %10770  ;;  %v19518_v22 = vld [vmem:[#allocation91_spill] sm:$0xff] }
 0x677   :  { %v9629_v19 = vsel %vm8979_vm10, %v19512_v8, %v16557_v58  ;;  %v10969_v54 = vpack.i.bf16 %v17182_v33, %v17177_v7  ;;  %v19516_v11 = vrot.slane %v19515_v38, 1  ;;  %v10693_v58 = vunpack.i.h.bf16 %v16865_v16 }
 0x678   :  { %v17193_v48 = vsel %vm8982_vm11, %v19513_v24, %v9629_v19  ;;  %v9643_v14 = vsel %vm8979_vm10, %v19514_v63, %v16652_v44  ;;  %v10692_v34 = vunpack.i.l.bf16 %v16865_v16  ;;  %v10688_v52 = vunpack.i.h.bf16 %v16853_v42  ;;  %v19519_v19 = vld [vmem:[#allocation76_spill] sm:$0xff]  ;;  %v19522_v24 = vld [vmem:[#allocation78_spill] sm:$0xff] }
 0x679   :  { %v17202_v51 = vsel %vm8982_vm11, %v19516_v11, %v9643_v14  ;;  %v9117_v25 = vsel %vm8964_vm5, %v9116_v12, %v7963_v9  ;;  %10970 = vrot.lane.b32.xlu1 %v10969_v54, %s11154_s0  ;;  %v10687_v44 = vunpack.i.l.bf16 %v16853_v42  ;;  %v19517_v4 = vrot.slane %v16908_v17, 2  ;;  %v19520_v54 = vld [vmem:[#allocation107_spill] sm:$0xff] }
 0x67a   :  { %v10964_v57 = vpack.i.bf16 %v17202_v51, %v17193_v48  ;;  %v7961_v16 = vmax.f32 %v19518_v22, %v10672_v41  ;;  %v9110_v1 = vrot.slane %v17121_v26, 3  ;;  %v9109_v3 = vsel %vm8973_vm8, %v9108_v10, %v9107_v49  ;;  %v19521_v41 = vld [vmem:[#allocation106_spill] sm:$0xff] }
 0x67b   :  { %v9085_v50 = vsel %vm8979_vm10, %v19517_v4, %v16955_v5  ;;  %v9120_v8 = vrot.slane %v7966_v27, 5  ;;  %v9119_v9 = vsel %vm8967_vm6, %v9118_v2, %v9117_v25  ;;  %v7970_v12 = vmax.f32 %v19519_v19, %v10693_v58  ;;  %v17229_v5 = vpop.permute.xlu0 %10775  ;;  %v17245_v58 = vpop.permute.xlu1 %10780 }
 0x67c   :  { %10965 = vrot.lane.b32.xlu0 %v10964_v57, %s11154_s0  ;;  %v7967_v42 = vmax.f32 %v19520_v54, %v10687_v44  ;;  %v9099_v17 = vsel %vm8979_vm10, %v9098_v15, %v17088_v6  ;;  %v7969_v26 = vmax.f32 %v19521_v41, %v10692_v34  ;;  %v7968_v49 = vmax.f32 %v19522_v24, %v10688_v52  ;;  %v19524_v52 = vld [vmem:[#allocation79_spill] sm:$0xff] }
 0x67d   :  { %v19523_v10 = vrot.slane %v16870_v29, 1  ;;  %v9101_v2 = vsel %vm8982_vm11, %v9100_v23, %v9099_v17  ;;  %v10702_v15 = vunpack.i.l.bf16 %v16900_v53  ;;  %v9114_v6 = vrot.slane %v17118_v39, 1  ;;  %v19525_v44 = vld [vmem:[#allocation115_spill] sm:$0xff] }
 0x67e   :  { %v9122_v63 = vrot.slane %v7967_v42, 4  ;;  %v9121_v38 = vsel %vm8970_vm7, %v9120_v8, %v9119_v9  ;;  %v10698_v11 = vunpack.i.h.bf16 %v16884_v45  ;;  %v10697_v29 = vunpack.i.l.bf16 %v16884_v45  ;;  %v19527_v45 = vld [vmem:[#allocation102_spill] sm:$0xff] }
 0x67f   :  { %v9087_v27 = vsel %vm8982_vm11, %v19523_v10, %v9085_v50  ;;  %v9112_v34 = vrot.slane %v7961_v16, 2  ;;  %v9111_v13 = vsel %vm8976_vm9, %v9110_v1, %v9109_v3  ;;  %v9128_v23 = vrot.slane %v7970_v12, 1  ;;  %v19526_v50 = vld [vmem:[#allocation104_spill] sm:$0xff]  ;;  %v17254_v19 = vpop.permute.xlu0 %10785 }
 0x680   :  { %v10974_v14 = vpack.i.bf16 %v9101_v2, %v9087_v27  ;;  %v8261_v25 = vmax.f32 %v19524_v52, %v10702_v15  ;;  %v9126_v57 = vrot.slane %v7969_v26, 2  ;;  %v9124_v53 = vrot.slane %v7968_v49, 3  ;;  %v19528_v49 = vld [vmem:[#allocation81_spill] sm:$0xff]  ;;  %v17268_v27 = vpop.permute.xlu1 %10790 }
 0x681   :  { %v8260_v39 = vmax.f32 %v19525_v44, %v10698_v11  ;;  %v9123_v4 = vsel %vm8973_vm8, %v9122_v63, %v9121_v38  ;;  %v8262_v22 = vmax.f32 %v19526_v50, %v10703_v47  ;;  %v8259_v9 = vmax.f32 %v19527_v45, %v10697_v29  ;;  %v19532_v29 = vld [vmem:[#allocation86_spill] sm:$0xff] }
 0x682   :  { %10975 = vrot.lane.b32.xlu0 %v10974_v14, %s11147_s18  ;;  %v9292_v8 = vrot.slane %v8261_v25, 6  ;;  %v10708_v1 = vunpack.i.h.bf16 %v16912_v30  ;;  %v10707_v3 = vunpack.i.l.bf16 %v16912_v30  ;;  %v10723_v12 = vunpack.i.h.bf16 %v16945_v60  ;;  %v19533_v25 = vld [vmem:[#allocation42_spill] sm:$0xff] }
 0x683   :  { %v9290_v16 = vrot.slane %v8260_v39, 7  ;;  %v10713_v54 = vunpack.i.h.bf16 %v16918_v21  ;;  %v10712_v42 = vunpack.i.l.bf16 %v16918_v21  ;;  %v10722_v17 = vunpack.i.l.bf16 %v16945_v60  ;;  %v19530_v21 = vld [vmem:[#allocation118_spill] sm:$0xff]  ;;  %v17278_v50 = vpop.permute.xlu0 %10795 }
 0x684   :  { %v10718_v41 = vunpack.i.h.bf16 %v16931_v37  ;;  %v9125_v26 = vsel %vm8976_vm9, %v9124_v53, %v9123_v4  ;;  %v8263_v10 = vmax.f32 %v19528_v49, %v10707_v3  ;;  %v10717_v30 = vunpack.i.l.bf16 %v16931_v37  ;;  %v19531_v60 = vld [vmem:[#allocation114_spill] sm:$0xff]  ;;  %v17292_v49 = vpop.permute.xlu1 %10800 }
 0x685   :  { %v9291_v24 = vsel %vm8964_vm5, %v9290_v16, %v8259_v9  ;;  %v9294_v2 = vrot.slane %v8262_v22, 5  ;;  %v8264_v38 = vmax.f32 %v19531_v60, %v10708_v1  ;;  %v8270_v52 = vmax.f32 %v19532_v29, %v10723_v12  ;;  %v19534_v9 = vld [vmem:[#allocation80_spill] sm:$0xff]  ;;  %v19535_v1 = vld [vmem:[#allocation111_spill] sm:$0xff] }
 0x686   :  { %10985 = vrot.lane.b32.xlu0 %v10974_v14, %s11151_s26  ;;  %v9293_v63 = vsel %vm8967_vm6, %v9292_v8, %v9291_v24  ;;  %v19529_v14 = vld [vmem:[#allocation119_spill] sm:$0xff]  ;;  %v8268_v15 = vmax.f32 %v19530_v21, %v10718_v41  ;;  %v9296_v11 = vrot.slane %v8263_v10, 4  ;;  %v8267_v53 = vmax.f32 %v19533_v25, %v10717_v30  ;;  %v19537_v41 = vld [vmem:[#allocation178_spill] sm:$0xff]  ;;  %v19541_v60 = vld [vmem:[#allocation192_spill] sm:$0xff] }
 0x687   :  { %v8269_v47 = vmax.f32 %v19529_v14, %v10722_v17  ;;  %v9113_v37 = vsel %vm8979_vm10, %v9112_v34, %v9111_v13  ;;  %v9127_v4 = vsel %vm8979_vm10, %v9126_v57, %v9125_v26  ;;  %v9295_v22 = vsel %vm8970_vm7, %v9294_v2, %v9293_v63  ;;  %v19536_v13 = vld [vmem:[#allocation181_spill] sm:$0xff]  ;;  %v19538_v10 = vld [vmem:[#allocation127_spill] sm:$0xff]  ;;  %v19540_v14 = vld [vmem:[#allocation186_spill] sm:$0xff] }
 0x688   :  { %v9304_v39 = vrot.slane %v8268_v15, 7  ;;  %v9115_v8 = vsel %vm8982_vm11, %v9114_v6, %v9113_v37  ;;  %v9129_v45 = vsel %vm8982_vm11, %v9128_v23, %v9127_v4  ;;  %v17284_v16 = vmax.f32 %v19534_v9, %v10713_v54  ;;  %v19539_v2 = vld [vmem:[#allocation131_spill] sm:$0xff] }
 0x689   :  { %v9306_v44 = vrot.slane %v8269_v47, 6  ;;  %v8265_v3 = vmax.f32 %v19535_v1, %v10712_v42  ;;  %v10979_v17 = vpack.i.bf16 %v9129_v45, %v9115_v8  ;;  %v10733_v57 = vunpack.i.h.bf16 %v19536_v13  ;;  %v19544_v8 = vld [vmem:[#allocation95_spill] sm:$0xff]  ;;  %v19545_v1 = vld [vmem:[#allocation122_spill] sm:$0xff] }
 0x68a   :  { %v9305_v12 = vsel %vm8964_vm5, %v9304_v39, %v8267_v53  ;;  %v10728_v26 = vunpack.i.h.bf16 %v19537_v41  ;;  %v10727_v24 = vunpack.i.l.bf16 %v19537_v41  ;;  %v9298_v6 = vrot.slane %v8264_v38, 3 }
 0x68b   :  { %v9307_v34 = vsel %vm8967_vm6, %v9306_v44, %v9305_v12  ;;  %v9297_v23 = vsel %vm8973_vm8, %v9296_v11, %v9295_v22  ;;  %v9308_v54 = vrot.slane %v8270_v52, 5  ;;  %10980 = vrot.lane.b32.xlu1 %v10979_v17, %s11147_s18  ;;  %v10732_v42 = vunpack.i.l.bf16 %v19536_v13  ;;  %v17304_v11 = vpop.permute.xlu0 %10805  ;;  %v19542_v52 = vld [vmem:[#allocation123_spill] sm:$0xff]  ;;  %v19543_v44 = vld [vmem:[#allocation92_spill] sm:$0xff]  ;;  %v19546_v13 = vld [vmem:[#allocation93_spill] sm:$0xff] }
 0x68c   :  { %v8272_v30 = vmax.f32 %v19538_v10, %v10728_v26  ;;  %v8271_v63 = vmax.f32 %v19539_v2, %v10727_v24  ;;  %v10743_v47 = vunpack.i.h.bf16 %v19540_v14  ;;  %v10742_v21 = vunpack.i.l.bf16 %v19540_v14 }
 0x68d   :  { %v9309_v15 = vsel %vm8970_vm7, %v9308_v54, %v9307_v34  ;;  %v10738_v29 = vunpack.i.h.bf16 %v19541_v60  ;;  %v10737_v38 = vunpack.i.l.bf16 %v19541_v60  ;;  %v8274_v25 = vmax.f32 %v19542_v52, %v10733_v57  ;;  %v17315_v57 = vpop.permute.xlu1 %10810  ;;  %v19547_v54 = vld [vmem:[#allocation130_spill] sm:$0xff] }
 0x68e   :  { %v9310_v53 = vrot.slane %v8271_v63, 4  ;;  %v8277_v39 = vmax.f32 %v19543_v44, %v10742_v21  ;;  %v9302_v37 = vrot.slane %v17284_v16, 1  ;;  %v9300_v4 = vrot.slane %v8265_v3, 2 }
 0x68f   :  { %v9312_v22 = vrot.slane %v8272_v30, 3  ;;  %10990 = vrot.lane.b32.xlu1 %v10979_v17, %s11151_s26  ;;  %v8276_v45 = vmax.f32 %v19544_v8, %v10738_v29  ;;  %v9299_v9 = vsel %vm8976_vm9, %v9298_v6, %v9297_v23  ;;  %v8273_v12 = vmax.f32 %v19545_v1, %v10732_v42  ;;  %v17326_v14 = vpop.permute.xlu0 %10815  ;;  %v19549_v29 = vld [vmem:[#allocation105_spill] sm:$0xff] }
 0x690   :  { %v9311_v34 = vsel %vm8973_vm8, %v9310_v53, %v9309_v15  ;;  %v8278_v41 = vmax.f32 %v19546_v13, %v10743_v47  ;;  %v9320_v26 = vrot.slane %v8277_v39, 6  ;;  %v8275_v16 = vmax.f32 %v19547_v54, %v10737_v38  ;;  %v19548_v15 = vld [vmem:[#allocation100_spill] sm:$0xff]  ;;  %v19551_v39 = vld [vmem:[#allocation134_spill] sm:$0xff]  ;;  %v19553_v13 = vld [vmem:[#allocation139_spill] sm:$0xff] }
 0x691   :  { %v9318_v24 = vrot.slane %v8276_v45, 7  ;;  %v10747_v3 = vunpack.i.l.bf16 %v17047_v62  ;;  %v9316_v10 = vrot.slane %v8274_v25, 1  ;;  %v10753_v17 = vunpack.i.h.bf16 %v17080_v0  ;;  %v19550_v25 = vld [vmem:[#allocation143_spill] sm:$0xff]  ;;  %v17337_v1 = vpop.permute.xlu1 %10820 }
 0x692   :  { %v10763_v30 = vunpack.i.h.bf16 %v17142_v43  ;;  %v10762_v6 = vunpack.i.l.bf16 %v17142_v43  ;;  %v9313_v23 = vsel %vm8976_vm9, %v9312_v22, %v9311_v34  ;;  %v10748_v2 = vunpack.i.h.bf16 %v17047_v62 }
 0x693   :  { %v9319_v42 = vsel %vm8964_vm5, %v9318_v24, %v8275_v16  ;;  %v10758_v63 = vunpack.i.h.bf16 %v17105_v46  ;;  %v9314_v47 = vrot.slane %v8273_v12, 2  ;;  %v9322_v21 = vrot.slane %v8278_v41, 5  ;;  %v19552_v12 = vld [vmem:[#allocation138_spill] sm:$0xff] }
 0x694   :  { %v8279_v60 = vmax.f32 %v19548_v15, %v10747_v3  ;;  %v8285_v38 = vmax.f32 %v19549_v29, %v10762_v6  ;;  %v9321_v52 = vsel %vm8967_vm6, %v9320_v26, %v9319_v42  ;;  %v10752_v43 = vunpack.i.l.bf16 %v17080_v0  ;;  %v19554_v0 = vld [vmem:[#allocation148_spill] sm:$0xff]  ;;  %v17352_v6 = vpop.permute.xlu0 %10825 }
 0x695   :  { %v8284_v53 = vmax.f32 %v19550_v25, %v10758_v63  ;;  %v10757_v44 = vunpack.i.l.bf16 %v17105_v46  ;;  %v8286_v62 = vmax.f32 %v19551_v39, %v10763_v30  ;;  %v9301_v8 = vsel %vm8979_vm10, %v9300_v4, %v9299_v9 }
 0x696   :  { %v9334_v22 = vrot.slane %v8285_v38, 6  ;;  %v9315_v45 = vsel %vm8979_vm10, %v9314_v47, %v9313_v23  ;;  %v17340_v34 = vmax.f32 %v19552_v12, %v10753_v17  ;;  %v8280_v41 = vmax.f32 %v19553_v13, %v10748_v2  ;;  %v19556_v47 = vld [vmem:[#allocation110_spill] sm:$0xff] }
 0x697   :  { %v9332_v26 = vrot.slane %v8284_v53, 7  ;;  %v8283_v24 = vmax.f32 %v19554_v0, %v10757_v44  ;;  %v9323_v54 = vsel %vm8970_vm7, %v9322_v21, %v9321_v52  ;;  %v9324_v46 = vrot.slane %v8279_v60, 4  ;;  %v19557_v60 = vld [vmem:[#allocation135_spill] sm:$0xff]  ;;  %v17366_v53 = vpop.permute.xlu1 %10830  ;;  %v19562_v0 = vld [vmem:[#allocation152_spill] sm:$0xff] }
 0x698   :  { %v9303_v16 = vsel %vm8982_vm11, %v9302_v37, %v9301_v8  ;;  %v9317_v3 = vsel %vm8982_vm11, %v9316_v10, %v9315_v45  ;;  %v10768_v30 = vunpack.i.h.bf16 %v17171_v28  ;;  %v10767_v17 = vunpack.i.l.bf16 %v17171_v28  ;;  %v19555_v37 = vld [vmem:[#allocation113_spill] sm:$0xff]  ;;  %v19559_v45 = vld [vmem:[#allocation151_spill] sm:$0xff] }
 0x699   :  { %v9333_v4 = vsel %vm8964_vm5, %v9332_v26, %v8283_v24  ;;  %v17348_v9 = vpack.i.bf16 %v9317_v3, %v9303_v16  ;;  %v9336_v23 = vrot.slane %v8286_v62, 5  ;;  %v10773_v2 = vunpack.i.h.bf16 %v17207_v35  ;;  %v19558_v62 = vld [vmem:[#allocation109_spill] sm:$0xff]  ;;  %v17376_v16 = vpop.permute.xlu0 %10835 }
 0x69a   :  { %v9335_v42 = vsel %vm8967_vm6, %v9334_v22, %v9333_v4  ;;  %v10772_v63 = vunpack.i.l.bf16 %v17207_v35  ;;  %v8288_v10 = vmax.f32 %v19555_v37, %v10768_v30  ;;  %v8287_v21 = vmax.f32 %v19556_v47, %v10767_v17  ;;  %v19563_v4 = vld [vmem:[#allocation116_spill] sm:$0xff] }
 0x69b   :  { %10995 = vrot.lane.b32.xlu0 %v17348_v9, %s11147_s18  ;;  %v10783_v15 = vunpack.i.h.bf16 %v17245_v58  ;;  %v10782_v28 = vunpack.i.l.bf16 %v17245_v58  ;;  %v8281_v29 = vmax.f32 %v19557_v60, %v10752_v43  ;;  %v9326_v38 = vrot.slane %v8280_v41, 3  ;;  %v19560_v58 = vld [vmem:[#allocation117_spill] sm:$0xff]  ;;  %v19561_v43 = vld [vmem:[#allocation108_spill] sm:$0xff]  ;;  %v17386_v47 = vpop.permute.xlu1 %10840 }
 0x69c   :  { %v9337_v52 = vsel %vm8970_vm7, %v9336_v23, %v9335_v42  ;;  %v10778_v25 = vunpack.i.h.bf16 %v17229_v5  ;;  %v9325_v35 = vsel %vm8973_vm8, %v9324_v46, %v9323_v54  ;;  %v9338_v44 = vrot.slane %v8287_v21, 4  ;;  %v19564_v60 = vld [vmem:[#allocation121_spill] sm:$0xff] }
 0x69d   :  { %v10777_v39 = vunpack.i.l.bf16 %v17229_v5  ;;  %v8290_v22 = vmax.f32 %v19558_v62, %v10773_v2  ;;  %v9340_v8 = vrot.slane %v8288_v10, 3  ;;  %v8581_v12 = vmax.f32 %v19559_v45, %v10782_v28  ;;  %v17398_v45 = vpop.permute.xlu0 %10845 }
 0x69e   :  { %v8580_v13 = vmax.f32 %v19560_v58, %v10778_v25  ;;  %v8289_v41 = vmax.f32 %v19561_v43, %v10772_v63  ;;  %v9339_v26 = vsel %vm8973_vm8, %v9338_v44, %v9337_v52  ;;  %v8582_v24 = vmax.f32 %v19562_v0, %v10783_v15  ;;  %v19566_v25 = vld [vmem:[#allocation125_spill] sm:$0xff] }
 0x69f   :  { %v9330_v54 = vrot.slane %v17340_v34, 1  ;;  %v9328_v46 = vrot.slane %v8281_v29, 2  ;;  %v9327_v5 = vsel %vm8976_vm9, %v9326_v38, %v9325_v35  ;;  %v8579_v30 = vmax.f32 %v19563_v4, %v10777_v39  ;;  %v19565_v38 = vld [vmem:[#allocation48_spill] sm:$0xff]  ;;  %v19567_v39 = vld [vmem:[#allocation155_spill] sm:$0xff] }
 0x6a0   :  { %v9506_v3 = vrot.slane %v8580_v13, 7  ;;  %v10787_v17 = vunpack.i.l.bf16 %v17254_v19  ;;  %v10803_v23 = vunpack.i.h.bf16 %v17292_v49  ;;  %v10802_v42 = vunpack.i.l.bf16 %v17292_v49  ;;  %v19568_v13 = vld [vmem:[#allocation124_spill] sm:$0xff] }
 0x6a1   :  { %v9344_v2 = vrot.slane %v8290_v22, 1  ;;  %v9341_v63 = vsel %vm8976_vm9, %v9340_v8, %v9339_v26  ;;  %v9508_v37 = vrot.slane %v8581_v12, 6  ;;  %v10798_v10 = vunpack.i.h.bf16 %v17278_v50  ;;  %v19569_v26 = vld [vmem:[#allocation150_spill] sm:$0xff] }
 0x6a2   :  { %v9342_v34 = vrot.slane %v8289_v41, 2  ;;  %v9510_v21 = vrot.slane %v8582_v24, 5  ;;  %v9507_v15 = vsel %vm8964_vm5, %v9506_v3, %v8579_v30  ;;  %v10788_v28 = vunpack.i.h.bf16 %v17254_v19  ;;  %v17410_v30 = vpop.permute.xlu1 %10850 }
 0x6a3   :  { %v8583_v29 = vmax.f32 %v19564_v60, %v10787_v17  ;;  %v8589_v52 = vmax.f32 %v19565_v38, %v10802_v42  ;;  %v8588_v49 = vmax.f32 %v19566_v25, %v10798_v10  ;;  %v10797_v35 = vunpack.i.l.bf16 %v17278_v50 }
 0x6a4   :  { %v10793_v44 = vunpack.i.h.bf16 %v17268_v27  ;;  %v8590_v62 = vmax.f32 %v19567_v39, %v10803_v23  ;;  %v9329_v22 = vsel %vm8979_vm10, %v9328_v46, %v9327_v5  ;;  %v9343_v8 = vsel %vm8979_vm10, %v9342_v34, %v9341_v63  ;;  %v19570_v63 = vld [vmem:[#allocation156_spill] sm:$0xff]  ;;  %v19574_v39 = vld [vmem:[#allocation133_spill] sm:$0xff] }
 0x6a5   :  { %v9509_v19 = vsel %vm8967_vm6, %v9508_v37, %v9507_v15  ;;  %v9522_v12 = vrot.slane %v8589_v52, 6  ;;  %v9520_v58 = vrot.slane %v8588_v49, 7  ;;  %v8587_v43 = vmax.f32 %v19568_v13, %v10797_v35  ;;  %v19571_v34 = vld [vmem:[#allocation120_spill] sm:$0xff] }
 0x6a6   :  { %v10792_v41 = vunpack.i.l.bf16 %v17268_v27  ;;  %v8584_v50 = vmax.f32 %v19569_v26, %v10788_v28  ;;  %v9331_v0 = vsel %vm8982_vm11, %v9330_v54, %v9329_v22  ;;  %v9345_v24 = vsel %vm8982_vm11, %v9344_v2, %v9343_v8  ;;  %v19572_v28 = vld [vmem:[#allocation129_spill] sm:$0xff]  ;;  %v19577_v13 = vld [vmem:[#allocation64_spill] sm:$0xff] }
 0x6a7   :  { %v9512_v3 = vrot.slane %v8583_v29, 4  ;;  %v9521_v46 = vsel %vm8964_vm5, %v9520_v58, %v8587_v43  ;;  %v17407_v5 = vpack.i.bf16 %v9345_v24, %v9331_v0  ;;  %v10808_v4 = vunpack.i.h.bf16 %v17304_v11  ;;  %v17424_v29 = vpop.permute.xlu0 %10855 }
 0x6a8   :  { %v9511_v17 = vsel %vm8970_vm7, %v9510_v21, %v9509_v19  ;;  %v9524_v23 = vrot.slane %v8590_v62, 5  ;;  %v9523_v27 = vsel %vm8967_vm6, %v9522_v12, %v9521_v46  ;;  %v10807_v42 = vunpack.i.l.bf16 %v17304_v11  ;;  %v19573_v11 = vld [vmem:[#allocation153_spill] sm:$0xff] }
 0x6a9   :  { %11000 = vrot.lane.b32.xlu1 %v17407_v5, %s11147_s18  ;;  %v10813_v54 = vunpack.i.h.bf16 %v17315_v57  ;;  %v10812_v2 = vunpack.i.l.bf16 %v17315_v57  ;;  %v8592_v37 = vmax.f32 %v19570_v63, %v10808_v4  ;;  %v10822_v10 = vunpack.i.l.bf16 %v17337_v1  ;;  %v19576_v19 = vld [vmem:[#allocation13_spill] sm:$0xff]  ;;  %v19578_v4 = vld [vmem:[#allocation58_spill] sm:$0xff] }
 0x6aa   :  { %v8586_v15 = vmax.f32 %v19571_v34, %v10793_v44  ;;  %v8591_v21 = vmax.f32 %v19572_v28, %v10807_v42  ;;  %v10818_v60 = vunpack.i.h.bf16 %v17326_v14  ;;  %v8585_v38 = vmax.f32 %v19573_v11, %v10792_v41  ;;  %v19575_v44 = vld [vmem:[#allocation128_spill] sm:$0xff]  ;;  %v17435_v41 = vpop.permute.xlu1 %10860  ;;  %v19580_v34 = vld [vmem:[#allocation15_spill] sm:$0xff] }
 0x6ab   :  { %v9514_v52 = vrot.slane %v8584_v50, 3  ;;  %v9513_v25 = vsel %vm8973_vm8, %v9512_v3, %v9511_v17  ;;  %v9525_v49 = vsel %vm8970_vm7, %v9524_v23, %v9523_v27  ;;  %v9528_v57 = vrot.slane %v8592_v37, 3  ;;  %v17444_v27 = vpop.permute.xlu0 %10865  ;;  %v19581_v11 = vld [vmem:[#allocation160_spill] sm:$0xff] }
 0x6ac   :  { %v9526_v35 = vrot.slane %v8591_v21, 4  ;;  %v8596_v62 = vmax.f32 %v19574_v39, %v10818_v60  ;;  %v10817_v22 = vunpack.i.l.bf16 %v17326_v14  ;;  %v8594_v8 = vmax.f32 %v19575_v44, %v10813_v54  ;;  %v19583_v39 = vld [vmem:[#allocation140_spill] sm:$0xff] }
 0x6ad   :  { %v8593_v12 = vmax.f32 %v19576_v19, %v10812_v2  ;;  %v10823_v58 = vunpack.i.h.bf16 %v17337_v1  ;;  %v8597_v43 = vmax.f32 %v19577_v13, %v10822_v10  ;;  %v9518_v0 = vrot.slane %v8586_v15, 1  ;;  %v19579_v2 = vld [vmem:[#allocation132_spill] sm:$0xff]  ;;  %v19584_v19 = vld [vmem:[#allocation163_spill] sm:$0xff] }
 0x6ae   :  { %v9527_v26 = vsel %vm8973_vm8, %v9526_v35, %v9525_v49  ;;  %v9534_v50 = vrot.slane %v8596_v62, 7  ;;  %v9516_v24 = vrot.slane %v8585_v38, 2  ;;  %v9515_v3 = vsel %vm8976_vm9, %v9514_v52, %v9513_v25  ;;  %v17455_v25 = vpop.permute.xlu1 %10870 }
 0x6af   :  { %v10827_v46 = vunpack.i.l.bf16 %v17352_v6  ;;  %v9529_v14 = vsel %vm8976_vm9, %v9528_v57, %v9527_v26  ;;  %v8595_v17 = vmax.f32 %v19578_v4, %v10817_v22  ;;  %v10843_v23 = vunpack.i.h.bf16 %v17386_v47  ;;  %v19582_v57 = vld [vmem:[#allocation164_spill] sm:$0xff] }
 0x6b0   :  { %v10842_v1 = vunpack.i.l.bf16 %v17386_v47  ;;  %v9532_v42 = vrot.slane %v8594_v8, 1  ;;  %v9530_v54 = vrot.slane %v8593_v12, 2  ;;  %v8598_v63 = vmax.f32 %v19579_v2, %v10823_v58  ;;  %v19587_v2 = vld [vmem:[#allocation145_spill] sm:$0xff] }
 0x6b1   :  { %v9536_v37 = vrot.slane %v8597_v43, 6  ;;  %v9535_v10 = vsel %vm8964_vm5, %v9534_v50, %v8595_v17  ;;  %v10838_v28 = vunpack.i.h.bf16 %v17376_v16  ;;  %v10837_v21 = vunpack.i.l.bf16 %v17376_v16  ;;  %v17467_v43 = vpop.permute.xlu0 %10875  ;;  %v19585_v50 = vld [vmem:[#allocation159_spill] sm:$0xff] }
 0x6b2   :  { %v8605_v15 = vmax.f32 %v19580_v34, %v10842_v1  ;;  %v10828_v60 = vunpack.i.h.bf16 %v17352_v6  ;;  %v8599_v38 = vmax.f32 %v19581_v11, %v10827_v46  ;;  %v9517_v47 = vsel %vm8979_vm10, %v9516_v24, %v9515_v3  ;;  %v19586_v17 = vld [vmem:[#allocation67_spill] sm:$0xff] }
 0x6b3   :  { %v9531_v52 = vsel %vm8979_vm10, %v9530_v54, %v9529_v14  ;;  %v10832_v49 = vunpack.i.l.bf16 %v17366_v53  ;;  %v8606_v35 = vmax.f32 %v19582_v57, %v10843_v23  ;;  %v8604_v62 = vmax.f32 %v19583_v39, %v10838_v28  ;;  %v19590_v57 = vld [vmem:[#allocation137_spill] sm:$0xff] }
 0x6b4   :  { %v9537_v22 = vsel %vm8967_vm6, %v9536_v37, %v9535_v10  ;;  %v9550_v44 = vrot.slane %v8605_v15, 6  ;;  %v9519_v16 = vsel %vm8982_vm11, %v9518_v0, %v9517_v47  ;;  %v9533_v6 = vsel %vm8982_vm11, %v9532_v42, %v9531_v52  ;;  %v17480_v37 = vpop.permute.xlu1 %10880 }
 0x6b5   :  { %v9548_v8 = vrot.slane %v8604_v62, 7  ;;  %v8603_v12 = vmax.f32 %v19584_v19, %v10837_v21  ;;  %v17464_v58 = vpack.i.bf16 %v9533_v6, %v9519_v16  ;;  %v10848_v13 = vunpack.i.h.bf16 %v17398_v45  ;;  %v17488_v52 = vpop.permute.xlu0 %10885  ;;  %v19592_v6 = vld [vmem:[#allocation66_spill] sm:$0xff] }
 0x6b6   :  { %v9538_v26 = vrot.slane %v8598_v63, 5  ;;  %v8600_v24 = vmax.f32 %v19585_v50, %v10828_v60  ;;  %v9540_v3 = vrot.slane %v8599_v38, 4  ;;  %v10847_v46 = vunpack.i.l.bf16 %v17398_v45  ;;  %v19588_v60 = vld [vmem:[#allocation136_spill] sm:$0xff]  ;;  %v19589_v38 = vld [vmem:[#allocation45_spill] sm:$0xff] }
 0x6b7   :  { %v9552_v14 = vrot.slane %v8606_v35, 5  ;;  %v9549_v0 = vsel %vm8964_vm5, %v9548_v8, %v8603_v12  ;;  %11005 = vrot.lane.b32.xlu0 %v17464_v58, %s11147_s18  ;;  %v10852_v4 = vunpack.i.l.bf16 %v17410_v30  ;;  %v8608_v23 = vmax.f32 %v19586_v17, %v10848_v13 }
 0x6b8   :  { %v10833_v1 = vunpack.i.h.bf16 %v17366_v53  ;;  %v9539_v42 = vsel %vm8970_vm7, %v9538_v26, %v9537_v22  ;;  %v9551_v54 = vsel %vm8967_vm6, %v9550_v44, %v9549_v0  ;;  %v8607_v63 = vmax.f32 %v19587_v2, %v10847_v46  ;;  %v10891_v8 = vpop.permute.xlu1 %10890  ;;  %v19593_v46 = vld [vmem:[#allocation147_spill] sm:$0xff]  ;;  %v19594_v2 = vld [vmem:[#allocation165_spill] sm:$0xff] }
 0x6b9   :  { %v10853_v45 = vunpack.i.h.bf16 %v17410_v30  ;;  %v9553_v10 = vsel %vm8970_vm7, %v9552_v14, %v9551_v54  ;;  %v9542_v34 = vrot.slane %v8600_v24, 3  ;;  %v9556_v15 = vrot.slane %v8608_v23, 3  ;;  %v19591_v30 = vld [vmem:[#allocation144_spill] sm:$0xff]  ;;  %v17503_v17 = vpop.permute.xlu0 %10895 }
 0x6ba   :  { %v9554_v28 = vrot.slane %v8607_v63, 4  ;;  %v10858_v21 = vunpack.i.h.bf16 %v17424_v29  ;;  %v8601_v11 = vmax.f32 %v19588_v60, %v10832_v49  ;;  %v9541_v53 = vsel %vm8973_vm8, %v9540_v3, %v9539_v42 }
 0x6bb   :  { %v8609_v47 = vmax.f32 %v19589_v38, %v10852_v4  ;;  %v8602_v35 = vmax.f32 %v19590_v57, %v10833_v1  ;;  %v8610_v62 = vmax.f32 %v19591_v30, %v10853_v45  ;;  %v10862_v22 = vunpack.i.l.bf16 %v17435_v41  ;;  %v19595_v45 = vld [vmem:[#allocation154_spill] sm:$0xff]  ;;  %v19597_v38 = vld [vmem:[#allocation60_spill] sm:$0xff] }
 0x6bc   :  { %v9555_v39 = vsel %vm8973_vm8, %v9554_v28, %v9553_v10  ;;  %v9543_v44 = vsel %vm8976_vm9, %v9542_v34, %v9541_v53  ;;  %v8900_v49 = vmax.f32 %v19592_v6, %v10858_v21  ;;  %v9544_v19 = vrot.slane %v8601_v11, 2  ;;  %v19596_v28 = vld [vmem:[#allocation149_spill] sm:$0xff] }
 0x6bd   :  { %v9557_v16 = vsel %vm8976_vm9, %v9556_v15, %v9555_v39  ;;  %v9558_v12 = vrot.slane %v8609_v47, 2  ;;  %v9546_v13 = vrot.slane %v8602_v35, 1  ;;  %v10863_v26 = vunpack.i.h.bf16 %v17435_v41  ;;  %v10901_v15 = vpop.permute.xlu1 %10900  ;;  %v19598_v39 = vld [vmem:[#allocation70_spill] sm:$0xff] }
 0x6be   :  { %v10857_v50 = vunpack.i.l.bf16 %v17424_v29  ;;  %v10878_v24 = vunpack.i.h.bf16 %v17467_v43  ;;  %v9560_v3 = vrot.slane %v8610_v62, 1  ;;  %v8901_v14 = vmax.f32 %v19593_v46, %v10862_v22  ;;  %v19599_v22 = vld [vmem:[#allocation49_spill] sm:$0xff] }
 0x6bf   :  { %v9545_v0 = vsel %vm8979_vm10, %v9544_v19, %v9543_v44  ;;  %v9559_v4 = vsel %vm8979_vm10, %v9558_v12, %v9557_v16  ;;  %v9722_v23 = vrot.slane %v8900_v49, 7  ;;  %v10872_v1 = vunpack.i.l.bf16 %v17455_v25  ;;  %v10906_v16 = vpop.permute.xlu0 %10905  ;;  %v19600_v12 = vld [vmem:[#allocation51_spill] sm:$0xff] }
 0x6c0   :  { %v10867_v42 = vunpack.i.l.bf16 %v17444_v27  ;;  %v10882_v41 = vunpack.i.l.bf16 %v17480_v37  ;;  %v9547_v29 = vsel %vm8982_vm11, %v9546_v13, %v9545_v0  ;;  %v9561_v54 = vsel %vm8982_vm11, %v9560_v3, %v9559_v4  ;;  %v19603_v0 = vld [vmem:[#allocation29_spill] sm:$0xff] }
 0x6c1   :  { %v8899_v63 = vmax.f32 %v19594_v2, %v10857_v50  ;;  %v8908_v10 = vmax.f32 %v19595_v45, %v10878_v24  ;;  %v17512_v34 = vpack.i.bf16 %v9561_v54, %v9547_v29  ;;  %v8902_v21 = vmax.f32 %v19596_v28, %v10863_v26  ;;  %v19601_v26 = vld [vmem:[#allocation12_spill] sm:$0xff]  ;;  %v19602_v24 = vld [vmem:[#allocation21_spill] sm:$0xff]  ;;  %v10911_v46 = vpop.permute.xlu1 %10910  ;;  %v19605_v2 = vld [vmem:[#allocation11_spill] sm:$0xff] }
 0x6c2   :  { %v9724_v60 = vrot.slane %v8901_v14, 6  ;;  %v10873_v11 = vunpack.i.h.bf16 %v17455_v25  ;;  %v17518_v47 = vmax.f32 %v19597_v38, %v10872_v1  ;;  %v10868_v57 = vunpack.i.h.bf16 %v17444_v27  ;;  %v19604_v29 = vld [vmem:[#allocation24_spill] sm:$0xff] }
 0x6c3   :  { %v9723_v53 = vsel %vm8964_vm5, %v9722_v23, %v8899_v63  ;;  %v10877_v35 = vunpack.i.l.bf16 %v17467_v43  ;;  %11010 = vrot.lane.b32.xlu1 %v17512_v34, %s11147_s18  ;;  %v8903_v30 = vmax.f32 %v19598_v39, %v10867_v42  ;;  %v10883_v62 = vunpack.i.h.bf16 %v17480_v37 }
 0x6c4   :  { %v8909_v44 = vmax.f32 %v19599_v22, %v10882_v41  ;;  %v9736_v25 = vrot.slane %v8908_v10, 7  ;;  %v10893_v6 = vunpack.i.h.bf16 %v10891_v8  ;;  %v9726_v49 = vrot.slane %v8902_v21, 5 }
 0x6c5   :  { %v9725_v19 = vsel %vm8967_vm6, %v9724_v60, %v9723_v53  ;;  %v17529_v13 = vmax.f32 %v19600_v12, %v10873_v11  ;;  %v10892_v27 = vunpack.i.l.bf16 %v10891_v8  ;;  %v9732_v43 = vrot.slane %v17518_v47, 2  ;;  %v19606_v11 = vld [vmem:[#allocation170_spill] sm:$0xff] }
 0x6c6   :  { %v8904_v50 = vmax.f32 %v19601_v26, %v10868_v57  ;;  %v8907_v3 = vmax.f32 %v19602_v24, %v10877_v35  ;;  %v10897_v37 = vunpack.i.l.bf16 %v17503_v17  ;;  %v9728_v14 = vrot.slane %v8903_v30, 4 }
 0x6c7   :  { %v8910_v4 = vmax.f32 %v19603_v0, %v10883_v62  ;;  %v9738_v23 = vrot.slane %v8909_v44, 6  ;;  %v10902_v1 = vunpack.i.l.bf16 %v10901_v15  ;;  %v9727_v42 = vsel %vm8970_vm7, %v9726_v49, %v9725_v19  ;;  %v10916_v21 = vpop.permute.xlu0 %10915  ;;  %v19607_v62 = vld [vmem:[#allocation35_spill] sm:$0xff] }
 0x6c8   :  { %v9737_v41 = vsel %vm8964_vm5, %v9736_v25, %v8907_v3  ;;  %v8924_v8 = vmax.f32 %v19604_v29, %v10893_v6  ;;  %v10888_v54 = vunpack.i.h.bf16 %v17488_v52  ;;  %v8916_v63 = vmax.f32 %v19605_v2, %v10892_v27  ;;  %v19608_v25 = vld [vmem:[#allocation166_spill] sm:$0xff]  ;;  %v19609_v19 = vld [vmem:[#allocation27_spill] sm:$0xff]  ;;  %v19610_v27 = vld [vmem:[#allocation157_spill] sm:$0xff] }
 0x6c9   :  { %v10887_v45 = vunpack.i.l.bf16 %v17488_v52  ;;  %v10903_v10 = vunpack.i.h.bf16 %v10901_v15  ;;  %v10898_v28 = vunpack.i.h.bf16 %v17503_v17  ;;  %v9730_v60 = vrot.slane %v8904_v50, 3  ;;  %v10921_v15 = vpop.permute.xlu1 %10920  ;;  %v19611_v50 = vld [vmem:[#allocation158_spill] sm:$0xff] }
 0x6ca   :  { %v8917_v53 = vmax.f32 %v19606_v11, %v10897_v37  ;;  %v10912_v38 = vunpack.i.l.bf16 %v10911_v46  ;;  %v10907_v57 = vunpack.i.l.bf16 %v10906_v16  ;;  %v9729_v35 = vsel %vm8973_vm8, %v9728_v14, %v9727_v42  ;;  %v19612_v14 = vld [vmem:[#allocation52_spill] sm:$0xff]  ;;  %v19616_v11 = vld [vmem:[#allocation46_spill] sm:$0xff] }
 0x6cb   :  { %v9740_v39 = vrot.slane %v8910_v4, 5  ;;  %v9739_v30 = vsel %vm8967_vm6, %v9738_v23, %v9737_v41  ;;  %v8915_v22 = vmax.f32 %v19607_v62, %v10902_v1  ;;  %v9764_v44 = vrot.slane %v8924_v8, 7  ;;  %v19613_v4 = vld [vmem:[#allocation17_spill] sm:$0xff] }
 0x6cc   :  { %v8912_v6 = vmax.f32 %v19608_v25, %v10888_v54  ;;  %v10908_v52 = vunpack.i.h.bf16 %v10906_v16  ;;  %v10917_v49 = vunpack.i.l.bf16 %v10916_v21  ;;  %v9750_v17 = vrot.slane %v8916_v63, 7  ;;  %v19614_v16 = vld [vmem:[#allocation161_spill] sm:$0xff] }
 0x6cd   :  { %v8911_v12 = vmax.f32 %v19609_v19, %v10887_v45  ;;  %v8918_v26 = vmax.f32 %v19610_v27, %v10903_v10  ;;  %v8925_v24 = vmax.f32 %v19611_v50, %v10898_v28  ;;  %v9752_v3 = vrot.slane %v8917_v53, 6  ;;  %v19615_v54 = vld [vmem:[#allocation173_spill] sm:$0xff] }
 0x6ce   :  { %v10913_v37 = vunpack.i.h.bf16 %v10911_v46  ;;  %v8919_v0 = vmax.f32 %v19612_v14, %v10912_v38  ;;  %v8923_v23 = vmax.f32 %v19613_v4, %v10907_v57  ;;  %v9751_v1 = vsel %vm8964_vm5, %v9750_v17, %v8915_v22  ;;  %v19617_v22 = vld [vmem:[#allocation61_spill] sm:$0xff] }
 0x6cf   :  { %v10923_v42 = vunpack.i.h.bf16 %v10921_v15  ;;  %v10922_v41 = vunpack.i.l.bf16 %v10921_v15  ;;  %v8926_v29 = vmax.f32 %v19614_v16, %v10908_v52  ;;  %v10918_v8 = vunpack.i.h.bf16 %v10916_v21  ;;  %v19618_v15 = vld [vmem:[#allocation162_spill] sm:$0xff] }
 0x6d0   :  { %v8920_v2 = vmax.f32 %v19615_v54, %v10917_v49  ;;  %v9741_v63 = vsel %vm8970_vm7, %v9740_v39, %v9739_v30  ;;  %v9742_v45 = vrot.slane %v8911_v12, 4  ;;  %v9754_v10 = vrot.slane %v8918_v26, 5  ;;  %v10931_v62 = vpop.permute.xlu1 %10930  ;;  %v19619_v30 = vld [vmem:[#allocation55_spill] sm:$0xff] }
 0x6d1   :  { %v9766_v28 = vrot.slane %v8925_v24, 6  ;;  %v9753_v46 = vsel %vm8967_vm6, %v9752_v3, %v9751_v1  ;;  %v8927_v53 = vmax.f32 %v19616_v11, %v10913_v37  ;;  %v9756_v38 = vrot.slane %v8919_v0, 4  ;;  %v19620_v24 = vld [vmem:[#allocation175_spill] sm:$0xff]  ;;  %v19621_v0 = vld [vmem:[#allocation69_spill] sm:$0xff] }
 0x6d2   :  { %v9765_v57 = vsel %vm8964_vm5, %v9764_v44, %v8923_v23  ;;  %v8921_v25 = vmax.f32 %v19617_v22, %v10923_v42  ;;  %v8913_v52 = vmax.f32 %v19618_v15, %v10922_v41  ;;  %v10933_v21 = vunpack.i.h.bf16 %v10931_v62 }
 0x6d3   :  { %v10932_v17 = vunpack.i.l.bf16 %v10931_v62  ;;  %v9731_v49 = vsel %vm8976_vm9, %v9730_v60, %v9729_v35  ;;  %v9768_v39 = vrot.slane %v8926_v29, 5  ;;  %v8928_v19 = vmax.f32 %v19619_v30, %v10918_v8  ;;  %v19622_v8 = vld [vmem:[#allocation33_spill] sm:$0xff] }
 0x6d4   :  { %v9758_v12 = vrot.slane %v8920_v2, 3  ;;  %v9744_v27 = vrot.slane %v8912_v6, 3  ;;  %v9755_v26 = vsel %vm8970_vm7, %v9754_v10, %v9753_v46  ;;  %v9767_v50 = vsel %vm8967_vm6, %v9766_v28, %v9765_v57  ;;  %v10926_v23 = vpop.permute.xlu0 %10925  ;;  %v19623_v2 = vld [vmem:[#allocation168_spill] sm:$0xff] }
 0x6d5   :  { %v8922_v44 = vmax.f32 %v19620_v24, %v10932_v17  ;;  %v9743_v3 = vsel %vm8973_vm8, %v9742_v45, %v9741_v63  ;;  %v9770_v37 = vrot.slane %v8927_v53, 4  ;;  %v9757_v14 = vsel %vm8973_vm8, %v9756_v38, %v9755_v26 }
 0x6d6   :  { %v8930_v4 = vmax.f32 %v19621_v0, %v10933_v21  ;;  %v9760_v60 = vrot.slane %v8921_v25, 2  ;;  %v9746_v35 = vrot.slane %v8913_v52, 2  ;;  %v10928_v1 = vunpack.i.h.bf16 %v10926_v23 }
 0x6d7   :  { %v10927_v42 = vunpack.i.l.bf16 %v10926_v23  ;;  %v9769_v6 = vsel %vm8970_vm7, %v9768_v39, %v9767_v50  ;;  %v9772_v41 = vrot.slane %v8928_v19, 3  ;;  %v9759_v16 = vsel %vm8976_vm9, %v9758_v12, %v9757_v14 }
 0x6d8   :  { %v9762_v29 = vrot.slane %v8922_v44, 1  ;;  %v8914_v54 = vmax.f32 %v19622_v8, %v10928_v1  ;;  %v9734_v45 = vrot.slane %v17529_v13, 1  ;;  %v9745_v10 = vsel %vm8976_vm9, %v9744_v27, %v9743_v3 }
 0x6d9   :  { %v8929_v63 = vmax.f32 %v19623_v2, %v10927_v42  ;;  %v9776_v28 = vrot.slane %v8930_v4, 1  ;;  %v9733_v46 = vsel %vm8979_vm10, %v9732_v43, %v9731_v49  ;;  %v9771_v11 = vsel %vm8973_vm8, %v9770_v37, %v9769_v6  ;;  %v10941_v49 = vpop.permute.xlu1 %10940 }
 0x6da   :  { %v9748_v53 = vrot.slane %v8914_v54, 1  ;;  %v9761_v57 = vsel %vm8979_vm10, %v9760_v60, %v9759_v16  ;;  %v9773_v62 = vsel %vm8976_vm9, %v9772_v41, %v9771_v11  ;;  %v9747_v22 = vsel %vm8979_vm10, %v9746_v35, %v9745_v10  ;;  %v10936_v17 = vpop.permute.xlu0 %10935  ;;  %v19624_v41 = vld [vmem:[#allocation167_spill] sm:$0xff] }
 0x6db   :  { %v9774_v38 = vrot.slane %v8929_v63, 2  ;;  %v9763_v25 = vsel %vm8982_vm11, %v9762_v29, %v9761_v57  ;;  %v9735_v13 = vsel %vm8982_vm11, %v9734_v45, %v9733_v46  ;;  %v10943_v24 = vunpack.i.h.bf16 %v10941_v49  ;;  %v19625_v29 = vld [vmem:[#allocation189_spill] sm:$0xff] }
 0x6dc   :  { %v9749_v15 = vsel %vm8982_vm11, %v9748_v53, %v9747_v22  ;;  %v10942_v44 = vunpack.i.l.bf16 %v10941_v49  ;;  %v10937_v3 = vunpack.i.l.bf16 %v10936_v17 }
 0x6dd   :  { %v9775_v47 = vsel %vm8979_vm10, %v9774_v38, %v9773_v62  ;;  %v11014_v52 = vpack.i.bf16 %v9749_v15, %v9735_v13  ;;  %v10951_v30 = vpop.permute.xlu1 %10950  ;;  %v9805_v16 = vsel %vm3651_vm1, %v19624_v41, %v10943_v24 }
 0x6de   :  { %v9777_v43 = vsel %vm8982_vm11, %v9776_v28, %v9775_v47  ;;  %v10953_v37 = vunpack.i.h.bf16 %v10951_v30  ;;  %v10952_v14 = vunpack.i.l.bf16 %v10951_v30  ;;  %v9804_v8 = vsel %vm3651_vm1, %v19625_v29, %v10942_v44 }
 0x6df   :  { %v11019_v21 = vpack.i.bf16 %v9777_v43, %v9763_v25  ;;  %11015 = vrot.lane.b32.xlu0 %v11014_v52, %s11147_s18  ;;  %v9802_v2 = vsel %vm3651_vm1, %v17022_v61, %v10937_v3 }
 0x6e0   :  { %v9817_v63 = vsel %vm3651_vm1, %v17055_v59, %v10953_v37  ;;  %v9816_v45 = vsel %vm3651_vm1, %v17064_v32, %v10952_v14 }
 0x6e1   :  { %11020 = vrot.lane.b32.xlu1 %v11019_v21, %s11147_s18  ;;  %v10946_v39 = vpop.permute.xlu0 %10945 }
 0x6e2   :  { %v10948_v0 = vunpack.i.h.bf16 %v10946_v39  ;;  %v10947_v4 = vunpack.i.l.bf16 %v10946_v39 }
 0x6e3   :  { %11025 = vrot.lane.b32.xlu0 %v17348_v9, %s11151_s26 }
 0x6e4   :  { %v9815_v10 = vsel %vm3651_vm1, %v17078_v18, %v10948_v0  ;;  %v9814_v28 = vsel %vm3651_vm1, %v17095_v55, %v10947_v4 }
 0x6e5   :  { %11030 = vrot.lane.b32.xlu1 %v17407_v5, %s11151_s26  ;;  %v10961_v12 = vpop.permute.xlu1 %10960 }
 0x6e6   :  { %v10963_v23 = vunpack.i.h.bf16 %v10961_v12  ;;  %v10962_v60 = vunpack.i.l.bf16 %v10961_v12 }
 0x6e7   :  { %11035 = vrot.lane.b32.xlu0 %v17464_v58, %s11151_s26 }
 0x6e8   :  { %v10956_v19 = vpop.permute.xlu0 %10955  ;;  %v17620_v46 = vsel %vm3651_vm1, %v17131_v31, %v10963_v23 }
 0x6e9   :  { %11040 = vrot.lane.b32.xlu1 %v17512_v34, %s11151_s26  ;;  %v10938_v34 = vunpack.i.h.bf16 %v10936_v17  ;;  %v10958_v1 = vunpack.i.h.bf16 %v10956_v19  ;;  %v10957_v42 = vunpack.i.l.bf16 %v10956_v19 }
 0x6eb   :  { %11045 = vrot.lane.b32.xlu0 %v11014_v52, %s11151_s26  ;;  %v10971_v27 = vpop.permute.xlu1 %10970  ;;  %v9803_v54 = vsel %vm3651_vm1, %v17042_v40, %v10938_v34  ;;  %v17624_v40 = vsel %vm3651_vm1, %v17126_v36, %v10962_v60  ;;  %v17630_v59 = vsel %vm3651_vm1, %v17152_v20, %v10958_v1  ;;  %v17634_v32 = vsel %vm3651_vm1, %v17147_v56, %v10957_v42 }
 0x6ec   :  { %v10973_v18 = vunpack.i.h.bf16 %v10971_v27  ;;  %v10972_v55 = vunpack.i.l.bf16 %v10971_v27 }
 0x6ed   :  { %11050 = vrot.lane.b32.xlu1 %v11019_v21, %s11151_s26 }
 0x6ee   :  { %v17600_v9 = vpop.permute.xlu0 %10965  ;;  %v9841_v56 = vsel %vm3651_vm1, %v17182_v33, %v10973_v18  ;;  %v9840_v43 = vsel %vm3651_vm1, %v17177_v7, %v10972_v55 }
 0x6ef   :  { %v10968_v21 = vunpack.i.h.bf16 %v17600_v9  ;;  %v10967_v17 = vunpack.i.l.bf16 %v17600_v9 }
 0x6f1   :  { %v9838_v18 = vsel %vm3651_vm1, %v17193_v48, %v10967_v17 }
 0x6f4   :  { %v10976_v5 = vpop.permute.xlu0 %10975 }
 0x6f5   :  { %v10978_v31 = vunpack.i.h.bf16 %v10976_v5  ;;  %v10977_v53 = vunpack.i.l.bf16 %v10976_v5 }
 0x6f7   :  { %v9807_v39 = vsel %vm3653_vm2, %v9803_v54, %v10978_v31  ;;  %v9806_v30 = vsel %vm3653_vm2, %v9802_v2, %v10977_v53 }
 0x6f8   :  { %v10986_v50 = vpop.permute.xlu0 %10985 }
 0x6f9   :  { %v10988_v36 = vunpack.i.h.bf16 %v10986_v50  ;;  %v10987_v62 = vunpack.i.l.bf16 %v10986_v50 }
 0x6fb   :  { %v9810_v27 = vsel %vm3655_vm3, %v9806_v30, %v10987_v62  ;;  %v9811_v33 = vsel %vm3655_vm3, %v9807_v39, %v10988_v36 }
 0x6fd   :  { %v10981_v26 = vpop.permute.xlu1 %10980 }
 0x6fe   :  { %v10983_v38 = vunpack.i.h.bf16 %v10981_v26  ;;  %v10982_v57 = vunpack.i.l.bf16 %v10981_v26 }
 0x700   :  { %v9809_v19 = vsel %vm3653_vm2, %v9805_v16, %v10983_v38  ;;  %v9808_v12 = vsel %vm3653_vm2, %v9804_v8, %v10982_v57 }
 0x701   :  { %v10991_v58 = vpop.permute.xlu1 %10990 }
 0x702   :  { %v10993_v22 = vunpack.i.h.bf16 %v10991_v58  ;;  %v10992_v25 = vunpack.i.l.bf16 %v10991_v58 }
 0x704   :  { %v9812_v5 = vsel %vm3655_vm3, %v9808_v12, %v10992_v25  ;;  %v9813_v7 = vsel %vm3655_vm3, %v9809_v19, %v10993_v22 }
 0x70d   :  { %v10996_v35 = vpop.permute.xlu0 %10995 }
 0x70e   :  { %v10998_v13 = vunpack.i.h.bf16 %v10996_v35  ;;  %v10997_v15 = vunpack.i.l.bf16 %v10996_v35 }
 0x710   :  { %v9819_v26 = vsel %vm3653_vm2, %v9815_v10, %v10998_v13  ;;  %v9818_v9 = vsel %vm3653_vm2, %v9814_v28, %v10997_v15 }
 0x71b   :  { %v11001_v6 = vpop.permute.xlu1 %11000 }
 0x71c   :  { %v11003_v20 = vunpack.i.h.bf16 %v11001_v6  ;;  %v11002_v47 = vunpack.i.l.bf16 %v11001_v6 }
 0x71e   :  { %v9821_v50 = vsel %vm3653_vm2, %v9817_v63, %v11003_v20  ;;  %v9820_v58 = vsel %vm3653_vm2, %v9816_v45, %v11002_v47 }
 0x729   :  { %v17626_v61 = vpop.permute.xlu0 %11005 }
 0x72a   :  { %v11008_v44 = vunpack.i.h.bf16 %v17626_v61  ;;  %v11007_v34 = vunpack.i.l.bf16 %v17626_v61  ;;  %v9839_v61 = vsel %vm3651_vm1, %v17202_v51, %v10968_v21 }
 0x72c   :  { %v9831_v31 = vsel %vm3653_vm2, %v17630_v59, %v11008_v44  ;;  %v9830_v53 = vsel %vm3653_vm2, %v17634_v32, %v11007_v34 }
 0x735   :  { %v17636_v11 = vpop.permute.xlu1 %11010 }
 0x736   :  { %v11013_v0 = vunpack.i.h.bf16 %v17636_v11  ;;  %v11012_v4 = vunpack.i.l.bf16 %v17636_v11 }
 0x738   :  { %v9833_v51 = vsel %vm3653_vm2, %v17620_v46, %v11013_v0  ;;  %v9832_v48 = vsel %vm3653_vm2, %v17624_v40, %v11012_v4 }
 0x751   :  { %v11016_v52 = vpop.permute.xlu0 %11015 }
 0x752   :  { %v11018_v35 = vunpack.i.h.bf16 %v11016_v52  ;;  %v11017_v1 = vunpack.i.l.bf16 %v11016_v52 }
 0x753   :  { %v11021_v49 = vpop.permute.xlu1 %11020 }
 0x754   :  { %v11023_v2 = vunpack.i.h.bf16 %v11021_v49  ;;  %v11022_v63 = vunpack.i.l.bf16 %v11021_v49  ;;  %v9843_v36 = vsel %vm3653_vm2, %v9839_v61, %v11018_v35  ;;  %v9842_v62 = vsel %vm3653_vm2, %v9838_v18, %v11017_v1 }
 0x755   :  { %v11026_v24 = vpop.permute.xlu0 %11025 }
 0x756   :  { %v11028_v3 = vunpack.i.h.bf16 %v11026_v24  ;;  %v11027_v37 = vunpack.i.l.bf16 %v11026_v24  ;;  %v9845_v59 = vsel %vm3653_vm2, %v9841_v56, %v11023_v2  ;;  %v9844_v25 = vsel %vm3653_vm2, %v9840_v43, %v11022_v63 }
 0x757   :  { %v11031_v14 = vpop.permute.xlu1 %11030 }
 0x758   :  { %v11033_v23 = vunpack.i.h.bf16 %v11031_v14  ;;  %v11032_v60 = vunpack.i.l.bf16 %v11031_v14  ;;  %v9822_v42 = vsel %vm3655_vm3, %v9818_v9, %v11027_v37  ;;  %v9823_v6 = vsel %vm3655_vm3, %v9819_v26, %v11028_v3 }
 0x759   :  { %v10273_v41 = vpack.c.bf16 %v9822_v42, %v9810_v27  ;;  %v10275_v16 = vpack.c.bf16 %v9823_v6, %v9811_v33  ;;  %v11036_v54 = vpop.permute.xlu0 %11035 }
 0x75a   :  { %v9824_v29 = vsel %vm3655_vm3, %v9820_v58, %v11032_v60  ;;  %v9825_v8 = vsel %vm3655_vm3, %v9821_v50, %v11033_v23  ;;  %v11038_v55 = vunpack.i.h.bf16 %v11036_v54  ;;  %v11037_v11 = vunpack.i.l.bf16 %v11036_v54 }
 0x75b   :  { %v10277_v45 = vpack.c.bf16 %v9824_v29, %v9812_v5  ;;  %v10279_v10 = vpack.c.bf16 %v9825_v8, %v9813_v7  ;;  %v11041_v28 = vpop.permute.xlu1 %11040  ;;  %9898 = vst [vmem:[#allocation7] sm:$0xff] %v10273_v41  ;;  %9900 = vst [vmem:[#allocation7 + $0x10] sm:$0xff] %v10275_v16 }
 0x75c   :  { %v11043_v38 = vunpack.i.h.bf16 %v11041_v28  ;;  %v11042_v57 = vunpack.i.l.bf16 %v11041_v28  ;;  %v9834_v20 = vsel %vm3655_vm3, %v9830_v53, %v11037_v11  ;;  %v9835_v47 = vsel %vm3655_vm3, %v9831_v31, %v11038_v55 }
 0x75d   :  { %9902 = vst [vmem:[#allocation7 + $0x20] sm:$0xff] %v10277_v45  ;;  %9904 = vst [vmem:[#allocation7 + $0x30] sm:$0xff] %v10279_v10  ;;  %v11046_v22 = vpop.permute.xlu0 %11045 }
 0x75e   :  { %v11048_v32 = vunpack.i.h.bf16 %v11046_v22  ;;  %v11047_v13 = vunpack.i.l.bf16 %v11046_v22  ;;  %v9836_v40 = vsel %vm3655_vm3, %v9832_v48, %v11042_v57  ;;  %v9837_v21 = vsel %vm3655_vm3, %v9833_v51, %v11043_v38 }
 0x75f   :  { %v11051_v15 = vpop.permute.xlu1 %11050 }
 0x760   :  { %v11053_v46 = vunpack.i.h.bf16 %v11051_v15  ;;  %v11052_v52 = vunpack.i.l.bf16 %v11051_v15  ;;  %v9846_v17 = vsel %vm3655_vm3, %v9842_v62, %v11047_v13  ;;  %v9847_v56 = vsel %vm3655_vm3, %v9843_v36, %v11048_v32 }
 0x761   :  { %v10274_v43 = vpack.c.bf16 %v9846_v17, %v9834_v20  ;;  %v10276_v49 = vpack.c.bf16 %v9847_v56, %v9835_v47 }
 0x762   :  { %v9848_v39 = vsel %vm3655_vm3, %v9844_v25, %v11052_v52  ;;  %v9849_v30 = vsel %vm3655_vm3, %v9845_v59, %v11053_v46 }
 0x763   :  { %v10278_v19 = vpack.c.bf16 %v9848_v39, %v9836_v40  ;;  %v10280_v12 = vpack.c.bf16 %v9849_v30, %v9837_v21  ;;  %9899 = vst [vmem:[#allocation7 + $0x8] sm:$0xff] %v10274_v43  ;;  %9901 = vst [vmem:[#allocation7 + $0x18] sm:$0xff] %v10276_v49 }
 0x765   :  { %9903 = vst [vmem:[#allocation7 + $0x28] sm:$0xff] %v10278_v19  ;;  %9905 = vst [vmem:[#allocation7 + $0x38] sm:$0xff] %v10280_v12 }
 0x766   :  { %11131 = shalt.err (!%p11128_p0)
}
 0x767   :  { %s11157_s7 = smov 256   ;;  %s11158_s8 = smov 16  }
 0x768   :  { %9917 = dma.vmem_to_hbm [thread:$0]  %s9912_s3, 1024, %s17695_s4, [#allocation4], %s11157_s7, %s11157_s7, %s11158_s8  }
 0x769   :  { %11144 = dma.done.wait [#allocation4], 1024  }
 0x76a   :  { %11145 = vsyncadd [#allocation4], 4294966272 }
 0x76b   :  { %9921 = vsyncpa [#allocation3], 1 }
 0x76c   :  { %9922 = vsyncpa [#allocation6], 1 }
 0x76d   :  { %9923 = vsyncpa [#allocation4], 1 }

</bundles_post_ra>
